<compile_context>
chip_gen: v5e
topology: v5e:2x2
jax: 0.10.0
libtpu: 0.0.40
codegen_flags: <defaults>
</compile_context>

<pallas_src>
import functools
import math

import jax
import jax.numpy as jnp
from jax import lax
from jax.experimental import pallas as pl
from jax.experimental.pallas import tpu as pltpu


# ----------------------------------------------------------------------------
# In-kernel building blocks (all matmuls: bf16 operands, f32 accumulation)
# ----------------------------------------------------------------------------
def _bf16(x):
    return x.astype(jnp.bfloat16)


def _dense(x, w, b=None):
    """x (N, K) f32, w (K, D) bf16 -> (N, D) f32."""
    y = jnp.dot(_bf16(x), w, preferred_element_type=jnp.float32)
    return y if b is None else y + b


def _heads_linear(x, w_h, b_h):
    """x (N, K) f32, w_h (H, K, dh) bf16, b_h (H, 1, dh) f32 -> (H, N, dh) f32."""
    h = w_h.shape[0]
    xb = jnp.broadcast_to(_bf16(x), (h,) + x.shape)
    y = lax.dot_general(xb, w_h, (((2,), (1,)), ((0,), (0,))),
                        preferred_element_type=jnp.float32)
    return y + b_h


def _attend(q3, k3, v3, valid_row3):
    """Batched-over-heads attention.

    q3 (H, Nt, dh), k3/v3 (H, Ns, dh) f32 (query already scaled/gated),
    valid_row3 (1, 1, Ns) bool -> (H, Nt, dh) f32.
    """
    s = lax.dot_general(_bf16(q3), _bf16(k3), (((2,), (2,)), ((0,), (0,))),
                        preferred_element_type=jnp.float32)
    # Large finite negative instead of -inf: identical softmax when a row has
    # at least one valid key, and no NaN if a row is fully masked.
    s = jnp.where(valid_row3, s, -1e30)
    m = jnp.max(s, axis=-1, keepdims=True)
    p = jnp.exp(s - m)
    attn = p * pl.reciprocal(jnp.sum(p, axis=-1, keepdims=True), approx=True)
    return lax.dot_general(_bf16(attn), _bf16(v3), (((2,), (1,)), ((0,), (0,))),
                           preferred_element_type=jnp.float32)


def _heads_project_sum(o3, w_out_h):
    """o3 (H, Nt, dh) f32, w_out_h (H, dh, D) bf16 -> (Nt, D) f32.

    Equivalent to concat(heads, axis=-1) @ W_out without materializing the
    concatenated (Nt, D) update.
    """
    y = lax.dot_general(_bf16(o3), w_out_h, (((2,), (1,)), ((0,), (0,))),
                        preferred_element_type=jnp.float32)
    return jnp.sum(y, axis=0)


def _inter_module(src, tgt, src_col3, src_row3, tgt_col3, p, scale):
    """OneSideInterModalityUpdate (src attends into tgt)."""
    k3 = _heads_linear(src, p['wk'], p['bk']) * src_col3
    v3 = _heads_linear(src, p['wv'], p['bv']) * src_col3
    q3 = _heads_linear(tgt, p['wq'], p['bq']) * tgt_col3
    o3 = _attend(q3 * scale, k3, v3, src_row3)
    # tgt_output(cat(tgt, upd)) == tgt @ W[:Dt] + upd @ W[Dt:] + b
    return _dense(tgt, p['wot']) + _heads_project_sum(o3, p['wou']) + p['bo']


def _intra_module(v, q, v_col2, v_col3, v_row3, q_col2, q_col3, q_row3, p, scale):
    """DyIntraModalityUpdate (gates algebraically factored)."""
    v_cnt = jnp.maximum(jnp.sum(v_col2, axis=0, keepdims=True), 1.0)  # guard /0
    q_cnt = jnp.maximum(jnp.sum(q_col2, axis=0, keepdims=True), 1.0)
    v_mean = jnp.sum(v * v_col2, axis=0, keepdims=True) * pl.reciprocal(v_cnt, approx=True)
    q_mean = jnp.sum(q * q_col2, axis=0, keepdims=True) * pl.reciprocal(q_cnt, approx=True)

    # v4q gate (from v_mean) is applied to q; q4v gate (from q_mean) to v.
    g_q = 1.0 + jax.nn.sigmoid(_heads_linear(v_mean, p['wg_to_q'], p['bg_to_q']))
    g_v = 1.0 + jax.nn.sigmoid(_heads_linear(q_mean, p['wg_to_v'], p['bg_to_v']))

    pv, pq = p['v'], p['q']
    vk3 = _heads_linear(v, pv['wk'], pv['bk']) * v_col3
    vq3 = _heads_linear(v, pv['wq'], pv['bq']) * v_col3
    vv3 = _heads_linear(v, pv['wv'], pv['bv']) * v_col3
    qk3 = _heads_linear(q, pq['wk'], pq['bk']) * q_col3
    qq3 = _heads_linear(q, pq['wq'], pq['bq']) * q_col3
    qv3 = _heads_linear(q, pq['wv'], pq['bv']) * q_col3

    # (g*q)·(g*k) == (g^2*q)·k  and  attn @ (g*v) == g ⊙ (attn @ v)
    vo3 = _attend(vq3 * (g_v * g_v * scale), vk3, vv3, v_row3) * g_v
    qo3 = _attend(qq3 * (g_q * g_q * scale), qk3, qv3, q_row3) * g_q

    # v_output(v + v_update) == v @ Wvo + v_update @ Wvo + b
    new_v = _dense(v, p['wvo_full']) + _heads_project_sum(vo3, p['wvo_h']) + p['bvo']
    new_q = _dense(q, p['wqo_full']) + _heads_project_sum(qo3, p['wqo_h']) + p['bqo']
    return new_v, new_q


def _multiblock_kernel(vlen_ref, qlen_ref, *refs, treedef, n_params,
                       num_obj, max_len, scale_inter, scale_intra):
    v_ref, q_ref = refs[0], refs[1]
    ov_ref, oq_ref = refs[2 + n_params], refs[3 + n_params]
    params = jax.tree_util.tree_unflatten(
        treedef, [r[...] for r in refs[2:2 + n_params]])

    b = pl.program_id(0)
    v_len = vlen_ref[b]
    q_len = qlen_ref[b]

    # Masks built in-kernel from prefetched lengths (prefix/length masks).
    v_col2 = (lax.broadcasted_iota(jnp.int32, (num_obj, 1), 0) < v_len).astype(jnp.float32)
    q_col2 = (lax.broadcasted_iota(jnp.int32, (max_len, 1), 0) < q_len).astype(jnp.float32)
    v_col3 = (lax.broadcasted_iota(jnp.int32, (1, num_obj, 1), 1) < v_len).astype(jnp.float32)
    q_col3 = (lax.broadcasted_iota(jnp.int32, (1, max_len, 1), 1) < q_len).astype(jnp.float32)
    v_row3 = lax.broadcasted_iota(jnp.int32, (1, 1, num_obj), 2) < v_len
    q_row3 = lax.broadcasted_iota(jnp.int32, (1, 1, max_len), 2) < q_len

    # Initial FCNet projections.
    v_cur = _dense(v_ref[0], params['v_in']['w'], params['v_in']['b'])
    q_cur = _dense(q_ref[0], params['q_in']['w'], params['q_in']['b'])

    sum_v, sum_q = v_cur, q_cur
    for blk in params['blocks']:                       # static Python loop
        q1 = _inter_module(v_cur, q_cur, v_col3, v_row3, q_col3,
                           blk['inter1'], scale_inter)
        v1 = _inter_module(q1 + q_cur, v_cur, q_col3, q_row3, v_col3,
                           blk['inter2'], scale_inter)
        v2, q2 = _intra_module(v1 + v_cur, q1 + q_cur,
                               v_col2, v_col3, v_row3,
                               q_col2, q_col3, q_row3,
                               blk['intra'], scale_intra)
        sum_v = sum_v + v1 + v2
        sum_q = sum_q + q1 + q2
        v_cur = v2 + v1 + v_cur
        q_cur = q2 + q1 + q_cur

    ov_ref[0] = sum_v
    oq_ref[0] = sum_q


# ----------------------------------------------------------------------------
# Host-side weight preparation (per-role / per-head splits, bf16 weights)
# ----------------------------------------------------------------------------
def _init_linear(key, in_size, out_size):
    # nn.Linear default init; weight_norm(dim=None) is forward-identical.
    kw, kb = jax.random.split(key)
    s = 1.0 / math.sqrt(in_size)
    return {'w': jax.random.uniform(kw, (in_size, out_size), jnp.float32, -s, s),
            'b': jax.random.uniform(kb, (1, out_size), jnp.float32, -s, s)}


def _split_heads_in(w, b, num_head):
    """(K, D)/(1, D) -> (H, K, dh) bf16 / (H, 1, dh) f32."""
    k, d = w.shape
    dh = d // num_head
    wh = jnp.transpose(w.reshape(k, num_head, dh), (1, 0, 2)).astype(jnp.bfloat16)
    bh = jnp.transpose(b.reshape(1, num_head, dh), (1, 0, 2)).astype(jnp.float32)
    return wh, bh


def _split_heads_out(w, num_head):
    """(D, Dout) with head-major rows -> (H, dh, Dout) bf16."""
    din, dout = w.shape
    dh = din // num_head
    return w.reshape(num_head, dh, dout).astype(jnp.bfloat16)


def _kernel_inter_params(p, d, num_head):
    wk, bk = _split_heads_in(p['src']['w'][:, :d], p['src']['b'][:, :d], num_head)
    wv, bv = _split_heads_in(p['src']['w'][:, d:], p['src']['b'][:, d:], num_head)
    wq, bq = _split_heads_in(p['tgt']['w'], p['tgt']['b'], num_head)
    w_out = p['out']['w']                      # (tgt_size + d, d)
    tgt_size = w_out.shape[0] - d
    return {'wk': wk, 'bk': bk, 'wv': wv, 'bv': bv, 'wq': wq, 'bq': bq,
            'wot': w_out[:tgt_size, :].astype(jnp.bfloat16),
            'wou': _split_heads_out(w_out[tgt_size:, :], num_head),
            'bo': p['out']['b'].astype(jnp.float32)}


def _kernel_intra_params(p, d, num_head):
    wg_to_q, bg_to_q = _split_heads_in(p['v4q_gate']['w'], p['v4q_gate']['b'], num_head)
    wg_to_v, bg_to_v = _split_heads_in(p['q4v_gate']['w'], p['q4v_gate']['b'], num_head)

    def split3(lin):
        out = {}
        for i, n in enumerate(('k', 'q', 'v')):        # original order: key, qry, val
            w, b = _split_heads_in(lin['w'][:, i * d:(i + 1) * d],
                                   lin['b'][:, i * d:(i + 1) * d], num_head)
            out['w' + n], out['b' + n] = w, b
        return out

    return {'wg_to_q': wg_to_q, 'bg_to_q': bg_to_q,
            'wg_to_v': wg_to_v, 'bg_to_v': bg_to_v,
            'v': split3(p['v_lin']), 'q': split3(p['q_lin']),
            'wvo_full': p['v_out']['w'].astype(jnp.bfloat16),
            'wvo_h': _split_heads_out(p['v_out']['w'], num_head),
            'bvo': p['v_out']['b'].astype(jnp.float32),
            'wqo_full': p['q_out']['w'].astype(jnp.bfloat16),
            'wqo_h': _split_heads_out(p['q_out']['w'], num_head),
            'bqo': p['q_out']['b'].astype(jnp.float32)}


def _const_index_map(ndim):
    def index_map(b, v_len_ref, q_len_ref):
        del b, v_len_ref, q_len_ref
        return (0,) * ndim
    return index_map


def _batch_index_map(b, v_len_ref, q_len_ref):
    del v_len_ref, q_len_ref
    return (b, 0, 0)


# ----------------------------------------------------------------------------
# Module
# ----------------------------------------------------------------------------
class MultiBlockPallas:
    """JAX/Pallas port of MultiBlock (drop=0.0 => dropout is identity)."""

    def __init__(self, num_block, v_size, q_size, output_size,
                 num_inter_head, num_intra_head, key, drop=0.0):
        self.num_block = num_block
        self.output_size = output_size
        self.num_inter_head = num_inter_head
        self.num_intra_head = num_intra_head
        D = output_size

        keys = jax.random.split(key, 2 + 12 * num_block)
        it = iter(keys)
        ref = {'v_lin': _init_linear(next(it), v_size, D),
               'q_lin': _init_linear(next(it), q_size, D),
               'blocks': []}
        for _ in range(num_block):
            inter1 = {'src': _init_linear(next(it), D, 2 * D),
                      'tgt': _init_linear(next(it), D, D),
                      'out': _init_linear(next(it), 2 * D, D)}
            inter2 = {'src': _init_linear(next(it), D, 2 * D),
                      'tgt': _init_linear(next(it), D, D),
                      'out': _init_linear(next(it), 2 * D, D)}
            intra = {'v4q_gate': _init_linear(next(it), D, D),
                     'q4v_gate': _init_linear(next(it), D, D),
                     'v_lin': _init_linear(next(it), D, 3 * D),
                     'q_lin': _init_linear(next(it), D, 3 * D),
                     'v_out': _init_linear(next(it), D, D),
                     'q_out': _init_linear(next(it), D, D)}
            ref['blocks'].append({'inter1': inter1, 'inter2': inter2, 'intra': intra})
        self.ref = ref                                   # canonical f32 params

        kparams = {
            'v_in': {'w': ref['v_lin']['w'].astype(jnp.bfloat16), 'b': ref['v_lin']['b']},
            'q_in': {'w': ref['q_lin']['w'].astype(jnp.bfloat16), 'b': ref['q_lin']['b']},
            'blocks': [
                {'inter1': _kernel_inter_params(blk['inter1'], D, num_inter_head),
                 'inter2': _kernel_inter_params(blk['inter2'], D, num_inter_head),
                 'intra': _kernel_intra_params(blk['intra'], D, num_intra_head)}
                for blk in ref['blocks']],
        }
        self._flat_params, self._treedef = jax.tree_util.tree_flatten(kparams)

    def __call__(self, v, q, v_mask, q_mask):
        B, No, v_size = v.shape
        _, Nq, q_size = q.shape
        D = self.output_size
        # NOTE: masks are assumed to be prefix (length-style) masks.
        v_len = jnp.sum(v_mask, axis=1).astype(jnp.int32)
        q_len = jnp.sum(q_mask, axis=1).astype(jnp.int32)

        kernel = functools.partial(
            _multiblock_kernel,
            treedef=self._treedef,
            n_params=len(self._flat_params),
            num_obj=No, max_len=Nq,
            scale_inter=1.0 / math.sqrt(D // self.num_inter_head),
            scale_intra=1.0 / math.sqrt(D // self.num_intra_head))

        param_specs = [pl.BlockSpec(a.shape, _const_index_map(a.ndim))
                       for a in self._flat_params]

        return pl.pallas_call(
            kernel,
            out_shape=(jax.ShapeDtypeStruct((B, No, D), jnp.float32),
                       jax.ShapeDtypeStruct((B, Nq, D), jnp.float32)),
            grid_spec=pltpu.PrefetchScalarGridSpec(
                num_scalar_prefetch=2,
                grid=(B,),
                in_specs=[pl.BlockSpec((1, No, v_size), _batch_index_map),
                          pl.BlockSpec((1, Nq, q_size), _batch_index_map),
                          *param_specs],
                out_specs=[pl.BlockSpec((1, No, D), _batch_index_map),
                           pl.BlockSpec((1, Nq, D), _batch_index_map)]),
            compiler_params=pltpu.CompilerParams(
                dimension_semantics=("parallel",)),
        )(v_len, q_len, v, q, *self._flat_params)


# ----------------------------------------------------------------------------
# Pure-JAX f32 reference (mirrors the PyTorch code) for validation
# ----------------------------------------------------------------------------
def _fc(x, p):
    return x @ p['w'] + p['b']


def _ref_inter(src, tgt, src_mask, tgt_mask, p, num_head, d):
    src_trans = _fc(src, p['src']) * src_mask[:, :, None]
    tgt_qry = _fc(tgt, p['tgt']) * tgt_mask[:, :, None]
    src_key, src_val = jnp.split(src_trans, 2, axis=2)
    dh = d // num_head
    ups = []
    for h in range(num_head):
        sl = slice(h * dh, (h + 1) * dh)
        s = jnp.einsum('btd,bsd->bts', tgt_qry[:, :, sl], src_key[:, :, sl]) / math.sqrt(dh)
        s = jnp.where(src_mask[:, None, :] == 0, -jnp.inf, s)
        ups.append(jnp.einsum('bts,bsd->btd', jax.nn.softmax(s, axis=2), src_val[:, :, sl]))
    tgt_update = jnp.concatenate(ups, axis=2)
    return _fc(jnp.concatenate([tgt, tgt_update], axis=2), p['out'])


def _ref_intra(v, q, v_mask, q_mask, p, num_head, d):
    v_mean = (v * v_mask[:, :, None]).sum(1) / v_mask.sum(1)[:, None]
    q_mean = (q * q_mask[:, :, None]).sum(1) / q_mask.sum(1)[:, None]
    v4q_gate = jax.nn.sigmoid(_fc(v_mean, p['v4q_gate']))[:, None, :]
    q4v_gate = jax.nn.sigmoid(_fc(q_mean, p['q4v_gate']))[:, None, :]
    v_trans = _fc(v, p['v_lin']) * v_mask[:, :, None]
    q_trans = _fc(q, p['q_lin']) * q_mask[:, :, None]
    v_key, v_qry, v_val = jnp.split(v_trans, 3, axis=2)
    q_key, q_qry, q_val = jnp.split(q_trans, 3, axis=2)
    gvq, gvk, gvv = (1 + q4v_gate) * v_qry, (1 + q4v_gate) * v_key, (1 + q4v_gate) * v_val
    gqq, gqk, gqv = (1 + v4q_gate) * q_qry, (1 + v4q_gate) * q_key, (1 + v4q_gate) * q_val
    dh = d // num_head
    v_ups, q_ups = [], []
    for h in range(num_head):
        sl = slice(h * dh, (h + 1) * dh)
        v2v = jnp.einsum('btd,bsd->bts', gvq[:, :, sl], gvk[:, :, sl]) / math.sqrt(dh)
        q2q = jnp.einsum('btd,bsd->bts', gqq[:, :, sl], gqk[:, :, sl]) / math.sqrt(dh)
        v2v = jnp.where(v_mask[:, None, :] == 0, -jnp.inf, v2v)
        q2q = jnp.where(q_mask[:, None, :] == 0, -jnp.inf, q2q)
        v_ups.append(jnp.einsum('bts,bsd->btd', jax.nn.softmax(v2v, 2), gvv[:, :, sl]))
        q_ups.append(jnp.einsum('bts,bsd->btd', jax.nn.softmax(q2q, 2), gqv[:, :, sl]))
    updated_v = _fc(v + jnp.concatenate(v_ups, 2), p['v_out'])
    updated_q = _fc(q + jnp.concatenate(q_ups, 2), p['q_out'])
    return updated_v, updated_q


def _reference_forward(params, v, q, v_mask, q_mask, num_inter_head, num_intra_head):
    D = params['v_lin']['w'].shape[1]
    v = _fc(v, params['v_lin'])
    q = _fc(q, params['q_lin'])
    v_container, q_container = [v], [q]
    result_v, result_q = [v], [q]
    for blk in params['blocks']:
        q1 = _ref_inter(v_container[-1], q_container[-1], v_mask, q_mask,
                        blk['inter1'], num_inter_head, D)
        q_container.append(q1)
        v1 = _ref_inter(q_container[-1] + q_container[-2], v_container[-1],
                        q_mask, v_mask, blk['inter2'], num_inter_head, D)
        v_container.append(v1)
        v2, q2 = _ref_intra(v_container[-1] + v_container[-2],
                            q_container[-1] + q_container[-2],
                            v_mask, q_mask, blk['intra'], num_intra_head, D)
        v_container.append(v2)
        q_container.append(q2)
        result_v += [v1, v2]
        result_q += [q1, q2]
        v_container.append(v_container[-1] + v_container[-2] + v_container[-3])
        q_container.append(q_container[-1] + q_container[-2] + q_container[-3])
    return sum(result_v), sum(result_q)


# ----------------------------------------------------------------------------
if __name__ == "__main__":
    key = jax.random.PRNGKey(0)
    kp, kv, kq = jax.random.split(key, 3)

    B, num_obj, max_len = 2, 6, 8
    v_size, q_size, output_size = 16, 24, 32
    num_inter_head, num_intra_head, num_block = 4, 2, 2

    model = MultiBlockPallas(num_block, v_size, q_size, output_size,
                             num_inter_head, num_intra_head, kp)

    v = jax.random.normal(kv, (B, num_obj, v_size), jnp.float32)
    q = jax.random.normal(kq, (B, max_len, q_size), jnp.float32)
    v_len = jnp.array([6, 4], jnp.int32)
    q_len = jnp.array([8, 5], jnp.int32)
    v_mask = (jnp.arange(num_obj)[None, :] < v_len[:, None]).astype(jnp.float32)
    q_mask = (jnp.arange(max_len)[None, :] < q_len[:, None]).astype(jnp.float32)

    out_v, out_q = model(v, q, v_mask, q_mask)
    out_v, out_q = jax.block_until_ready((out_v, out_q))

    ref_v, ref_q = _reference_forward(model.ref, v, q, v_mask, q_mask,
                                      num_inter_head, num_intra_head)

    assert out_v.shape == (B, num_obj, output_size)
    assert out_q.shape == (B, max_len, output_size)
    assert bool(jnp.all(jnp.isfinite(out_v))) and bool(jnp.all(jnp.isfinite(out_q)))
    # Kernel uses bf16 MXU operands (f32 accumulation) per the perf review, so
    # tolerances vs. the f32 reference are relaxed accordingly.
    assert jnp.allclose(out_v, ref_v, rtol=5e-2, atol=1e-1)
    assert jnp.allclose(out_q, ref_q, rtol=5e-2, atol=1e-1)

    print("KERNEL_OK")
</pallas_src>

<mosaic_0001>
module attributes {stable_mosaic.version = 11 : i64} {
  func.func @_multiblock_kernel(%arg0: i32, %arg1: memref<2xi32, #tpu.memory_space<smem>>, %arg2: memref<2xi32, #tpu.memory_space<smem>>, %arg3: memref<1x6x16xf32, #tpu.memory_space<vmem>>, %arg4: memref<1x8x24xf32, #tpu.memory_space<vmem>>, %arg5: memref<4x1x8xf32, #tpu.memory_space<vmem>>, %arg6: memref<1x32xf32, #tpu.memory_space<vmem>>, %arg7: memref<4x1x8xf32, #tpu.memory_space<vmem>>, %arg8: memref<4x1x8xf32, #tpu.memory_space<vmem>>, %arg9: memref<4x32x8xbf16, #tpu.memory_space<vmem>>, %arg10: memref<32x32xbf16, #tpu.memory_space<vmem>>, %arg11: memref<4x8x32xbf16, #tpu.memory_space<vmem>>, %arg12: memref<4x32x8xbf16, #tpu.memory_space<vmem>>, %arg13: memref<4x32x8xbf16, #tpu.memory_space<vmem>>, %arg14: memref<4x1x8xf32, #tpu.memory_space<vmem>>, %arg15: memref<1x32xf32, #tpu.memory_space<vmem>>, %arg16: memref<4x1x8xf32, #tpu.memory_space<vmem>>, %arg17: memref<4x1x8xf32, #tpu.memory_space<vmem>>, %arg18: memref<4x32x8xbf16, #tpu.memory_space<vmem>>, %arg19: memref<32x32xbf16, #tpu.memory_space<vmem>>, %arg20: memref<4x8x32xbf16, #tpu.memory_space<vmem>>, %arg21: memref<4x32x8xbf16, #tpu.memory_space<vmem>>, %arg22: memref<4x32x8xbf16, #tpu.memory_space<vmem>>, %arg23: memref<2x1x16xf32, #tpu.memory_space<vmem>>, %arg24: memref<2x1x16xf32, #tpu.memory_space<vmem>>, %arg25: memref<1x32xf32, #tpu.memory_space<vmem>>, %arg26: memref<1x32xf32, #tpu.memory_space<vmem>>, %arg27: memref<2x1x16xf32, #tpu.memory_space<vmem>>, %arg28: memref<2x1x16xf32, #tpu.memory_space<vmem>>, %arg29: memref<2x1x16xf32, #tpu.memory_space<vmem>>, %arg30: memref<2x32x16xbf16, #tpu.memory_space<vmem>>, %arg31: memref<2x32x16xbf16, #tpu.memory_space<vmem>>, %arg32: memref<2x32x16xbf16, #tpu.memory_space<vmem>>, %arg33: memref<2x1x16xf32, #tpu.memory_space<vmem>>, %arg34: memref<2x1x16xf32, #tpu.memory_space<vmem>>, %arg35: memref<2x1x16xf32, #tpu.memory_space<vmem>>, %arg36: memref<2x32x16xbf16, #tpu.memory_space<vmem>>, %arg37: memref<2x32x16xbf16, #tpu.memory_space<vmem>>, %arg38: memref<2x32x16xbf16, #tpu.memory_space<vmem>>, %arg39: memref<2x32x16xbf16, #tpu.memory_space<vmem>>, %arg40: memref<2x32x16xbf16, #tpu.memory_space<vmem>>, %arg41: memref<32x32xbf16, #tpu.memory_space<vmem>>, %arg42: memref<2x16x32xbf16, #tpu.memory_space<vmem>>, %arg43: memref<32x32xbf16, #tpu.memory_space<vmem>>, %arg44: memref<2x16x32xbf16, #tpu.memory_space<vmem>>, %arg45: memref<4x1x8xf32, #tpu.memory_space<vmem>>, %arg46: memref<1x32xf32, #tpu.memory_space<vmem>>, %arg47: memref<4x1x8xf32, #tpu.memory_space<vmem>>, %arg48: memref<4x1x8xf32, #tpu.memory_space<vmem>>, %arg49: memref<4x32x8xbf16, #tpu.memory_space<vmem>>, %arg50: memref<32x32xbf16, #tpu.memory_space<vmem>>, %arg51: memref<4x8x32xbf16, #tpu.memory_space<vmem>>, %arg52: memref<4x32x8xbf16, #tpu.memory_space<vmem>>, %arg53: memref<4x32x8xbf16, #tpu.memory_space<vmem>>, %arg54: memref<4x1x8xf32, #tpu.memory_space<vmem>>, %arg55: memref<1x32xf32, #tpu.memory_space<vmem>>, %arg56: memref<4x1x8xf32, #tpu.memory_space<vmem>>, %arg57: memref<4x1x8xf32, #tpu.memory_space<vmem>>, %arg58: memref<4x32x8xbf16, #tpu.memory_space<vmem>>, %arg59: memref<32x32xbf16, #tpu.memory_space<vmem>>, %arg60: memref<4x8x32xbf16, #tpu.memory_space<vmem>>, %arg61: memref<4x32x8xbf16, #tpu.memory_space<vmem>>, %arg62: memref<4x32x8xbf16, #tpu.memory_space<vmem>>, %arg63: memref<2x1x16xf32, #tpu.memory_space<vmem>>, %arg64: memref<2x1x16xf32, #tpu.memory_space<vmem>>, %arg65: memref<1x32xf32, #tpu.memory_space<vmem>>, %arg66: memref<1x32xf32, #tpu.memory_space<vmem>>, %arg67: memref<2x1x16xf32, #tpu.memory_space<vmem>>, %arg68: memref<2x1x16xf32, #tpu.memory_space<vmem>>, %arg69: memref<2x1x16xf32, #tpu.memory_space<vmem>>, %arg70: memref<2x32x16xbf16, #tpu.memory_space<vmem>>, %arg71: memref<2x32x16xbf16, #tpu.memory_space<vmem>>, %arg72: memref<2x32x16xbf16, #tpu.memory_space<vmem>>, %arg73: memref<2x1x16xf32, #tpu.memory_space<vmem>>, %arg74: memref<2x1x16xf32, #tpu.memory_space<vmem>>, %arg75: memref<2x1x16xf32, #tpu.memory_space<vmem>>, %arg76: memref<2x32x16xbf16, #tpu.memory_space<vmem>>, %arg77: memref<2x32x16xbf16, #tpu.memory_space<vmem>>, %arg78: memref<2x32x16xbf16, #tpu.memory_space<vmem>>, %arg79: memref<2x32x16xbf16, #tpu.memory_space<vmem>>, %arg80: memref<2x32x16xbf16, #tpu.memory_space<vmem>>, %arg81: memref<32x32xbf16, #tpu.memory_space<vmem>>, %arg82: memref<2x16x32xbf16, #tpu.memory_space<vmem>>, %arg83: memref<32x32xbf16, #tpu.memory_space<vmem>>, %arg84: memref<2x16x32xbf16, #tpu.memory_space<vmem>>, %arg85: memref<1x32xf32, #tpu.memory_space<vmem>>, %arg86: memref<24x32xbf16, #tpu.memory_space<vmem>>, %arg87: memref<1x32xf32, #tpu.memory_space<vmem>>, %arg88: memref<16x32xbf16, #tpu.memory_space<vmem>>, %arg89: memref<1x6x32xf32, #tpu.memory_space<vmem>>, %arg90: memref<1x8x32xf32, #tpu.memory_space<vmem>>) attributes {dimension_semantics = [#tpu.dimension_semantics<parallel>], iteration_bounds = array<i64: 2>, scalar_prefetch = 2 : i64, scratch_operands = 0 : i64, tpu.core_type = #tpu.core_type<tc>, window_params = [{transform_indices = @transform_0, window_bounds = array<i64: 1, 6, 16>}, {transform_indices = @transform_1, window_bounds = array<i64: 1, 8, 24>}, {pipeline_mode = #tpu.pipeline_mode<synchronous>, transform_indices = @transform_2, window_bounds = array<i64: 4, 1, 8>}, {pipeline_mode = #tpu.pipeline_mode<synchronous>, transform_indices = @transform_3, window_bounds = array<i64: 1, 32>}, {pipeline_mode = #tpu.pipeline_mode<synchronous>, transform_indices = @transform_4, window_bounds = array<i64: 4, 1, 8>}, {pipeline_mode = #tpu.pipeline_mode<synchronous>, transform_indices = @transform_5, window_bounds = array<i64: 4, 1, 8>}, {pipeline_mode = #tpu.pipeline_mode<synchronous>, transform_indices = @transform_6, window_bounds = array<i64: 4, 32, 8>}, {pipeline_mode = #tpu.pipeline_mode<synchronous>, transform_indices = @transform_7, window_bounds = array<i64: 32, 32>}, {pipeline_mode = #tpu.pipeline_mode<synchronous>, transform_indices = @transform_8, window_bounds = array<i64: 4, 8, 32>}, {pipeline_mode = #tpu.pipeline_mode<synchronous>, transform_indices = @transform_9, window_bounds = array<i64: 4, 32, 8>}, {pipeline_mode = #tpu.pipeline_mode<synchronous>, transform_indices = @transform_10, window_bounds = array<i64: 4, 32, 8>}, {pipeline_mode = #tpu.pipeline_mode<synchronous>, transform_indices = @transform_11, window_bounds = array<i64: 4, 1, 8>}, {pipeline_mode = #tpu.pipeline_mode<synchronous>, transform_indices = @transform_12, window_bounds = array<i64: 1, 32>}, {pipeline_mode = #tpu.pipeline_mode<synchronous>, transform_indices = @transform_13, window_bounds = array<i64: 4, 1, 8>}, {pipeline_mode = #tpu.pipeline_mode<synchronous>, transform_indices = @transform_14, window_bounds = array<i64: 4, 1, 8>}, {pipeline_mode = #tpu.pipeline_mode<synchronous>, transform_indices = @transform_15, window_bounds = array<i64: 4, 32, 8>}, {pipeline_mode = #tpu.pipeline_mode<synchronous>, transform_indices = @transform_16, window_bounds = array<i64: 32, 32>}, {pipeline_mode = #tpu.pipeline_mode<synchronous>, transform_indices = @transform_17, window_bounds = array<i64: 4, 8, 32>}, {pipeline_mode = #tpu.pipeline_mode<synchronous>, transform_indices = @transform_18, window_bounds = array<i64: 4, 32, 8>}, {pipeline_mode = #tpu.pipeline_mode<synchronous>, transform_indices = @transform_19, window_bounds = array<i64: 4, 32, 8>}, {pipeline_mode = #tpu.pipeline_mode<synchronous>, transform_indices = @transform_20, window_bounds = array<i64: 2, 1, 16>}, {pipeline_mode = #tpu.pipeline_mode<synchronous>, transform_indices = @transform_21, window_bounds = array<i64: 2, 1, 16>}, {pipeline_mode = #tpu.pipeline_mode<synchronous>, transform_indices = @transform_22, window_bounds = array<i64: 1, 32>}, {pipeline_mode = #tpu.pipeline_mode<synchronous>, transform_indices = @transform_23, window_bounds = array<i64: 1, 32>}, {pipeline_mode = #tpu.pipeline_mode<synchronous>, transform_indices = @transform_24, window_bounds = array<i64: 2, 1, 16>}, {pipeline_mode = #tpu.pipeline_mode<synchronous>, transform_indices = @transform_25, window_bounds = array<i64: 2, 1, 16>}, {pipeline_mode = #tpu.pipeline_mode<synchronous>, transform_indices = @transform_26, window_bounds = array<i64: 2, 1, 16>}, {pipeline_mode = #tpu.pipeline_mode<synchronous>, transform_indices = @transform_27, window_bounds = array<i64: 2, 32, 16>}, {pipeline_mode = #tpu.pipeline_mode<synchronous>, transform_indices = @transform_28, window_bounds = array<i64: 2, 32, 16>}, {pipeline_mode = #tpu.pipeline_mode<synchronous>, transform_indices = @transform_29, window_bounds = array<i64: 2, 32, 16>}, {pipeline_mode = #tpu.pipeline_mode<synchronous>, transform_indices = @transform_30, window_bounds = array<i64: 2, 1, 16>}, {pipeline_mode = #tpu.pipeline_mode<synchronous>, transform_indices = @transform_31, window_bounds = array<i64: 2, 1, 16>}, {pipeline_mode = #tpu.pipeline_mode<synchronous>, transform_indices = @transform_32, window_bounds = array<i64: 2, 1, 16>}, {pipeline_mode = #tpu.pipeline_mode<synchronous>, transform_indices = @transform_33, window_bounds = array<i64: 2, 32, 16>}, {pipeline_mode = #tpu.pipeline_mode<synchronous>, transform_indices = @transform_34, window_bounds = array<i64: 2, 32, 16>}, {pipeline_mode = #tpu.pipeline_mode<synchronous>, transform_indices = @transform_35, window_bounds = array<i64: 2, 32, 16>}, {pipeline_mode = #tpu.pipeline_mode<synchronous>, transform_indices = @transform_36, window_bounds = array<i64: 2, 32, 16>}, {pipeline_mode = #tpu.pipeline_mode<synchronous>, transform_indices = @transform_37, window_bounds = array<i64: 2, 32, 16>}, {pipeline_mode = #tpu.pipeline_mode<synchronous>, transform_indices = @transform_38, window_bounds = array<i64: 32, 32>}, {pipeline_mode = #tpu.pipeline_mode<synchronous>, transform_indices = @transform_39, window_bounds = array<i64: 2, 16, 32>}, {pipeline_mode = #tpu.pipeline_mode<synchronous>, transform_indices = @transform_40, window_bounds = array<i64: 32, 32>}, {pipeline_mode = #tpu.pipeline_mode<synchronous>, transform_indices = @transform_41, window_bounds = array<i64: 2, 16, 32>}, {pipeline_mode = #tpu.pipeline_mode<synchronous>, transform_indices = @transform_42, window_bounds = array<i64: 4, 1, 8>}, {pipeline_mode = #tpu.pipeline_mode<synchronous>, transform_indices = @transform_43, window_bounds = array<i64: 1, 32>}, {pipeline_mode = #tpu.pipeline_mode<synchronous>, transform_indices = @transform_44, window_bounds = array<i64: 4, 1, 8>}, {pipeline_mode = #tpu.pipeline_mode<synchronous>, transform_indices = @transform_45, window_bounds = array<i64: 4, 1, 8>}, {pipeline_mode = #tpu.pipeline_mode<synchronous>, transform_indices = @transform_46, window_bounds = array<i64: 4, 32, 8>}, {pipeline_mode = #tpu.pipeline_mode<synchronous>, transform_indices = @transform_47, window_bounds = array<i64: 32, 32>}, {pipeline_mode = #tpu.pipeline_mode<synchronous>, transform_indices = @transform_48, window_bounds = array<i64: 4, 8, 32>}, {pipeline_mode = #tpu.pipeline_mode<synchronous>, transform_indices = @transform_49, window_bounds = array<i64: 4, 32, 8>}, {pipeline_mode = #tpu.pipeline_mode<synchronous>, transform_indices = @transform_50, window_bounds = array<i64: 4, 32, 8>}, {pipeline_mode = #tpu.pipeline_mode<synchronous>, transform_indices = @transform_51, window_bounds = array<i64: 4, 1, 8>}, {pipeline_mode = #tpu.pipeline_mode<synchronous>, transform_indices = @transform_52, window_bounds = array<i64: 1, 32>}, {pipeline_mode = #tpu.pipeline_mode<synchronous>, transform_indices = @transform_53, window_bounds = array<i64: 4, 1, 8>}, {pipeline_mode = #tpu.pipeline_mode<synchronous>, transform_indices = @transform_54, window_bounds = array<i64: 4, 1, 8>}, {pipeline_mode = #tpu.pipeline_mode<synchronous>, transform_indices = @transform_55, window_bounds = array<i64: 4, 32, 8>}, {pipeline_mode = #tpu.pipeline_mode<synchronous>, transform_indices = @transform_56, window_bounds = array<i64: 32, 32>}, {pipeline_mode = #tpu.pipeline_mode<synchronous>, transform_indices = @transform_57, window_bounds = array<i64: 4, 8, 32>}, {pipeline_mode = #tpu.pipeline_mode<synchronous>, transform_indices = @transform_58, window_bounds = array<i64: 4, 32, 8>}, {pipeline_mode = #tpu.pipeline_mode<synchronous>, transform_indices = @transform_59, window_bounds = array<i64: 4, 32, 8>}, {pipeline_mode = #tpu.pipeline_mode<synchronous>, transform_indices = @transform_60, window_bounds = array<i64: 2, 1, 16>}, {pipeline_mode = #tpu.pipeline_mode<synchronous>, transform_indices = @transform_61, window_bounds = array<i64: 2, 1, 16>}, {pipeline_mode = #tpu.pipeline_mode<synchronous>, transform_indices = @transform_62, window_bounds = array<i64: 1, 32>}, {pipeline_mode = #tpu.pipeline_mode<synchronous>, transform_indices = @transform_63, window_bounds = array<i64: 1, 32>}, {pipeline_mode = #tpu.pipeline_mode<synchronous>, transform_indices = @transform_64, window_bounds = array<i64: 2, 1, 16>}, {pipeline_mode = #tpu.pipeline_mode<synchronous>, transform_indices = @transform_65, window_bounds = array<i64: 2, 1, 16>}, {pipeline_mode = #tpu.pipeline_mode<synchronous>, transform_indices = @transform_66, window_bounds = array<i64: 2, 1, 16>}, {pipeline_mode = #tpu.pipeline_mode<synchronous>, transform_indices = @transform_67, window_bounds = array<i64: 2, 32, 16>}, {pipeline_mode = #tpu.pipeline_mode<synchronous>, transform_indices = @transform_68, window_bounds = array<i64: 2, 32, 16>}, {pipeline_mode = #tpu.pipeline_mode<synchronous>, transform_indices = @transform_69, window_bounds = array<i64: 2, 32, 16>}, {pipeline_mode = #tpu.pipeline_mode<synchronous>, transform_indices = @transform_70, window_bounds = array<i64: 2, 1, 16>}, {pipeline_mode = #tpu.pipeline_mode<synchronous>, transform_indices = @transform_71, window_bounds = array<i64: 2, 1, 16>}, {pipeline_mode = #tpu.pipeline_mode<synchronous>, transform_indices = @transform_72, window_bounds = array<i64: 2, 1, 16>}, {pipeline_mode = #tpu.pipeline_mode<synchronous>, transform_indices = @transform_73, window_bounds = array<i64: 2, 32, 16>}, {pipeline_mode = #tpu.pipeline_mode<synchronous>, transform_indices = @transform_74, window_bounds = array<i64: 2, 32, 16>}, {pipeline_mode = #tpu.pipeline_mode<synchronous>, transform_indices = @transform_75, window_bounds = array<i64: 2, 32, 16>}, {pipeline_mode = #tpu.pipeline_mode<synchronous>, transform_indices = @transform_76, window_bounds = array<i64: 2, 32, 16>}, {pipeline_mode = #tpu.pipeline_mode<synchronous>, transform_indices = @transform_77, window_bounds = array<i64: 2, 32, 16>}, {pipeline_mode = #tpu.pipeline_mode<synchronous>, transform_indices = @transform_78, window_bounds = array<i64: 32, 32>}, {pipeline_mode = #tpu.pipeline_mode<synchronous>, transform_indices = @transform_79, window_bounds = array<i64: 2, 16, 32>}, {pipeline_mode = #tpu.pipeline_mode<synchronous>, transform_indices = @transform_80, window_bounds = array<i64: 32, 32>}, {pipeline_mode = #tpu.pipeline_mode<synchronous>, transform_indices = @transform_81, window_bounds = array<i64: 2, 16, 32>}, {pipeline_mode = #tpu.pipeline_mode<synchronous>, transform_indices = @transform_82, window_bounds = array<i64: 1, 32>}, {pipeline_mode = #tpu.pipeline_mode<synchronous>, transform_indices = @transform_83, window_bounds = array<i64: 24, 32>}, {pipeline_mode = #tpu.pipeline_mode<synchronous>, transform_indices = @transform_84, window_bounds = array<i64: 1, 32>}, {pipeline_mode = #tpu.pipeline_mode<synchronous>, transform_indices = @transform_85, window_bounds = array<i64: 16, 32>}, {transform_indices = @transform_86, window_bounds = array<i64: 1, 6, 32>}, {transform_indices = @transform_87, window_bounds = array<i64: 1, 8, 32>}]} {
    %c0 = arith.constant 0 : index
    %c0_0 = arith.constant 0 : index
    %c0_1 = arith.constant 0 : index
    %0 = vector.load %arg5[%c0, %c0_0, %c0_1] : memref<4x1x8xf32, #tpu.memory_space<vmem>>, vector<4x1x8xf32>
    %c0_2 = arith.constant 0 : index
    %c0_3 = arith.constant 0 : index
    %1 = vector.load %arg6[%c0_2, %c0_3] : memref<1x32xf32, #tpu.memory_space<vmem>>, vector<1x32xf32>
    %c0_4 = arith.constant 0 : index
    %c0_5 = arith.constant 0 : index
    %c0_6 = arith.constant 0 : index
    %2 = vector.load %arg7[%c0_4, %c0_5, %c0_6] : memref<4x1x8xf32, #tpu.memory_space<vmem>>, vector<4x1x8xf32>
    %c0_7 = arith.constant 0 : index
    %c0_8 = arith.constant 0 : index
    %c0_9 = arith.constant 0 : index
    %3 = vector.load %arg8[%c0_7, %c0_8, %c0_9] : memref<4x1x8xf32, #tpu.memory_space<vmem>>, vector<4x1x8xf32>
    %c0_10 = arith.constant 0 : index
    %c0_11 = arith.constant 0 : index
    %c0_12 = arith.constant 0 : index
    %4 = vector.load %arg9[%c0_10, %c0_11, %c0_12] : memref<4x32x8xbf16, #tpu.memory_space<vmem>>, vector<4x32x8xbf16>
    %c0_13 = arith.constant 0 : index
    %c0_14 = arith.constant 0 : index
    %5 = vector.load %arg10[%c0_13, %c0_14] : memref<32x32xbf16, #tpu.memory_space<vmem>>, vector<32x32xbf16>
    %c0_15 = arith.constant 0 : index
    %c0_16 = arith.constant 0 : index
    %c0_17 = arith.constant 0 : index
    %6 = vector.load %arg11[%c0_15, %c0_16, %c0_17] : memref<4x8x32xbf16, #tpu.memory_space<vmem>>, vector<4x8x32xbf16>
    %c0_18 = arith.constant 0 : index
    %c0_19 = arith.constant 0 : index
    %c0_20 = arith.constant 0 : index
    %7 = vector.load %arg12[%c0_18, %c0_19, %c0_20] : memref<4x32x8xbf16, #tpu.memory_space<vmem>>, vector<4x32x8xbf16>
    %c0_21 = arith.constant 0 : index
    %c0_22 = arith.constant 0 : index
    %c0_23 = arith.constant 0 : index
    %8 = vector.load %arg13[%c0_21, %c0_22, %c0_23] : memref<4x32x8xbf16, #tpu.memory_space<vmem>>, vector<4x32x8xbf16>
    %c0_24 = arith.constant 0 : index
    %c0_25 = arith.constant 0 : index
    %c0_26 = arith.constant 0 : index
    %9 = vector.load %arg14[%c0_24, %c0_25, %c0_26] : memref<4x1x8xf32, #tpu.memory_space<vmem>>, vector<4x1x8xf32>
    %c0_27 = arith.constant 0 : index
    %c0_28 = arith.constant 0 : index
    %10 = vector.load %arg15[%c0_27, %c0_28] : memref<1x32xf32, #tpu.memory_space<vmem>>, vector<1x32xf32>
    %c0_29 = arith.constant 0 : index
    %c0_30 = arith.constant 0 : index
    %c0_31 = arith.constant 0 : index
    %11 = vector.load %arg16[%c0_29, %c0_30, %c0_31] : memref<4x1x8xf32, #tpu.memory_space<vmem>>, vector<4x1x8xf32>
    %c0_32 = arith.constant 0 : index
    %c0_33 = arith.constant 0 : index
    %c0_34 = arith.constant 0 : index
    %12 = vector.load %arg17[%c0_32, %c0_33, %c0_34] : memref<4x1x8xf32, #tpu.memory_space<vmem>>, vector<4x1x8xf32>
    %c0_35 = arith.constant 0 : index
    %c0_36 = arith.constant 0 : index
    %c0_37 = arith.constant 0 : index
    %13 = vector.load %arg18[%c0_35, %c0_36, %c0_37] : memref<4x32x8xbf16, #tpu.memory_space<vmem>>, vector<4x32x8xbf16>
    %c0_38 = arith.constant 0 : index
    %c0_39 = arith.constant 0 : index
    %14 = vector.load %arg19[%c0_38, %c0_39] : memref<32x32xbf16, #tpu.memory_space<vmem>>, vector<32x32xbf16>
    %c0_40 = arith.constant 0 : index
    %c0_41 = arith.constant 0 : index
    %c0_42 = arith.constant 0 : index
    %15 = vector.load %arg20[%c0_40, %c0_41, %c0_42] : memref<4x8x32xbf16, #tpu.memory_space<vmem>>, vector<4x8x32xbf16>
    %c0_43 = arith.constant 0 : index
    %c0_44 = arith.constant 0 : index
    %c0_45 = arith.constant 0 : index
    %16 = vector.load %arg21[%c0_43, %c0_44, %c0_45] : memref<4x32x8xbf16, #tpu.memory_space<vmem>>, vector<4x32x8xbf16>
    %c0_46 = arith.constant 0 : index
    %c0_47 = arith.constant 0 : index
    %c0_48 = arith.constant 0 : index
    %17 = vector.load %arg22[%c0_46, %c0_47, %c0_48] : memref<4x32x8xbf16, #tpu.memory_space<vmem>>, vector<4x32x8xbf16>
    %c0_49 = arith.constant 0 : index
    %c0_50 = arith.constant 0 : index
    %c0_51 = arith.constant 0 : index
    %18 = vector.load %arg23[%c0_49, %c0_50, %c0_51] : memref<2x1x16xf32, #tpu.memory_space<vmem>>, vector<2x1x16xf32>
    %c0_52 = arith.constant 0 : index
    %c0_53 = arith.constant 0 : index
    %c0_54 = arith.constant 0 : index
    %19 = vector.load %arg24[%c0_52, %c0_53, %c0_54] : memref<2x1x16xf32, #tpu.memory_space<vmem>>, vector<2x1x16xf32>
    %c0_55 = arith.constant 0 : index
    %c0_56 = arith.constant 0 : index
    %20 = vector.load %arg25[%c0_55, %c0_56] : memref<1x32xf32, #tpu.memory_space<vmem>>, vector<1x32xf32>
    %c0_57 = arith.constant 0 : index
    %c0_58 = arith.constant 0 : index
    %21 = vector.load %arg26[%c0_57, %c0_58] : memref<1x32xf32, #tpu.memory_space<vmem>>, vector<1x32xf32>
    %c0_59 = arith.constant 0 : index
    %c0_60 = arith.constant 0 : index
    %c0_61 = arith.constant 0 : index
    %22 = vector.load %arg27[%c0_59, %c0_60, %c0_61] : memref<2x1x16xf32, #tpu.memory_space<vmem>>, vector<2x1x16xf32>
    %c0_62 = arith.constant 0 : index
    %c0_63 = arith.constant 0 : index
    %c0_64 = arith.constant 0 : index
    %23 = vector.load %arg28[%c0_62, %c0_63, %c0_64] : memref<2x1x16xf32, #tpu.memory_space<vmem>>, vector<2x1x16xf32>
    %c0_65 = arith.constant 0 : index
    %c0_66 = arith.constant 0 : index
    %c0_67 = arith.constant 0 : index
    %24 = vector.load %arg29[%c0_65, %c0_66, %c0_67] : memref<2x1x16xf32, #tpu.memory_space<vmem>>, vector<2x1x16xf32>
    %c0_68 = arith.constant 0 : index
    %c0_69 = arith.constant 0 : index
    %c0_70 = arith.constant 0 : index
    %25 = vector.load %arg30[%c0_68, %c0_69, %c0_70] : memref<2x32x16xbf16, #tpu.memory_space<vmem>>, vector<2x32x16xbf16>
    %c0_71 = arith.constant 0 : index
    %c0_72 = arith.constant 0 : index
    %c0_73 = arith.constant 0 : index
    %26 = vector.load %arg31[%c0_71, %c0_72, %c0_73] : memref<2x32x16xbf16, #tpu.memory_space<vmem>>, vector<2x32x16xbf16>
    %c0_74 = arith.constant 0 : index
    %c0_75 = arith.constant 0 : index
    %c0_76 = arith.constant 0 : index
    %27 = vector.load %arg32[%c0_74, %c0_75, %c0_76] : memref<2x32x16xbf16, #tpu.memory_space<vmem>>, vector<2x32x16xbf16>
    %c0_77 = arith.constant 0 : index
    %c0_78 = arith.constant 0 : index
    %c0_79 = arith.constant 0 : index
    %28 = vector.load %arg33[%c0_77, %c0_78, %c0_79] : memref<2x1x16xf32, #tpu.memory_space<vmem>>, vector<2x1x16xf32>
    %c0_80 = arith.constant 0 : index
    %c0_81 = arith.constant 0 : index
    %c0_82 = arith.constant 0 : index
    %29 = vector.load %arg34[%c0_80, %c0_81, %c0_82] : memref<2x1x16xf32, #tpu.memory_space<vmem>>, vector<2x1x16xf32>
    %c0_83 = arith.constant 0 : index
    %c0_84 = arith.constant 0 : index
    %c0_85 = arith.constant 0 : index
    %30 = vector.load %arg35[%c0_83, %c0_84, %c0_85] : memref<2x1x16xf32, #tpu.memory_space<vmem>>, vector<2x1x16xf32>
    %c0_86 = arith.constant 0 : index
    %c0_87 = arith.constant 0 : index
    %c0_88 = arith.constant 0 : index
    %31 = vector.load %arg36[%c0_86, %c0_87, %c0_88] : memref<2x32x16xbf16, #tpu.memory_space<vmem>>, vector<2x32x16xbf16>
    %c0_89 = arith.constant 0 : index
    %c0_90 = arith.constant 0 : index
    %c0_91 = arith.constant 0 : index
    %32 = vector.load %arg37[%c0_89, %c0_90, %c0_91] : memref<2x32x16xbf16, #tpu.memory_space<vmem>>, vector<2x32x16xbf16>
    %c0_92 = arith.constant 0 : index
    %c0_93 = arith.constant 0 : index
    %c0_94 = arith.constant 0 : index
    %33 = vector.load %arg38[%c0_92, %c0_93, %c0_94] : memref<2x32x16xbf16, #tpu.memory_space<vmem>>, vector<2x32x16xbf16>
    %c0_95 = arith.constant 0 : index
    %c0_96 = arith.constant 0 : index
    %c0_97 = arith.constant 0 : index
    %34 = vector.load %arg39[%c0_95, %c0_96, %c0_97] : memref<2x32x16xbf16, #tpu.memory_space<vmem>>, vector<2x32x16xbf16>
    %c0_98 = arith.constant 0 : index
    %c0_99 = arith.constant 0 : index
    %c0_100 = arith.constant 0 : index
    %35 = vector.load %arg40[%c0_98, %c0_99, %c0_100] : memref<2x32x16xbf16, #tpu.memory_space<vmem>>, vector<2x32x16xbf16>
    %c0_101 = arith.constant 0 : index
    %c0_102 = arith.constant 0 : index
    %36 = vector.load %arg41[%c0_101, %c0_102] : memref<32x32xbf16, #tpu.memory_space<vmem>>, vector<32x32xbf16>
    %c0_103 = arith.constant 0 : index
    %c0_104 = arith.constant 0 : index
    %c0_105 = arith.constant 0 : index
    %37 = vector.load %arg42[%c0_103, %c0_104, %c0_105] : memref<2x16x32xbf16, #tpu.memory_space<vmem>>, vector<2x16x32xbf16>
    %c0_106 = arith.constant 0 : index
    %c0_107 = arith.constant 0 : index
    %38 = vector.load %arg43[%c0_106, %c0_107] : memref<32x32xbf16, #tpu.memory_space<vmem>>, vector<32x32xbf16>
    %c0_108 = arith.constant 0 : index
    %c0_109 = arith.constant 0 : index
    %c0_110 = arith.constant 0 : index
    %39 = vector.load %arg44[%c0_108, %c0_109, %c0_110] : memref<2x16x32xbf16, #tpu.memory_space<vmem>>, vector<2x16x32xbf16>
    %c0_111 = arith.constant 0 : index
    %c0_112 = arith.constant 0 : index
    %c0_113 = arith.constant 0 : index
    %40 = vector.load %arg45[%c0_111, %c0_112, %c0_113] : memref<4x1x8xf32, #tpu.memory_space<vmem>>, vector<4x1x8xf32>
    %c0_114 = arith.constant 0 : index
    %c0_115 = arith.constant 0 : index
    %41 = vector.load %arg46[%c0_114, %c0_115] : memref<1x32xf32, #tpu.memory_space<vmem>>, vector<1x32xf32>
    %c0_116 = arith.constant 0 : index
    %c0_117 = arith.constant 0 : index
    %c0_118 = arith.constant 0 : index
    %42 = vector.load %arg47[%c0_116, %c0_117, %c0_118] : memref<4x1x8xf32, #tpu.memory_space<vmem>>, vector<4x1x8xf32>
    %c0_119 = arith.constant 0 : index
    %c0_120 = arith.constant 0 : index
    %c0_121 = arith.constant 0 : index
    %43 = vector.load %arg48[%c0_119, %c0_120, %c0_121] : memref<4x1x8xf32, #tpu.memory_space<vmem>>, vector<4x1x8xf32>
    %c0_122 = arith.constant 0 : index
    %c0_123 = arith.constant 0 : index
    %c0_124 = arith.constant 0 : index
    %44 = vector.load %arg49[%c0_122, %c0_123, %c0_124] : memref<4x32x8xbf16, #tpu.memory_space<vmem>>, vector<4x32x8xbf16>
    %c0_125 = arith.constant 0 : index
    %c0_126 = arith.constant 0 : index
    %45 = vector.load %arg50[%c0_125, %c0_126] : memref<32x32xbf16, #tpu.memory_space<vmem>>, vector<32x32xbf16>
    %c0_127 = arith.constant 0 : index
    %c0_128 = arith.constant 0 : index
    %c0_129 = arith.constant 0 : index
    %46 = vector.load %arg51[%c0_127, %c0_128, %c0_129] : memref<4x8x32xbf16, #tpu.memory_space<vmem>>, vector<4x8x32xbf16>
    %c0_130 = arith.constant 0 : index
    %c0_131 = arith.constant 0 : index
    %c0_132 = arith.constant 0 : index
    %47 = vector.load %arg52[%c0_130, %c0_131, %c0_132] : memref<4x32x8xbf16, #tpu.memory_space<vmem>>, vector<4x32x8xbf16>
    %c0_133 = arith.constant 0 : index
    %c0_134 = arith.constant 0 : index
    %c0_135 = arith.constant 0 : index
    %48 = vector.load %arg53[%c0_133, %c0_134, %c0_135] : memref<4x32x8xbf16, #tpu.memory_space<vmem>>, vector<4x32x8xbf16>
    %c0_136 = arith.constant 0 : index
    %c0_137 = arith.constant 0 : index
    %c0_138 = arith.constant 0 : index
    %49 = vector.load %arg54[%c0_136, %c0_137, %c0_138] : memref<4x1x8xf32, #tpu.memory_space<vmem>>, vector<4x1x8xf32>
    %c0_139 = arith.constant 0 : index
    %c0_140 = arith.constant 0 : index
    %50 = vector.load %arg55[%c0_139, %c0_140] : memref<1x32xf32, #tpu.memory_space<vmem>>, vector<1x32xf32>
    %c0_141 = arith.constant 0 : index
    %c0_142 = arith.constant 0 : index
    %c0_143 = arith.constant 0 : index
    %51 = vector.load %arg56[%c0_141, %c0_142, %c0_143] : memref<4x1x8xf32, #tpu.memory_space<vmem>>, vector<4x1x8xf32>
    %c0_144 = arith.constant 0 : index
    %c0_145 = arith.constant 0 : index
    %c0_146 = arith.constant 0 : index
    %52 = vector.load %arg57[%c0_144, %c0_145, %c0_146] : memref<4x1x8xf32, #tpu.memory_space<vmem>>, vector<4x1x8xf32>
    %c0_147 = arith.constant 0 : index
    %c0_148 = arith.constant 0 : index
    %c0_149 = arith.constant 0 : index
    %53 = vector.load %arg58[%c0_147, %c0_148, %c0_149] : memref<4x32x8xbf16, #tpu.memory_space<vmem>>, vector<4x32x8xbf16>
    %c0_150 = arith.constant 0 : index
    %c0_151 = arith.constant 0 : index
    %54 = vector.load %arg59[%c0_150, %c0_151] : memref<32x32xbf16, #tpu.memory_space<vmem>>, vector<32x32xbf16>
    %c0_152 = arith.constant 0 : index
    %c0_153 = arith.constant 0 : index
    %c0_154 = arith.constant 0 : index
    %55 = vector.load %arg60[%c0_152, %c0_153, %c0_154] : memref<4x8x32xbf16, #tpu.memory_space<vmem>>, vector<4x8x32xbf16>
    %c0_155 = arith.constant 0 : index
    %c0_156 = arith.constant 0 : index
    %c0_157 = arith.constant 0 : index
    %56 = vector.load %arg61[%c0_155, %c0_156, %c0_157] : memref<4x32x8xbf16, #tpu.memory_space<vmem>>, vector<4x32x8xbf16>
    %c0_158 = arith.constant 0 : index
    %c0_159 = arith.constant 0 : index
    %c0_160 = arith.constant 0 : index
    %57 = vector.load %arg62[%c0_158, %c0_159, %c0_160] : memref<4x32x8xbf16, #tpu.memory_space<vmem>>, vector<4x32x8xbf16>
    %c0_161 = arith.constant 0 : index
    %c0_162 = arith.constant 0 : index
    %c0_163 = arith.constant 0 : index
    %58 = vector.load %arg63[%c0_161, %c0_162, %c0_163] : memref<2x1x16xf32, #tpu.memory_space<vmem>>, vector<2x1x16xf32>
    %c0_164 = arith.constant 0 : index
    %c0_165 = arith.constant 0 : index
    %c0_166 = arith.constant 0 : index
    %59 = vector.load %arg64[%c0_164, %c0_165, %c0_166] : memref<2x1x16xf32, #tpu.memory_space<vmem>>, vector<2x1x16xf32>
    %c0_167 = arith.constant 0 : index
    %c0_168 = arith.constant 0 : index
    %60 = vector.load %arg65[%c0_167, %c0_168] : memref<1x32xf32, #tpu.memory_space<vmem>>, vector<1x32xf32>
    %c0_169 = arith.constant 0 : index
    %c0_170 = arith.constant 0 : index
    %61 = vector.load %arg66[%c0_169, %c0_170] : memref<1x32xf32, #tpu.memory_space<vmem>>, vector<1x32xf32>
    %c0_171 = arith.constant 0 : index
    %c0_172 = arith.constant 0 : index
    %c0_173 = arith.constant 0 : index
    %62 = vector.load %arg67[%c0_171, %c0_172, %c0_173] : memref<2x1x16xf32, #tpu.memory_space<vmem>>, vector<2x1x16xf32>
    %c0_174 = arith.constant 0 : index
    %c0_175 = arith.constant 0 : index
    %c0_176 = arith.constant 0 : index
    %63 = vector.load %arg68[%c0_174, %c0_175, %c0_176] : memref<2x1x16xf32, #tpu.memory_space<vmem>>, vector<2x1x16xf32>
    %c0_177 = arith.constant 0 : index
    %c0_178 = arith.constant 0 : index
    %c0_179 = arith.constant 0 : index
    %64 = vector.load %arg69[%c0_177, %c0_178, %c0_179] : memref<2x1x16xf32, #tpu.memory_space<vmem>>, vector<2x1x16xf32>
    %c0_180 = arith.constant 0 : index
    %c0_181 = arith.constant 0 : index
    %c0_182 = arith.constant 0 : index
    %65 = vector.load %arg70[%c0_180, %c0_181, %c0_182] : memref<2x32x16xbf16, #tpu.memory_space<vmem>>, vector<2x32x16xbf16>
    %c0_183 = arith.constant 0 : index
    %c0_184 = arith.constant 0 : index
    %c0_185 = arith.constant 0 : index
    %66 = vector.load %arg71[%c0_183, %c0_184, %c0_185] : memref<2x32x16xbf16, #tpu.memory_space<vmem>>, vector<2x32x16xbf16>
    %c0_186 = arith.constant 0 : index
    %c0_187 = arith.constant 0 : index
    %c0_188 = arith.constant 0 : index
    %67 = vector.load %arg72[%c0_186, %c0_187, %c0_188] : memref<2x32x16xbf16, #tpu.memory_space<vmem>>, vector<2x32x16xbf16>
    %c0_189 = arith.constant 0 : index
    %c0_190 = arith.constant 0 : index
    %c0_191 = arith.constant 0 : index
    %68 = vector.load %arg73[%c0_189, %c0_190, %c0_191] : memref<2x1x16xf32, #tpu.memory_space<vmem>>, vector<2x1x16xf32>
    %c0_192 = arith.constant 0 : index
    %c0_193 = arith.constant 0 : index
    %c0_194 = arith.constant 0 : index
    %69 = vector.load %arg74[%c0_192, %c0_193, %c0_194] : memref<2x1x16xf32, #tpu.memory_space<vmem>>, vector<2x1x16xf32>
    %c0_195 = arith.constant 0 : index
    %c0_196 = arith.constant 0 : index
    %c0_197 = arith.constant 0 : index
    %70 = vector.load %arg75[%c0_195, %c0_196, %c0_197] : memref<2x1x16xf32, #tpu.memory_space<vmem>>, vector<2x1x16xf32>
    %c0_198 = arith.constant 0 : index
    %c0_199 = arith.constant 0 : index
    %c0_200 = arith.constant 0 : index
    %71 = vector.load %arg76[%c0_198, %c0_199, %c0_200] : memref<2x32x16xbf16, #tpu.memory_space<vmem>>, vector<2x32x16xbf16>
    %c0_201 = arith.constant 0 : index
    %c0_202 = arith.constant 0 : index
    %c0_203 = arith.constant 0 : index
    %72 = vector.load %arg77[%c0_201, %c0_202, %c0_203] : memref<2x32x16xbf16, #tpu.memory_space<vmem>>, vector<2x32x16xbf16>
    %c0_204 = arith.constant 0 : index
    %c0_205 = arith.constant 0 : index
    %c0_206 = arith.constant 0 : index
    %73 = vector.load %arg78[%c0_204, %c0_205, %c0_206] : memref<2x32x16xbf16, #tpu.memory_space<vmem>>, vector<2x32x16xbf16>
    %c0_207 = arith.constant 0 : index
    %c0_208 = arith.constant 0 : index
    %c0_209 = arith.constant 0 : index
    %74 = vector.load %arg79[%c0_207, %c0_208, %c0_209] : memref<2x32x16xbf16, #tpu.memory_space<vmem>>, vector<2x32x16xbf16>
    %c0_210 = arith.constant 0 : index
    %c0_211 = arith.constant 0 : index
    %c0_212 = arith.constant 0 : index
    %75 = vector.load %arg80[%c0_210, %c0_211, %c0_212] : memref<2x32x16xbf16, #tpu.memory_space<vmem>>, vector<2x32x16xbf16>
    %c0_213 = arith.constant 0 : index
    %c0_214 = arith.constant 0 : index
    %76 = vector.load %arg81[%c0_213, %c0_214] : memref<32x32xbf16, #tpu.memory_space<vmem>>, vector<32x32xbf16>
    %c0_215 = arith.constant 0 : index
    %c0_216 = arith.constant 0 : index
    %c0_217 = arith.constant 0 : index
    %77 = vector.load %arg82[%c0_215, %c0_216, %c0_217] : memref<2x16x32xbf16, #tpu.memory_space<vmem>>, vector<2x16x32xbf16>
    %c0_218 = arith.constant 0 : index
    %c0_219 = arith.constant 0 : index
    %78 = vector.load %arg83[%c0_218, %c0_219] : memref<32x32xbf16, #tpu.memory_space<vmem>>, vector<32x32xbf16>
    %c0_220 = arith.constant 0 : index
    %c0_221 = arith.constant 0 : index
    %c0_222 = arith.constant 0 : index
    %79 = vector.load %arg84[%c0_220, %c0_221, %c0_222] : memref<2x16x32xbf16, #tpu.memory_space<vmem>>, vector<2x16x32xbf16>
    %c0_223 = arith.constant 0 : index
    %c0_224 = arith.constant 0 : index
    %80 = vector.load %arg85[%c0_223, %c0_224] : memref<1x32xf32, #tpu.memory_space<vmem>>, vector<1x32xf32>
    %c0_225 = arith.constant 0 : index
    %c0_226 = arith.constant 0 : index
    %81 = vector.load %arg86[%c0_225, %c0_226] : memref<24x32xbf16, #tpu.memory_space<vmem>>, vector<24x32xbf16>
    %c0_227 = arith.constant 0 : index
    %c0_228 = arith.constant 0 : index
    %82 = vector.load %arg87[%c0_227, %c0_228] : memref<1x32xf32, #tpu.memory_space<vmem>>, vector<1x32xf32>
    %c0_229 = arith.constant 0 : index
    %c0_230 = arith.constant 0 : index
    %83 = vector.load %arg88[%c0_229, %c0_230] : memref<16x32xbf16, #tpu.memory_space<vmem>>, vector<16x32xbf16>
    %84 = arith.index_cast %arg0 : i32 to index
    %85 = memref.load %arg1[%84] : memref<2xi32, #tpu.memory_space<smem>>
    %86 = arith.index_cast %arg0 : i32 to index
    %87 = memref.load %arg2[%86] : memref<2xi32, #tpu.memory_space<smem>>
    %88 = tpu.iota {dimensions = array<i32: 0>} : vector<6x1xi32>
    %89 = vector.broadcast %85 : i32 to vector<6x1xi32>
    %90 = arith.cmpi slt, %88, %89 : vector<6x1xi32>
    %91 = arith.extui %90 : vector<6x1xi1> to vector<6x1xi32>
    %92 = arith.sitofp %91 : vector<6x1xi32> to vector<6x1xf32>
    %93 = tpu.iota {dimensions = array<i32: 0>} : vector<8x1xi32>
    %94 = vector.broadcast %87 : i32 to vector<8x1xi32>
    %95 = arith.cmpi slt, %93, %94 : vector<8x1xi32>
    %96 = arith.extui %95 : vector<8x1xi1> to vector<8x1xi32>
    %97 = arith.sitofp %96 : vector<8x1xi32> to vector<8x1xf32>
    %98 = tpu.iota {dimensions = array<i32: 1>} : vector<1x6x1xi32>
    %99 = vector.broadcast %85 : i32 to vector<1x6x1xi32>
    %100 = arith.cmpi slt, %98, %99 : vector<1x6x1xi32>
    %101 = arith.extui %100 : vector<1x6x1xi1> to vector<1x6x1xi32>
    %102 = arith.sitofp %101 : vector<1x6x1xi32> to vector<1x6x1xf32>
    %103 = tpu.iota {dimensions = array<i32: 1>} : vector<1x8x1xi32>
    %104 = vector.broadcast %87 : i32 to vector<1x8x1xi32>
    %105 = arith.cmpi slt, %103, %104 : vector<1x8x1xi32>
    %106 = arith.extui %105 : vector<1x8x1xi1> to vector<1x8x1xi32>
    %107 = arith.sitofp %106 : vector<1x8x1xi32> to vector<1x8x1xf32>
    %108 = tpu.iota {dimensions = array<i32: 2>} : vector<1x1x6xi32>
    %109 = vector.broadcast %85 : i32 to vector<1x1x6xi32>
    %110 = arith.cmpi slt, %108, %109 : vector<1x1x6xi32>
    %111 = tpu.iota {dimensions = array<i32: 2>} : vector<1x1x8xi32>
    %112 = vector.broadcast %87 : i32 to vector<1x1x8xi32>
    %113 = arith.cmpi slt, %111, %112 : vector<1x1x8xi32>
    %c0_231 = arith.constant 0 : index
    %c0_232 = arith.constant 0 : index
    %c0_233 = arith.constant 0 : index
    %114 = vector.load %arg3[%c0_231, %c0_232, %c0_233] : memref<1x6x16xf32, #tpu.memory_space<vmem>>, vector<1x6x16xf32>
    %115 = vector.shape_cast %114 : vector<1x6x16xf32> to vector<6x16xf32>
    %116 = arith.truncf %115 : vector<6x16xf32> to vector<6x16xbf16>
    %cst = arith.constant dense<0.000000e+00> : vector<6x32xf32>
    %117 = tpu.matmul %116, %83, %cst {dimension_numbers = #tpu.dot_dimension_numbers<[1], [0], [0], [1], [0, 0, 1, 1], [], []>} : vector<6x16xbf16>, vector<16x32xbf16>, vector<6x32xf32> -> vector<6x32xf32>
    %118 = vector.broadcast %82 : vector<1x32xf32> to vector<6x32xf32>
    %119 = arith.addf %117, %118 : vector<6x32xf32>
    %c0_234 = arith.constant 0 : index
    %c0_235 = arith.constant 0 : index
    %c0_236 = arith.constant 0 : index
    %120 = vector.load %arg4[%c0_234, %c0_235, %c0_236] : memref<1x8x24xf32, #tpu.memory_space<vmem>>, vector<1x8x24xf32>
    %121 = vector.shape_cast %120 : vector<1x8x24xf32> to vector<8x24xf32>
    %122 = arith.truncf %121 : vector<8x24xf32> to vector<8x24xbf16>
    %cst_237 = arith.constant dense<0.000000e+00> : vector<8x32xf32>
    %123 = tpu.matmul %122, %81, %cst_237 {dimension_numbers = #tpu.dot_dimension_numbers<[1], [0], [0], [1], [0, 0, 1, 1], [], []>} : vector<8x24xbf16>, vector<24x32xbf16>, vector<8x32xf32> -> vector<8x32xf32>
    %124 = vector.broadcast %80 : vector<1x32xf32> to vector<8x32xf32>
    %125 = arith.addf %123, %124 : vector<8x32xf32>
    %126 = arith.truncf %119 : vector<6x32xf32> to vector<6x32xbf16>
    %127 = vector.shape_cast %126 : vector<6x32xbf16> to vector<1x6x32xbf16>
    %128 = vector.broadcast %127 : vector<1x6x32xbf16> to vector<4x6x32xbf16>
    %cst_238 = arith.constant dense<0.000000e+00> : vector<4x6x8xf32>
    %129 = tpu.matmul %128, %4, %cst_238 {dimension_numbers = #tpu.dot_dimension_numbers<[2], [1], [1], [2], [0, 0, 0, 1, 1, 2], [0], [0]>} : vector<4x6x32xbf16>, vector<4x32x8xbf16>, vector<4x6x8xf32> -> vector<4x6x8xf32>
    %130 = vector.broadcast %0 : vector<4x1x8xf32> to vector<4x6x8xf32>
    %131 = arith.addf %129, %130 : vector<4x6x8xf32>
    %132 = vector.broadcast %102 : vector<1x6x1xf32> to vector<4x6x8xf32>
    %133 = arith.mulf %131, %132 : vector<4x6x8xf32>
    %134 = arith.truncf %119 : vector<6x32xf32> to vector<6x32xbf16>
    %135 = vector.shape_cast %134 : vector<6x32xbf16> to vector<1x6x32xbf16>
    %136 = vector.broadcast %135 : vector<1x6x32xbf16> to vector<4x6x32xbf16>
    %cst_239 = arith.constant dense<0.000000e+00> : vector<4x6x8xf32>
    %137 = tpu.matmul %136, %8, %cst_239 {dimension_numbers = #tpu.dot_dimension_numbers<[2], [1], [1], [2], [0, 0, 0, 1, 1, 2], [0], [0]>} : vector<4x6x32xbf16>, vector<4x32x8xbf16>, vector<4x6x8xf32> -> vector<4x6x8xf32>
    %138 = vector.broadcast %3 : vector<4x1x8xf32> to vector<4x6x8xf32>
    %139 = arith.addf %137, %138 : vector<4x6x8xf32>
    %140 = vector.broadcast %102 : vector<1x6x1xf32> to vector<4x6x8xf32>
    %141 = arith.mulf %139, %140 : vector<4x6x8xf32>
    %142 = arith.truncf %125 : vector<8x32xf32> to vector<8x32xbf16>
    %143 = vector.shape_cast %142 : vector<8x32xbf16> to vector<1x8x32xbf16>
    %144 = vector.broadcast %143 : vector<1x8x32xbf16> to vector<4x8x32xbf16>
    %cst_240 = arith.constant dense<0.000000e+00> : vector<4x8x8xf32>
    %145 = tpu.matmul %144, %7, %cst_240 {dimension_numbers = #tpu.dot_dimension_numbers<[2], [1], [1], [2], [0, 0, 0, 1, 1, 2], [0], [0]>} : vector<4x8x32xbf16>, vector<4x32x8xbf16>, vector<4x8x8xf32> -> vector<4x8x8xf32>
    %146 = vector.broadcast %2 : vector<4x1x8xf32> to vector<4x8x8xf32>
    %147 = arith.addf %145, %146 : vector<4x8x8xf32>
    %148 = vector.broadcast %107 : vector<1x8x1xf32> to vector<4x8x8xf32>
    %149 = arith.mulf %147, %148 : vector<4x8x8xf32>
    %cst_241 = arith.constant 0.353553385 : f32
    %150 = vector.broadcast %cst_241 : f32 to vector<4x8x8xf32>
    %151 = arith.mulf %149, %150 : vector<4x8x8xf32>
    %152 = arith.truncf %151 : vector<4x8x8xf32> to vector<4x8x8xbf16>
    %153 = arith.truncf %133 : vector<4x6x8xf32> to vector<4x6x8xbf16>
    %cst_242 = arith.constant dense<0.000000e+00> : vector<4x8x6xf32>
    %154 = tpu.matmul %152, %153, %cst_242 {dimension_numbers = #tpu.dot_dimension_numbers<[2], [2], [1], [1], [0, 0, 0, 1, 1, 1], [0], [0]>} : vector<4x8x8xbf16>, vector<4x6x8xbf16>, vector<4x8x6xf32> -> vector<4x8x6xf32>
    %cst_243 = arith.constant -1.000000e+30 : f32
    %155 = vector.shape_cast %110 : vector<1x1x6xi1> to vector<1x1x6xi1>
    %156 = vector.broadcast %155 : vector<1x1x6xi1> to vector<4x8x6xi1>
    %157 = vector.broadcast %cst_243 : f32 to vector<4x8x6xf32>
    %158 = arith.select %156, %154, %157 : vector<4x8x6xi1>, vector<4x8x6xf32>
    %cst_244 = arith.constant dense<0xFF800000> : vector<4x8xf32>
    %159 = vector.multi_reduction <maximumf>, %158, %cst_244 [2] : vector<4x8x6xf32> to vector<4x8xf32>
    %160 = vector.shape_cast %159 : vector<4x8xf32> to vector<4x8x1xf32>
    %161 = vector.broadcast %160 : vector<4x8x1xf32> to vector<4x8x6xf32>
    %162 = arith.subf %158, %161 : vector<4x8x6xf32>
    %163 = math.exp %162 : vector<4x8x6xf32>
    %cst_245 = arith.constant dense<0.000000e+00> : vector<4x8xf32>
    %164 = vector.multi_reduction <add>, %163, %cst_245 [2] : vector<4x8x6xf32> to vector<4x8xf32>
    %165 = vector.shape_cast %164 : vector<4x8xf32> to vector<4x8x1xf32>
    %166 = tpu.reciprocal %165 {approx = true} : vector<4x8x1xf32> -> vector<4x8x1xf32>
    %167 = vector.broadcast %166 : vector<4x8x1xf32> to vector<4x8x6xf32>
    %168 = arith.mulf %163, %167 : vector<4x8x6xf32>
    %169 = arith.truncf %168 : vector<4x8x6xf32> to vector<4x8x6xbf16>
    %170 = arith.truncf %141 : vector<4x6x8xf32> to vector<4x6x8xbf16>
    %cst_246 = arith.constant dense<0.000000e+00> : vector<4x8x8xf32>
    %171 = tpu.matmul %169, %170, %cst_246 {dimension_numbers = #tpu.dot_dimension_numbers<[2], [1], [1], [2], [0, 0, 0, 1, 1, 2], [0], [0]>} : vector<4x8x6xbf16>, vector<4x6x8xbf16>, vector<4x8x8xf32> -> vector<4x8x8xf32>
    %172 = arith.truncf %125 : vector<8x32xf32> to vector<8x32xbf16>
    %cst_247 = arith.constant dense<0.000000e+00> : vector<8x32xf32>
    %173 = tpu.matmul %172, %5, %cst_247 {dimension_numbers = #tpu.dot_dimension_numbers<[1], [0], [0], [1], [0, 0, 1, 1], [], []>} : vector<8x32xbf16>, vector<32x32xbf16>, vector<8x32xf32> -> vector<8x32xf32>
    %174 = arith.truncf %171 : vector<4x8x8xf32> to vector<4x8x8xbf16>
    %cst_248 = arith.constant dense<0.000000e+00> : vector<4x8x32xf32>
    %175 = tpu.matmul %174, %6, %cst_248 {dimension_numbers = #tpu.dot_dimension_numbers<[2], [1], [1], [2], [0, 0, 0, 1, 1, 2], [0], [0]>} : vector<4x8x8xbf16>, vector<4x8x32xbf16>, vector<4x8x32xf32> -> vector<4x8x32xf32>
    %cst_249 = arith.constant dense<0.000000e+00> : vector<8x32xf32>
    %176 = vector.multi_reduction <add>, %175, %cst_249 [0] : vector<4x8x32xf32> to vector<8x32xf32>
    %177 = arith.addf %173, %176 : vector<8x32xf32>
    %178 = vector.broadcast %1 : vector<1x32xf32> to vector<8x32xf32>
    %179 = arith.addf %177, %178 : vector<8x32xf32>
    %180 = arith.addf %179, %125 : vector<8x32xf32>
    %181 = arith.truncf %180 : vector<8x32xf32> to vector<8x32xbf16>
    %182 = vector.shape_cast %181 : vector<8x32xbf16> to vector<1x8x32xbf16>
    %183 = vector.broadcast %182 : vector<1x8x32xbf16> to vector<4x8x32xbf16>
    %cst_250 = arith.constant dense<0.000000e+00> : vector<4x8x8xf32>
    %184 = tpu.matmul %183, %13, %cst_250 {dimension_numbers = #tpu.dot_dimension_numbers<[2], [1], [1], [2], [0, 0, 0, 1, 1, 2], [0], [0]>} : vector<4x8x32xbf16>, vector<4x32x8xbf16>, vector<4x8x8xf32> -> vector<4x8x8xf32>
    %185 = vector.broadcast %9 : vector<4x1x8xf32> to vector<4x8x8xf32>
    %186 = arith.addf %184, %185 : vector<4x8x8xf32>
    %187 = vector.broadcast %107 : vector<1x8x1xf32> to vector<4x8x8xf32>
    %188 = arith.mulf %186, %187 : vector<4x8x8xf32>
    %189 = arith.truncf %180 : vector<8x32xf32> to vector<8x32xbf16>
    %190 = vector.shape_cast %189 : vector<8x32xbf16> to vector<1x8x32xbf16>
    %191 = vector.broadcast %190 : vector<1x8x32xbf16> to vector<4x8x32xbf16>
    %cst_251 = arith.constant dense<0.000000e+00> : vector<4x8x8xf32>
    %192 = tpu.matmul %191, %17, %cst_251 {dimension_numbers = #tpu.dot_dimension_numbers<[2], [1], [1], [2], [0, 0, 0, 1, 1, 2], [0], [0]>} : vector<4x8x32xbf16>, vector<4x32x8xbf16>, vector<4x8x8xf32> -> vector<4x8x8xf32>
    %193 = vector.broadcast %12 : vector<4x1x8xf32> to vector<4x8x8xf32>
    %194 = arith.addf %192, %193 : vector<4x8x8xf32>
    %195 = vector.broadcast %107 : vector<1x8x1xf32> to vector<4x8x8xf32>
    %196 = arith.mulf %194, %195 : vector<4x8x8xf32>
    %197 = arith.truncf %119 : vector<6x32xf32> to vector<6x32xbf16>
    %198 = vector.shape_cast %197 : vector<6x32xbf16> to vector<1x6x32xbf16>
    %199 = vector.broadcast %198 : vector<1x6x32xbf16> to vector<4x6x32xbf16>
    %cst_252 = arith.constant dense<0.000000e+00> : vector<4x6x8xf32>
    %200 = tpu.matmul %199, %16, %cst_252 {dimension_numbers = #tpu.dot_dimension_numbers<[2], [1], [1], [2], [0, 0, 0, 1, 1, 2], [0], [0]>} : vector<4x6x32xbf16>, vector<4x32x8xbf16>, vector<4x6x8xf32> -> vector<4x6x8xf32>
    %201 = vector.broadcast %11 : vector<4x1x8xf32> to vector<4x6x8xf32>
    %202 = arith.addf %200, %201 : vector<4x6x8xf32>
    %203 = vector.broadcast %102 : vector<1x6x1xf32> to vector<4x6x8xf32>
    %204 = arith.mulf %202, %203 : vector<4x6x8xf32>
    %cst_253 = arith.constant 0.353553385 : f32
    %205 = vector.broadcast %cst_253 : f32 to vector<4x6x8xf32>
    %206 = arith.mulf %204, %205 : vector<4x6x8xf32>
    %207 = arith.truncf %206 : vector<4x6x8xf32> to vector<4x6x8xbf16>
    %208 = arith.truncf %188 : vector<4x8x8xf32> to vector<4x8x8xbf16>
    %cst_254 = arith.constant dense<0.000000e+00> : vector<4x6x8xf32>
    %209 = tpu.matmul %207, %208, %cst_254 {dimension_numbers = #tpu.dot_dimension_numbers<[2], [2], [1], [1], [0, 0, 0, 1, 1, 1], [0], [0]>} : vector<4x6x8xbf16>, vector<4x8x8xbf16>, vector<4x6x8xf32> -> vector<4x6x8xf32>
    %cst_255 = arith.constant -1.000000e+30 : f32
    %210 = vector.shape_cast %113 : vector<1x1x8xi1> to vector<1x1x8xi1>
    %211 = vector.broadcast %210 : vector<1x1x8xi1> to vector<4x6x8xi1>
    %212 = vector.broadcast %cst_255 : f32 to vector<4x6x8xf32>
    %213 = arith.select %211, %209, %212 : vector<4x6x8xi1>, vector<4x6x8xf32>
    %cst_256 = arith.constant dense<0xFF800000> : vector<4x6xf32>
    %214 = vector.multi_reduction <maximumf>, %213, %cst_256 [2] : vector<4x6x8xf32> to vector<4x6xf32>
    %215 = vector.shape_cast %214 : vector<4x6xf32> to vector<4x6x1xf32>
    %216 = vector.broadcast %215 : vector<4x6x1xf32> to vector<4x6x8xf32>
    %217 = arith.subf %213, %216 : vector<4x6x8xf32>
    %218 = math.exp %217 : vector<4x6x8xf32>
    %cst_257 = arith.constant dense<0.000000e+00> : vector<4x6xf32>
    %219 = vector.multi_reduction <add>, %218, %cst_257 [2] : vector<4x6x8xf32> to vector<4x6xf32>
    %220 = vector.shape_cast %219 : vector<4x6xf32> to vector<4x6x1xf32>
    %221 = tpu.reciprocal %220 {approx = true} : vector<4x6x1xf32> -> vector<4x6x1xf32>
    %222 = vector.broadcast %221 : vector<4x6x1xf32> to vector<4x6x8xf32>
    %223 = arith.mulf %218, %222 : vector<4x6x8xf32>
    %224 = arith.truncf %223 : vector<4x6x8xf32> to vector<4x6x8xbf16>
    %225 = arith.truncf %196 : vector<4x8x8xf32> to vector<4x8x8xbf16>
    %cst_258 = arith.constant dense<0.000000e+00> : vector<4x6x8xf32>
    %226 = tpu.matmul %224, %225, %cst_258 {dimension_numbers = #tpu.dot_dimension_numbers<[2], [1], [1], [2], [0, 0, 0, 1, 1, 2], [0], [0]>} : vector<4x6x8xbf16>, vector<4x8x8xbf16>, vector<4x6x8xf32> -> vector<4x6x8xf32>
    %227 = arith.truncf %119 : vector<6x32xf32> to vector<6x32xbf16>
    %cst_259 = arith.constant dense<0.000000e+00> : vector<6x32xf32>
    %228 = tpu.matmul %227, %14, %cst_259 {dimension_numbers = #tpu.dot_dimension_numbers<[1], [0], [0], [1], [0, 0, 1, 1], [], []>} : vector<6x32xbf16>, vector<32x32xbf16>, vector<6x32xf32> -> vector<6x32xf32>
    %229 = arith.truncf %226 : vector<4x6x8xf32> to vector<4x6x8xbf16>
    %cst_260 = arith.constant dense<0.000000e+00> : vector<4x6x32xf32>
    %230 = tpu.matmul %229, %15, %cst_260 {dimension_numbers = #tpu.dot_dimension_numbers<[2], [1], [1], [2], [0, 0, 0, 1, 1, 2], [0], [0]>} : vector<4x6x8xbf16>, vector<4x8x32xbf16>, vector<4x6x32xf32> -> vector<4x6x32xf32>
    %cst_261 = arith.constant dense<0.000000e+00> : vector<6x32xf32>
    %231 = vector.multi_reduction <add>, %230, %cst_261 [0] : vector<4x6x32xf32> to vector<6x32xf32>
    %232 = arith.addf %228, %231 : vector<6x32xf32>
    %233 = vector.broadcast %10 : vector<1x32xf32> to vector<6x32xf32>
    %234 = arith.addf %232, %233 : vector<6x32xf32>
    %235 = arith.addf %234, %119 : vector<6x32xf32>
    %236 = arith.addf %179, %125 : vector<8x32xf32>
    %cst_262 = arith.constant dense<0.000000e+00> : vector<1xf32>
    %237 = vector.multi_reduction <add>, %92, %cst_262 [0] : vector<6x1xf32> to vector<1xf32>
    %238 = vector.shape_cast %237 : vector<1xf32> to vector<1x1xf32>
    %cst_263 = arith.constant 1.000000e+00 : f32
    %239 = vector.broadcast %cst_263 : f32 to vector<1x1xf32>
    %240 = arith.maximumf %238, %239 : vector<1x1xf32>
    %cst_264 = arith.constant dense<0.000000e+00> : vector<1xf32>
    %241 = vector.multi_reduction <add>, %97, %cst_264 [0] : vector<8x1xf32> to vector<1xf32>
    %242 = vector.shape_cast %241 : vector<1xf32> to vector<1x1xf32>
    %cst_265 = arith.constant 1.000000e+00 : f32
    %243 = vector.broadcast %cst_265 : f32 to vector<1x1xf32>
    %244 = arith.maximumf %242, %243 : vector<1x1xf32>
    %245 = vector.broadcast %92 : vector<6x1xf32> to vector<6x32xf32>
    %246 = arith.mulf %235, %245 : vector<6x32xf32>
    %cst_266 = arith.constant dense<0.000000e+00> : vector<32xf32>
    %247 = vector.multi_reduction <add>, %246, %cst_266 [0] : vector<6x32xf32> to vector<32xf32>
    %248 = vector.shape_cast %247 : vector<32xf32> to vector<1x32xf32>
    %249 = tpu.reciprocal %240 {approx = true} : vector<1x1xf32> -> vector<1x1xf32>
    %250 = vector.broadcast %249 : vector<1x1xf32> to vector<1x32xf32>
    %251 = arith.mulf %248, %250 : vector<1x32xf32>
    %252 = vector.broadcast %97 : vector<8x1xf32> to vector<8x32xf32>
    %253 = arith.mulf %236, %252 : vector<8x32xf32>
    %cst_267 = arith.constant dense<0.000000e+00> : vector<32xf32>
    %254 = vector.multi_reduction <add>, %253, %cst_267 [0] : vector<8x32xf32> to vector<32xf32>
    %255 = vector.shape_cast %254 : vector<32xf32> to vector<1x32xf32>
    %256 = tpu.reciprocal %244 {approx = true} : vector<1x1xf32> -> vector<1x1xf32>
    %257 = vector.broadcast %256 : vector<1x1xf32> to vector<1x32xf32>
    %258 = arith.mulf %255, %257 : vector<1x32xf32>
    %259 = arith.truncf %251 : vector<1x32xf32> to vector<1x32xbf16>
    %260 = vector.shape_cast %259 : vector<1x32xbf16> to vector<1x1x32xbf16>
    %261 = vector.broadcast %260 : vector<1x1x32xbf16> to vector<2x1x32xbf16>
    %cst_268 = arith.constant dense<0.000000e+00> : vector<2x1x16xf32>
    %262 = tpu.matmul %261, %34, %cst_268 {dimension_numbers = #tpu.dot_dimension_numbers<[2], [1], [1], [2], [0, 0, 0, 1, 1, 2], [0], [0]>} : vector<2x1x32xbf16>, vector<2x32x16xbf16>, vector<2x1x16xf32> -> vector<2x1x16xf32>
    %263 = arith.addf %262, %18 : vector<2x1x16xf32>
    %264 = arith.negf %263 : vector<2x1x16xf32>
    %265 = math.exp %264 : vector<2x1x16xf32>
    %cst_269 = arith.constant 1.000000e+00 : f32
    %266 = vector.broadcast %cst_269 : f32 to vector<2x1x16xf32>
    %267 = arith.addf %266, %265 : vector<2x1x16xf32>
    %268 = arith.divf %266, %267 : vector<2x1x16xf32>
    %cst_270 = arith.constant 1.000000e+00 : f32
    %269 = vector.broadcast %cst_270 : f32 to vector<2x1x16xf32>
    %270 = arith.addf %269, %268 : vector<2x1x16xf32>
    %271 = arith.truncf %258 : vector<1x32xf32> to vector<1x32xbf16>
    %272 = vector.shape_cast %271 : vector<1x32xbf16> to vector<1x1x32xbf16>
    %273 = vector.broadcast %272 : vector<1x1x32xbf16> to vector<2x1x32xbf16>
    %cst_271 = arith.constant dense<0.000000e+00> : vector<2x1x16xf32>
    %274 = tpu.matmul %273, %35, %cst_271 {dimension_numbers = #tpu.dot_dimension_numbers<[2], [1], [1], [2], [0, 0, 0, 1, 1, 2], [0], [0]>} : vector<2x1x32xbf16>, vector<2x32x16xbf16>, vector<2x1x16xf32> -> vector<2x1x16xf32>
    %275 = arith.addf %274, %19 : vector<2x1x16xf32>
    %276 = arith.negf %275 : vector<2x1x16xf32>
    %277 = math.exp %276 : vector<2x1x16xf32>
    %cst_272 = arith.constant 1.000000e+00 : f32
    %278 = vector.broadcast %cst_272 : f32 to vector<2x1x16xf32>
    %279 = arith.addf %278, %277 : vector<2x1x16xf32>
    %280 = arith.divf %278, %279 : vector<2x1x16xf32>
    %cst_273 = arith.constant 1.000000e+00 : f32
    %281 = vector.broadcast %cst_273 : f32 to vector<2x1x16xf32>
    %282 = arith.addf %281, %280 : vector<2x1x16xf32>
    %283 = arith.truncf %235 : vector<6x32xf32> to vector<6x32xbf16>
    %284 = vector.shape_cast %283 : vector<6x32xbf16> to vector<1x6x32xbf16>
    %285 = vector.broadcast %284 : vector<1x6x32xbf16> to vector<2x6x32xbf16>
    %cst_274 = arith.constant dense<0.000000e+00> : vector<2x6x16xf32>
    %286 = tpu.matmul %285, %31, %cst_274 {dimension_numbers = #tpu.dot_dimension_numbers<[2], [1], [1], [2], [0, 0, 0, 1, 1, 2], [0], [0]>} : vector<2x6x32xbf16>, vector<2x32x16xbf16>, vector<2x6x16xf32> -> vector<2x6x16xf32>
    %287 = vector.broadcast %28 : vector<2x1x16xf32> to vector<2x6x16xf32>
    %288 = arith.addf %286, %287 : vector<2x6x16xf32>
    %289 = vector.broadcast %102 : vector<1x6x1xf32> to vector<2x6x16xf32>
    %290 = arith.mulf %288, %289 : vector<2x6x16xf32>
    %291 = arith.truncf %235 : vector<6x32xf32> to vector<6x32xbf16>
    %292 = vector.shape_cast %291 : vector<6x32xbf16> to vector<1x6x32xbf16>
    %293 = vector.broadcast %292 : vector<1x6x32xbf16> to vector<2x6x32xbf16>
    %cst_275 = arith.constant dense<0.000000e+00> : vector<2x6x16xf32>
    %294 = tpu.matmul %293, %32, %cst_275 {dimension_numbers = #tpu.dot_dimension_numbers<[2], [1], [1], [2], [0, 0, 0, 1, 1, 2], [0], [0]>} : vector<2x6x32xbf16>, vector<2x32x16xbf16>, vector<2x6x16xf32> -> vector<2x6x16xf32>
    %295 = vector.broadcast %29 : vector<2x1x16xf32> to vector<2x6x16xf32>
    %296 = arith.addf %294, %295 : vector<2x6x16xf32>
    %297 = vector.broadcast %102 : vector<1x6x1xf32> to vector<2x6x16xf32>
    %298 = arith.mulf %296, %297 : vector<2x6x16xf32>
    %299 = arith.truncf %235 : vector<6x32xf32> to vector<6x32xbf16>
    %300 = vector.shape_cast %299 : vector<6x32xbf16> to vector<1x6x32xbf16>
    %301 = vector.broadcast %300 : vector<1x6x32xbf16> to vector<2x6x32xbf16>
    %cst_276 = arith.constant dense<0.000000e+00> : vector<2x6x16xf32>
    %302 = tpu.matmul %301, %33, %cst_276 {dimension_numbers = #tpu.dot_dimension_numbers<[2], [1], [1], [2], [0, 0, 0, 1, 1, 2], [0], [0]>} : vector<2x6x32xbf16>, vector<2x32x16xbf16>, vector<2x6x16xf32> -> vector<2x6x16xf32>
    %303 = vector.broadcast %30 : vector<2x1x16xf32> to vector<2x6x16xf32>
    %304 = arith.addf %302, %303 : vector<2x6x16xf32>
    %305 = vector.broadcast %102 : vector<1x6x1xf32> to vector<2x6x16xf32>
    %306 = arith.mulf %304, %305 : vector<2x6x16xf32>
    %307 = arith.truncf %236 : vector<8x32xf32> to vector<8x32xbf16>
    %308 = vector.shape_cast %307 : vector<8x32xbf16> to vector<1x8x32xbf16>
    %309 = vector.broadcast %308 : vector<1x8x32xbf16> to vector<2x8x32xbf16>
    %cst_277 = arith.constant dense<0.000000e+00> : vector<2x8x16xf32>
    %310 = tpu.matmul %309, %25, %cst_277 {dimension_numbers = #tpu.dot_dimension_numbers<[2], [1], [1], [2], [0, 0, 0, 1, 1, 2], [0], [0]>} : vector<2x8x32xbf16>, vector<2x32x16xbf16>, vector<2x8x16xf32> -> vector<2x8x16xf32>
    %311 = vector.broadcast %22 : vector<2x1x16xf32> to vector<2x8x16xf32>
    %312 = arith.addf %310, %311 : vector<2x8x16xf32>
    %313 = vector.broadcast %107 : vector<1x8x1xf32> to vector<2x8x16xf32>
    %314 = arith.mulf %312, %313 : vector<2x8x16xf32>
    %315 = arith.truncf %236 : vector<8x32xf32> to vector<8x32xbf16>
    %316 = vector.shape_cast %315 : vector<8x32xbf16> to vector<1x8x32xbf16>
    %317 = vector.broadcast %316 : vector<1x8x32xbf16> to vector<2x8x32xbf16>
    %cst_278 = arith.constant dense<0.000000e+00> : vector<2x8x16xf32>
    %318 = tpu.matmul %317, %26, %cst_278 {dimension_numbers = #tpu.dot_dimension_numbers<[2], [1], [1], [2], [0, 0, 0, 1, 1, 2], [0], [0]>} : vector<2x8x32xbf16>, vector<2x32x16xbf16>, vector<2x8x16xf32> -> vector<2x8x16xf32>
    %319 = vector.broadcast %23 : vector<2x1x16xf32> to vector<2x8x16xf32>
    %320 = arith.addf %318, %319 : vector<2x8x16xf32>
    %321 = vector.broadcast %107 : vector<1x8x1xf32> to vector<2x8x16xf32>
    %322 = arith.mulf %320, %321 : vector<2x8x16xf32>
    %323 = arith.truncf %236 : vector<8x32xf32> to vector<8x32xbf16>
    %324 = vector.shape_cast %323 : vector<8x32xbf16> to vector<1x8x32xbf16>
    %325 = vector.broadcast %324 : vector<1x8x32xbf16> to vector<2x8x32xbf16>
    %cst_279 = arith.constant dense<0.000000e+00> : vector<2x8x16xf32>
    %326 = tpu.matmul %325, %27, %cst_279 {dimension_numbers = #tpu.dot_dimension_numbers<[2], [1], [1], [2], [0, 0, 0, 1, 1, 2], [0], [0]>} : vector<2x8x32xbf16>, vector<2x32x16xbf16>, vector<2x8x16xf32> -> vector<2x8x16xf32>
    %327 = vector.broadcast %24 : vector<2x1x16xf32> to vector<2x8x16xf32>
    %328 = arith.addf %326, %327 : vector<2x8x16xf32>
    %329 = vector.broadcast %107 : vector<1x8x1xf32> to vector<2x8x16xf32>
    %330 = arith.mulf %328, %329 : vector<2x8x16xf32>
    %331 = arith.mulf %282, %282 : vector<2x1x16xf32>
    %cst_280 = arith.constant 2.500000e-01 : f32
    %332 = vector.broadcast %cst_280 : f32 to vector<2x1x16xf32>
    %333 = arith.mulf %331, %332 : vector<2x1x16xf32>
    %334 = vector.broadcast %333 : vector<2x1x16xf32> to vector<2x6x16xf32>
    %335 = arith.mulf %298, %334 : vector<2x6x16xf32>
    %336 = arith.truncf %335 : vector<2x6x16xf32> to vector<2x6x16xbf16>
    %337 = arith.truncf %290 : vector<2x6x16xf32> to vector<2x6x16xbf16>
    %cst_281 = arith.constant dense<0.000000e+00> : vector<2x6x6xf32>
    %338 = tpu.matmul %336, %337, %cst_281 {dimension_numbers = #tpu.dot_dimension_numbers<[2], [2], [1], [1], [0, 0, 0, 1, 1, 1], [0], [0]>} : vector<2x6x16xbf16>, vector<2x6x16xbf16>, vector<2x6x6xf32> -> vector<2x6x6xf32>
    %cst_282 = arith.constant -1.000000e+30 : f32
    %339 = vector.shape_cast %110 : vector<1x1x6xi1> to vector<1x1x6xi1>
    %340 = vector.broadcast %339 : vector<1x1x6xi1> to vector<2x6x6xi1>
    %341 = vector.broadcast %cst_282 : f32 to vector<2x6x6xf32>
    %342 = arith.select %340, %338, %341 : vector<2x6x6xi1>, vector<2x6x6xf32>
    %cst_283 = arith.constant dense<0xFF800000> : vector<2x6xf32>
    %343 = vector.multi_reduction <maximumf>, %342, %cst_283 [2] : vector<2x6x6xf32> to vector<2x6xf32>
    %344 = vector.shape_cast %343 : vector<2x6xf32> to vector<2x6x1xf32>
    %345 = vector.broadcast %344 : vector<2x6x1xf32> to vector<2x6x6xf32>
    %346 = arith.subf %342, %345 : vector<2x6x6xf32>
    %347 = math.exp %346 : vector<2x6x6xf32>
    %cst_284 = arith.constant dense<0.000000e+00> : vector<2x6xf32>
    %348 = vector.multi_reduction <add>, %347, %cst_284 [2] : vector<2x6x6xf32> to vector<2x6xf32>
    %349 = vector.shape_cast %348 : vector<2x6xf32> to vector<2x6x1xf32>
    %350 = tpu.reciprocal %349 {approx = true} : vector<2x6x1xf32> -> vector<2x6x1xf32>
    %351 = vector.broadcast %350 : vector<2x6x1xf32> to vector<2x6x6xf32>
    %352 = arith.mulf %347, %351 : vector<2x6x6xf32>
    %353 = arith.truncf %352 : vector<2x6x6xf32> to vector<2x6x6xbf16>
    %354 = arith.truncf %306 : vector<2x6x16xf32> to vector<2x6x16xbf16>
    %cst_285 = arith.constant dense<0.000000e+00> : vector<2x6x16xf32>
    %355 = tpu.matmul %353, %354, %cst_285 {dimension_numbers = #tpu.dot_dimension_numbers<[2], [1], [1], [2], [0, 0, 0, 1, 1, 2], [0], [0]>} : vector<2x6x6xbf16>, vector<2x6x16xbf16>, vector<2x6x16xf32> -> vector<2x6x16xf32>
    %356 = vector.broadcast %282 : vector<2x1x16xf32> to vector<2x6x16xf32>
    %357 = arith.mulf %355, %356 : vector<2x6x16xf32>
    %358 = arith.mulf %270, %270 : vector<2x1x16xf32>
    %cst_286 = arith.constant 2.500000e-01 : f32
    %359 = vector.broadcast %cst_286 : f32 to vector<2x1x16xf32>
    %360 = arith.mulf %358, %359 : vector<2x1x16xf32>
    %361 = vector.broadcast %360 : vector<2x1x16xf32> to vector<2x8x16xf32>
    %362 = arith.mulf %322, %361 : vector<2x8x16xf32>
    %363 = arith.truncf %362 : vector<2x8x16xf32> to vector<2x8x16xbf16>
    %364 = arith.truncf %314 : vector<2x8x16xf32> to vector<2x8x16xbf16>
    %cst_287 = arith.constant dense<0.000000e+00> : vector<2x8x8xf32>
    %365 = tpu.matmul %363, %364, %cst_287 {dimension_numbers = #tpu.dot_dimension_numbers<[2], [2], [1], [1], [0, 0, 0, 1, 1, 1], [0], [0]>} : vector<2x8x16xbf16>, vector<2x8x16xbf16>, vector<2x8x8xf32> -> vector<2x8x8xf32>
    %cst_288 = arith.constant -1.000000e+30 : f32
    %366 = vector.shape_cast %113 : vector<1x1x8xi1> to vector<1x1x8xi1>
    %367 = vector.broadcast %366 : vector<1x1x8xi1> to vector<2x8x8xi1>
    %368 = vector.broadcast %cst_288 : f32 to vector<2x8x8xf32>
    %369 = arith.select %367, %365, %368 : vector<2x8x8xi1>, vector<2x8x8xf32>
    %cst_289 = arith.constant dense<0xFF800000> : vector<2x8xf32>
    %370 = vector.multi_reduction <maximumf>, %369, %cst_289 [2] : vector<2x8x8xf32> to vector<2x8xf32>
    %371 = vector.shape_cast %370 : vector<2x8xf32> to vector<2x8x1xf32>
    %372 = vector.broadcast %371 : vector<2x8x1xf32> to vector<2x8x8xf32>
    %373 = arith.subf %369, %372 : vector<2x8x8xf32>
    %374 = math.exp %373 : vector<2x8x8xf32>
    %cst_290 = arith.constant dense<0.000000e+00> : vector<2x8xf32>
    %375 = vector.multi_reduction <add>, %374, %cst_290 [2] : vector<2x8x8xf32> to vector<2x8xf32>
    %376 = vector.shape_cast %375 : vector<2x8xf32> to vector<2x8x1xf32>
    %377 = tpu.reciprocal %376 {approx = true} : vector<2x8x1xf32> -> vector<2x8x1xf32>
    %378 = vector.broadcast %377 : vector<2x8x1xf32> to vector<2x8x8xf32>
    %379 = arith.mulf %374, %378 : vector<2x8x8xf32>
    %380 = arith.truncf %379 : vector<2x8x8xf32> to vector<2x8x8xbf16>
    %381 = arith.truncf %330 : vector<2x8x16xf32> to vector<2x8x16xbf16>
    %cst_291 = arith.constant dense<0.000000e+00> : vector<2x8x16xf32>
    %382 = tpu.matmul %380, %381, %cst_291 {dimension_numbers = #tpu.dot_dimension_numbers<[2], [1], [1], [2], [0, 0, 0, 1, 1, 2], [0], [0]>} : vector<2x8x8xbf16>, vector<2x8x16xbf16>, vector<2x8x16xf32> -> vector<2x8x16xf32>
    %383 = vector.broadcast %270 : vector<2x1x16xf32> to vector<2x8x16xf32>
    %384 = arith.mulf %382, %383 : vector<2x8x16xf32>
    %385 = arith.truncf %235 : vector<6x32xf32> to vector<6x32xbf16>
    %cst_292 = arith.constant dense<0.000000e+00> : vector<6x32xf32>
    %386 = tpu.matmul %385, %38, %cst_292 {dimension_numbers = #tpu.dot_dimension_numbers<[1], [0], [0], [1], [0, 0, 1, 1], [], []>} : vector<6x32xbf16>, vector<32x32xbf16>, vector<6x32xf32> -> vector<6x32xf32>
    %387 = arith.truncf %357 : vector<2x6x16xf32> to vector<2x6x16xbf16>
    %cst_293 = arith.constant dense<0.000000e+00> : vector<2x6x32xf32>
    %388 = tpu.matmul %387, %39, %cst_293 {dimension_numbers = #tpu.dot_dimension_numbers<[2], [1], [1], [2], [0, 0, 0, 1, 1, 2], [0], [0]>} : vector<2x6x16xbf16>, vector<2x16x32xbf16>, vector<2x6x32xf32> -> vector<2x6x32xf32>
    %cst_294 = arith.constant dense<0.000000e+00> : vector<6x32xf32>
    %389 = vector.multi_reduction <add>, %388, %cst_294 [0] : vector<2x6x32xf32> to vector<6x32xf32>
    %390 = arith.addf %386, %389 : vector<6x32xf32>
    %391 = vector.broadcast %21 : vector<1x32xf32> to vector<6x32xf32>
    %392 = arith.addf %390, %391 : vector<6x32xf32>
    %393 = arith.truncf %236 : vector<8x32xf32> to vector<8x32xbf16>
    %cst_295 = arith.constant dense<0.000000e+00> : vector<8x32xf32>
    %394 = tpu.matmul %393, %36, %cst_295 {dimension_numbers = #tpu.dot_dimension_numbers<[1], [0], [0], [1], [0, 0, 1, 1], [], []>} : vector<8x32xbf16>, vector<32x32xbf16>, vector<8x32xf32> -> vector<8x32xf32>
    %395 = arith.truncf %384 : vector<2x8x16xf32> to vector<2x8x16xbf16>
    %cst_296 = arith.constant dense<0.000000e+00> : vector<2x8x32xf32>
    %396 = tpu.matmul %395, %37, %cst_296 {dimension_numbers = #tpu.dot_dimension_numbers<[2], [1], [1], [2], [0, 0, 0, 1, 1, 2], [0], [0]>} : vector<2x8x16xbf16>, vector<2x16x32xbf16>, vector<2x8x32xf32> -> vector<2x8x32xf32>
    %cst_297 = arith.constant dense<0.000000e+00> : vector<8x32xf32>
    %397 = vector.multi_reduction <add>, %396, %cst_297 [0] : vector<2x8x32xf32> to vector<8x32xf32>
    %398 = arith.addf %394, %397 : vector<8x32xf32>
    %399 = vector.broadcast %20 : vector<1x32xf32> to vector<8x32xf32>
    %400 = arith.addf %398, %399 : vector<8x32xf32>
    %401 = arith.addf %119, %234 : vector<6x32xf32>
    %402 = arith.addf %401, %392 : vector<6x32xf32>
    %403 = arith.addf %125, %179 : vector<8x32xf32>
    %404 = arith.addf %403, %400 : vector<8x32xf32>
    %405 = arith.addf %392, %234 : vector<6x32xf32>
    %406 = arith.addf %405, %119 : vector<6x32xf32>
    %407 = arith.addf %400, %179 : vector<8x32xf32>
    %408 = arith.addf %407, %125 : vector<8x32xf32>
    %409 = arith.truncf %406 : vector<6x32xf32> to vector<6x32xbf16>
    %410 = vector.shape_cast %409 : vector<6x32xbf16> to vector<1x6x32xbf16>
    %411 = vector.broadcast %410 : vector<1x6x32xbf16> to vector<4x6x32xbf16>
    %cst_298 = arith.constant dense<0.000000e+00> : vector<4x6x8xf32>
    %412 = tpu.matmul %411, %44, %cst_298 {dimension_numbers = #tpu.dot_dimension_numbers<[2], [1], [1], [2], [0, 0, 0, 1, 1, 2], [0], [0]>} : vector<4x6x32xbf16>, vector<4x32x8xbf16>, vector<4x6x8xf32> -> vector<4x6x8xf32>
    %413 = vector.broadcast %40 : vector<4x1x8xf32> to vector<4x6x8xf32>
    %414 = arith.addf %412, %413 : vector<4x6x8xf32>
    %415 = vector.broadcast %102 : vector<1x6x1xf32> to vector<4x6x8xf32>
    %416 = arith.mulf %414, %415 : vector<4x6x8xf32>
    %417 = arith.truncf %406 : vector<6x32xf32> to vector<6x32xbf16>
    %418 = vector.shape_cast %417 : vector<6x32xbf16> to vector<1x6x32xbf16>
    %419 = vector.broadcast %418 : vector<1x6x32xbf16> to vector<4x6x32xbf16>
    %cst_299 = arith.constant dense<0.000000e+00> : vector<4x6x8xf32>
    %420 = tpu.matmul %419, %48, %cst_299 {dimension_numbers = #tpu.dot_dimension_numbers<[2], [1], [1], [2], [0, 0, 0, 1, 1, 2], [0], [0]>} : vector<4x6x32xbf16>, vector<4x32x8xbf16>, vector<4x6x8xf32> -> vector<4x6x8xf32>
    %421 = vector.broadcast %43 : vector<4x1x8xf32> to vector<4x6x8xf32>
    %422 = arith.addf %420, %421 : vector<4x6x8xf32>
    %423 = vector.broadcast %102 : vector<1x6x1xf32> to vector<4x6x8xf32>
    %424 = arith.mulf %422, %423 : vector<4x6x8xf32>
    %425 = arith.truncf %408 : vector<8x32xf32> to vector<8x32xbf16>
    %426 = vector.shape_cast %425 : vector<8x32xbf16> to vector<1x8x32xbf16>
    %427 = vector.broadcast %426 : vector<1x8x32xbf16> to vector<4x8x32xbf16>
    %cst_300 = arith.constant dense<0.000000e+00> : vector<4x8x8xf32>
    %428 = tpu.matmul %427, %47, %cst_300 {dimension_numbers = #tpu.dot_dimension_numbers<[2], [1], [1], [2], [0, 0, 0, 1, 1, 2], [0], [0]>} : vector<4x8x32xbf16>, vector<4x32x8xbf16>, vector<4x8x8xf32> -> vector<4x8x8xf32>
    %429 = vector.broadcast %42 : vector<4x1x8xf32> to vector<4x8x8xf32>
    %430 = arith.addf %428, %429 : vector<4x8x8xf32>
    %431 = vector.broadcast %107 : vector<1x8x1xf32> to vector<4x8x8xf32>
    %432 = arith.mulf %430, %431 : vector<4x8x8xf32>
    %cst_301 = arith.constant 0.353553385 : f32
    %433 = vector.broadcast %cst_301 : f32 to vector<4x8x8xf32>
    %434 = arith.mulf %432, %433 : vector<4x8x8xf32>
    %435 = arith.truncf %434 : vector<4x8x8xf32> to vector<4x8x8xbf16>
    %436 = arith.truncf %416 : vector<4x6x8xf32> to vector<4x6x8xbf16>
    %cst_302 = arith.constant dense<0.000000e+00> : vector<4x8x6xf32>
    %437 = tpu.matmul %435, %436, %cst_302 {dimension_numbers = #tpu.dot_dimension_numbers<[2], [2], [1], [1], [0, 0, 0, 1, 1, 1], [0], [0]>} : vector<4x8x8xbf16>, vector<4x6x8xbf16>, vector<4x8x6xf32> -> vector<4x8x6xf32>
    %cst_303 = arith.constant -1.000000e+30 : f32
    %438 = vector.shape_cast %110 : vector<1x1x6xi1> to vector<1x1x6xi1>
    %439 = vector.broadcast %438 : vector<1x1x6xi1> to vector<4x8x6xi1>
    %440 = vector.broadcast %cst_303 : f32 to vector<4x8x6xf32>
    %441 = arith.select %439, %437, %440 : vector<4x8x6xi1>, vector<4x8x6xf32>
    %cst_304 = arith.constant dense<0xFF800000> : vector<4x8xf32>
    %442 = vector.multi_reduction <maximumf>, %441, %cst_304 [2] : vector<4x8x6xf32> to vector<4x8xf32>
    %443 = vector.shape_cast %442 : vector<4x8xf32> to vector<4x8x1xf32>
    %444 = vector.broadcast %443 : vector<4x8x1xf32> to vector<4x8x6xf32>
    %445 = arith.subf %441, %444 : vector<4x8x6xf32>
    %446 = math.exp %445 : vector<4x8x6xf32>
    %cst_305 = arith.constant dense<0.000000e+00> : vector<4x8xf32>
    %447 = vector.multi_reduction <add>, %446, %cst_305 [2] : vector<4x8x6xf32> to vector<4x8xf32>
    %448 = vector.shape_cast %447 : vector<4x8xf32> to vector<4x8x1xf32>
    %449 = tpu.reciprocal %448 {approx = true} : vector<4x8x1xf32> -> vector<4x8x1xf32>
    %450 = vector.broadcast %449 : vector<4x8x1xf32> to vector<4x8x6xf32>
    %451 = arith.mulf %446, %450 : vector<4x8x6xf32>
    %452 = arith.truncf %451 : vector<4x8x6xf32> to vector<4x8x6xbf16>
    %453 = arith.truncf %424 : vector<4x6x8xf32> to vector<4x6x8xbf16>
    %cst_306 = arith.constant dense<0.000000e+00> : vector<4x8x8xf32>
    %454 = tpu.matmul %452, %453, %cst_306 {dimension_numbers = #tpu.dot_dimension_numbers<[2], [1], [1], [2], [0, 0, 0, 1, 1, 2], [0], [0]>} : vector<4x8x6xbf16>, vector<4x6x8xbf16>, vector<4x8x8xf32> -> vector<4x8x8xf32>
    %455 = arith.truncf %408 : vector<8x32xf32> to vector<8x32xbf16>
    %cst_307 = arith.constant dense<0.000000e+00> : vector<8x32xf32>
    %456 = tpu.matmul %455, %45, %cst_307 {dimension_numbers = #tpu.dot_dimension_numbers<[1], [0], [0], [1], [0, 0, 1, 1], [], []>} : vector<8x32xbf16>, vector<32x32xbf16>, vector<8x32xf32> -> vector<8x32xf32>
    %457 = arith.truncf %454 : vector<4x8x8xf32> to vector<4x8x8xbf16>
    %cst_308 = arith.constant dense<0.000000e+00> : vector<4x8x32xf32>
    %458 = tpu.matmul %457, %46, %cst_308 {dimension_numbers = #tpu.dot_dimension_numbers<[2], [1], [1], [2], [0, 0, 0, 1, 1, 2], [0], [0]>} : vector<4x8x8xbf16>, vector<4x8x32xbf16>, vector<4x8x32xf32> -> vector<4x8x32xf32>
    %cst_309 = arith.constant dense<0.000000e+00> : vector<8x32xf32>
    %459 = vector.multi_reduction <add>, %458, %cst_309 [0] : vector<4x8x32xf32> to vector<8x32xf32>
    %460 = arith.addf %456, %459 : vector<8x32xf32>
    %461 = vector.broadcast %41 : vector<1x32xf32> to vector<8x32xf32>
    %462 = arith.addf %460, %461 : vector<8x32xf32>
    %463 = arith.addf %462, %408 : vector<8x32xf32>
    %464 = arith.truncf %463 : vector<8x32xf32> to vector<8x32xbf16>
    %465 = vector.shape_cast %464 : vector<8x32xbf16> to vector<1x8x32xbf16>
    %466 = vector.broadcast %465 : vector<1x8x32xbf16> to vector<4x8x32xbf16>
    %cst_310 = arith.constant dense<0.000000e+00> : vector<4x8x8xf32>
    %467 = tpu.matmul %466, %53, %cst_310 {dimension_numbers = #tpu.dot_dimension_numbers<[2], [1], [1], [2], [0, 0, 0, 1, 1, 2], [0], [0]>} : vector<4x8x32xbf16>, vector<4x32x8xbf16>, vector<4x8x8xf32> -> vector<4x8x8xf32>
    %468 = vector.broadcast %49 : vector<4x1x8xf32> to vector<4x8x8xf32>
    %469 = arith.addf %467, %468 : vector<4x8x8xf32>
    %470 = vector.broadcast %107 : vector<1x8x1xf32> to vector<4x8x8xf32>
    %471 = arith.mulf %469, %470 : vector<4x8x8xf32>
    %472 = arith.truncf %463 : vector<8x32xf32> to vector<8x32xbf16>
    %473 = vector.shape_cast %472 : vector<8x32xbf16> to vector<1x8x32xbf16>
    %474 = vector.broadcast %473 : vector<1x8x32xbf16> to vector<4x8x32xbf16>
    %cst_311 = arith.constant dense<0.000000e+00> : vector<4x8x8xf32>
    %475 = tpu.matmul %474, %57, %cst_311 {dimension_numbers = #tpu.dot_dimension_numbers<[2], [1], [1], [2], [0, 0, 0, 1, 1, 2], [0], [0]>} : vector<4x8x32xbf16>, vector<4x32x8xbf16>, vector<4x8x8xf32> -> vector<4x8x8xf32>
    %476 = vector.broadcast %52 : vector<4x1x8xf32> to vector<4x8x8xf32>
    %477 = arith.addf %475, %476 : vector<4x8x8xf32>
    %478 = vector.broadcast %107 : vector<1x8x1xf32> to vector<4x8x8xf32>
    %479 = arith.mulf %477, %478 : vector<4x8x8xf32>
    %480 = arith.truncf %406 : vector<6x32xf32> to vector<6x32xbf16>
    %481 = vector.shape_cast %480 : vector<6x32xbf16> to vector<1x6x32xbf16>
    %482 = vector.broadcast %481 : vector<1x6x32xbf16> to vector<4x6x32xbf16>
    %cst_312 = arith.constant dense<0.000000e+00> : vector<4x6x8xf32>
    %483 = tpu.matmul %482, %56, %cst_312 {dimension_numbers = #tpu.dot_dimension_numbers<[2], [1], [1], [2], [0, 0, 0, 1, 1, 2], [0], [0]>} : vector<4x6x32xbf16>, vector<4x32x8xbf16>, vector<4x6x8xf32> -> vector<4x6x8xf32>
    %484 = vector.broadcast %51 : vector<4x1x8xf32> to vector<4x6x8xf32>
    %485 = arith.addf %483, %484 : vector<4x6x8xf32>
    %486 = vector.broadcast %102 : vector<1x6x1xf32> to vector<4x6x8xf32>
    %487 = arith.mulf %485, %486 : vector<4x6x8xf32>
    %cst_313 = arith.constant 0.353553385 : f32
    %488 = vector.broadcast %cst_313 : f32 to vector<4x6x8xf32>
    %489 = arith.mulf %487, %488 : vector<4x6x8xf32>
    %490 = arith.truncf %489 : vector<4x6x8xf32> to vector<4x6x8xbf16>
    %491 = arith.truncf %471 : vector<4x8x8xf32> to vector<4x8x8xbf16>
    %cst_314 = arith.constant dense<0.000000e+00> : vector<4x6x8xf32>
    %492 = tpu.matmul %490, %491, %cst_314 {dimension_numbers = #tpu.dot_dimension_numbers<[2], [2], [1], [1], [0, 0, 0, 1, 1, 1], [0], [0]>} : vector<4x6x8xbf16>, vector<4x8x8xbf16>, vector<4x6x8xf32> -> vector<4x6x8xf32>
    %cst_315 = arith.constant -1.000000e+30 : f32
    %493 = vector.shape_cast %113 : vector<1x1x8xi1> to vector<1x1x8xi1>
    %494 = vector.broadcast %493 : vector<1x1x8xi1> to vector<4x6x8xi1>
    %495 = vector.broadcast %cst_315 : f32 to vector<4x6x8xf32>
    %496 = arith.select %494, %492, %495 : vector<4x6x8xi1>, vector<4x6x8xf32>
    %cst_316 = arith.constant dense<0xFF800000> : vector<4x6xf32>
    %497 = vector.multi_reduction <maximumf>, %496, %cst_316 [2] : vector<4x6x8xf32> to vector<4x6xf32>
    %498 = vector.shape_cast %497 : vector<4x6xf32> to vector<4x6x1xf32>
    %499 = vector.broadcast %498 : vector<4x6x1xf32> to vector<4x6x8xf32>
    %500 = arith.subf %496, %499 : vector<4x6x8xf32>
    %501 = math.exp %500 : vector<4x6x8xf32>
    %cst_317 = arith.constant dense<0.000000e+00> : vector<4x6xf32>
    %502 = vector.multi_reduction <add>, %501, %cst_317 [2] : vector<4x6x8xf32> to vector<4x6xf32>
    %503 = vector.shape_cast %502 : vector<4x6xf32> to vector<4x6x1xf32>
    %504 = tpu.reciprocal %503 {approx = true} : vector<4x6x1xf32> -> vector<4x6x1xf32>
    %505 = vector.broadcast %504 : vector<4x6x1xf32> to vector<4x6x8xf32>
    %506 = arith.mulf %501, %505 : vector<4x6x8xf32>
    %507 = arith.truncf %506 : vector<4x6x8xf32> to vector<4x6x8xbf16>
    %508 = arith.truncf %479 : vector<4x8x8xf32> to vector<4x8x8xbf16>
    %cst_318 = arith.constant dense<0.000000e+00> : vector<4x6x8xf32>
    %509 = tpu.matmul %507, %508, %cst_318 {dimension_numbers = #tpu.dot_dimension_numbers<[2], [1], [1], [2], [0, 0, 0, 1, 1, 2], [0], [0]>} : vector<4x6x8xbf16>, vector<4x8x8xbf16>, vector<4x6x8xf32> -> vector<4x6x8xf32>
    %510 = arith.truncf %406 : vector<6x32xf32> to vector<6x32xbf16>
    %cst_319 = arith.constant dense<0.000000e+00> : vector<6x32xf32>
    %511 = tpu.matmul %510, %54, %cst_319 {dimension_numbers = #tpu.dot_dimension_numbers<[1], [0], [0], [1], [0, 0, 1, 1], [], []>} : vector<6x32xbf16>, vector<32x32xbf16>, vector<6x32xf32> -> vector<6x32xf32>
    %512 = arith.truncf %509 : vector<4x6x8xf32> to vector<4x6x8xbf16>
    %cst_320 = arith.constant dense<0.000000e+00> : vector<4x6x32xf32>
    %513 = tpu.matmul %512, %55, %cst_320 {dimension_numbers = #tpu.dot_dimension_numbers<[2], [1], [1], [2], [0, 0, 0, 1, 1, 2], [0], [0]>} : vector<4x6x8xbf16>, vector<4x8x32xbf16>, vector<4x6x32xf32> -> vector<4x6x32xf32>
    %cst_321 = arith.constant dense<0.000000e+00> : vector<6x32xf32>
    %514 = vector.multi_reduction <add>, %513, %cst_321 [0] : vector<4x6x32xf32> to vector<6x32xf32>
    %515 = arith.addf %511, %514 : vector<6x32xf32>
    %516 = vector.broadcast %50 : vector<1x32xf32> to vector<6x32xf32>
    %517 = arith.addf %515, %516 : vector<6x32xf32>
    %518 = arith.addf %517, %406 : vector<6x32xf32>
    %519 = arith.addf %462, %408 : vector<8x32xf32>
    %cst_322 = arith.constant dense<0.000000e+00> : vector<1xf32>
    %520 = vector.multi_reduction <add>, %92, %cst_322 [0] : vector<6x1xf32> to vector<1xf32>
    %521 = vector.shape_cast %520 : vector<1xf32> to vector<1x1xf32>
    %cst_323 = arith.constant 1.000000e+00 : f32
    %522 = vector.broadcast %cst_323 : f32 to vector<1x1xf32>
    %523 = arith.maximumf %521, %522 : vector<1x1xf32>
    %cst_324 = arith.constant dense<0.000000e+00> : vector<1xf32>
    %524 = vector.multi_reduction <add>, %97, %cst_324 [0] : vector<8x1xf32> to vector<1xf32>
    %525 = vector.shape_cast %524 : vector<1xf32> to vector<1x1xf32>
    %cst_325 = arith.constant 1.000000e+00 : f32
    %526 = vector.broadcast %cst_325 : f32 to vector<1x1xf32>
    %527 = arith.maximumf %525, %526 : vector<1x1xf32>
    %528 = vector.broadcast %92 : vector<6x1xf32> to vector<6x32xf32>
    %529 = arith.mulf %518, %528 : vector<6x32xf32>
    %cst_326 = arith.constant dense<0.000000e+00> : vector<32xf32>
    %530 = vector.multi_reduction <add>, %529, %cst_326 [0] : vector<6x32xf32> to vector<32xf32>
    %531 = vector.shape_cast %530 : vector<32xf32> to vector<1x32xf32>
    %532 = tpu.reciprocal %523 {approx = true} : vector<1x1xf32> -> vector<1x1xf32>
    %533 = vector.broadcast %532 : vector<1x1xf32> to vector<1x32xf32>
    %534 = arith.mulf %531, %533 : vector<1x32xf32>
    %535 = vector.broadcast %97 : vector<8x1xf32> to vector<8x32xf32>
    %536 = arith.mulf %519, %535 : vector<8x32xf32>
    %cst_327 = arith.constant dense<0.000000e+00> : vector<32xf32>
    %537 = vector.multi_reduction <add>, %536, %cst_327 [0] : vector<8x32xf32> to vector<32xf32>
    %538 = vector.shape_cast %537 : vector<32xf32> to vector<1x32xf32>
    %539 = tpu.reciprocal %527 {approx = true} : vector<1x1xf32> -> vector<1x1xf32>
    %540 = vector.broadcast %539 : vector<1x1xf32> to vector<1x32xf32>
    %541 = arith.mulf %538, %540 : vector<1x32xf32>
    %542 = arith.truncf %534 : vector<1x32xf32> to vector<1x32xbf16>
    %543 = vector.shape_cast %542 : vector<1x32xbf16> to vector<1x1x32xbf16>
    %544 = vector.broadcast %543 : vector<1x1x32xbf16> to vector<2x1x32xbf16>
    %cst_328 = arith.constant dense<0.000000e+00> : vector<2x1x16xf32>
    %545 = tpu.matmul %544, %74, %cst_328 {dimension_numbers = #tpu.dot_dimension_numbers<[2], [1], [1], [2], [0, 0, 0, 1, 1, 2], [0], [0]>} : vector<2x1x32xbf16>, vector<2x32x16xbf16>, vector<2x1x16xf32> -> vector<2x1x16xf32>
    %546 = arith.addf %545, %58 : vector<2x1x16xf32>
    %547 = arith.negf %546 : vector<2x1x16xf32>
    %548 = math.exp %547 : vector<2x1x16xf32>
    %cst_329 = arith.constant 1.000000e+00 : f32
    %549 = vector.broadcast %cst_329 : f32 to vector<2x1x16xf32>
    %550 = arith.addf %549, %548 : vector<2x1x16xf32>
    %551 = arith.divf %549, %550 : vector<2x1x16xf32>
    %cst_330 = arith.constant 1.000000e+00 : f32
    %552 = vector.broadcast %cst_330 : f32 to vector<2x1x16xf32>
    %553 = arith.addf %552, %551 : vector<2x1x16xf32>
    %554 = arith.truncf %541 : vector<1x32xf32> to vector<1x32xbf16>
    %555 = vector.shape_cast %554 : vector<1x32xbf16> to vector<1x1x32xbf16>
    %556 = vector.broadcast %555 : vector<1x1x32xbf16> to vector<2x1x32xbf16>
    %cst_331 = arith.constant dense<0.000000e+00> : vector<2x1x16xf32>
    %557 = tpu.matmul %556, %75, %cst_331 {dimension_numbers = #tpu.dot_dimension_numbers<[2], [1], [1], [2], [0, 0, 0, 1, 1, 2], [0], [0]>} : vector<2x1x32xbf16>, vector<2x32x16xbf16>, vector<2x1x16xf32> -> vector<2x1x16xf32>
    %558 = arith.addf %557, %59 : vector<2x1x16xf32>
    %559 = arith.negf %558 : vector<2x1x16xf32>
    %560 = math.exp %559 : vector<2x1x16xf32>
    %cst_332 = arith.constant 1.000000e+00 : f32
    %561 = vector.broadcast %cst_332 : f32 to vector<2x1x16xf32>
    %562 = arith.addf %561, %560 : vector<2x1x16xf32>
    %563 = arith.divf %561, %562 : vector<2x1x16xf32>
    %cst_333 = arith.constant 1.000000e+00 : f32
    %564 = vector.broadcast %cst_333 : f32 to vector<2x1x16xf32>
    %565 = arith.addf %564, %563 : vector<2x1x16xf32>
    %566 = arith.truncf %518 : vector<6x32xf32> to vector<6x32xbf16>
    %567 = vector.shape_cast %566 : vector<6x32xbf16> to vector<1x6x32xbf16>
    %568 = vector.broadcast %567 : vector<1x6x32xbf16> to vector<2x6x32xbf16>
    %cst_334 = arith.constant dense<0.000000e+00> : vector<2x6x16xf32>
    %569 = tpu.matmul %568, %71, %cst_334 {dimension_numbers = #tpu.dot_dimension_numbers<[2], [1], [1], [2], [0, 0, 0, 1, 1, 2], [0], [0]>} : vector<2x6x32xbf16>, vector<2x32x16xbf16>, vector<2x6x16xf32> -> vector<2x6x16xf32>
    %570 = vector.broadcast %68 : vector<2x1x16xf32> to vector<2x6x16xf32>
    %571 = arith.addf %569, %570 : vector<2x6x16xf32>
    %572 = vector.broadcast %102 : vector<1x6x1xf32> to vector<2x6x16xf32>
    %573 = arith.mulf %571, %572 : vector<2x6x16xf32>
    %574 = arith.truncf %518 : vector<6x32xf32> to vector<6x32xbf16>
    %575 = vector.shape_cast %574 : vector<6x32xbf16> to vector<1x6x32xbf16>
    %576 = vector.broadcast %575 : vector<1x6x32xbf16> to vector<2x6x32xbf16>
    %cst_335 = arith.constant dense<0.000000e+00> : vector<2x6x16xf32>
    %577 = tpu.matmul %576, %72, %cst_335 {dimension_numbers = #tpu.dot_dimension_numbers<[2], [1], [1], [2], [0, 0, 0, 1, 1, 2], [0], [0]>} : vector<2x6x32xbf16>, vector<2x32x16xbf16>, vector<2x6x16xf32> -> vector<2x6x16xf32>
    %578 = vector.broadcast %69 : vector<2x1x16xf32> to vector<2x6x16xf32>
    %579 = arith.addf %577, %578 : vector<2x6x16xf32>
    %580 = vector.broadcast %102 : vector<1x6x1xf32> to vector<2x6x16xf32>
    %581 = arith.mulf %579, %580 : vector<2x6x16xf32>
    %582 = arith.truncf %518 : vector<6x32xf32> to vector<6x32xbf16>
    %583 = vector.shape_cast %582 : vector<6x32xbf16> to vector<1x6x32xbf16>
    %584 = vector.broadcast %583 : vector<1x6x32xbf16> to vector<2x6x32xbf16>
    %cst_336 = arith.constant dense<0.000000e+00> : vector<2x6x16xf32>
    %585 = tpu.matmul %584, %73, %cst_336 {dimension_numbers = #tpu.dot_dimension_numbers<[2], [1], [1], [2], [0, 0, 0, 1, 1, 2], [0], [0]>} : vector<2x6x32xbf16>, vector<2x32x16xbf16>, vector<2x6x16xf32> -> vector<2x6x16xf32>
    %586 = vector.broadcast %70 : vector<2x1x16xf32> to vector<2x6x16xf32>
    %587 = arith.addf %585, %586 : vector<2x6x16xf32>
    %588 = vector.broadcast %102 : vector<1x6x1xf32> to vector<2x6x16xf32>
    %589 = arith.mulf %587, %588 : vector<2x6x16xf32>
    %590 = arith.truncf %519 : vector<8x32xf32> to vector<8x32xbf16>
    %591 = vector.shape_cast %590 : vector<8x32xbf16> to vector<1x8x32xbf16>
    %592 = vector.broadcast %591 : vector<1x8x32xbf16> to vector<2x8x32xbf16>
    %cst_337 = arith.constant dense<0.000000e+00> : vector<2x8x16xf32>
    %593 = tpu.matmul %592, %65, %cst_337 {dimension_numbers = #tpu.dot_dimension_numbers<[2], [1], [1], [2], [0, 0, 0, 1, 1, 2], [0], [0]>} : vector<2x8x32xbf16>, vector<2x32x16xbf16>, vector<2x8x16xf32> -> vector<2x8x16xf32>
    %594 = vector.broadcast %62 : vector<2x1x16xf32> to vector<2x8x16xf32>
    %595 = arith.addf %593, %594 : vector<2x8x16xf32>
    %596 = vector.broadcast %107 : vector<1x8x1xf32> to vector<2x8x16xf32>
    %597 = arith.mulf %595, %596 : vector<2x8x16xf32>
    %598 = arith.truncf %519 : vector<8x32xf32> to vector<8x32xbf16>
    %599 = vector.shape_cast %598 : vector<8x32xbf16> to vector<1x8x32xbf16>
    %600 = vector.broadcast %599 : vector<1x8x32xbf16> to vector<2x8x32xbf16>
    %cst_338 = arith.constant dense<0.000000e+00> : vector<2x8x16xf32>
    %601 = tpu.matmul %600, %66, %cst_338 {dimension_numbers = #tpu.dot_dimension_numbers<[2], [1], [1], [2], [0, 0, 0, 1, 1, 2], [0], [0]>} : vector<2x8x32xbf16>, vector<2x32x16xbf16>, vector<2x8x16xf32> -> vector<2x8x16xf32>
    %602 = vector.broadcast %63 : vector<2x1x16xf32> to vector<2x8x16xf32>
    %603 = arith.addf %601, %602 : vector<2x8x16xf32>
    %604 = vector.broadcast %107 : vector<1x8x1xf32> to vector<2x8x16xf32>
    %605 = arith.mulf %603, %604 : vector<2x8x16xf32>
    %606 = arith.truncf %519 : vector<8x32xf32> to vector<8x32xbf16>
    %607 = vector.shape_cast %606 : vector<8x32xbf16> to vector<1x8x32xbf16>
    %608 = vector.broadcast %607 : vector<1x8x32xbf16> to vector<2x8x32xbf16>
    %cst_339 = arith.constant dense<0.000000e+00> : vector<2x8x16xf32>
    %609 = tpu.matmul %608, %67, %cst_339 {dimension_numbers = #tpu.dot_dimension_numbers<[2], [1], [1], [2], [0, 0, 0, 1, 1, 2], [0], [0]>} : vector<2x8x32xbf16>, vector<2x32x16xbf16>, vector<2x8x16xf32> -> vector<2x8x16xf32>
    %610 = vector.broadcast %64 : vector<2x1x16xf32> to vector<2x8x16xf32>
    %611 = arith.addf %609, %610 : vector<2x8x16xf32>
    %612 = vector.broadcast %107 : vector<1x8x1xf32> to vector<2x8x16xf32>
    %613 = arith.mulf %611, %612 : vector<2x8x16xf32>
    %614 = arith.mulf %565, %565 : vector<2x1x16xf32>
    %cst_340 = arith.constant 2.500000e-01 : f32
    %615 = vector.broadcast %cst_340 : f32 to vector<2x1x16xf32>
    %616 = arith.mulf %614, %615 : vector<2x1x16xf32>
    %617 = vector.broadcast %616 : vector<2x1x16xf32> to vector<2x6x16xf32>
    %618 = arith.mulf %581, %617 : vector<2x6x16xf32>
    %619 = arith.truncf %618 : vector<2x6x16xf32> to vector<2x6x16xbf16>
    %620 = arith.truncf %573 : vector<2x6x16xf32> to vector<2x6x16xbf16>
    %cst_341 = arith.constant dense<0.000000e+00> : vector<2x6x6xf32>
    %621 = tpu.matmul %619, %620, %cst_341 {dimension_numbers = #tpu.dot_dimension_numbers<[2], [2], [1], [1], [0, 0, 0, 1, 1, 1], [0], [0]>} : vector<2x6x16xbf16>, vector<2x6x16xbf16>, vector<2x6x6xf32> -> vector<2x6x6xf32>
    %cst_342 = arith.constant -1.000000e+30 : f32
    %622 = vector.shape_cast %110 : vector<1x1x6xi1> to vector<1x1x6xi1>
    %623 = vector.broadcast %622 : vector<1x1x6xi1> to vector<2x6x6xi1>
    %624 = vector.broadcast %cst_342 : f32 to vector<2x6x6xf32>
    %625 = arith.select %623, %621, %624 : vector<2x6x6xi1>, vector<2x6x6xf32>
    %cst_343 = arith.constant dense<0xFF800000> : vector<2x6xf32>
    %626 = vector.multi_reduction <maximumf>, %625, %cst_343 [2] : vector<2x6x6xf32> to vector<2x6xf32>
    %627 = vector.shape_cast %626 : vector<2x6xf32> to vector<2x6x1xf32>
    %628 = vector.broadcast %627 : vector<2x6x1xf32> to vector<2x6x6xf32>
    %629 = arith.subf %625, %628 : vector<2x6x6xf32>
    %630 = math.exp %629 : vector<2x6x6xf32>
    %cst_344 = arith.constant dense<0.000000e+00> : vector<2x6xf32>
    %631 = vector.multi_reduction <add>, %630, %cst_344 [2] : vector<2x6x6xf32> to vector<2x6xf32>
    %632 = vector.shape_cast %631 : vector<2x6xf32> to vector<2x6x1xf32>
    %633 = tpu.reciprocal %632 {approx = true} : vector<2x6x1xf32> -> vector<2x6x1xf32>
    %634 = vector.broadcast %633 : vector<2x6x1xf32> to vector<2x6x6xf32>
    %635 = arith.mulf %630, %634 : vector<2x6x6xf32>
    %636 = arith.truncf %635 : vector<2x6x6xf32> to vector<2x6x6xbf16>
    %637 = arith.truncf %589 : vector<2x6x16xf32> to vector<2x6x16xbf16>
    %cst_345 = arith.constant dense<0.000000e+00> : vector<2x6x16xf32>
    %638 = tpu.matmul %636, %637, %cst_345 {dimension_numbers = #tpu.dot_dimension_numbers<[2], [1], [1], [2], [0, 0, 0, 1, 1, 2], [0], [0]>} : vector<2x6x6xbf16>, vector<2x6x16xbf16>, vector<2x6x16xf32> -> vector<2x6x16xf32>
    %639 = vector.broadcast %565 : vector<2x1x16xf32> to vector<2x6x16xf32>
    %640 = arith.mulf %638, %639 : vector<2x6x16xf32>
    %641 = arith.mulf %553, %553 : vector<2x1x16xf32>
    %cst_346 = arith.constant 2.500000e-01 : f32
    %642 = vector.broadcast %cst_346 : f32 to vector<2x1x16xf32>
    %643 = arith.mulf %641, %642 : vector<2x1x16xf32>
    %644 = vector.broadcast %643 : vector<2x1x16xf32> to vector<2x8x16xf32>
    %645 = arith.mulf %605, %644 : vector<2x8x16xf32>
    %646 = arith.truncf %645 : vector<2x8x16xf32> to vector<2x8x16xbf16>
    %647 = arith.truncf %597 : vector<2x8x16xf32> to vector<2x8x16xbf16>
    %cst_347 = arith.constant dense<0.000000e+00> : vector<2x8x8xf32>
    %648 = tpu.matmul %646, %647, %cst_347 {dimension_numbers = #tpu.dot_dimension_numbers<[2], [2], [1], [1], [0, 0, 0, 1, 1, 1], [0], [0]>} : vector<2x8x16xbf16>, vector<2x8x16xbf16>, vector<2x8x8xf32> -> vector<2x8x8xf32>
    %cst_348 = arith.constant -1.000000e+30 : f32
    %649 = vector.shape_cast %113 : vector<1x1x8xi1> to vector<1x1x8xi1>
    %650 = vector.broadcast %649 : vector<1x1x8xi1> to vector<2x8x8xi1>
    %651 = vector.broadcast %cst_348 : f32 to vector<2x8x8xf32>
    %652 = arith.select %650, %648, %651 : vector<2x8x8xi1>, vector<2x8x8xf32>
    %cst_349 = arith.constant dense<0xFF800000> : vector<2x8xf32>
    %653 = vector.multi_reduction <maximumf>, %652, %cst_349 [2] : vector<2x8x8xf32> to vector<2x8xf32>
    %654 = vector.shape_cast %653 : vector<2x8xf32> to vector<2x8x1xf32>
    %655 = vector.broadcast %654 : vector<2x8x1xf32> to vector<2x8x8xf32>
    %656 = arith.subf %652, %655 : vector<2x8x8xf32>
    %657 = math.exp %656 : vector<2x8x8xf32>
    %cst_350 = arith.constant dense<0.000000e+00> : vector<2x8xf32>
    %658 = vector.multi_reduction <add>, %657, %cst_350 [2] : vector<2x8x8xf32> to vector<2x8xf32>
    %659 = vector.shape_cast %658 : vector<2x8xf32> to vector<2x8x1xf32>
    %660 = tpu.reciprocal %659 {approx = true} : vector<2x8x1xf32> -> vector<2x8x1xf32>
    %661 = vector.broadcast %660 : vector<2x8x1xf32> to vector<2x8x8xf32>
    %662 = arith.mulf %657, %661 : vector<2x8x8xf32>
    %663 = arith.truncf %662 : vector<2x8x8xf32> to vector<2x8x8xbf16>
    %664 = arith.truncf %613 : vector<2x8x16xf32> to vector<2x8x16xbf16>
    %cst_351 = arith.constant dense<0.000000e+00> : vector<2x8x16xf32>
    %665 = tpu.matmul %663, %664, %cst_351 {dimension_numbers = #tpu.dot_dimension_numbers<[2], [1], [1], [2], [0, 0, 0, 1, 1, 2], [0], [0]>} : vector<2x8x8xbf16>, vector<2x8x16xbf16>, vector<2x8x16xf32> -> vector<2x8x16xf32>
    %666 = vector.broadcast %553 : vector<2x1x16xf32> to vector<2x8x16xf32>
    %667 = arith.mulf %665, %666 : vector<2x8x16xf32>
    %668 = arith.truncf %518 : vector<6x32xf32> to vector<6x32xbf16>
    %cst_352 = arith.constant dense<0.000000e+00> : vector<6x32xf32>
    %669 = tpu.matmul %668, %78, %cst_352 {dimension_numbers = #tpu.dot_dimension_numbers<[1], [0], [0], [1], [0, 0, 1, 1], [], []>} : vector<6x32xbf16>, vector<32x32xbf16>, vector<6x32xf32> -> vector<6x32xf32>
    %670 = arith.truncf %640 : vector<2x6x16xf32> to vector<2x6x16xbf16>
    %cst_353 = arith.constant dense<0.000000e+00> : vector<2x6x32xf32>
    %671 = tpu.matmul %670, %79, %cst_353 {dimension_numbers = #tpu.dot_dimension_numbers<[2], [1], [1], [2], [0, 0, 0, 1, 1, 2], [0], [0]>} : vector<2x6x16xbf16>, vector<2x16x32xbf16>, vector<2x6x32xf32> -> vector<2x6x32xf32>
    %cst_354 = arith.constant dense<0.000000e+00> : vector<6x32xf32>
    %672 = vector.multi_reduction <add>, %671, %cst_354 [0] : vector<2x6x32xf32> to vector<6x32xf32>
    %673 = arith.addf %669, %672 : vector<6x32xf32>
    %674 = vector.broadcast %61 : vector<1x32xf32> to vector<6x32xf32>
    %675 = arith.addf %673, %674 : vector<6x32xf32>
    %676 = arith.truncf %519 : vector<8x32xf32> to vector<8x32xbf16>
    %cst_355 = arith.constant dense<0.000000e+00> : vector<8x32xf32>
    %677 = tpu.matmul %676, %76, %cst_355 {dimension_numbers = #tpu.dot_dimension_numbers<[1], [0], [0], [1], [0, 0, 1, 1], [], []>} : vector<8x32xbf16>, vector<32x32xbf16>, vector<8x32xf32> -> vector<8x32xf32>
    %678 = arith.truncf %667 : vector<2x8x16xf32> to vector<2x8x16xbf16>
    %cst_356 = arith.constant dense<0.000000e+00> : vector<2x8x32xf32>
    %679 = tpu.matmul %678, %77, %cst_356 {dimension_numbers = #tpu.dot_dimension_numbers<[2], [1], [1], [2], [0, 0, 0, 1, 1, 2], [0], [0]>} : vector<2x8x16xbf16>, vector<2x16x32xbf16>, vector<2x8x32xf32> -> vector<2x8x32xf32>
    %cst_357 = arith.constant dense<0.000000e+00> : vector<8x32xf32>
    %680 = vector.multi_reduction <add>, %679, %cst_357 [0] : vector<2x8x32xf32> to vector<8x32xf32>
    %681 = arith.addf %677, %680 : vector<8x32xf32>
    %682 = vector.broadcast %60 : vector<1x32xf32> to vector<8x32xf32>
    %683 = arith.addf %681, %682 : vector<8x32xf32>
    %684 = arith.addf %402, %517 : vector<6x32xf32>
    %685 = arith.addf %684, %675 : vector<6x32xf32>
    %686 = arith.addf %404, %462 : vector<8x32xf32>
    %687 = arith.addf %686, %683 : vector<8x32xf32>
    %c0_358 = arith.constant 0 : index
    %c0_359 = arith.constant 0 : index
    %c0_360 = arith.constant 0 : index
    %688 = vector.load %arg89[%c0_358, %c0_359, %c0_360] : memref<1x6x32xf32, #tpu.memory_space<vmem>>, vector<1x6x32xf32>
    %689 = vector.shape_cast %688 : vector<1x6x32xf32> to vector<6x32xf32>
    %690 = vector.shape_cast %685 : vector<6x32xf32> to vector<1x6x32xf32>
    tpu.vector_store %arg89[%c0_358, %c0_359, %c0_360], %690 {strides = array<i32>} : memref<1x6x32xf32, #tpu.memory_space<vmem>>, vector<1x6x32xf32>,
    %c0_361 = arith.constant 0 : index
    %c0_362 = arith.constant 0 : index
    %c0_363 = arith.constant 0 : index
    %691 = vector.load %arg90[%c0_361, %c0_362, %c0_363] : memref<1x8x32xf32, #tpu.memory_space<vmem>>, vector<1x8x32xf32>
    %692 = vector.shape_cast %691 : vector<1x8x32xf32> to vector<8x32xf32>
    %693 = vector.shape_cast %687 : vector<8x32xf32> to vector<1x8x32xf32>
    tpu.vector_store %arg90[%c0_361, %c0_362, %c0_363], %693 {strides = array<i32>} : memref<1x8x32xf32, #tpu.memory_space<vmem>>, vector<1x8x32xf32>,
    return
  }
  func.func @transform_0(%arg0: i32, %arg1: memref<2xi32, #tpu.memory_space<smem>>, %arg2: memref<2xi32, #tpu.memory_space<smem>>) -> (i32, i32, i32) {
    %c0_i32 = arith.constant 0 : i32
    %c0_i32_0 = arith.constant 0 : i32
    %c0_i32_1 = arith.constant 0 : i32
    return %arg0, %c0_i32, %c0_i32_0 : i32, i32, i32
  }
  func.func @transform_1(%arg0: i32, %arg1: memref<2xi32, #tpu.memory_space<smem>>, %arg2: memref<2xi32, #tpu.memory_space<smem>>) -> (i32, i32, i32) {
    %c0_i32 = arith.constant 0 : i32
    %c0_i32_0 = arith.constant 0 : i32
    %c0_i32_1 = arith.constant 0 : i32
    return %arg0, %c0_i32, %c0_i32_0 : i32, i32, i32
  }
  func.func @transform_2(%arg0: i32, %arg1: memref<2xi32, #tpu.memory_space<smem>>, %arg2: memref<2xi32, #tpu.memory_space<smem>>) -> (i32, i32, i32) {
    %c0_i32 = arith.constant 0 : i32
    %c0_i32_0 = arith.constant 0 : i32
    %c0_i32_1 = arith.constant 0 : i32
    %c0_i32_2 = arith.constant 0 : i32
    return %c0_i32, %c0_i32_0, %c0_i32_1 : i32, i32, i32
  }
  func.func @transform_3(%arg0: i32, %arg1: memref<2xi32, #tpu.memory_space<smem>>, %arg2: memref<2xi32, #tpu.memory_space<smem>>) -> (i32, i32) {
    %c0_i32 = arith.constant 0 : i32
    %c0_i32_0 = arith.constant 0 : i32
    %c0_i32_1 = arith.constant 0 : i32
    return %c0_i32, %c0_i32_0 : i32, i32
  }
  func.func @transform_4(%arg0: i32, %arg1: memref<2xi32, #tpu.memory_space<smem>>, %arg2: memref<2xi32, #tpu.memory_space<smem>>) -> (i32, i32, i32) {
    %c0_i32 = arith.constant 0 : i32
    %c0_i32_0 = arith.constant 0 : i32
    %c0_i32_1 = arith.constant 0 : i32
    %c0_i32_2 = arith.constant 0 : i32
    return %c0_i32, %c0_i32_0, %c0_i32_1 : i32, i32, i32
  }
  func.func @transform_5(%arg0: i32, %arg1: memref<2xi32, #tpu.memory_space<smem>>, %arg2: memref<2xi32, #tpu.memory_space<smem>>) -> (i32, i32, i32) {
    %c0_i32 = arith.constant 0 : i32
    %c0_i32_0 = arith.constant 0 : i32
    %c0_i32_1 = arith.constant 0 : i32
    %c0_i32_2 = arith.constant 0 : i32
    return %c0_i32, %c0_i32_0, %c0_i32_1 : i32, i32, i32
  }
  func.func @transform_6(%arg0: i32, %arg1: memref<2xi32, #tpu.memory_space<smem>>, %arg2: memref<2xi32, #tpu.memory_space<smem>>) -> (i32, i32, i32) {
    %c0_i32 = arith.constant 0 : i32
    %c0_i32_0 = arith.constant 0 : i32
    %c0_i32_1 = arith.constant 0 : i32
    %c0_i32_2 = arith.constant 0 : i32
    return %c0_i32, %c0_i32_0, %c0_i32_1 : i32, i32, i32
  }
  func.func @transform_7(%arg0: i32, %arg1: memref<2xi32, #tpu.memory_space<smem>>, %arg2: memref<2xi32, #tpu.memory_space<smem>>) -> (i32, i32) {
    %c0_i32 = arith.constant 0 : i32
    %c0_i32_0 = arith.constant 0 : i32
    %c0_i32_1 = arith.constant 0 : i32
    return %c0_i32, %c0_i32_0 : i32, i32
  }
  func.func @transform_8(%arg0: i32, %arg1: memref<2xi32, #tpu.memory_space<smem>>, %arg2: memref<2xi32, #tpu.memory_space<smem>>) -> (i32, i32, i32) {
    %c0_i32 = arith.constant 0 : i32
    %c0_i32_0 = arith.constant 0 : i32
    %c0_i32_1 = arith.constant 0 : i32
    %c0_i32_2 = arith.constant 0 : i32
    return %c0_i32, %c0_i32_0, %c0_i32_1 : i32, i32, i32
  }
  func.func @transform_9(%arg0: i32, %arg1: memref<2xi32, #tpu.memory_space<smem>>, %arg2: memref<2xi32, #tpu.memory_space<smem>>) -> (i32, i32, i32) {
    %c0_i32 = arith.constant 0 : i32
    %c0_i32_0 = arith.constant 0 : i32
    %c0_i32_1 = arith.constant 0 : i32
    %c0_i32_2 = arith.constant 0 : i32
    return %c0_i32, %c0_i32_0, %c0_i32_1 : i32, i32, i32
  }
  func.func @transform_10(%arg0: i32, %arg1: memref<2xi32, #tpu.memory_space<smem>>, %arg2: memref<2xi32, #tpu.memory_space<smem>>) -> (i32, i32, i32) {
    %c0_i32 = arith.constant 0 : i32
    %c0_i32_0 = arith.constant 0 : i32
    %c0_i32_1 = arith.constant 0 : i32
    %c0_i32_2 = arith.constant 0 : i32
    return %c0_i32, %c0_i32_0, %c0_i32_1 : i32, i32, i32
  }
  func.func @transform_11(%arg0: i32, %arg1: memref<2xi32, #tpu.memory_space<smem>>, %arg2: memref<2xi32, #tpu.memory_space<smem>>) -> (i32, i32, i32) {
    %c0_i32 = arith.constant 0 : i32
    %c0_i32_0 = arith.constant 0 : i32
    %c0_i32_1 = arith.constant 0 : i32
    %c0_i32_2 = arith.constant 0 : i32
    return %c0_i32, %c0_i32_0, %c0_i32_1 : i32, i32, i32
  }
  func.func @transform_12(%arg0: i32, %arg1: memref<2xi32, #tpu.memory_space<smem>>, %arg2: memref<2xi32, #tpu.memory_space<smem>>) -> (i32, i32) {
    %c0_i32 = arith.constant 0 : i32
    %c0_i32_0 = arith.constant 0 : i32
    %c0_i32_1 = arith.constant 0 : i32
    return %c0_i32, %c0_i32_0 : i32, i32
  }
  func.func @transform_13(%arg0: i32, %arg1: memref<2xi32, #tpu.memory_space<smem>>, %arg2: memref<2xi32, #tpu.memory_space<smem>>) -> (i32, i32, i32) {
    %c0_i32 = arith.constant 0 : i32
    %c0_i32_0 = arith.constant 0 : i32
    %c0_i32_1 = arith.constant 0 : i32
    %c0_i32_2 = arith.constant 0 : i32
    return %c0_i32, %c0_i32_0, %c0_i32_1 : i32, i32, i32
  }
  func.func @transform_14(%arg0: i32, %arg1: memref<2xi32, #tpu.memory_space<smem>>, %arg2: memref<2xi32, #tpu.memory_space<smem>>) -> (i32, i32, i32) {
    %c0_i32 = arith.constant 0 : i32
    %c0_i32_0 = arith.constant 0 : i32
    %c0_i32_1 = arith.constant 0 : i32
    %c0_i32_2 = arith.constant 0 : i32
    return %c0_i32, %c0_i32_0, %c0_i32_1 : i32, i32, i32
  }
  func.func @transform_15(%arg0: i32, %arg1: memref<2xi32, #tpu.memory_space<smem>>, %arg2: memref<2xi32, #tpu.memory_space<smem>>) -> (i32, i32, i32) {
    %c0_i32 = arith.constant 0 : i32
    %c0_i32_0 = arith.constant 0 : i32
    %c0_i32_1 = arith.constant 0 : i32
    %c0_i32_2 = arith.constant 0 : i32
    return %c0_i32, %c0_i32_0, %c0_i32_1 : i32, i32, i32
  }
  func.func @transform_16(%arg0: i32, %arg1: memref<2xi32, #tpu.memory_space<smem>>, %arg2: memref<2xi32, #tpu.memory_space<smem>>) -> (i32, i32) {
    %c0_i32 = arith.constant 0 : i32
    %c0_i32_0 = arith.constant 0 : i32
    %c0_i32_1 = arith.constant 0 : i32
    return %c0_i32, %c0_i32_0 : i32, i32
  }
  func.func @transform_17(%arg0: i32, %arg1: memref<2xi32, #tpu.memory_space<smem>>, %arg2: memref<2xi32, #tpu.memory_space<smem>>) -> (i32, i32, i32) {
    %c0_i32 = arith.constant 0 : i32
    %c0_i32_0 = arith.constant 0 : i32
    %c0_i32_1 = arith.constant 0 : i32
    %c0_i32_2 = arith.constant 0 : i32
    return %c0_i32, %c0_i32_0, %c0_i32_1 : i32, i32, i32
  }
  func.func @transform_18(%arg0: i32, %arg1: memref<2xi32, #tpu.memory_space<smem>>, %arg2: memref<2xi32, #tpu.memory_space<smem>>) -> (i32, i32, i32) {
    %c0_i32 = arith.constant 0 : i32
    %c0_i32_0 = arith.constant 0 : i32
    %c0_i32_1 = arith.constant 0 : i32
    %c0_i32_2 = arith.constant 0 : i32
    return %c0_i32, %c0_i32_0, %c0_i32_1 : i32, i32, i32
  }
  func.func @transform_19(%arg0: i32, %arg1: memref<2xi32, #tpu.memory_space<smem>>, %arg2: memref<2xi32, #tpu.memory_space<smem>>) -> (i32, i32, i32) {
    %c0_i32 = arith.constant 0 : i32
    %c0_i32_0 = arith.constant 0 : i32
    %c0_i32_1 = arith.constant 0 : i32
    %c0_i32_2 = arith.constant 0 : i32
    return %c0_i32, %c0_i32_0, %c0_i32_1 : i32, i32, i32
  }
  func.func @transform_20(%arg0: i32, %arg1: memref<2xi32, #tpu.memory_space<smem>>, %arg2: memref<2xi32, #tpu.memory_space<smem>>) -> (i32, i32, i32) {
    %c0_i32 = arith.constant 0 : i32
    %c0_i32_0 = arith.constant 0 : i32
    %c0_i32_1 = arith.constant 0 : i32
    %c0_i32_2 = arith.constant 0 : i32
    return %c0_i32, %c0_i32_0, %c0_i32_1 : i32, i32, i32
  }
  func.func @transform_21(%arg0: i32, %arg1: memref<2xi32, #tpu.memory_space<smem>>, %arg2: memref<2xi32, #tpu.memory_space<smem>>) -> (i32, i32, i32) {
    %c0_i32 = arith.constant 0 : i32
    %c0_i32_0 = arith.constant 0 : i32
    %c0_i32_1 = arith.constant 0 : i32
    %c0_i32_2 = arith.constant 0 : i32
    return %c0_i32, %c0_i32_0, %c0_i32_1 : i32, i32, i32
  }
  func.func @transform_22(%arg0: i32, %arg1: memref<2xi32, #tpu.memory_space<smem>>, %arg2: memref<2xi32, #tpu.memory_space<smem>>) -> (i32, i32) {
    %c0_i32 = arith.constant 0 : i32
    %c0_i32_0 = arith.constant 0 : i32
    %c0_i32_1 = arith.constant 0 : i32
    return %c0_i32, %c0_i32_0 : i32, i32
  }
  func.func @transform_23(%arg0: i32, %arg1: memref<2xi32, #tpu.memory_space<smem>>, %arg2: memref<2xi32, #tpu.memory_space<smem>>) -> (i32, i32) {
    %c0_i32 = arith.constant 0 : i32
    %c0_i32_0 = arith.constant 0 : i32
    %c0_i32_1 = arith.constant 0 : i32
    return %c0_i32, %c0_i32_0 : i32, i32
  }
  func.func @transform_24(%arg0: i32, %arg1: memref<2xi32, #tpu.memory_space<smem>>, %arg2: memref<2xi32, #tpu.memory_space<smem>>) -> (i32, i32, i32) {
    %c0_i32 = arith.constant 0 : i32
    %c0_i32_0 = arith.constant 0 : i32
    %c0_i32_1 = arith.constant 0 : i32
    %c0_i32_2 = arith.constant 0 : i32
    return %c0_i32, %c0_i32_0, %c0_i32_1 : i32, i32, i32
  }
  func.func @transform_25(%arg0: i32, %arg1: memref<2xi32, #tpu.memory_space<smem>>, %arg2: memref<2xi32, #tpu.memory_space<smem>>) -> (i32, i32, i32) {
    %c0_i32 = arith.constant 0 : i32
    %c0_i32_0 = arith.constant 0 : i32
    %c0_i32_1 = arith.constant 0 : i32
    %c0_i32_2 = arith.constant 0 : i32
    return %c0_i32, %c0_i32_0, %c0_i32_1 : i32, i32, i32
  }
  func.func @transform_26(%arg0: i32, %arg1: memref<2xi32, #tpu.memory_space<smem>>, %arg2: memref<2xi32, #tpu.memory_space<smem>>) -> (i32, i32, i32) {
    %c0_i32 = arith.constant 0 : i32
    %c0_i32_0 = arith.constant 0 : i32
    %c0_i32_1 = arith.constant 0 : i32
    %c0_i32_2 = arith.constant 0 : i32
    return %c0_i32, %c0_i32_0, %c0_i32_1 : i32, i32, i32
  }
  func.func @transform_27(%arg0: i32, %arg1: memref<2xi32, #tpu.memory_space<smem>>, %arg2: memref<2xi32, #tpu.memory_space<smem>>) -> (i32, i32, i32) {
    %c0_i32 = arith.constant 0 : i32
    %c0_i32_0 = arith.constant 0 : i32
    %c0_i32_1 = arith.constant 0 : i32
    %c0_i32_2 = arith.constant 0 : i32
    return %c0_i32, %c0_i32_0, %c0_i32_1 : i32, i32, i32
  }
  func.func @transform_28(%arg0: i32, %arg1: memref<2xi32, #tpu.memory_space<smem>>, %arg2: memref<2xi32, #tpu.memory_space<smem>>) -> (i32, i32, i32) {
    %c0_i32 = arith.constant 0 : i32
    %c0_i32_0 = arith.constant 0 : i32
    %c0_i32_1 = arith.constant 0 : i32
    %c0_i32_2 = arith.constant 0 : i32
    return %c0_i32, %c0_i32_0, %c0_i32_1 : i32, i32, i32
  }
  func.func @transform_29(%arg0: i32, %arg1: memref<2xi32, #tpu.memory_space<smem>>, %arg2: memref<2xi32, #tpu.memory_space<smem>>) -> (i32, i32, i32) {
    %c0_i32 = arith.constant 0 : i32
    %c0_i32_0 = arith.constant 0 : i32
    %c0_i32_1 = arith.constant 0 : i32
    %c0_i32_2 = arith.constant 0 : i32
    return %c0_i32, %c0_i32_0, %c0_i32_1 : i32, i32, i32
  }
  func.func @transform_30(%arg0: i32, %arg1: memref<2xi32, #tpu.memory_space<smem>>, %arg2: memref<2xi32, #tpu.memory_space<smem>>) -> (i32, i32, i32) {
    %c0_i32 = arith.constant 0 : i32
    %c0_i32_0 = arith.constant 0 : i32
    %c0_i32_1 = arith.constant 0 : i32
    %c0_i32_2 = arith.constant 0 : i32
    return %c0_i32, %c0_i32_0, %c0_i32_1 : i32, i32, i32
  }
  func.func @transform_31(%arg0: i32, %arg1: memref<2xi32, #tpu.memory_space<smem>>, %arg2: memref<2xi32, #tpu.memory_space<smem>>) -> (i32, i32, i32) {
    %c0_i32 = arith.constant 0 : i32
    %c0_i32_0 = arith.constant 0 : i32
    %c0_i32_1 = arith.constant 0 : i32
    %c0_i32_2 = arith.constant 0 : i32
    return %c0_i32, %c0_i32_0, %c0_i32_1 : i32, i32, i32
  }
  func.func @transform_32(%arg0: i32, %arg1: memref<2xi32, #tpu.memory_space<smem>>, %arg2: memref<2xi32, #tpu.memory_space<smem>>) -> (i32, i32, i32) {
    %c0_i32 = arith.constant 0 : i32
    %c0_i32_0 = arith.constant 0 : i32
    %c0_i32_1 = arith.constant 0 : i32
    %c0_i32_2 = arith.constant 0 : i32
    return %c0_i32, %c0_i32_0, %c0_i32_1 : i32, i32, i32
  }
  func.func @transform_33(%arg0: i32, %arg1: memref<2xi32, #tpu.memory_space<smem>>, %arg2: memref<2xi32, #tpu.memory_space<smem>>) -> (i32, i32, i32) {
    %c0_i32 = arith.constant 0 : i32
    %c0_i32_0 = arith.constant 0 : i32
    %c0_i32_1 = arith.constant 0 : i32
    %c0_i32_2 = arith.constant 0 : i32
    return %c0_i32, %c0_i32_0, %c0_i32_1 : i32, i32, i32
  }
  func.func @transform_34(%arg0: i32, %arg1: memref<2xi32, #tpu.memory_space<smem>>, %arg2: memref<2xi32, #tpu.memory_space<smem>>) -> (i32, i32, i32) {
    %c0_i32 = arith.constant 0 : i32
    %c0_i32_0 = arith.constant 0 : i32
    %c0_i32_1 = arith.constant 0 : i32
    %c0_i32_2 = arith.constant 0 : i32
    return %c0_i32, %c0_i32_0, %c0_i32_1 : i32, i32, i32
  }
  func.func @transform_35(%arg0: i32, %arg1: memref<2xi32, #tpu.memory_space<smem>>, %arg2: memref<2xi32, #tpu.memory_space<smem>>) -> (i32, i32, i32) {
    %c0_i32 = arith.constant 0 : i32
    %c0_i32_0 = arith.constant 0 : i32
    %c0_i32_1 = arith.constant 0 : i32
    %c0_i32_2 = arith.constant 0 : i32
    return %c0_i32, %c0_i32_0, %c0_i32_1 : i32, i32, i32
  }
  func.func @transform_36(%arg0: i32, %arg1: memref<2xi32, #tpu.memory_space<smem>>, %arg2: memref<2xi32, #tpu.memory_space<smem>>) -> (i32, i32, i32) {
    %c0_i32 = arith.constant 0 : i32
    %c0_i32_0 = arith.constant 0 : i32
    %c0_i32_1 = arith.constant 0 : i32
    %c0_i32_2 = arith.constant 0 : i32
    return %c0_i32, %c0_i32_0, %c0_i32_1 : i32, i32, i32
  }
  func.func @transform_37(%arg0: i32, %arg1: memref<2xi32, #tpu.memory_space<smem>>, %arg2: memref<2xi32, #tpu.memory_space<smem>>) -> (i32, i32, i32) {
    %c0_i32 = arith.constant 0 : i32
    %c0_i32_0 = arith.constant 0 : i32
    %c0_i32_1 = arith.constant 0 : i32
    %c0_i32_2 = arith.constant 0 : i32
    return %c0_i32, %c0_i32_0, %c0_i32_1 : i32, i32, i32
  }
  func.func @transform_38(%arg0: i32, %arg1: memref<2xi32, #tpu.memory_space<smem>>, %arg2: memref<2xi32, #tpu.memory_space<smem>>) -> (i32, i32) {
    %c0_i32 = arith.constant 0 : i32
    %c0_i32_0 = arith.constant 0 : i32
    %c0_i32_1 = arith.constant 0 : i32
    return %c0_i32, %c0_i32_0 : i32, i32
  }
  func.func @transform_39(%arg0: i32, %arg1: memref<2xi32, #tpu.memory_space<smem>>, %arg2: memref<2xi32, #tpu.memory_space<smem>>) -> (i32, i32, i32) {
    %c0_i32 = arith.constant 0 : i32
    %c0_i32_0 = arith.constant 0 : i32
    %c0_i32_1 = arith.constant 0 : i32
    %c0_i32_2 = arith.constant 0 : i32
    return %c0_i32, %c0_i32_0, %c0_i32_1 : i32, i32, i32
  }
  func.func @transform_40(%arg0: i32, %arg1: memref<2xi32, #tpu.memory_space<smem>>, %arg2: memref<2xi32, #tpu.memory_space<smem>>) -> (i32, i32) {
    %c0_i32 = arith.constant 0 : i32
    %c0_i32_0 = arith.constant 0 : i32
    %c0_i32_1 = arith.constant 0 : i32
    return %c0_i32, %c0_i32_0 : i32, i32
  }
  func.func @transform_41(%arg0: i32, %arg1: memref<2xi32, #tpu.memory_space<smem>>, %arg2: memref<2xi32, #tpu.memory_space<smem>>) -> (i32, i32, i32) {
    %c0_i32 = arith.constant 0 : i32
    %c0_i32_0 = arith.constant 0 : i32
    %c0_i32_1 = arith.constant 0 : i32
    %c0_i32_2 = arith.constant 0 : i32
    return %c0_i32, %c0_i32_0, %c0_i32_1 : i32, i32, i32
  }
  func.func @transform_42(%arg0: i32, %arg1: memref<2xi32, #tpu.memory_space<smem>>, %arg2: memref<2xi32, #tpu.memory_space<smem>>) -> (i32, i32, i32) {
    %c0_i32 = arith.constant 0 : i32
    %c0_i32_0 = arith.constant 0 : i32
    %c0_i32_1 = arith.constant 0 : i32
    %c0_i32_2 = arith.constant 0 : i32
    return %c0_i32, %c0_i32_0, %c0_i32_1 : i32, i32, i32
  }
  func.func @transform_43(%arg0: i32, %arg1: memref<2xi32, #tpu.memory_space<smem>>, %arg2: memref<2xi32, #tpu.memory_space<smem>>) -> (i32, i32) {
    %c0_i32 = arith.constant 0 : i32
    %c0_i32_0 = arith.constant 0 : i32
    %c0_i32_1 = arith.constant 0 : i32
    return %c0_i32, %c0_i32_0 : i32, i32
  }
  func.func @transform_44(%arg0: i32, %arg1: memref<2xi32, #tpu.memory_space<smem>>, %arg2: memref<2xi32, #tpu.memory_space<smem>>) -> (i32, i32, i32) {
    %c0_i32 = arith.constant 0 : i32
    %c0_i32_0 = arith.constant 0 : i32
    %c0_i32_1 = arith.constant 0 : i32
    %c0_i32_2 = arith.constant 0 : i32
    return %c0_i32, %c0_i32_0, %c0_i32_1 : i32, i32, i32
  }
  func.func @transform_45(%arg0: i32, %arg1: memref<2xi32, #tpu.memory_space<smem>>, %arg2: memref<2xi32, #tpu.memory_space<smem>>) -> (i32, i32, i32) {
    %c0_i32 = arith.constant 0 : i32
    %c0_i32_0 = arith.constant 0 : i32
    %c0_i32_1 = arith.constant 0 : i32
    %c0_i32_2 = arith.constant 0 : i32
    return %c0_i32, %c0_i32_0, %c0_i32_1 : i32, i32, i32
  }
  func.func @transform_46(%arg0: i32, %arg1: memref<2xi32, #tpu.memory_space<smem>>, %arg2: memref<2xi32, #tpu.memory_space<smem>>) -> (i32, i32, i32) {
    %c0_i32 = arith.constant 0 : i32
    %c0_i32_0 = arith.constant 0 : i32
    %c0_i32_1 = arith.constant 0 : i32
    %c0_i32_2 = arith.constant 0 : i32
    return %c0_i32, %c0_i32_0, %c0_i32_1 : i32, i32, i32
  }
  func.func @transform_47(%arg0: i32, %arg1: memref<2xi32, #tpu.memory_space<smem>>, %arg2: memref<2xi32, #tpu.memory_space<smem>>) -> (i32, i32) {
    %c0_i32 = arith.constant 0 : i32
    %c0_i32_0 = arith.constant 0 : i32
    %c0_i32_1 = arith.constant 0 : i32
    return %c0_i32, %c0_i32_0 : i32, i32
  }
  func.func @transform_48(%arg0: i32, %arg1: memref<2xi32, #tpu.memory_space<smem>>, %arg2: memref<2xi32, #tpu.memory_space<smem>>) -> (i32, i32, i32) {
    %c0_i32 = arith.constant 0 : i32
    %c0_i32_0 = arith.constant 0 : i32
    %c0_i32_1 = arith.constant 0 : i32
    %c0_i32_2 = arith.constant 0 : i32
    return %c0_i32, %c0_i32_0, %c0_i32_1 : i32, i32, i32
  }
  func.func @transform_49(%arg0: i32, %arg1: memref<2xi32, #tpu.memory_space<smem>>, %arg2: memref<2xi32, #tpu.memory_space<smem>>) -> (i32, i32, i32) {
    %c0_i32 = arith.constant 0 : i32
    %c0_i32_0 = arith.constant 0 : i32
    %c0_i32_1 = arith.constant 0 : i32
    %c0_i32_2 = arith.constant 0 : i32
    return %c0_i32, %c0_i32_0, %c0_i32_1 : i32, i32, i32
  }
  func.func @transform_50(%arg0: i32, %arg1: memref<2xi32, #tpu.memory_space<smem>>, %arg2: memref<2xi32, #tpu.memory_space<smem>>) -> (i32, i32, i32) {
    %c0_i32 = arith.constant 0 : i32
    %c0_i32_0 = arith.constant 0 : i32
    %c0_i32_1 = arith.constant 0 : i32
    %c0_i32_2 = arith.constant 0 : i32
    return %c0_i32, %c0_i32_0, %c0_i32_1 : i32, i32, i32
  }
  func.func @transform_51(%arg0: i32, %arg1: memref<2xi32, #tpu.memory_space<smem>>, %arg2: memref<2xi32, #tpu.memory_space<smem>>) -> (i32, i32, i32) {
    %c0_i32 = arith.constant 0 : i32
    %c0_i32_0 = arith.constant 0 : i32
    %c0_i32_1 = arith.constant 0 : i32
    %c0_i32_2 = arith.constant 0 : i32
    return %c0_i32, %c0_i32_0, %c0_i32_1 : i32, i32, i32
  }
  func.func @transform_52(%arg0: i32, %arg1: memref<2xi32, #tpu.memory_space<smem>>, %arg2: memref<2xi32, #tpu.memory_space<smem>>) -> (i32, i32) {
    %c0_i32 = arith.constant 0 : i32
    %c0_i32_0 = arith.constant 0 : i32
    %c0_i32_1 = arith.constant 0 : i32
    return %c0_i32, %c0_i32_0 : i32, i32
  }
  func.func @transform_53(%arg0: i32, %arg1: memref<2xi32, #tpu.memory_space<smem>>, %arg2: memref<2xi32, #tpu.memory_space<smem>>) -> (i32, i32, i32) {
    %c0_i32 = arith.constant 0 : i32
    %c0_i32_0 = arith.constant 0 : i32
    %c0_i32_1 = arith.constant 0 : i32
    %c0_i32_2 = arith.constant 0 : i32
    return %c0_i32, %c0_i32_0, %c0_i32_1 : i32, i32, i32
  }
  func.func @transform_54(%arg0: i32, %arg1: memref<2xi32, #tpu.memory_space<smem>>, %arg2: memref<2xi32, #tpu.memory_space<smem>>) -> (i32, i32, i32) {
    %c0_i32 = arith.constant 0 : i32
    %c0_i32_0 = arith.constant 0 : i32
    %c0_i32_1 = arith.constant 0 : i32
    %c0_i32_2 = arith.constant 0 : i32
    return %c0_i32, %c0_i32_0, %c0_i32_1 : i32, i32, i32
  }
  func.func @transform_55(%arg0: i32, %arg1: memref<2xi32, #tpu.memory_space<smem>>, %arg2: memref<2xi32, #tpu.memory_space<smem>>) -> (i32, i32, i32) {
    %c0_i32 = arith.constant 0 : i32
    %c0_i32_0 = arith.constant 0 : i32
    %c0_i32_1 = arith.constant 0 : i32
    %c0_i32_2 = arith.constant 0 : i32
    return %c0_i32, %c0_i32_0, %c0_i32_1 : i32, i32, i32
  }
  func.func @transform_56(%arg0: i32, %arg1: memref<2xi32, #tpu.memory_space<smem>>, %arg2: memref<2xi32, #tpu.memory_space<smem>>) -> (i32, i32) {
    %c0_i32 = arith.constant 0 : i32
    %c0_i32_0 = arith.constant 0 : i32
    %c0_i32_1 = arith.constant 0 : i32
    return %c0_i32, %c0_i32_0 : i32, i32
  }
  func.func @transform_57(%arg0: i32, %arg1: memref<2xi32, #tpu.memory_space<smem>>, %arg2: memref<2xi32, #tpu.memory_space<smem>>) -> (i32, i32, i32) {
    %c0_i32 = arith.constant 0 : i32
    %c0_i32_0 = arith.constant 0 : i32
    %c0_i32_1 = arith.constant 0 : i32
    %c0_i32_2 = arith.constant 0 : i32
    return %c0_i32, %c0_i32_0, %c0_i32_1 : i32, i32, i32
  }
  func.func @transform_58(%arg0: i32, %arg1: memref<2xi32, #tpu.memory_space<smem>>, %arg2: memref<2xi32, #tpu.memory_space<smem>>) -> (i32, i32, i32) {
    %c0_i32 = arith.constant 0 : i32
    %c0_i32_0 = arith.constant 0 : i32
    %c0_i32_1 = arith.constant 0 : i32
    %c0_i32_2 = arith.constant 0 : i32
    return %c0_i32, %c0_i32_0, %c0_i32_1 : i32, i32, i32
  }
  func.func @transform_59(%arg0: i32, %arg1: memref<2xi32, #tpu.memory_space<smem>>, %arg2: memref<2xi32, #tpu.memory_space<smem>>) -> (i32, i32, i32) {
    %c0_i32 = arith.constant 0 : i32
    %c0_i32_0 = arith.constant 0 : i32
    %c0_i32_1 = arith.constant 0 : i32
    %c0_i32_2 = arith.constant 0 : i32
    return %c0_i32, %c0_i32_0, %c0_i32_1 : i32, i32, i32
  }
  func.func @transform_60(%arg0: i32, %arg1: memref<2xi32, #tpu.memory_space<smem>>, %arg2: memref<2xi32, #tpu.memory_space<smem>>) -> (i32, i32, i32) {
    %c0_i32 = arith.constant 0 : i32
    %c0_i32_0 = arith.constant 0 : i32
    %c0_i32_1 = arith.constant 0 : i32
    %c0_i32_2 = arith.constant 0 : i32
    return %c0_i32, %c0_i32_0, %c0_i32_1 : i32, i32, i32
  }
  func.func @transform_61(%arg0: i32, %arg1: memref<2xi32, #tpu.memory_space<smem>>, %arg2: memref<2xi32, #tpu.memory_space<smem>>) -> (i32, i32, i32) {
    %c0_i32 = arith.constant 0 : i32
    %c0_i32_0 = arith.constant 0 : i32
    %c0_i32_1 = arith.constant 0 : i32
    %c0_i32_2 = arith.constant 0 : i32
    return %c0_i32, %c0_i32_0, %c0_i32_1 : i32, i32, i32
  }
  func.func @transform_62(%arg0: i32, %arg1: memref<2xi32, #tpu.memory_space<smem>>, %arg2: memref<2xi32, #tpu.memory_space<smem>>) -> (i32, i32) {
    %c0_i32 = arith.constant 0 : i32
    %c0_i32_0 = arith.constant 0 : i32
    %c0_i32_1 = arith.constant 0 : i32
    return %c0_i32, %c0_i32_0 : i32, i32
  }
  func.func @transform_63(%arg0: i32, %arg1: memref<2xi32, #tpu.memory_space<smem>>, %arg2: memref<2xi32, #tpu.memory_space<smem>>) -> (i32, i32) {
    %c0_i32 = arith.constant 0 : i32
    %c0_i32_0 = arith.constant 0 : i32
    %c0_i32_1 = arith.constant 0 : i32
    return %c0_i32, %c0_i32_0 : i32, i32
  }
  func.func @transform_64(%arg0: i32, %arg1: memref<2xi32, #tpu.memory_space<smem>>, %arg2: memref<2xi32, #tpu.memory_space<smem>>) -> (i32, i32, i32) {
    %c0_i32 = arith.constant 0 : i32
    %c0_i32_0 = arith.constant 0 : i32
    %c0_i32_1 = arith.constant 0 : i32
    %c0_i32_2 = arith.constant 0 : i32
    return %c0_i32, %c0_i32_0, %c0_i32_1 : i32, i32, i32
  }
  func.func @transform_65(%arg0: i32, %arg1: memref<2xi32, #tpu.memory_space<smem>>, %arg2: memref<2xi32, #tpu.memory_space<smem>>) -> (i32, i32, i32) {
    %c0_i32 = arith.constant 0 : i32
    %c0_i32_0 = arith.constant 0 : i32
    %c0_i32_1 = arith.constant 0 : i32
    %c0_i32_2 = arith.constant 0 : i32
    return %c0_i32, %c0_i32_0, %c0_i32_1 : i32, i32, i32
  }
  func.func @transform_66(%arg0: i32, %arg1: memref<2xi32, #tpu.memory_space<smem>>, %arg2: memref<2xi32, #tpu.memory_space<smem>>) -> (i32, i32, i32) {
    %c0_i32 = arith.constant 0 : i32
    %c0_i32_0 = arith.constant 0 : i32
    %c0_i32_1 = arith.constant 0 : i32
    %c0_i32_2 = arith.constant 0 : i32
    return %c0_i32, %c0_i32_0, %c0_i32_1 : i32, i32, i32
  }
  func.func @transform_67(%arg0: i32, %arg1: memref<2xi32, #tpu.memory_space<smem>>, %arg2: memref<2xi32, #tpu.memory_space<smem>>) -> (i32, i32, i32) {
    %c0_i32 = arith.constant 0 : i32
    %c0_i32_0 = arith.constant 0 : i32
    %c0_i32_1 = arith.constant 0 : i32
    %c0_i32_2 = arith.constant 0 : i32
    return %c0_i32, %c0_i32_0, %c0_i32_1 : i32, i32, i32
  }
  func.func @transform_68(%arg0: i32, %arg1: memref<2xi32, #tpu.memory_space<smem>>, %arg2: memref<2xi32, #tpu.memory_space<smem>>) -> (i32, i32, i32) {
    %c0_i32 = arith.constant 0 : i32
    %c0_i32_0 = arith.constant 0 : i32
    %c0_i32_1 = arith.constant 0 : i32
    %c0_i32_2 = arith.constant 0 : i32
    return %c0_i32, %c0_i32_0, %c0_i32_1 : i32, i32, i32
  }
  func.func @transform_69(%arg0: i32, %arg1: memref<2xi32, #tpu.memory_space<smem>>, %arg2: memref<2xi32, #tpu.memory_space<smem>>) -> (i32, i32, i32) {
    %c0_i32 = arith.constant 0 : i32
    %c0_i32_0 = arith.constant 0 : i32
    %c0_i32_1 = arith.constant 0 : i32
    %c0_i32_2 = arith.constant 0 : i32
    return %c0_i32, %c0_i32_0, %c0_i32_1 : i32, i32, i32
  }
  func.func @transform_70(%arg0: i32, %arg1: memref<2xi32, #tpu.memory_space<smem>>, %arg2: memref<2xi32, #tpu.memory_space<smem>>) -> (i32, i32, i32) {
    %c0_i32 = arith.constant 0 : i32
    %c0_i32_0 = arith.constant 0 : i32
    %c0_i32_1 = arith.constant 0 : i32
    %c0_i32_2 = arith.constant 0 : i32
    return %c0_i32, %c0_i32_0, %c0_i32_1 : i32, i32, i32
  }
  func.func @transform_71(%arg0: i32, %arg1: memref<2xi32, #tpu.memory_space<smem>>, %arg2: memref<2xi32, #tpu.memory_space<smem>>) -> (i32, i32, i32) {
    %c0_i32 = arith.constant 0 : i32
    %c0_i32_0 = arith.constant 0 : i32
    %c0_i32_1 = arith.constant 0 : i32
    %c0_i32_2 = arith.constant 0 : i32
    return %c0_i32, %c0_i32_0, %c0_i32_1 : i32, i32, i32
  }
  func.func @transform_72(%arg0: i32, %arg1: memref<2xi32, #tpu.memory_space<smem>>, %arg2: memref<2xi32, #tpu.memory_space<smem>>) -> (i32, i32, i32) {
    %c0_i32 = arith.constant 0 : i32
    %c0_i32_0 = arith.constant 0 : i32
    %c0_i32_1 = arith.constant 0 : i32
    %c0_i32_2 = arith.constant 0 : i32
    return %c0_i32, %c0_i32_0, %c0_i32_1 : i32, i32, i32
  }
  func.func @transform_73(%arg0: i32, %arg1: memref<2xi32, #tpu.memory_space<smem>>, %arg2: memref<2xi32, #tpu.memory_space<smem>>) -> (i32, i32, i32) {
    %c0_i32 = arith.constant 0 : i32
    %c0_i32_0 = arith.constant 0 : i32
    %c0_i32_1 = arith.constant 0 : i32
    %c0_i32_2 = arith.constant 0 : i32
    return %c0_i32, %c0_i32_0, %c0_i32_1 : i32, i32, i32
  }
  func.func @transform_74(%arg0: i32, %arg1: memref<2xi32, #tpu.memory_space<smem>>, %arg2: memref<2xi32, #tpu.memory_space<smem>>) -> (i32, i32, i32) {
    %c0_i32 = arith.constant 0 : i32
    %c0_i32_0 = arith.constant 0 : i32
    %c0_i32_1 = arith.constant 0 : i32
    %c0_i32_2 = arith.constant 0 : i32
    return %c0_i32, %c0_i32_0, %c0_i32_1 : i32, i32, i32
  }
  func.func @transform_75(%arg0: i32, %arg1: memref<2xi32, #tpu.memory_space<smem>>, %arg2: memref<2xi32, #tpu.memory_space<smem>>) -> (i32, i32, i32) {
    %c0_i32 = arith.constant 0 : i32
    %c0_i32_0 = arith.constant 0 : i32
    %c0_i32_1 = arith.constant 0 : i32
    %c0_i32_2 = arith.constant 0 : i32
    return %c0_i32, %c0_i32_0, %c0_i32_1 : i32, i32, i32
  }
  func.func @transform_76(%arg0: i32, %arg1: memref<2xi32, #tpu.memory_space<smem>>, %arg2: memref<2xi32, #tpu.memory_space<smem>>) -> (i32, i32, i32) {
    %c0_i32 = arith.constant 0 : i32
    %c0_i32_0 = arith.constant 0 : i32
    %c0_i32_1 = arith.constant 0 : i32
    %c0_i32_2 = arith.constant 0 : i32
    return %c0_i32, %c0_i32_0, %c0_i32_1 : i32, i32, i32
  }
  func.func @transform_77(%arg0: i32, %arg1: memref<2xi32, #tpu.memory_space<smem>>, %arg2: memref<2xi32, #tpu.memory_space<smem>>) -> (i32, i32, i32) {
    %c0_i32 = arith.constant 0 : i32
    %c0_i32_0 = arith.constant 0 : i32
    %c0_i32_1 = arith.constant 0 : i32
    %c0_i32_2 = arith.constant 0 : i32
    return %c0_i32, %c0_i32_0, %c0_i32_1 : i32, i32, i32
  }
  func.func @transform_78(%arg0: i32, %arg1: memref<2xi32, #tpu.memory_space<smem>>, %arg2: memref<2xi32, #tpu.memory_space<smem>>) -> (i32, i32) {
    %c0_i32 = arith.constant 0 : i32
    %c0_i32_0 = arith.constant 0 : i32
    %c0_i32_1 = arith.constant 0 : i32
    return %c0_i32, %c0_i32_0 : i32, i32
  }
  func.func @transform_79(%arg0: i32, %arg1: memref<2xi32, #tpu.memory_space<smem>>, %arg2: memref<2xi32, #tpu.memory_space<smem>>) -> (i32, i32, i32) {
    %c0_i32 = arith.constant 0 : i32
    %c0_i32_0 = arith.constant 0 : i32
    %c0_i32_1 = arith.constant 0 : i32
    %c0_i32_2 = arith.constant 0 : i32
    return %c0_i32, %c0_i32_0, %c0_i32_1 : i32, i32, i32
  }
  func.func @transform_80(%arg0: i32, %arg1: memref<2xi32, #tpu.memory_space<smem>>, %arg2: memref<2xi32, #tpu.memory_space<smem>>) -> (i32, i32) {
    %c0_i32 = arith.constant 0 : i32
    %c0_i32_0 = arith.constant 0 : i32
    %c0_i32_1 = arith.constant 0 : i32
    return %c0_i32, %c0_i32_0 : i32, i32
  }
  func.func @transform_81(%arg0: i32, %arg1: memref<2xi32, #tpu.memory_space<smem>>, %arg2: memref<2xi32, #tpu.memory_space<smem>>) -> (i32, i32, i32) {
    %c0_i32 = arith.constant 0 : i32
    %c0_i32_0 = arith.constant 0 : i32
    %c0_i32_1 = arith.constant 0 : i32
    %c0_i32_2 = arith.constant 0 : i32
    return %c0_i32, %c0_i32_0, %c0_i32_1 : i32, i32, i32
  }
  func.func @transform_82(%arg0: i32, %arg1: memref<2xi32, #tpu.memory_space<smem>>, %arg2: memref<2xi32, #tpu.memory_space<smem>>) -> (i32, i32) {
    %c0_i32 = arith.constant 0 : i32
    %c0_i32_0 = arith.constant 0 : i32
    %c0_i32_1 = arith.constant 0 : i32
    return %c0_i32, %c0_i32_0 : i32, i32
  }
  func.func @transform_83(%arg0: i32, %arg1: memref<2xi32, #tpu.memory_space<smem>>, %arg2: memref<2xi32, #tpu.memory_space<smem>>) -> (i32, i32) {
    %c0_i32 = arith.constant 0 : i32
    %c0_i32_0 = arith.constant 0 : i32
    %c0_i32_1 = arith.constant 0 : i32
    return %c0_i32, %c0_i32_0 : i32, i32
  }
  func.func @transform_84(%arg0: i32, %arg1: memref<2xi32, #tpu.memory_space<smem>>, %arg2: memref<2xi32, #tpu.memory_space<smem>>) -> (i32, i32) {
    %c0_i32 = arith.constant 0 : i32
    %c0_i32_0 = arith.constant 0 : i32
    %c0_i32_1 = arith.constant 0 : i32
    return %c0_i32, %c0_i32_0 : i32, i32
  }
  func.func @transform_85(%arg0: i32, %arg1: memref<2xi32, #tpu.memory_space<smem>>, %arg2: memref<2xi32, #tpu.memory_space<smem>>) -> (i32, i32) {
    %c0_i32 = arith.constant 0 : i32
    %c0_i32_0 = arith.constant 0 : i32
    %c0_i32_1 = arith.constant 0 : i32
    return %c0_i32, %c0_i32_0 : i32, i32
  }
  func.func @transform_86(%arg0: i32, %arg1: memref<2xi32, #tpu.memory_space<smem>>, %arg2: memref<2xi32, #tpu.memory_space<smem>>) -> (i32, i32, i32) {
    %c0_i32 = arith.constant 0 : i32
    %c0_i32_0 = arith.constant 0 : i32
    %c0_i32_1 = arith.constant 0 : i32
    return %arg0, %c0_i32, %c0_i32_0 : i32, i32, i32
  }
  func.func @transform_87(%arg0: i32, %arg1: memref<2xi32, #tpu.memory_space<smem>>, %arg2: memref<2xi32, #tpu.memory_space<smem>>) -> (i32, i32, i32) {
    %c0_i32 = arith.constant 0 : i32
    %c0_i32_0 = arith.constant 0 : i32
    %c0_i32_1 = arith.constant 0 : i32
    return %arg0, %c0_i32, %c0_i32_0 : i32, i32, i32
  }
}

</mosaic_0001>

<bundles_post_ra>
// kernel: tpu_custom_call.1
= control target key start
LH: loop header
LB: loop body
LE: loop exit
PB: predicated region body
PF: predicated region fallthrough
CT: control target
= control target key end

     0   :  { %s11145_s6 = smov 1   ;;  %s11146_s10 = smov 2   ;;  %s13187_s0 = inlined_call_operand.smem [shape: u32[90], index: -1, kind: input, shape index: {}] }
   0x1   :  { %s11271_s5 = sld [smem:[%s13187_s0]]   ;;  %s11147_s14 = smov 3  }
   0x2   :  { %s11276_s9 = sld [smem:[%s13187_s0 + %s11145_s6]]   ;;  %s11148_s18 = smov 4  }
   0x3   :  { %s11281_s13 = sld [smem:[%s13187_s0 + %s11146_s10]]   ;;  %s11149_s22 = smov 5  }
   0x4   :  { %s11286_s17 = sld [smem:[%s13187_s0 + %s11147_s14]]   ;;  %s11150_s26 = smov 6  }
   0x5   :  { %s11291_s21 = sld [smem:[%s13187_s0 + %s11148_s18]]   ;;  %s11151_s30 = smov 7  }
   0x6   :  { %s11296_s25 = sld [smem:[%s13187_s0 + %s11149_s22]]   ;;  %s11152_s4 = smov 8  }
   0x7   :  { %s11301_s29 = sld [smem:[%s13187_s0 + %s11150_s26]]   ;;  %s11153_s10 = smov 9  }
   0x8   :  { %s11306_s3 = sld [smem:[%s13187_s0 + %s11151_s30]]   ;;  %s11154_s15 = smov 10  }
   0x9   :  { %13337 = sst [smem:[#allocation59_spill]] %s11281_s13  ;;  %s11155_s20 = smov 11  }
   0xa   :  { %13338 = sst [smem:[#allocation60_spill]] %s11286_s17  ;;  %s11156_s26 = smov 12  }
   0xb   :  { %13339 = sst [smem:[#allocation61_spill]] %s11291_s21  ;;  %s11157_s1 = smov 13  }
   0xc   :  { %s11311_s8 = sld [smem:[%s13187_s0 + %s11152_s4]]   ;;  %s11158_s7 = smov 14  }
   0xd   :  { %13340 = sst [smem:[#allocation62_spill]] %s11301_s29  ;;  %s11160_s22 = smov 16  }
   0xe   :  { %13341 = sst [smem:[#allocation63_spill]] %s11306_s3  ;;  %s11161_s28 = smov 17  }
   0xf   :  { %s11316_s14 = sld [smem:[%s13187_s0 + %s11153_s10]]   ;;  %s11233_s2 = smov 89  }
  0x10   :  { %s11321_s19 = sld [smem:[%s13187_s0 + %s11154_s15]]   ;;  %s11159_s15 = smov 15  }
  0x11   :  { %s11326_s24 = sld [smem:[%s13187_s0 + %s11155_s20]]  }
  0x12   :  { %13342 = sst [smem:[#allocation64_spill]] %s11311_s8 }
  0x13   :  { %s11331_s30 = sld [smem:[%s13187_s0 + %s11156_s26]]   ;;  %s11232_s26 = smov 88  }
  0x14   :  { %s11336_s6 = sld [smem:[%s13187_s0 + %s11157_s1]]  }
  0x15   :  { %13343 = sst [smem:[#allocation65_spill]] %s11316_s14 }
  0x16   :  { %13344 = sst [smem:[#allocation66_spill]] %s11321_s19 }
  0x17   :  { %13345 = sst [smem:[#allocation67_spill]] %s11326_s24 }
  0x18   :  { %s11341_s12 = sld [smem:[%s13187_s0 + %s11158_s7]]   ;;  %s11162_s7 = smov 18  }
  0x19   :  { %13346 = sst [smem:[#allocation68_spill]] %s11331_s30 }
  0x1a   :  { %13347 = sst [smem:[#allocation69_spill]] %s11336_s6 }
  0x1b   :  { %s11346_s20 = sld [smem:[%s13187_s0 + %s11159_s15]]   ;;  %s11163_s15 = smov 19  }
  0x1c   :  { %s11351_s27 = sld [smem:[%s13187_s0 + %s11160_s22]]   ;;  %s11164_s22 = smov 20  }
  0x1d   :  { %s11356_s4 = sld [smem:[%s13187_s0 + %s11161_s28]]   ;;  %s11165_s28 = smov 21  }
  0x1e   :  { %13348 = sst [smem:[#allocation70_spill]] %s11341_s12 }
  0x1f   :  { %s11361_s6 = sld [smem:[%s13187_s0 + %s11162_s7]]   ;;  %s11166_s7 = smov 22  }
  0x21   :  { %13349 = sst [smem:[#allocation71_spill]] %s11346_s20 }
  0x22   :  { %13350 = sst [smem:[#allocation72_spill]] %s11351_s27 }
  0x23   :  { %13351 = sst [smem:[#allocation73_spill]] %s11356_s4 }
  0x24   :  { %s11366_s20 = sld [smem:[%s13187_s0 + %s11163_s15]]   ;;  %s11167_s15 = smov 23  }
  0x25   :  { %13352 = sst [smem:[#allocation74_spill]] %s11361_s6 }
  0x26   :  { %s11371_s27 = sld [smem:[%s13187_s0 + %s11164_s22]]   ;;  %s11168_s22 = smov 24  }
  0x27   :  { %s11376_s4 = sld [smem:[%s13187_s0 + %s11165_s28]]   ;;  %s11169_s28 = smov 25  }
  0x28   :  { %s11381_s6 = sld [smem:[%s13187_s0 + %s11166_s7]]   ;;  %s11170_s7 = smov 26  }
  0x2a   :  { %13353 = sst [smem:[#allocation75_spill]] %s11366_s20 }
  0x2b   :  { %s11386_s20 = sld [smem:[%s13187_s0 + %s11167_s15]]   ;;  %s11171_s15 = smov 27  }
  0x2c   :  { %13354 = sst [smem:[#allocation76_spill]] %s11371_s27 }
  0x2d   :  { %13355 = sst [smem:[#allocation77_spill]] %s11376_s4 }
  0x2e   :  { %13356 = sst [smem:[#allocation78_spill]] %s11381_s6 }
  0x2f   :  { %s11391_s27 = sld [smem:[%s13187_s0 + %s11168_s22]]   ;;  %s11172_s22 = smov 28  }
  0x30   :  { %s11396_s4 = sld [smem:[%s13187_s0 + %s11169_s28]]   ;;  %s11173_s28 = smov 29  }
  0x31   :  { %13357 = sst [smem:[#allocation79_spill]] %s11386_s20 }
  0x32   :  { %s11401_s6 = sld [smem:[%s13187_s0 + %s11170_s7]]   ;;  %s11174_s7 = smov 30  }
  0x33   :  { %s11406_s20 = sld [smem:[%s13187_s0 + %s11171_s15]]   ;;  %s11175_s15 = smov 31  }
  0x34   :  { %s11411_s14 = sld [smem:[%s13187_s0 + %s11172_s22]]   ;;  %s11176_s22 = smov 32  }
  0x35   :  { %13358 = sst [smem:[#allocation80_spill]] %s11391_s27 }
  0x36   :  { %13359 = sst [smem:[#allocation81_spill]] %s11396_s4 }
  0x37   :  { %s11416_s19 = sld [smem:[%s13187_s0 + %s11173_s28]]   ;;  %s11177_s28 = smov 33  }
  0x38   :  { %13360 = sst [smem:[#allocation82_spill]] %s11401_s6 }
  0x39   :  { %s11421_s29 = sld [smem:[%s13187_s0 + %s11174_s7]]   ;;  %s11178_s7 = smov 34  }
  0x3a   :  { %13361 = sst [smem:[#allocation83_spill]] %s11411_s14 }
  0x3b   :  { %s11426_s3 = sld [smem:[%s13187_s0 + %s11175_s15]]   ;;  %s11179_s15 = smov 35  }
  0x3c   :  { %s11431_s21 = sld [smem:[%s13187_s0 + %s11176_s22]]   ;;  %s11180_s22 = smov 36  }
  0x3d   :  { %13362 = sst [smem:[#allocation84_spill]] %s11416_s19 }
  0x3e   :  { %s11436_s19 = sld [smem:[%s13187_s0 + %s11177_s28]]   ;;  %s11181_s28 = smov 37  }
  0x3f   :  { %13363 = sst [smem:[#allocation85_spill]] %s11421_s29 }
  0x40   :  { %s11441_s29 = sld [smem:[%s13187_s0 + %s11178_s7]]   ;;  %s11182_s7 = smov 38  }
  0x41   :  { %13364 = sst [smem:[#allocation86_spill]] %s11426_s3 }
  0x42   :  { %s11446_s3 = sld [smem:[%s13187_s0 + %s11179_s15]]   ;;  %s11183_s15 = smov 39  }
  0x43   :  { %s11451_s24 = sld [smem:[%s13187_s0 + %s11180_s22]]   ;;  %s11184_s22 = smov 40  }
  0x44   :  { %13365 = sst [smem:[#allocation87_spill]] %s11436_s19 }
  0x45   :  { %s11456_s30 = sld [smem:[%s13187_s0 + %s11181_s28]]   ;;  %s11185_s28 = smov 41  }
  0x46   :  { %s11461_s8 = sld [smem:[%s13187_s0 + %s11182_s7]]   ;;  %s11186_s7 = smov 42  }
  0x48   :  { %13366 = sst [smem:[#allocation88_spill]] %s11446_s3 }
  0x49   :  { %13367 = sst [smem:[#allocation89_spill]] %s11451_s24 }
  0x4a   :  { %s11466_s3 = sld [smem:[%s13187_s0 + %s11183_s15]]   ;;  %s11187_s15 = smov 43  }
  0x4b   :  { %13368 = sst [smem:[#allocation90_spill]] %s11456_s30 }
  0x4c   :  { %13369 = sst [smem:[#allocation91_spill]] %s11461_s8 }
  0x4d   :  { %s11471_s24 = sld [smem:[%s13187_s0 + %s11184_s22]]   ;;  %s11188_s22 = smov 44  }
  0x4e   :  { %s11476_s30 = sld [smem:[%s13187_s0 + %s11185_s28]]   ;;  %s11189_s28 = smov 45  }
  0x4f   :  { %s11481_s8 = sld [smem:[%s13187_s0 + %s11186_s7]]   ;;  %s11190_s7 = smov 46  }
  0x50   :  { %13370 = sst [smem:[#allocation92_spill]] %s11466_s3 }
  0x51   :  { %s11486_s3 = sld [smem:[%s13187_s0 + %s11187_s15]]   ;;  %s11191_s15 = smov 47  }
  0x53   :  { %13371 = sst [smem:[#allocation93_spill]] %s11471_s24 }
  0x54   :  { %13372 = sst [smem:[#allocation94_spill]] %s11476_s30 }
  0x55   :  { %13373 = sst [smem:[#allocation95_spill]] %s11481_s8 }
  0x56   :  { %s11491_s24 = sld [smem:[%s13187_s0 + %s11188_s22]]   ;;  %s11192_s22 = smov 48  }
  0x57   :  { %13374 = sst [smem:[#allocation96_spill]] %s11486_s3 }
  0x58   :  { %s11496_s30 = sld [smem:[%s13187_s0 + %s11189_s28]]   ;;  %s11193_s28 = smov 49  }
  0x59   :  { %s11501_s8 = sld [smem:[%s13187_s0 + %s11190_s7]]   ;;  %s11194_s7 = smov 50  }
  0x5a   :  { %s11506_s3 = sld [smem:[%s13187_s0 + %s11191_s15]]   ;;  %s11195_s15 = smov 51  }
  0x5b   :  { %s11516_s17 = sld [smem:[%s13187_s0 + %s11193_s28]]   ;;  %s11197_s28 = smov 53  }
  0x5c   :  { %13375 = sst [smem:[#allocation97_spill]] %s11491_s24 }
  0x5d   :  { %s11511_s24 = sld [smem:[%s13187_s0 + %s11192_s22]]   ;;  %s11196_s22 = smov 52  }
  0x5e   :  { %13376 = sst [smem:[#allocation98_spill]] %s11496_s30 }
  0x5f   :  { %13377 = sst [smem:[#allocation99_spill]] %s11501_s8 }
  0x60   :  { %13378 = sst [smem:[#allocation100_spill]] %s11506_s3 }
  0x61   :  { %13380 = sst [smem:[#allocation102_spill]] %s11516_s17 }
  0x62   :  { %s11521_s8 = sld [smem:[%s13187_s0 + %s11194_s7]]   ;;  %s11198_s7 = smov 54  }
  0x63   :  { %13379 = sst [smem:[#allocation101_spill]] %s11511_s24 }
  0x64   :  { %s11526_s3 = sld [smem:[%s13187_s0 + %s11195_s15]]   ;;  %s11199_s15 = smov 55  }
  0x65   :  { %s11531_s24 = sld [smem:[%s13187_s0 + %s11196_s22]]   ;;  %s11200_s22 = smov 56  }
  0x66   :  { %s11536_s17 = sld [smem:[%s13187_s0 + %s11197_s28]]   ;;  %s11201_s28 = smov 57  }
  0x68   :  { %13381 = sst [smem:[#allocation103_spill]] %s11521_s8 }
  0x69   :  { %s11541_s8 = sld [smem:[%s13187_s0 + %s11198_s7]]   ;;  %s11202_s7 = smov 58  }
  0x6a   :  { %13382 = sst [smem:[#allocation104_spill]] %s11526_s3 }
  0x6b   :  { %13383 = sst [smem:[#allocation105_spill]] %s11531_s24 }
  0x6c   :  { %13384 = sst [smem:[#allocation106_spill]] %s11536_s17 }
  0x6d   :  { %s11546_s3 = sld [smem:[%s13187_s0 + %s11199_s15]]   ;;  %s11203_s15 = smov 59  }
  0x6e   :  { %s11551_s24 = sld [smem:[%s13187_s0 + %s11200_s22]]   ;;  %s11204_s22 = smov 60  }
  0x6f   :  { %13385 = sst [smem:[#allocation107_spill]] %s11541_s8 }
  0x70   :  { %s11556_s17 = sld [smem:[%s13187_s0 + %s11201_s28]]   ;;  %s11205_s28 = smov 61  }
  0x71   :  { %s11561_s13 = sld [smem:[%s13187_s0 + %s11202_s7]]   ;;  %s11206_s7 = smov 62  }
  0x73   :  { %13386 = sst [smem:[#allocation108_spill]] %s11546_s3 }
  0x74   :  { %13387 = sst [smem:[#allocation109_spill]] %s11551_s24 }
  0x75   :  { %s11566_s3 = sld [smem:[%s13187_s0 + %s11203_s15]]   ;;  %s11207_s15 = smov 63  }
  0x76   :  { %13388 = sst [smem:[#allocation110_spill]] %s11556_s17 }
  0x77   :  { %13389 = sst [smem:[#allocation111_spill]] %s11561_s13 }
  0x78   :  { %s11571_s24 = sld [smem:[%s13187_s0 + %s11204_s22]]   ;;  %s11208_s22 = smov 64  }
  0x79   :  { %s11576_s17 = sld [smem:[%s13187_s0 + %s11205_s28]]   ;;  %s11209_s28 = smov 65  }
  0x7a   :  { %s11581_s13 = sld [smem:[%s13187_s0 + %s11206_s7]]   ;;  %s11210_s7 = smov 66  }
  0x7b   :  { %13390 = sst [smem:[#allocation112_spill]] %s11566_s3 }
  0x7c   :  { %s11586_s3 = sld [smem:[%s13187_s0 + %s11207_s15]]   ;;  %s11211_s15 = smov 67  }
  0x7d   :  { %s11606_s30 = sld [smem:[%s13187_s0 + %s11211_s15]]   ;;  %s11215_s15 = smov 71  }
  0x7e   :  { %13391 = sst [smem:[#allocation113_spill]] %s11571_s24 }
  0x7f   :  { %13392 = sst [smem:[#allocation114_spill]] %s11576_s17 }
  0x80   :  { %13393 = sst [smem:[#allocation115_spill]] %s11581_s13 }
  0x81   :  { %s11591_s24 = sld [smem:[%s13187_s0 + %s11208_s22]]   ;;  %s11212_s22 = smov 68  }
  0x82   :  { %13394 = sst [smem:[#allocation116_spill]] %s11586_s3 }
  0x83   :  { %s11596_s17 = sld [smem:[%s13187_s0 + %s11209_s28]]   ;;  %s11213_s28 = smov 69  }
  0x84   :  { %s11601_s13 = sld [smem:[%s13187_s0 + %s11210_s7]]   ;;  %s11214_s7 = smov 70  }
  0x85   :  { %s11616_s19 = sld [smem:[%s13187_s0 + %s11213_s28]]   ;;  %s11217_s28 = smov 73  }
  0x86   :  { %s11626_s14 = sld [smem:[%s13187_s0 + %s11215_s15]]   ;;  %s11219_s15 = smov 75  }
  0x87   :  { %13395 = sst [smem:[#allocation117_spill]] %s11591_s24 }
  0x88   :  { %s11611_s24 = sld [smem:[%s13187_s0 + %s11212_s22]]   ;;  %s11216_s22 = smov 72  }
  0x8a   :  { %13396 = sst [smem:[#allocation118_spill]] %s11601_s13 }
  0x8b   :  { %13398 = sst [smem:[#allocation120_spill]] %s11616_s19 }
  0x8c   :  { %s11621_s13 = sld [smem:[%s13187_s0 + %s11214_s7]]   ;;  %s11218_s7 = smov 74  }
  0x8d   :  { %13400 = sst [smem:[#allocation122_spill]] %s11626_s14 }
  0x8e   :  { %13397 = sst [smem:[#allocation119_spill]] %s11611_s24 }
  0x8f   :  { %s11631_s24 = sld [smem:[%s13187_s0 + %s11216_s22]]   ;;  %s11220_s22 = smov 76  }
  0x90   :  { %s11636_s19 = sld [smem:[%s13187_s0 + %s11217_s28]]   ;;  %s11221_s28 = smov 77  }
  0x91   :  { %s11646_s14 = sld [smem:[%s13187_s0 + %s11219_s15]]   ;;  %s11223_s15 = smov 79  }
  0x92   :  { %13399 = sst [smem:[#allocation121_spill]] %s11621_s13 }
  0x93   :  { %s11641_s13 = sld [smem:[%s13187_s0 + %s11218_s7]]   ;;  %s11222_s7 = smov 78  }
  0x94   :  { %s11651_s6 = sld [smem:[%s13187_s0 + %s11220_s22]]   ;;  %s11224_s22 = smov 80  }
  0x95   :  { %s11661_s27 = sld [smem:[%s13187_s0 + %s11222_s7]]   ;;  %s11226_s7 = smov 82  }
  0x96   :  { %13401 = sst [smem:[#allocation123_spill]] %s11636_s19 }
  0x97   :  { %13403 = sst [smem:[#allocation125_spill]] %s11646_s14 }
  0x98   :  { %s11656_s19 = sld [smem:[%s13187_s0 + %s11221_s28]]   ;;  %s11225_s28 = smov 81  }
  0x99   :  { %13402 = sst [smem:[#allocation124_spill]] %s11641_s13 }
  0x9a   :  { %13404 = sst [smem:[#allocation126_spill]] %s11651_s6 }
  0x9b   :  { %13406 = sst [smem:[#allocation128_spill]] %s11661_s27 }
  0x9c   :  { %s11666_s14 = sld [smem:[%s13187_s0 + %s11223_s15]]   ;;  %s11227_s15 = smov 83  }
  0x9d   :  { %s11671_s1 = sld [smem:[%s13187_s0 + %s11224_s22]]   ;;  %s11228_s22 = smov 84  }
  0x9e   :  { %13405 = sst [smem:[#allocation127_spill]] %s11656_s19  ;;  %s11229_s19 = smov 85  }
  0x9f   :  { %s11676_s10 = sld [smem:[%s13187_s0 + %s11225_s28]]  }
  0xa0   :  { %s11681_s16 = sld [smem:[%s13187_s0 + %s11226_s7]]   ;;  %s11230_s7 = smov 86  }
  0xa1   :  { %s11686_s23 = sld [smem:[%s13187_s0 + %s11227_s15]]   ;;  %s11231_s15 = smov 87  }
  0xa2   :  { %13407 = sst [smem:[#allocation129_spill]] %s11666_s14 }
  0xa3   :  { %13408 = sst [smem:[#allocation130_spill]] %s11671_s1 }
  0xa4   :  { %s11691_s14 = sld [smem:[%s13187_s0 + %s11228_s22]]   ;;  %s186_s22 = sshll.u32 %s11271_s5, 4  ;;  %s187_s22 = int_to_ptr.hbm [resolvable:$true] %s186_s22 }
  0xa5   :  { %13409 = sst [smem:[#allocation131_spill]] %s11676_s10 }
  0xa6   :  { %13410 = sst [smem:[#allocation132_spill]] %s11681_s16 }
  0xa7   :  { %13411 = sst [smem:[#allocation133_spill]] %s11686_s23  ;;  %s10335_s23 = scalar_lea.hbm %s11271_s5, 1 }
  0xa8   :  { %s11696_s27 = sld [smem:[%s13187_s0 + %s11229_s19]]  }
  0xa9   :  { %s11701_s6 = sld [smem:[%s13187_s0 + %s11230_s7]]   ;;  %s10331_s7 = sshra.s32 %s187_s22, 4  ;;  %s10332_s7 = int_to_ptr.hbm [resolvable:$true] %s10331_s7 }
  0xaa   :  { %13412 = sst [smem:[#allocation134_spill]] %s11691_s14  ;;  %s10333_s11 = scalar_lea.hbm %s10332_s7, 1 }
  0xab   :  { %s11706_s1 = sld [smem:[%s13187_s0 + %s11231_s15]]   ;;  %p10334_p0 = scmp.ne.s32.totalorder %s10332_s7, %s10333_s11 }
  0xac   :  { %s11712_s19 = sld [smem:[%s13187_s0 + %s11232_s26]]   ;;  %p10336_p1 = scmp.lt.s32.totalorder %s10332_s7, %s11271_s5 }
  0xad   :  { %s11717_s10 = sld [smem:[%s13187_s0 + %s11233_s2]]   ;;  %p10337_p2 = scmp.lt.s32.totalorder %s10335_s23, %s10333_s11 }
  0xae   :  { %13413 = sst [smem:[#allocation135_spill]] %s11696_s27 }
  0xaf   :  { %p10338_p3 = por %p10337_p2, %p10336_p1 }
  0xb1   :  { %13414 = sst [smem:[#allocation136_spill]] %s11706_s1  ;;  %p10339_p4 = pnand %p10338_p3, %p10334_p0 }
  0xb3   :  { %10342 = shalt.err (!%p10339_p4)  }
  0xb4   :  { %s11234_s16 = smov [#allocation3]   ;;  %s191_s15 = sshll.u32 %s11276_s9, 4  ;;  %s192_s15 = int_to_ptr.hbm [resolvable:$true] %s191_s15 }
  0xb5   :  { %189 = dma.hbm_to_smem %s187_s22, 16, %s11234_s16, [#allocation2] }
  0xb6   :  { %s10343_s14 = sshra.s32 %s192_s15, 4  ;;  %s10347_s27 = scalar_lea.hbm %s11276_s9, 1  ;;  %s10344_s14 = int_to_ptr.hbm [resolvable:$true] %s10343_s14 }
  0xb7   :  { %s10345_s0 = scalar_lea.hbm %s10344_s14, 1  ;;  %p10348_p6 = scmp.lt.s32.totalorder %s10344_s14, %s11276_s9 }
  0xb8   :  { %p10346_p5 = scmp.ne.s32.totalorder %s10344_s14, %s10345_s0  ;;  %p10349_p7 = scmp.lt.s32.totalorder %s10347_s27, %s10345_s0 }
  0xba   :  { %p10350_p8 = por %p10349_p7, %p10348_p6 }
  0xbc   :  { %p10351_p9 = pnand %p10350_p8, %p10346_p5 }
  0xbe   :  { %10354 = shalt.err (!%p10351_p9)  }
  0xbf   :  { %s11235_s5 = smov [#allocation4]  }
  0xc0   :  { %194 = dma.hbm_to_smem %s192_s15, 16, %s11235_s5, [#allocation2] }
  0xc1   :  { %11071 = dma.done.wait [#allocation2], 32 }
  0xc2   :  { %11072 = vsyncadd [#allocation2], 4294967264 }
  0xc3   :  { %197 = sfence }
  0xc4   :  { %198 = vsyncpa [#allocation6], 0 }
  0xc5   :  { %199 = vsyncpa [#allocation9], 0 }
  0xc6   :  { %200 = vsyncpa [#allocation12], 0 }
  0xc7   :  { %201 = vsyncpa [#allocation15], 0 }
  0xc8   :  { %202 = vsyncpa [#allocation18], 0 }
  0xc9   :  { %203 = vsyncpa [#allocation21], 0 }
  0xca   :  { %204 = vsyncpa [#allocation24], 0 }
  0xcb   :  { %205 = vsyncpa [#allocation27], 0 }
  0xcc   :  { %206 = vsyncpa [#allocation30], 0 }
  0xcd   :  { %207 = vsyncpa [#allocation33], 0 }
  0xce   :  { %208 = vsyncpa [#allocation36], 0 }
  0xcf   :  { %209 = vsyncpa [#allocation39], 0 }
  0xd0   :  { %210 = vsyncpa [#allocation42], 0 }
  0xd1   :  { %211 = vsyncpa [#allocation7], 0 }
  0xd2   :  { %213 = vsyncpa [#allocation7 + $0x1], 0  ;;  %s11724_s9 = smov 0   ;;  %s11726_s18 = smov 0  }
  0xd3   :  { %s11728_s22 = smov 0   ;;  %s11730_s26 = smov 0  }
  0xd4 LB: > { %s13415_s13 = sld [smem:[#allocation124_spill]]  ;;  %s11745_s28 = sadd.s32 4294967295, %s11143_s26   ;;  %s11131_s9 = sphi %s11724_s9, %s13585_s9   ;;  %s11143_s26 = sphi %s11730_s26, %s13582_s26   ;;  %s11139_s22 = sphi %s11728_s22, %s13584_s22   ;;  %s11135_s18 = sphi %s11726_s18, %s13586_s18  }
  0xd5   : > { %s13416_s12 = sld [smem:[#allocation70_spill]]  ;;  %s8654_s2 = sadd.s32 4294967294, %s11143_s26  }
  0xd6   : > { %s13417_s8 = sld [smem:[#allocation107_spill]]  ;;  %s11749_s7 = sadd.s32 1, %s11143_s26  }
  0xd7   : > { %s13418_s4 = sld [smem:[#allocation81_spill]]  ;;  %s2068_s11 = sadd.s32 1, %s11139_s22 }
  0xd8   : > { %s13419_s3 = sld [smem:[#allocation116_spill]]  ;;  %s2065_s23 = ssub.s32 %s11143_s26, %s11749_s7 }
  0xd9   : > { %13420 = sst [smem:[#allocation137_spill]] %s11131_s9  ;;  %p2078_p10 = scmp.ne.s32.totalorder %s11139_s22, %s11135_s18 }
  0xda   : > { %13421 = sst [smem:[#allocation138_spill]] %s11139_s22  ;;  %p2066_p11 = scmp.eq.s32.totalorder %s2065_s23, 0 }
  0xdb   : > { %13422 = sst [smem:[#allocation139_spill]] %s11143_s26  ;;  %p2079_p12 = scmp.eq.s32.totalorder %s11745_s28, 1 }
  0xdc   : > { %13423 = sst [smem:[#allocation140_spill]] %s11749_s7  ;;  %p2084_p13 = scmp.ne.s32.totalorder %s11135_s18, %s11131_s9 }
  0xdd   : > { %p2085_p0 = scmp.eq.s32.totalorder %s8654_s2, 1  ;;  %p11762_p1 = por %p2079_p12, %p2078_p10 }
  0xde   : > { %s11760_s16 = scalar_select %p2066_p11, %s11139_s22, %s2068_s11  }
  0xdf   : > { %p11766_p2 = por %p2085_p0, %p2084_p13  ;;  %p8655_p3 = scmp.ge.s32.totalorder %s11143_s26, 1 }
  0xe0   : > { %13424 = sst [smem:[#allocation141_spill]] %s11760_s16  ;;  %p2092_p4 = scmp.lt.s32.totalorder %s11143_s26, 3 }
  0xe1   : > { %s13426_s14 = scalar_select %p11766_p2, 1, 0 }
  0xe2   : > { %p11772_p5 = pnand %p8655_p3, %p2092_p4 }
  0xe3   : > { %13427 = sst [smem:[#allocation142_spill]] %s13426_s14  ;;  %p9918_p6 = scmp.eq.s32.totalorder (!%p11772_p5), %s11745_s28, 0 }
  0xe4   : > { %2096 = sbr.rel (%p11772_p5) target bundleno = 544 (0x220), region = 12  ;;  %s2143_s27 = sshll.u32 (!%p11772_p5), %s13416_s12, 4  ;;  %s2144_s27 = int_to_ptr.hbm [resolvable:$true] %s2143_s27 }
  0xe5   : > { %s11236_s5 = smov (!%p11772_p5), [#allocation8]   ;;  %s2194_s11 = sshll.u32 (!%p11772_p5), %s13418_s4, 4  ;;  %s11781_s11 = int_to_ptr.hbm [resolvable:$true] %s2194_s11 }
  0xe6   : > { %s2145_s2 = sshll.u32 (!%p11772_p5), %s11236_s5, 4  ;;  %s10355_s23 = sshra.s32 (!%p11772_p5), %s2144_s27, 4  ;;  %s2146_s2 = int_to_ptr.vmem [resolvable:$true] %s2145_s2  ;;  %s10356_s23 = int_to_ptr.hbm [resolvable:$true] %s10355_s23 }
  0xe7   : > { %s10357_s16 = scalar_lea.hbm (!%p11772_p5), %s10356_s23, 1  ;;  %s10361_s22 = scalar_lea.hbm (!%p11772_p5), %s13416_s12, 1 }
  0xe8   : > { %p10358_p7 = scmp.ne.s32.totalorder (!%p11772_p5), %s10356_s23, %s10357_s16  ;;  %p10362_p10 = scmp.lt.s32.totalorder (!%p11772_p5), %s10356_s23, %s13416_s12 }
  0xe9   : > { %p10363_p11 = scmp.lt.s32.totalorder %s10361_s22, %s10357_s16 }
  0xea   : > { %p10359_p8 = pnand %p10358_p7, %p9918_p6 }
  0xeb   : > { %p10364_p12 = por %p10363_p11, %p10362_p10 }
  0xec   : > { %p10360_p9 = pneg %p10359_p8 }
  0xee   : > { %p10365_p13 = pnand %p10364_p12, %p10360_p9 }
  0xf0   : > { %10368 = shalt.err (!%p10365_p13)
}
  0xf1   : > { %9819 = dma.hbm_to_vmem [thread:$0]  (%p9918_p6), %s2144_s27, 16, %s2146_s2, [#allocation9]  }
  0xf2   : > { %s11237_s5 = smov [#allocation11]   ;;  %s2219_s14 = sshll.u32 %s11406_s20, 4  ;;  %s2220_s14 = int_to_ptr.hbm [resolvable:$true] %s2219_s14 }
  0xf3   : > { %s2196_s7 = sshll.u32 %s11237_s5, 4  ;;  %s10383_s9 = sshra.s32 %s11781_s11, 4  ;;  %s2197_s7 = int_to_ptr.vmem [resolvable:$true] %s2196_s7  ;;  %s10384_s9 = int_to_ptr.hbm [resolvable:$true] %s10383_s9 }
  0xf4   : > { %s10385_s26 = scalar_lea.hbm %s10384_s9, 1  ;;  %s10389_s22 = scalar_lea.hbm %s13418_s4, 1 }
  0xf5   : > { %p10386_p0 = scmp.ne.s32.totalorder %s10384_s9, %s10385_s26  ;;  %p10390_p7 = scmp.lt.s32.totalorder %s10384_s9, %s13418_s4 }
  0xf6   : > { %p10391_p8 = scmp.lt.s32.totalorder %s10389_s22, %s10385_s26 }
  0xf7   : > { %p10387_p3 = pnand %p10386_p0, %p9918_p6 }
  0xf8   : > { %p10392_p9 = por %p10391_p8, %p10390_p7 }
  0xf9   : > { %p10388_p4 = pneg %p10387_p3 }
  0xfb   : > { %p10393_p10 = pnand %p10392_p9, %p10388_p4 }
  0xfd   : > { %10396 = shalt.err (!%p10393_p10)
}
  0xfe   : > { %9823 = dma.hbm_to_vmem [thread:$0]  (%p9918_p6), %s11781_s11, 16, %s2197_s7, [#allocation12]  }
  0xff   : > { %s11238_s16 = smov [#allocation14]   ;;  %s2256_s2 = sshll.u32 %s11431_s21, 4  ;;  %s11799_s2 = int_to_ptr.hbm [resolvable:$true] %s2256_s2 }
 0x100   : > { %s2221_s27 = sshll.u32 %s11238_s16, 4  ;;  %s10411_s9 = sshra.s32 %s2220_s14, 4  ;;  %s2222_s27 = int_to_ptr.vmem [resolvable:$true] %s2221_s27  ;;  %s10412_s9 = int_to_ptr.hbm [resolvable:$true] %s10411_s9 }
 0x101   : > { %s10413_s26 = scalar_lea.hbm %s10412_s9, 2  ;;  %s10417_s23 = scalar_lea.hbm %s11406_s20, 2 }
 0x102   : > { %p10414_p11 = scmp.ne.s32.totalorder %s10412_s9, %s10413_s26  ;;  %p10418_p0 = scmp.lt.s32.totalorder %s10412_s9, %s11406_s20 }
 0x103   : > { %p10419_p3 = scmp.lt.s32.totalorder %s10417_s23, %s10413_s26 }
 0x104   : > { %p10415_p12 = pnand %p10414_p11, %p9918_p6 }
 0x105   : > { %p10420_p4 = por %p10419_p3, %p10418_p0 }
 0x106   : > { %p10416_p13 = pneg %p10415_p12 }
 0x108   : > { %p10421_p7 = pnand %p10420_p4, %p10416_p13 }
 0x10a   : > { %10424 = shalt.err (!%p10421_p7)
}
 0x10b   : > { %s13265_s7 = smov 16   ;;  %s13267_s11 = smov 1  }
 0x10c   : > { %9827 = dma.hbm_to_vmem [thread:$0]  (%p9918_p6), %s2220_s14, 32, %s2222_s27, [#allocation15], %s13265_s7, %s13265_s7, %s13267_s11  }
 0x10d   : > { %s2284_s5 = sshll.u32 %s11441_s29, 4  ;;  %s11241_s22 = smov [#allocation17]   ;;  %s11811_s5 = int_to_ptr.hbm [resolvable:$true] %s2284_s5 }
 0x10e   : > { %s2258_s16 = sshll.u32 %s11241_s22, 4  ;;  %s10439_s9 = sshra.s32 %s11799_s2, 4  ;;  %s2259_s16 = int_to_ptr.vmem [resolvable:$true] %s2258_s16  ;;  %s10440_s9 = int_to_ptr.hbm [resolvable:$true] %s10439_s9 }
 0x10f   : > { %s10441_s26 = scalar_lea.hbm %s10440_s9, 2  ;;  %s10445_s23 = scalar_lea.hbm %s11431_s21, 2 }
 0x110   : > { %p10442_p8 = scmp.ne.s32.totalorder %s10440_s9, %s10441_s26  ;;  %p10446_p11 = scmp.lt.s32.totalorder %s10440_s9, %s11431_s21 }
 0x111   : > { %p10447_p12 = scmp.lt.s32.totalorder %s10445_s23, %s10441_s26 }
 0x112   : > { %p10443_p9 = pnand %p10442_p8, %p9918_p6 }
 0x113   : > { %p10448_p13 = por %p10447_p12, %p10446_p11 }
 0x114   : > { %p10444_p10 = pneg %p10443_p9 }
 0x116   : > { %p10449_p0 = pnand %p10448_p13, %p10444_p10 }
 0x118   : > { %10452 = shalt.err (!%p10449_p0)
}
 0x119   : > { %9831 = dma.hbm_to_vmem [thread:$0]  (%p9918_p6), %s11799_s2, 32, %s2259_s16, [#allocation18], %s13265_s7, %s13265_s7, %s13267_s11  }
 0x11a   : > { %s11242_s14 = smov [#allocation20]   ;;  %s2365_s22 = sshll.u32 %s13417_s8, 4  ;;  %s11825_s22 = int_to_ptr.hbm [resolvable:$true] %s2365_s22 }
 0x11b   : > { %s2286_s27 = sshll.u32 %s11242_s14, 4  ;;  %s10467_s9 = sshra.s32 %s11811_s5, 4  ;;  %s2287_s27 = int_to_ptr.vmem [resolvable:$true] %s2286_s27  ;;  %s10468_s9 = int_to_ptr.hbm [resolvable:$true] %s10467_s9 }
 0x11c   : > { %s10469_s26 = scalar_lea.hbm %s10468_s9, 2  ;;  %s10473_s23 = scalar_lea.hbm %s11441_s29, 2 }
 0x11d   : > { %p10470_p3 = scmp.ne.s32.totalorder %s10468_s9, %s10469_s26  ;;  %p10474_p8 = scmp.lt.s32.totalorder %s10468_s9, %s11441_s29 }
 0x11e   : > { %p10475_p9 = scmp.lt.s32.totalorder %s10473_s23, %s10469_s26 }
 0x11f   : > { %p10471_p4 = pnand %p10470_p3, %p9918_p6 }
 0x120   : > { %p10476_p10 = por %p10475_p9, %p10474_p8 }
 0x121   : > { %p10472_p7 = pneg %p10471_p4 }
 0x123   : > { %p10477_p11 = pnand %p10476_p10, %p10472_p7 }
 0x125   : > { %10480 = shalt.err (!%p10477_p11)
}
 0x126   : > { %9835 = dma.hbm_to_vmem [thread:$0]  (%p9918_p6), %s11811_s5, 32, %s2287_s27, [#allocation21], %s13265_s7, %s13265_s7, %s13267_s11  }
 0x127   : > { %s2411_s2 = sshll.u32 %s13419_s3, 4  ;;  %s11243_s16 = smov [#allocation23]   ;;  %s11839_s2 = int_to_ptr.hbm [resolvable:$true] %s2411_s2 }
 0x128   : > { %s2367_s14 = sshll.u32 %s11243_s16, 4  ;;  %s10495_s9 = sshra.s32 %s11825_s22, 4  ;;  %s2368_s14 = int_to_ptr.vmem [resolvable:$true] %s2367_s14  ;;  %s10496_s9 = int_to_ptr.hbm [resolvable:$true] %s10495_s9 }
 0x129   : > { %s10497_s26 = scalar_lea.hbm %s10496_s9, 1  ;;  %s10501_s23 = scalar_lea.hbm %s13417_s8, 1 }
 0x12a   : > { %p10498_p12 = scmp.ne.s32.totalorder %s10496_s9, %s10497_s26  ;;  %p10502_p3 = scmp.lt.s32.totalorder %s10496_s9, %s13417_s8 }
 0x12b   : > { %p10503_p4 = scmp.lt.s32.totalorder %s10501_s23, %s10497_s26 }
 0x12c   : > { %p10499_p13 = pnand %p10498_p12, %p9918_p6 }
 0x12d   : > { %p10504_p7 = por %p10503_p4, %p10502_p3 }
 0x12e   : > { %p10500_p0 = pneg %p10499_p13 }
 0x130   : > { %p10505_p8 = pnand %p10504_p7, %p10500_p0 }
 0x132   : > { %10508 = shalt.err (!%p10505_p8)
}
 0x133   : > { %9839 = dma.hbm_to_vmem [thread:$0]  (%p9918_p6), %s11825_s22, 16, %s2368_s14, [#allocation24]  }
 0x134   : > { %s11244_s5 = smov [#allocation26]   ;;  %s2438_s16 = sshll.u32 %s11596_s17, 4  ;;  %s11850_s16 = int_to_ptr.hbm [resolvable:$true] %s2438_s16 }
 0x135   : > { %s2413_s27 = sshll.u32 %s11244_s5, 4  ;;  %s10523_s9 = sshra.s32 %s11839_s2, 4  ;;  %s2414_s27 = int_to_ptr.vmem [resolvable:$true] %s2413_s27  ;;  %s10524_s9 = int_to_ptr.hbm [resolvable:$true] %s10523_s9 }
 0x136   : > { %s10525_s26 = scalar_lea.hbm %s10524_s9, 2  ;;  %s10529_s23 = scalar_lea.hbm %s13419_s3, 2 }
 0x137   : > { %p10526_p9 = scmp.ne.s32.totalorder %s10524_s9, %s10525_s26  ;;  %p10530_p12 = scmp.lt.s32.totalorder %s10524_s9, %s13419_s3 }
 0x138   : > { %p10531_p13 = scmp.lt.s32.totalorder %s10529_s23, %s10525_s26 }
 0x139   : > { %p10527_p10 = pnand %p10526_p9, %p9918_p6 }
 0x13a   : > { %p10532_p0 = por %p10531_p13, %p10530_p12 }
 0x13b   : > { %p10528_p11 = pneg %p10527_p10 }
 0x13d   : > { %p10533_p3 = pnand %p10532_p0, %p10528_p11 }
 0x13f   : > { %10536 = shalt.err (!%p10533_p3)
}
 0x140   : > { %9843 = dma.hbm_to_vmem [thread:$0]  (%p9918_p6), %s11839_s2, 32, %s2414_s27, [#allocation27], %s13265_s7, %s13265_s7, %s13267_s11  }
 0x141   : > { %s2463_s22 = sshll.u32 %s11606_s30, 4  ;;  %s11245_s14 = smov [#allocation29]   ;;  %s11864_s22 = int_to_ptr.hbm [resolvable:$true] %s2463_s22 }
 0x142   : > { %s2440_s5 = sshll.u32 %s11245_s14, 4  ;;  %s10551_s9 = sshra.s32 %s11850_s16, 4  ;;  %s2441_s5 = int_to_ptr.vmem [resolvable:$true] %s2440_s5  ;;  %s10552_s9 = int_to_ptr.hbm [resolvable:$true] %s10551_s9 }
 0x143   : > { %s10553_s26 = scalar_lea.hbm %s10552_s9, 1  ;;  %s10557_s23 = scalar_lea.hbm %s11596_s17, 1 }
 0x144   : > { %p10554_p4 = scmp.ne.s32.totalorder %s10552_s9, %s10553_s26  ;;  %p10558_p9 = scmp.lt.s32.totalorder %s10552_s9, %s11596_s17 }
 0x145   : > { %p10559_p10 = scmp.lt.s32.totalorder %s10557_s23, %s10553_s26 }
 0x146   : > { %p10555_p7 = pnand %p10554_p4, %p9918_p6 }
 0x147   : > { %p10560_p11 = por %p10559_p10, %p10558_p9 }
 0x148   : > { %p10556_p8 = pneg %p10555_p7 }
 0x14a   : > { %p10561_p12 = pnand %p10560_p11, %p10556_p8 }
 0x14c   : > { %10564 = shalt.err (!%p10561_p12)
}
 0x14d   : > { %9847 = dma.hbm_to_vmem [thread:$0]  (%p9918_p6), %s11850_s16, 16, %s2441_s5, [#allocation30]  }
 0x14e   : > { %s11246_s2 = smov [#allocation32]   ;;  %s2500_s14 = sshll.u32 %s11631_s24, 4  ;;  %s11875_s14 = int_to_ptr.hbm [resolvable:$true] %s2500_s14 }
 0x14f   : > { %s2465_s27 = sshll.u32 %s11246_s2, 4  ;;  %s10579_s9 = sshra.s32 %s11864_s22, 4  ;;  %s2466_s27 = int_to_ptr.vmem [resolvable:$true] %s2465_s27  ;;  %s10580_s9 = int_to_ptr.hbm [resolvable:$true] %s10579_s9 }
 0x150   : > { %s10581_s26 = scalar_lea.hbm %s10580_s9, 2  ;;  %s10585_s23 = scalar_lea.hbm %s11606_s30, 2 }
 0x151   : > { %p10582_p13 = scmp.ne.s32.totalorder %s10580_s9, %s10581_s26  ;;  %p10586_p4 = scmp.lt.s32.totalorder %s10580_s9, %s11606_s30 }
 0x152   : > { %p10587_p7 = scmp.lt.s32.totalorder %s10585_s23, %s10581_s26 }
 0x153   : > { %p10583_p0 = pnand %p10582_p13, %p9918_p6 }
 0x154   : > { %p10588_p8 = por %p10587_p7, %p10586_p4 }
 0x155   : > { %p10584_p3 = pneg %p10583_p0 }
 0x157   : > { %p10589_p9 = pnand %p10588_p8, %p10584_p3 }
 0x159   : > { %10592 = shalt.err (!%p10589_p9)
}
 0x15a   : > { %9851 = dma.hbm_to_vmem [thread:$0]  (%p9918_p6), %s11864_s22, 32, %s2466_s27, [#allocation33], %s13265_s7, %s13265_s7, %s13267_s11  }
 0x15b   : > { %s2528_s16 = sshll.u32 %s13415_s13, 4  ;;  %s11247_s5 = smov [#allocation35]   ;;  %s11889_s16 = int_to_ptr.hbm [resolvable:$true] %s2528_s16 }
 0x15c   : > { %s2502_s2 = sshll.u32 %s11247_s5, 4  ;;  %s10607_s9 = sshra.s32 %s11875_s14, 4  ;;  %s2503_s2 = int_to_ptr.vmem [resolvable:$true] %s2502_s2  ;;  %s10608_s9 = int_to_ptr.hbm [resolvable:$true] %s10607_s9 }
 0x15d   : > { %s10609_s26 = scalar_lea.hbm %s10608_s9, 2  ;;  %s10613_s23 = scalar_lea.hbm %s11631_s24, 2 }
 0x15e   : > { %p10610_p10 = scmp.ne.s32.totalorder %s10608_s9, %s10609_s26  ;;  %p10614_p13 = scmp.lt.s32.totalorder %s10608_s9, %s11631_s24 }
 0x15f   : > { %p10615_p0 = scmp.lt.s32.totalorder %s10613_s23, %s10609_s26 }
 0x160   : > { %p10611_p11 = pnand %p10610_p10, %p9918_p6 }
 0x161   : > { %p10616_p3 = por %p10615_p0, %p10614_p13 }
 0x162   : > { %p10612_p12 = pneg %p10611_p11 }
 0x164   : > { %p10617_p4 = pnand %p10616_p3, %p10612_p12 }
 0x166   : > { %10620 = shalt.err (!%p10617_p4)
}
 0x167   : > { %9855 = dma.hbm_to_vmem [thread:$0]  (%p9918_p6), %s11875_s14, 32, %s2503_s2, [#allocation36], %s13265_s7, %s13265_s7, %s13267_s11  }
 0x168   : > { %s11248_s22 = smov [#allocation38]   ;;  %s2107_s5 = sshll.u32 %s11296_s25, 4  ;;  %s2108_s5 = int_to_ptr.hbm [resolvable:$true] %s2107_s5 }
 0x169   : > { %s2530_s27 = sshll.u32 %s11248_s22, 4  ;;  %s10635_s9 = sshra.s32 %s11889_s16, 4  ;;  %s2531_s27 = int_to_ptr.vmem [resolvable:$true] %s2530_s27  ;;  %s10636_s9 = int_to_ptr.hbm [resolvable:$true] %s10635_s9 }
 0x16a   : > { %s10637_s26 = scalar_lea.hbm %s10636_s9, 2  ;;  %s10641_s23 = scalar_lea.hbm %s13415_s13, 2 }
 0x16b   : > { %p10638_p7 = scmp.ne.s32.totalorder %s10636_s9, %s10637_s26  ;;  %p10642_p10 = scmp.lt.s32.totalorder %s10636_s9, %s13415_s13 }
 0x16c   : > { %p10643_p11 = scmp.lt.s32.totalorder %s10641_s23, %s10637_s26 }
 0x16d   : > { %p10639_p8 = pnand %p10638_p7, %p9918_p6 }
 0x16e   : > { %p10644_p12 = por %p10643_p11, %p10642_p10 }
 0x16f   : > { %p10640_p9 = pneg %p10639_p8 }
 0x171   : > { %p10645_p13 = pnand %p10644_p12, %p10640_p9 }
 0x173   : > { %10648 = shalt.err (!%p10645_p13)
}
 0x174   : > { %s13429_s14 = sld [smem:[#allocation80_spill]]  ;;  %s11249_s2 = smov [#allocation5]  }
 0x175   : > { %9859 = dma.hbm_to_vmem [thread:$0]  (%p9918_p6), %s11889_s16, 32, %s2531_s27, [#allocation39], %s13265_s7, %s13265_s7, %s13267_s11  }
 0x176   : > { %s2109_s22 = sshll.u32 %s11249_s2, 4  ;;  %s10663_s9 = sshra.s32 %s2108_s5, 4  ;;  %s2110_s22 = int_to_ptr.vmem [resolvable:$true] %s2109_s22  ;;  %s10664_s9 = int_to_ptr.hbm [resolvable:$true] %s10663_s9 }
 0x177   : > { %s10665_s26 = scalar_lea.hbm %s10664_s9, 1  ;;  %s10669_s23 = scalar_lea.hbm %s11296_s25, 1 }
 0x178   : > { %p10666_p0 = scmp.ne.s32.totalorder %s10664_s9, %s10665_s26  ;;  %p10670_p7 = scmp.lt.s32.totalorder %s10664_s9, %s11296_s25 }
 0x179   : > { %p10671_p8 = scmp.lt.s32.totalorder %s10669_s23, %s10665_s26 }
 0x17a   : > { %s2182_s3 = sshll.u32 %s13429_s14, 4  ;;  %p10667_p3 = pnand %p10666_p0, %p9918_p6  ;;  %s11915_s3 = int_to_ptr.hbm [resolvable:$true] %s2182_s3 }
 0x17b   : > { %p10672_p9 = por %p10671_p8, %p10670_p7 }
 0x17c   : > { %p10668_p4 = pneg %p10667_p3 }
 0x17e   : > { %p10673_p10 = pnand %p10672_p9, %p10668_p4 }
 0x180   : > { %10676 = shalt.err (!%p10673_p10)
}
 0x181   : > { %s13430_s16 = sld [smem:[#allocation82_spill]]  ;;  %s11250_s2 = smov [#allocation10]  }
 0x182   : > { %9817 = dma.hbm_to_vmem [thread:$0]  (%p9918_p6), %s2108_s5, 16, %s2110_s22, [#allocation6]  }
 0x183   : > { %s2184_s7 = sshll.u32 %s11250_s2, 4  ;;  %s10691_s11 = sshra.s32 %s11915_s3, 4  ;;  %s2185_s7 = int_to_ptr.vmem [resolvable:$true] %s2184_s7  ;;  %s10692_s11 = int_to_ptr.hbm [resolvable:$true] %s10691_s11 }
 0x184   : > { %s10693_s9 = scalar_lea.hbm %s10692_s11, 1  ;;  %s10697_s26 = scalar_lea.hbm %s13429_s14, 1 }
 0x185   : > { %p10694_p11 = scmp.ne.s32.totalorder %s10692_s11, %s10693_s9  ;;  %p10698_p0 = scmp.lt.s32.totalorder %s10692_s11, %s13429_s14 }
 0x186   : > { %p10699_p3 = scmp.lt.s32.totalorder %s10697_s26, %s10693_s9 }
 0x187   : > { %s2205_s27 = sshll.u32 %s13430_s16, 4  ;;  %p10695_p12 = pnand %p10694_p11, %p9918_p6  ;;  %s11924_s27 = int_to_ptr.hbm [resolvable:$true] %s2205_s27 }
 0x188   : > { %p10700_p4 = por %p10699_p3, %p10698_p0 }
 0x189   : > { %p10696_p13 = pneg %p10695_p12 }
 0x18b   : > { %p10701_p7 = pnand %p10700_p4, %p10696_p13 }
 0x18d   : > { %10704 = shalt.err (!%p10701_p7)
}
 0x18e   : > { %s13431_s5 = sld [smem:[#allocation83_spill]]  ;;  %s11251_s22 = smov [#allocation13]  }
 0x18f   : > { %9821 = dma.hbm_to_vmem [thread:$0]  (%p9918_p6), %s11915_s3, 16, %s2185_s7, [#allocation9]  }
 0x190   : > { %s2207_s23 = sshll.u32 %s11251_s22, 4  ;;  %s10719_s11 = sshra.s32 %s11924_s27, 4  ;;  %s2208_s23 = int_to_ptr.vmem [resolvable:$true] %s2207_s23  ;;  %s10720_s11 = int_to_ptr.hbm [resolvable:$true] %s10719_s11 }
 0x191   : > { %s10721_s9 = scalar_lea.hbm %s10720_s11, 2  ;;  %s10725_s26 = scalar_lea.hbm %s13430_s16, 2 }
 0x192   : > { %p10722_p8 = scmp.ne.s32.totalorder %s10720_s11, %s10721_s9  ;;  %p10726_p11 = scmp.lt.s32.totalorder %s10720_s11, %s13430_s16 }
 0x193   : > { %p10727_p12 = scmp.lt.s32.totalorder %s10725_s26, %s10721_s9 }
 0x194   : > { %s2233_s2 = sshll.u32 %s13431_s5, 4  ;;  %p10723_p9 = pnand %p10722_p8, %p9918_p6  ;;  %s11935_s2 = int_to_ptr.hbm [resolvable:$true] %s2233_s2 }
 0x195   : > { %p10728_p13 = por %p10727_p12, %p10726_p11 }
 0x196   : > { %p10724_p10 = pneg %p10723_p9 }
 0x198   : > { %p10729_p0 = pnand %p10728_p13, %p10724_p10 }
 0x19a   : > { %10732 = shalt.err (!%p10729_p0)
}
 0x19b   : > { %s13432_s3 = smov 1   ;;  %s13433_s7 = smov 16  }
 0x19c   : > { %s13434_s22 = sld [smem:[#allocation87_spill]]  ;;  %s11252_s12 = smov [#allocation16]  }
 0x19d   : > { %9825 = dma.hbm_to_vmem [thread:$0]  (%p9918_p6), %s11924_s27, 32, %s2208_s23, [#allocation12], %s13433_s7, %s13433_s7, %s13432_s3  }
 0x19e   : > { %s2235_s13 = sshll.u32 %s11252_s12, 4  ;;  %s10747_s11 = sshra.s32 %s11935_s2, 4  ;;  %s2236_s13 = int_to_ptr.vmem [resolvable:$true] %s2235_s13  ;;  %s10748_s11 = int_to_ptr.hbm [resolvable:$true] %s10747_s11 }
 0x19f   : > { %s10749_s9 = scalar_lea.hbm %s10748_s11, 2  ;;  %s10753_s26 = scalar_lea.hbm %s13431_s5, 2 }
 0x1a0   : > { %p10750_p3 = scmp.ne.s32.totalorder %s10748_s11, %s10749_s9  ;;  %p10754_p8 = scmp.lt.s32.totalorder %s10748_s11, %s13431_s5 }
 0x1a1   : > { %p10755_p9 = scmp.lt.s32.totalorder %s10753_s26, %s10749_s9 }
 0x1a2   : > { %s13435_s4 = smov %s13434_s22  ;;  %s2270_s8 = sshll.u32 %s13434_s22, 4  ;;  %s11949_s8 = int_to_ptr.hbm [resolvable:$true] %s2270_s8 }
 0x1a3   : > { %p10751_p4 = pnand %p10750_p3, %p9918_p6  ;;  %p10756_p10 = por %p10755_p9, %p10754_p8 }
 0x1a5   : > { %p10752_p7 = pneg %p10751_p4 }
 0x1a7   : > { %p10757_p11 = pnand %p10756_p10, %p10752_p7 }
 0x1a9   : > { %10760 = shalt.err (!%p10757_p11)
}
 0x1aa   : > { %s13436_s12 = sld [smem:[#allocation98_spill]]  ;;  %s11253_s27 = smov [#allocation19]  }
 0x1ab   : > { %9829 = dma.hbm_to_vmem [thread:$0]  (%p9918_p6), %s11935_s2, 32, %s2236_s13, [#allocation15], %s13433_s7, %s13433_s7, %s13432_s3  }
 0x1ac   : > { %s2272_s23 = sshll.u32 %s11253_s27, 4  ;;  %s10775_s11 = sshra.s32 %s11949_s8, 4  ;;  %s2273_s23 = int_to_ptr.vmem [resolvable:$true] %s2272_s23  ;;  %s10776_s11 = int_to_ptr.hbm [resolvable:$true] %s10775_s11 }
 0x1ad   : > { %s10777_s9 = scalar_lea.hbm %s10776_s11, 2  ;;  %s10781_s26 = scalar_lea.hbm %s13435_s4, 2 }
 0x1ae   : > { %p10778_p12 = scmp.ne.s32.totalorder %s10776_s11, %s10777_s9  ;;  %p10782_p3 = scmp.lt.s32.totalorder %s10776_s11, %s13435_s4 }
 0x1af   : > { %p10783_p4 = scmp.lt.s32.totalorder %s10781_s26, %s10777_s9 }
 0x1b0   : > { %s2329_s22 = sshll.u32 %s13436_s12, 4  ;;  %p10779_p13 = pnand %p10778_p12, %p9918_p6  ;;  %s11963_s22 = int_to_ptr.hbm [resolvable:$true] %s2329_s22 }
 0x1b1   : > { %p10784_p7 = por %p10783_p4, %p10782_p3 }
 0x1b2   : > { %p10780_p0 = pneg %p10779_p13 }
 0x1b4   : > { %p10785_p8 = pnand %p10784_p7, %p10780_p0 }
 0x1b6   : > { %10788 = shalt.err (!%p10785_p8)
}
 0x1b7   : > { %s13437_s13 = sld [smem:[#allocation115_spill]]  ;;  %s11254_s27 = smov [#allocation22]  }
 0x1b8   : > { %9833 = dma.hbm_to_vmem [thread:$0]  (%p9918_p6), %s11949_s8, 32, %s2273_s23, [#allocation18], %s13433_s7, %s13433_s7, %s13432_s3  }
 0x1b9   : > { %s2331_s5 = sshll.u32 %s11254_s27, 4  ;;  %s10803_s11 = sshra.s32 %s11963_s22, 4  ;;  %s2332_s5 = int_to_ptr.vmem [resolvable:$true] %s2331_s5  ;;  %s10804_s11 = int_to_ptr.hbm [resolvable:$true] %s10803_s11 }
 0x1ba   : > { %s10805_s9 = scalar_lea.hbm %s10804_s11, 1  ;;  %s10809_s26 = scalar_lea.hbm %s13436_s12, 1 }
 0x1bb   : > { %p10806_p9 = scmp.ne.s32.totalorder %s10804_s11, %s10805_s9  ;;  %p10810_p12 = scmp.lt.s32.totalorder %s10804_s11, %s13436_s12 }
 0x1bc   : > { %p10811_p13 = scmp.lt.s32.totalorder %s10809_s26, %s10805_s9 }
 0x1bd   : > { %s2397_s2 = sshll.u32 %s13437_s13, 4  ;;  %p10807_p10 = pnand %p10806_p9, %p9918_p6  ;;  %s11977_s2 = int_to_ptr.hbm [resolvable:$true] %s2397_s2 }
 0x1be   : > { %p10812_p0 = por %p10811_p13, %p10810_p12 }
 0x1bf   : > { %p10808_p11 = pneg %p10807_p10 }
 0x1c1   : > { %p10813_p3 = pnand %p10812_p0, %p10808_p11 }
 0x1c3   : > { %10816 = shalt.err (!%p10813_p3)
}
 0x1c4   : > { %s13438_s8 = sld [smem:[#allocation117_spill]]  ;;  %s11255_s23 = smov [#allocation25]  }
 0x1c5   : > { %9837 = dma.hbm_to_vmem [thread:$0]  (%p9918_p6), %s11963_s22, 16, %s2332_s5, [#allocation21]  }
 0x1c6   : > { %s2399_s27 = sshll.u32 %s11255_s23, 4  ;;  %s10831_s11 = sshra.s32 %s11977_s2, 4  ;;  %s2400_s27 = int_to_ptr.vmem [resolvable:$true] %s2399_s27  ;;  %s10832_s11 = int_to_ptr.hbm [resolvable:$true] %s10831_s11 }
 0x1c7   : > { %s10833_s9 = scalar_lea.hbm %s10832_s11, 2  ;;  %s10837_s26 = scalar_lea.hbm %s13437_s13, 2 }
 0x1c8   : > { %p10834_p4 = scmp.ne.s32.totalorder %s10832_s11, %s10833_s9  ;;  %p10838_p9 = scmp.lt.s32.totalorder %s10832_s11, %s13437_s13 }
 0x1c9   : > { %p10839_p10 = scmp.lt.s32.totalorder %s10837_s26, %s10833_s9 }
 0x1ca   : > { %s2426_s4 = sshll.u32 %s13438_s8, 4  ;;  %p10835_p7 = pnand %p10834_p4, %p9918_p6  ;;  %s11988_s4 = int_to_ptr.hbm [resolvable:$true] %s2426_s4 }
 0x1cb   : > { %p10840_p11 = por %p10839_p10, %p10838_p9 }
 0x1cc   : > { %p10836_p8 = pneg %p10835_p7 }
 0x1ce   : > { %p10841_p12 = pnand %p10840_p11, %p10836_p8 }
 0x1d0   : > { %10844 = shalt.err (!%p10841_p12)
}
 0x1d1   : > { %s13439_s5 = sld [smem:[#allocation118_spill]]  ;;  %s11256_s23 = smov [#allocation28]  }
 0x1d2   : > { %9841 = dma.hbm_to_vmem [thread:$0]  (%p9918_p6), %s11977_s2, 32, %s2400_s27, [#allocation24], %s13433_s7, %s13433_s7, %s13432_s3  }
 0x1d3   : > { %s2428_s12 = sshll.u32 %s11256_s23, 4  ;;  %s10859_s11 = sshra.s32 %s11988_s4, 4  ;;  %s2429_s12 = int_to_ptr.vmem [resolvable:$true] %s2428_s12  ;;  %s10860_s11 = int_to_ptr.hbm [resolvable:$true] %s10859_s11 }
 0x1d4   : > { %s10861_s9 = scalar_lea.hbm %s10860_s11, 1  ;;  %s10865_s26 = scalar_lea.hbm %s13438_s8, 1 }
 0x1d5   : > { %p10862_p13 = scmp.ne.s32.totalorder %s10860_s11, %s10861_s9  ;;  %p10866_p4 = scmp.lt.s32.totalorder %s10860_s11, %s13438_s8 }
 0x1d6   : > { %p10867_p7 = scmp.lt.s32.totalorder %s10865_s26, %s10861_s9 }
 0x1d7   : > { %s2449_s22 = sshll.u32 %s13439_s5, 4  ;;  %p10863_p0 = pnand %p10862_p13, %p9918_p6  ;;  %s12002_s22 = int_to_ptr.hbm [resolvable:$true] %s2449_s22 }
 0x1d8   : > { %p10868_p8 = por %p10867_p7, %p10866_p4 }
 0x1d9   : > { %p10864_p3 = pneg %p10863_p0 }
 0x1db   : > { %p10869_p9 = pnand %p10868_p8, %p10864_p3 }
 0x1dd   : > { %10872 = shalt.err (!%p10869_p9)
}
 0x1de   : > { %s13440_s2 = sld [smem:[#allocation119_spill]]  ;;  %s11257_s27 = smov [#allocation31]  }
 0x1df   : > { %9845 = dma.hbm_to_vmem [thread:$0]  (%p9918_p6), %s11988_s4, 16, %s2429_s12, [#allocation27]  }
 0x1e0   : > { %s2451_s23 = sshll.u32 %s11257_s27, 4  ;;  %s10887_s11 = sshra.s32 %s12002_s22, 4  ;;  %s2452_s23 = int_to_ptr.vmem [resolvable:$true] %s2451_s23  ;;  %s10888_s11 = int_to_ptr.hbm [resolvable:$true] %s10887_s11 }
 0x1e1   : > { %s10889_s9 = scalar_lea.hbm %s10888_s11, 2  ;;  %s10893_s26 = scalar_lea.hbm %s13439_s5, 2 }
 0x1e2   : > { %p10890_p10 = scmp.ne.s32.totalorder %s10888_s11, %s10889_s9  ;;  %p10894_p13 = scmp.lt.s32.totalorder %s10888_s11, %s13439_s5 }
 0x1e3   : > { %p10895_p0 = scmp.lt.s32.totalorder %s10893_s26, %s10889_s9 }
 0x1e4   : > { %s2477_s13 = sshll.u32 %s13440_s2, 4  ;;  %p10891_p11 = pnand %p10890_p10, %p9918_p6  ;;  %s12013_s13 = int_to_ptr.hbm [resolvable:$true] %s2477_s13 }
 0x1e5   : > { %p10896_p3 = por %p10895_p0, %p10894_p13 }
 0x1e6   : > { %p10892_p12 = pneg %p10891_p11 }
 0x1e8   : > { %p10897_p4 = pnand %p10896_p3, %p10892_p12 }
 0x1ea   : > { %10900 = shalt.err (!%p10897_p4)
}
 0x1eb   : > { %s13441_s4 = sld [smem:[#allocation123_spill]]  ;;  %s11258_s27 = smov [#allocation34]  }
 0x1ec   : > { %9849 = dma.hbm_to_vmem [thread:$0]  (%p9918_p6), %s12002_s22, 32, %s2452_s23, [#allocation30], %s13433_s7, %s13433_s7, %s13432_s3  }
 0x1ed   : > { %s2479_s8 = sshll.u32 %s11258_s27, 4  ;;  %s10915_s11 = sshra.s32 %s12013_s13, 4  ;;  %s2480_s8 = int_to_ptr.vmem [resolvable:$true] %s2479_s8  ;;  %s10916_s11 = int_to_ptr.hbm [resolvable:$true] %s10915_s11 }
 0x1ee   : > { %s10917_s9 = scalar_lea.hbm %s10916_s11, 2  ;;  %s10921_s26 = scalar_lea.hbm %s13440_s2, 2 }
 0x1ef   : > { %p10918_p7 = scmp.ne.s32.totalorder %s10916_s11, %s10917_s9  ;;  %p10922_p10 = scmp.lt.s32.totalorder %s10916_s11, %s13440_s2 }
 0x1f0   : > { %p10923_p11 = scmp.lt.s32.totalorder %s10921_s26, %s10917_s9 }
 0x1f1   : > { %s2514_s12 = sshll.u32 %s13441_s4, 4  ;;  %p10919_p8 = pnand %p10918_p7, %p9918_p6  ;;  %s12027_s12 = int_to_ptr.hbm [resolvable:$true] %s2514_s12 }
 0x1f2   : > { %p10924_p12 = por %p10923_p11, %p10922_p10 }
 0x1f3   : > { %p10920_p9 = pneg %p10919_p8 }
 0x1f5   : > { %p10925_p13 = pnand %p10924_p12, %p10920_p9 }
 0x1f7   : > { %10928 = shalt.err (!%p10925_p13)
}
 0x1f8   : > { %s13442_s22 = sld [smem:[#allocation134_spill]]  ;;  %s11259_s27 = smov [#allocation37]  }
 0x1f9   : > { %9853 = dma.hbm_to_vmem [thread:$0]  (%p9918_p6), %s12013_s13, 32, %s2480_s8, [#allocation33], %s13433_s7, %s13433_s7, %s13432_s3  }
 0x1fa   : > { %s2516_s5 = sshll.u32 %s11259_s27, 4  ;;  %s10943_s11 = sshra.s32 %s12027_s12, 4  ;;  %s2517_s5 = int_to_ptr.vmem [resolvable:$true] %s2516_s5  ;;  %s10944_s11 = int_to_ptr.hbm [resolvable:$true] %s10943_s11 }
 0x1fb   : > { %s10945_s9 = scalar_lea.hbm %s10944_s11, 2  ;;  %s10949_s26 = scalar_lea.hbm %s13441_s4, 2 }
 0x1fc   : > { %p10946_p0 = scmp.ne.s32.totalorder %s10944_s11, %s10945_s9  ;;  %p10950_p7 = scmp.lt.s32.totalorder %s10944_s11, %s13441_s4 }
 0x1fd   : > { %p10951_p8 = scmp.lt.s32.totalorder %s10949_s26, %s10945_s9 }
 0x1fe   : > { %s13443_s23 = smov %s13442_s22  ;;  %s2570_s14 = sshll.u32 %s13442_s22, 4  ;;  %s12041_s14 = int_to_ptr.hbm [resolvable:$true] %s2570_s14 }
 0x1ff   : > { %p10947_p3 = pnand %p10946_p0, %p9918_p6  ;;  %p10952_p9 = por %p10951_p8, %p10950_p7 }
 0x201   : > { %p10948_p4 = pneg %p10947_p3 }
 0x203   : > { %p10953_p10 = pnand %p10952_p9, %p10948_p4 }
 0x205   : > { %10956 = shalt.err (!%p10953_p10)
}
 0x206   : > { %9857 = dma.hbm_to_vmem [thread:$0]  (%p9918_p6), %s12027_s12, 32, %s2517_s5, [#allocation36], %s13433_s7, %s13433_s7, %s13432_s3  }
 0x207   : > { %s2585_s13 = sshll.u32 %s11701_s6, 4  ;;  %s11260_s8 = smov [#allocation40]   ;;  %s12055_s13 = int_to_ptr.hbm [resolvable:$true] %s2585_s13 }
 0x208   : > { %s2572_s22 = sshll.u32 %s11260_s8, 4  ;;  %s10971_s27 = sshra.s32 %s12041_s14, 4  ;;  %s2573_s22 = int_to_ptr.vmem [resolvable:$true] %s2572_s22  ;;  %s10972_s27 = int_to_ptr.hbm [resolvable:$true] %s10971_s27 }
 0x209   : > { %s10973_s11 = scalar_lea.hbm %s10972_s27, 1  ;;  %s10977_s9 = scalar_lea.hbm %s13443_s23, 1 }
 0x20a   : > { %p10974_p11 = scmp.ne.s32.totalorder %s10972_s27, %s10973_s11  ;;  %p10978_p0 = scmp.lt.s32.totalorder %s10972_s27, %s13443_s23 }
 0x20b   : > { %p10979_p3 = scmp.lt.s32.totalorder %s10977_s9, %s10973_s11 }
 0x20c   : > { %p10975_p12 = pnand %p10974_p11, %p9918_p6 }
 0x20d   : > { %p10980_p4 = por %p10979_p3, %p10978_p0 }
 0x20e   : > { %p10976_p13 = pneg %p10975_p12 }
 0x210   : > { %p10981_p7 = pnand %p10980_p4, %p10976_p13 }
 0x212   : > { %10984 = shalt.err (!%p10981_p7)
}
 0x213   : > { %9861 = dma.hbm_to_vmem [thread:$0]  (%p9918_p6), %s12041_s14, 16, %s2573_s22, [#allocation39]  }
 0x214   : > { %s11261_s3 = smov [#allocation41]   ;;  %s10999_s5 = sshra.s32 %s12055_s13, 4  ;;  %s11000_s5 = int_to_ptr.hbm [resolvable:$true] %s10999_s5 }
 0x215   : > { %s2587_s7 = sshll.u32 %s11261_s3, 4  ;;  %s11001_s12 = scalar_lea.hbm %s11000_s5, 1  ;;  %s2588_s7 = int_to_ptr.vmem [resolvable:$true] %s2587_s7 }
 0x216   : > { %p11002_p8 = scmp.ne.s32.totalorder %s11000_s5, %s11001_s12  ;;  %s11005_s26 = scalar_lea.hbm %s11701_s6, 1 }
 0x217   : > { %p11006_p11 = scmp.lt.s32.totalorder %s11000_s5, %s11701_s6  ;;  %p11007_p12 = scmp.lt.s32.totalorder %s11005_s26, %s11001_s12 }
 0x218   : > { %p11003_p9 = pnand %p11002_p8, %p9918_p6 }
 0x219   : > { %p11008_p13 = por %p11007_p12, %p11006_p11 }
 0x21a   : > { %p11004_p10 = pneg %p11003_p9 }
 0x21c   : > { %p11009_p0 = pnand %p11008_p13, %p11004_p10 }
 0x21e   : > { %11012 = shalt.err (!%p11009_p0)
}
 0x21f   : > { %9863 = dma.hbm_to_vmem [thread:$0]  (%p9918_p6), %s12055_s13, 16, %s2588_s7, [#allocation42]  }
 0x220 PF: > { %2617 = sbr.rel (%p11772_p5) target bundleno = 5817 (0x16b9), region = 364  ;;  %p9942_p3 = scmp.eq.s32.totalorder (!%p11772_p5), %s11745_s28, 0 }
 0x225   : > { %11074 = dma.done.wait (%p9942_p3), [#allocation6], 16  }
 0x226   : > { %11076 = vsyncadd (%p9942_p3), [#allocation6], 4294967280 }
 0x227   : > { %11078 = dma.done.wait (%p9942_p3), [#allocation9], 32  }
 0x228   : > { %11080 = vsyncadd (%p9942_p3), [#allocation9], 4294967264 }
 0x229   : > { %11082 = dma.done.wait (%p9942_p3), [#allocation12], 48  }
 0x22a   : > { %11084 = vsyncadd (%p9942_p3), [#allocation12], 4294967248 }
 0x22b   : > { %11086 = dma.done.wait (%p9942_p3), [#allocation15], 64  }
 0x22c   : > { %11088 = vsyncadd (%p9942_p3), [#allocation15], 4294967232 }
 0x22d   : > { %11090 = dma.done.wait (%p9942_p3), [#allocation18], 64  }
 0x22e   : > { %11092 = vsyncadd (%p9942_p3), [#allocation18], 4294967232 }
 0x22f   : > { %11094 = dma.done.wait (%p9942_p3), [#allocation21], 48  }
 0x230   : > { %11096 = vsyncadd (%p9942_p3), [#allocation21], 4294967248 }
 0x231   : > { %11098 = dma.done.wait (%p9942_p3), [#allocation24], 48  }
 0x232   : > { %11100 = vsyncadd (%p9942_p3), [#allocation24], 4294967248 }
 0x233   : > { %11102 = dma.done.wait (%p9942_p3), [#allocation27], 48  }
 0x234   : > { %11104 = vsyncadd (%p9942_p3), [#allocation27], 4294967248 }
 0x235   : > { %11106 = dma.done.wait (%p9942_p3), [#allocation30], 48  }
 0x236   : > { %11108 = vsyncadd (%p9942_p3), [#allocation30], 4294967248 }
 0x237   : > { %11110 = dma.done.wait (%p9942_p3), [#allocation33], 64  }
 0x238   : > { %11112 = vsyncadd (%p9942_p3), [#allocation33], 4294967232 }
 0x239   : > { %11114 = dma.done.wait (%p9942_p3), [#allocation36], 64  }
 0x23a   : > { %11116 = vsyncadd (%p9942_p3), [#allocation36], 4294967232 }
 0x23b   : > { %11118 = dma.done.wait (%p9942_p3), [#allocation39], 48  }
 0x23c   : > { %11120 = vsyncadd (%p9942_p3), [#allocation39], 4294967248 }
 0x23d   : > { %11122 = dma.done.wait (%p9942_p3), [#allocation42], 16  }
 0x23e   : > { %11124 = vsyncadd (%p9942_p3), [#allocation42], 4294967280  ;;  %s13444_s0 = sld [smem:[#allocation59_spill]]  ;;  %p2932_p5 = scmp.lt.s32.totalorder %s11745_s28, 1  ;;  %vm3451_vm0 = vcmask 130048   ;;  %vm3486_vm1 = vcmask 1043456   ;;  %v3426_v44 = vlaneseq }
 0x23f   : > { %s13445_s1 = sld [smem:[#allocation136_spill]]  ;;  %vm3482_vm2 = vcmask 195584   ;;  %v10117_v26 = vld [vmem:[#allocation41] ss:$0 sm:$0xff]  ;;  %vm3528_vm3 = vcmask 261120   ;;  %v11262_v49 = vmov 0.0  }
 0x240   : > { %s13446_s14 = sld [smem:[#allocation135_spill]]  ;;  %v10118_v41 = vld [vmem:[#allocation40] ss:$0 sm:$0xff]  ;;  %v12205_v45 = vshrl.u32 %v3426_v44, 7  ;;  %vm3872_vm5 = vcmask 64512   ;;  %vm4011_vm6 = vcmask 1042432  }
 0x241   : > { %s13447_s13 = sld [smem:[#allocation60_spill]]  ;;  %vm3955_vm9 = vcmask 48128   ;;  %vm13297_vm11 = vcmask 62464   ;;  %vm4895_vm12 = vcmask 1045504   ;;  %vm13326_vm13 = vcmask 259072  }
 0x242   : > { %s13448_s8 = sld [smem:[#allocation64_spill]] }
 0x243   : > { %s2933_s22 = scalar_select %p2932_p5, %s11745_s28, 1 }
 0x244   : > { %s13449_s3 = sld [smem:[#allocation68_spill]] }
 0x245   : > { %s12130_s27 = sshll.u32 %s2933_s22, 3  ;;  %v9815_v0 = vld [vmem:[%s13445_s1] sm:$0xff]  ;;  %s13450_s7 = sld [smem:[#allocation67_spill]] }
 0x246   : > { %s2935_s11 = scalar_lea.vmem %s13444_s0, %s12130_s27  ;;  %v3420_v2 = vld [vmem:[%s13446_s14 + $0x8] sm:$0xf]  ;;  %3462 = vmatpush.bf16.msra.mxu0 %v9815_v0  ;;  %v9814_v9 = vld [vmem:[%s13446_s14] sm:$0xff]  ;;  %s13451_s5 = sld [smem:[#allocation61_spill]] }
 0x247   : > { %v3440_v1 = vld [vmem:[%s2935_s11] sm:$0x3f]  ;;  %v3478_v4 = vunpack.c.l.b16 %v3420_v2  ;;  %s2939_s9 = scalar_lea.vmem %s13447_s13, %s12130_s27  ;;  %s12202_s12 = sld [smem:[#allocation3 + %s11745_s28]] }
 0x248   : > { %v3441_v3 = vpack.c.bf16 %v3440_v1, %v3440_v1  ;;  %v9631_v5 = vld [vmem:[%s13448_s8 + $0x8] sm:$0xff]  ;;  %v9633_v6 = vld [vmem:[%s13448_s8 + $0x18] sm:$0xff]  ;;  %v3468_v10 = vld [vmem:[%s2939_s9] sm:$0xff]  ;;  %s13452_s26 = sld [smem:[#allocation63_spill]] }
 0x249   : > { %v9635_v7 = vld [vmem:[%s13448_s8 + $0x28] sm:$0xff]  ;;  %v3480_v8 = vpack.c.b16 %v3478_v4, %v3478_v4  ;;  %3538 = vmatpush.bf16.msra.mxu2 %v9631_v5  ;;  %3563 = vmatpush.bf16.msra.mxu3 %v9633_v6  ;;  %v9637_v12 = vld [vmem:[%s13448_s8 + $0x38] sm:$0xff]  ;;  %v3469_v13 = vpack.c.bf16 %v3468_v10, %v3468_v10  ;;  %v9630_v14 = vld [vmem:[%s13448_s8] sm:$0xff]  ;;  %s12229_s13 = sld [smem:[#allocation4 + %s11745_s28]] }
 0x24a   : > { %3588 = vmatpush.bf16.msrb.mxu0 %v9635_v7  ;;  %v9632_v15 = vld [vmem:[%s13448_s8 + $0x10] sm:$0xff]  ;;  %v9634_v16 = vld [vmem:[%s13448_s8 + $0x20] sm:$0xff]  ;;  %v9649_v18 = vld [vmem:[%s13449_s3 + $0x8] sm:$0xff]  ;;  %s13454_s22 = sld [smem:[#allocation62_spill]] }
 0x24b   : > { %8716 = vmatmul.msk.bf16.vlgmr.msra.gmra.mxu0 %vm3451_vm0, %v3441_v3  ;;  %v3488_v11 = vsel %vm3486_vm1, %v3480_v8, 0  ;;  %v9636_v17 = vld [vmem:[%s13448_s8 + $0x30] sm:$0xff]  ;;  %v9651_v19 = vld [vmem:[%s13449_s3 + $0x18] sm:$0xff]  ;;  %v9653_v20 = vld [vmem:[%s13449_s3 + $0x28] sm:$0xff]  ;;  %s13458_s9 = sld [smem:[#allocation66_spill]] }
 0x24c   : > { %3496 = vmatpush.bf16.msra.mxu1 %v3488_v11  ;;  %v9655_v21 = vld [vmem:[%s13449_s3 + $0x38] sm:$0xff]  ;;  %v9648_v22 = vld [vmem:[%s13449_s3] sm:$0xff]  ;;  %v9650_v23 = vld [vmem:[%s13449_s3 + $0x10] sm:$0xff] }
 0x24d   : > { %3539 = vmatpush.bf16.msra.mxu2 %v9630_v14  ;;  %3564 = vmatpush.bf16.msra.mxu3 %v9632_v15  ;;  %v9652_v24 = vld [vmem:[%s13449_s3 + $0x20] sm:$0xff]  ;;  %v9654_v25 = vld [vmem:[%s13449_s3 + $0x30] sm:$0xff]  ;;  %v9641_v30 = vld [vmem:[%s13450_s7 + $0x8] sm:$0xff]  ;;  %v3428_v46 = vstv %s12202_s12 }
 0x24e   : > { %3589 = vmatpush.bf16.msrb.mxu0 %v9634_v16  ;;  %v9643_v31 = vld [vmem:[%s13450_s7 + $0x18] sm:$0xff]  ;;  %v9645_v32 = vld [vmem:[%s13450_s7 + $0x28] sm:$0xff]  ;;  %v9640_v34 = vld [vmem:[%s13450_s7] sm:$0xff]  ;;  %vm3429_vm4 = vcmp.lt.s32.totalorder %v12205_v45, %v3428_v46  ;;  %s13453_s0 = smov %s13452_s26 }
 0x24f   : > { %v9647_v33 = vld [vmem:[%s13450_s7 + $0x38] sm:$0xff]  ;;  %v9642_v35 = vld [vmem:[%s13450_s7 + $0x10] sm:$0xff]  ;;  %v9644_v38 = vld [vmem:[%s13450_s7 + $0x20] sm:$0xff]  ;;  %v12214_v50 = vsel %vm3429_vm4, 1.0, %v11262_v49 }
 0x250   : > { %3497 = vmatpush.bf16.msra.mxu1 %v9814_v9  ;;  %v9646_v39 = vld [vmem:[%s13450_s7 + $0x30] sm:$0xff]  ;;  %v10119_v47 = vld [vmem:[%s13451_s5 + $0x2] ss:$0 sm:$0xff]  ;;  %v10120_v48 = vld [vmem:[%s13451_s5 + $0x3] ss:$0 sm:$0xff]  ;;  %s13455_s11 = smov %s13454_s22 }
 0x251   : > { %3654 = vmatpush.bf16.msrb.mxu2 %v9649_v18  ;;  %3679 = vmatpush.bf16.msrb.mxu3 %v9651_v19  ;;  %v10121_v55 = vld [vmem:[%s13451_s5] ss:$0 sm:$0xff]  ;;  %v10122_v56 = vld [vmem:[%s13451_s5 + $0x1] ss:$0 sm:$0xff]  ;;  %v10124_v14 = vld [vmem:[%s13453_s0 + $0x3] ss:$0 sm:$0xff]  ;;  %s13459_s12 = smov %s13458_s9 }
 0x252   : > { %3704 = vmatpush.bf16.msra.mxu0 %v9653_v20  ;;  %v10125_v19 = vld [vmem:[%s13453_s0] ss:$0 sm:$0xff]  ;;  %v10126_v20 = vld [vmem:[%s13453_s0 + $0x1] ss:$0 sm:$0xff] }
 0x253   : > { %8721 = vmatmul.msk.bf16.vlgmr.msra.gmra.mxu1 %vm3482_vm2, %v3469_v13  ;;  %v10123_v13 = vld [vmem:[%s13452_s26 + $0x2] ss:$0 sm:$0xff]  ;;  %s13460_s26 = sld [smem:[#allocation65_spill]] }
 0x254   : > { %3613 = vmatpush.bf16.msrb.mxu1 %v9637_v12 }
 0x255   : > { %3655 = vmatpush.bf16.msrb.mxu2 %v9648_v22  ;;  %3680 = vmatpush.bf16.msrb.mxu3 %v9650_v23 }
 0x256   : > { %3705 = vmatpush.bf16.msra.mxu0 %v9652_v24 }
 0x258   : > { %3614 = vmatpush.bf16.msrb.mxu1 %v9636_v17 }
 0x259   : > { %s13461_s0 = smov %s13460_s26 }
 0x25c   : > { %3729 = vmatpush.bf16.msra.mxu1 %v9655_v21 }
 0x260   : > { %3730 = vmatpush.bf16.msra.mxu1 %v9654_v25 }
 0x2c8   : > { %v3464_v27 = vpop.f32.mrf.mxu0 }
 0x2c9   : > { %v12157_v28 = vadd.f32 %v10117_v26, %v3464_v27 }
 0x2cb   : > { %v12161_v29 = vpack.c.bf16 %v12157_v28, %v12157_v28 }
 0x2cd   : > { %8730 = vmatmul.msk.bf16.vlgmr.msra.gmra.mxu2 %vm3528_vm3, %v12161_v29  ;;  %8739 = vmatmul.msk.bf16.vlgmr.msra.gmra.mxu3 %vm3528_vm3, %v12161_v29 }
 0x2ce   : > { %8748 = vmatmul.msk.bf16.vlgmr.msrb.gmra.mxu0 %vm3528_vm3, %v12161_v29  ;;  %8757 = vmatmul.msk.bf16.vlgmr.msrb.gmra.mxu1 %vm3528_vm3, %v12161_v29 }
 0x2cf   : > { %3774 = vmatpush.bf16.msra.mxu2 %v9641_v30  ;;  %3799 = vmatpush.bf16.msra.mxu3 %v9643_v31 }
 0x2d0   : > { %v3466_v36 = vpop.f32.mrf.mxu0  ;;  %v3499_v37 = vpop.f32.mrf.mxu1  ;;  %3824 = vmatpush.bf16.msrb.mxu0 %v9645_v32  ;;  %3849 = vmatpush.bf16.msrb.mxu1 %v9647_v33 }
 0x2d1   : > { %v12187_v42 = vadd.f32 %v10118_v41, %v3499_v37  ;;  %v3432_v37 = vstv %s12229_s13  ;;  %s13476_s13 = sld [smem:[#allocation75_spill]] }
 0x2d2   : > { %vm3433_vm7 = vcmp.lt.s32.totalorder %v12205_v45, %v3432_v37 }
 0x2d3   : > { %3775 = vmatpush.bf16.msra.mxu2 %v9640_v34  ;;  %3800 = vmatpush.bf16.msra.mxu3 %v9642_v35  ;;  %v12191_v43 = vpack.c.bf16 %v12187_v42, %v12187_v42 }
 0x2d4   : > { %3825 = vmatpush.bf16.msrb.mxu0 %v9644_v38  ;;  %3850 = vmatpush.bf16.msrb.mxu1 %v9646_v39 }
 0x2d8   : > { %v3501_v40 = vpop.f32.mrf.mxu1 }
 0x2dd   : > { %8766 = vmatmul.msk.bf16.vlgmr.msrb.gmra.mxu2 %vm3528_vm3, %v12161_v29  ;;  %8775 = vmatmul.msk.bf16.vlgmr.msrb.gmra.mxu3 %vm3528_vm3, %v12161_v29 }
 0x2de   : > { %8784 = vmatmul.msk.bf16.vlgmr.msra.gmra.mxu0 %vm3528_vm3, %v12161_v29  ;;  %8793 = vmatmul.msk.bf16.vlgmr.msra.gmra.mxu1 %vm3528_vm3, %v12161_v29 }
 0x2ed   : > { %8802 = vmatmul.msk.bf16.vlgmr.msra.gmra.mxu2 %vm3528_vm3, %v12191_v43  ;;  %8811 = vmatmul.msk.bf16.vlgmr.msra.gmra.mxu3 %vm3528_vm3, %v12191_v43 }
 0x2ee   : > { %8820 = vmatmul.msk.bf16.vlgmr.msrb.gmra.mxu0 %vm3528_vm3, %v12191_v43  ;;  %8829 = vmatmul.msk.bf16.vlgmr.msrb.gmra.mxu1 %vm3528_vm3, %v12191_v43 }
 0x34b   : > { %v3591_v51 = vpop.f32.mrf.mxu0  ;;  %v3616_v52 = vpop.f32.mrf.mxu1 }
 0x34c   : > { %v3592_v53 = vadd.f32 %v10119_v47, %v3591_v51  ;;  %v3617_v54 = vadd.f32 %v10120_v48, %v3616_v52  ;;  %v10127_v51 = vld [vmem:[%s13454_s22 + $0x2] ss:$0 sm:$0xff]  ;;  %v10128_v52 = vld [vmem:[%s13455_s11 + $0x3] ss:$0 sm:$0xff]  ;;  %s13462_s22 = sld [smem:[#allocation73_spill]] }
 0x34e   : > { %v3622_v57 = vmul.f32 %v12214_v50, %v3592_v53  ;;  %v3623_v58 = vmul.f32 %v12214_v50, %v3617_v54  ;;  %v12248_v53 = vsel %vm3433_vm7, 1.0, %v11262_v49 }
 0x350   : > { %v3870_v59 = vpack.c.bf16 %v3622_v57, %v3622_v57  ;;  %v3871_v60 = vpack.c.bf16 %v3623_v58, %v3623_v58  ;;  %v3541_v61 = vpop.f32.mrf.mxu2  ;;  %v3566_v62 = vpop.f32.mrf.mxu3  ;;  %v10129_v58 = vld [vmem:[%s13455_s11] ss:$0 sm:$0xff] }
 0x351   : > { %v3542_v63 = vadd.f32 %v10121_v55, %v3541_v61  ;;  %v3567_v0 = vadd.f32 %v10122_v56, %v3566_v62 }
 0x352   : > { %v3915_v1 = vsel %vm3872_vm5, %v3870_v59, 0  ;;  %v3934_v2 = vsel %vm3872_vm5, %v3871_v60, 0  ;;  %v10130_v59 = vld [vmem:[%s13455_s11 + $0x1] ss:$0 sm:$0xff]  ;;  %s13463_s1 = smov %s13462_s22 }
 0x353   : > { %v3620_v3 = vmul.f32 %v12214_v50, %v3542_v63  ;;  %v3621_v4 = vmul.f32 %v12214_v50, %v3567_v0  ;;  %v3593_v5 = vpop.f32.mrf.mxu0  ;;  %v3618_v6 = vpop.f32.mrf.mxu1  ;;  %3924 = vmatpush.bf16.xpose.msra.mxu0 %v3915_v1  ;;  %3943 = vmatpush.bf16.xpose.msra.mxu1 %v3934_v2 }
 0x355   : > { %v3868_v7 = vpack.c.bf16 %v3620_v3, %v3620_v3  ;;  %v3869_v8 = vpack.c.bf16 %v3621_v4, %v3621_v4 }
 0x357   : > { %v3877_v9 = vsel %vm3872_vm5, %v3868_v7, 0  ;;  %v3896_v10 = vsel %vm3872_vm5, %v3869_v8, 0 }
 0x358   : > { %v3543_v11 = vpop.f32.mrf.mxu2  ;;  %v3568_v12 = vpop.f32.mrf.mxu3  ;;  %3886 = vmatpush.bf16.xpose.msrb.mxu2 %v3877_v9  ;;  %3905 = vmatpush.bf16.xpose.msrb.mxu3 %v3896_v10 }
 0x35b   : > { %v3707_v15 = vpop.f32.mrf.mxu0  ;;  %v3732_v16 = vpop.f32.mrf.mxu1 }
 0x35c   : > { %v3708_v17 = vadd.f32 %v10123_v13, %v3707_v15  ;;  %v3733_v18 = vadd.f32 %v10124_v14, %v3732_v16  ;;  %v12261_v14 = vand.u32 127, %v3426_v44 }
 0x35e   : > { %v3738_v21 = vmul.f32 %v12214_v50, %v3708_v17  ;;  %v3739_v22 = vmul.f32 %v12214_v50, %v3733_v18  ;;  %vm12266_vm8 = vcmp.lt.s32.totalorder %v12261_v14, %v3428_v46  ;;  %vm12407_vm10 = vcmp.lt.s32.totalorder %v12261_v14, %v3432_v37 }
 0x360   : > { %v4006_v23 = vpack.c.bf16 %v3738_v21, %v3738_v21  ;;  %v4007_v24 = vpack.c.bf16 %v3739_v22, %v3739_v22  ;;  %v3657_v25 = vpop.f32.mrf.mxu2  ;;  %v3682_v26 = vpop.f32.mrf.mxu3 }
 0x361   : > { %v3658_v27 = vadd.f32 %v10125_v19, %v3657_v25  ;;  %v3683_v30 = vadd.f32 %v10126_v20, %v3682_v26 }
 0x362   : > { %v4051_v31 = vsel %vm4011_vm6, %v4006_v23, 0  ;;  %v4070_v32 = vsel %vm4011_vm6, %v4007_v24, 0 }
 0x363   : > { %v3736_v33 = vmul.f32 %v12214_v50, %v3658_v27  ;;  %v3737_v34 = vmul.f32 %v12214_v50, %v3683_v30  ;;  %v3709_v35 = vpop.f32.mrf.mxu0  ;;  %v3734_v36 = vpop.f32.mrf.mxu1  ;;  %4060 = vmatpush.bf16.msrb.mxu0 %v4051_v31  ;;  %4079 = vmatpush.bf16.msrb.mxu1 %v4070_v32 }
 0x365   : > { %v4004_v38 = vpack.c.bf16 %v3736_v33, %v3736_v33  ;;  %v4005_v39 = vpack.c.bf16 %v3737_v34, %v3737_v34 }
 0x367   : > { %v4013_v40 = vsel %vm4011_vm6, %v4004_v38, 0  ;;  %v4032_v41 = vsel %vm4011_vm6, %v4005_v39, 0 }
 0x368   : > { %v3659_v47 = vpop.f32.mrf.mxu2  ;;  %v3684_v48 = vpop.f32.mrf.mxu3  ;;  %4022 = vmatpush.bf16.msra.mxu2 %v4013_v40  ;;  %4041 = vmatpush.bf16.msra.mxu3 %v4032_v41 }
 0x36b   : > { %v3827_v54 = vpop.f32.mrf.mxu0  ;;  %v3852_v55 = vpop.f32.mrf.mxu1 }
 0x36c   : > { %v3828_v56 = vadd.f32 %v10127_v51, %v3827_v54  ;;  %v3853_v57 = vadd.f32 %v10128_v52, %v3852_v55 }
 0x36e   : > { %v3858_v60 = vmul.f32 %v12248_v53, %v3828_v56  ;;  %v3859_v61 = vmul.f32 %v12248_v53, %v3853_v57 }
 0x370   : > { %v3862_v45 = vmul.f32 0.35355338, %v3858_v60  ;;  %v3863_v62 = vmul.f32 0.35355338, %v3859_v61  ;;  %v3777_v63 = vpop.f32.mrf.mxu2  ;;  %v3802_v0 = vpop.f32.mrf.mxu3 }
 0x371   : > { %v3778_v1 = vadd.f32 %v10129_v58, %v3777_v63  ;;  %v3803_v2 = vadd.f32 %v10130_v59, %v3802_v0 }
 0x372   : > { %v3866_v3 = vpack.c.bf16 %v3862_v45, %v3862_v45  ;;  %v3867_v4 = vpack.c.bf16 %v3863_v62, %v3863_v62 }
 0x373   : > { %v3856_v49 = vmul.f32 %v12248_v53, %v3778_v1  ;;  %v3857_v5 = vmul.f32 %v12248_v53, %v3803_v2  ;;  %v3829_v6 = vpop.f32.mrf.mxu0  ;;  %v3854_v7 = vpop.f32.mrf.mxu1 }
 0x374   : > { %8832 = vmatmul.msk.bf16.vlgmr.msra.gmra.mxu0 %vm3872_vm5, %v3866_v3  ;;  %8833 = vmatmul.msk.bf16.vlgmr.msra.gmra.mxu1 %vm3872_vm5, %v3867_v4 }
 0x375   : > { %v3860_v8 = vmul.f32 0.35355338, %v3856_v49  ;;  %v3861_v9 = vmul.f32 0.35355338, %v3857_v5 }
 0x377   : > { %v3864_v10 = vpack.c.bf16 %v3860_v8, %v3860_v8  ;;  %v3865_v11 = vpack.c.bf16 %v3861_v9, %v3861_v9 }
 0x378   : > { %v3779_v12 = vpop.f32.mrf.mxu2  ;;  %v3804_v13 = vpop.f32.mrf.mxu3 }
 0x379   : > { %8830 = vmatmul.msk.bf16.vlgmr.msrb.gmra.mxu2 %vm3872_vm5, %v3864_v10  ;;  %8831 = vmatmul.msk.bf16.vlgmr.msrb.gmra.mxu3 %vm3872_vm5, %v3865_v11  ;;  %v2980_v11 = vld [vmem:[%s13458_s9 + $0x8] sm:$0xf]  ;;  %v2981_v13 = vld [vmem:[%s13459_s12 + $0xc] sm:$0xf]  ;;  %s13464_s9 = sld [smem:[#allocation77_spill]] }
 0x37a   : > { %v4131_v12 = vsel %vm3486_vm1, %v2980_v11, 0 }
 0x37b   : > { %4140 = vmatpush.bf16.msra.mxu0 %v4131_v12 }
 0x3f1   : > { %v3926_v16 = vpop.f32.mrf.mxu0  ;;  %v3945_v17 = vpop.f32.mrf.mxu1 }
 0x3f2   : > { %v3953_v18 = vsel %vm12266_vm8, %v3926_v16, -1e+30  ;;  %v3954_v20 = vsel %vm12266_vm8, %v3945_v17, -1e+30  ;;  %v4150_v16 = vsel %vm3486_vm1, %v2981_v13, 0 }
 0x3f3   : > { %v3962_v19 = vsel %vm3955_vm9, %v3953_v18, -inf  ;;  %v3965_v22 = vsel %vm3955_vm9, %v3954_v20, -inf  ;;  %4159 = vmatpush.bf16.msra.mxu1 %v4150_v16  ;;  %v2978_v17 = vld [vmem:[%s13459_s12] sm:$0xf] }
 0x3f4   : > { %3963 = vmax.xlane.f32.xlu1 %v3962_v19  ;;  %v2979_v19 = vld [vmem:[%s13459_s12 + $0x4] sm:$0xf] }
 0x3f9   : > { %v3928_v44 = vpop.f32.mrf.mxu0  ;;  %v3947_v21 = vpop.f32.mrf.mxu1 }
 0x3fa   : > { %v9639_v44 = vld [vmem:[%s13460_s26 + $0x8] sm:$0xff]  ;;  %s13466_s26 = sld [smem:[#allocation76_spill]] }
 0x3fc   : > { %3966 = vmax.xlane.f32.xlu1 %v3965_v22  ;;  %v3888_v46 = vpop.f32.mrf.mxu2  ;;  %v3907_v23 = vpop.f32.mrf.mxu3  ;;  %v9638_v22 = vld [vmem:[%s13461_s0] sm:$0xff]  ;;  %s13465_s0 = smov %s13464_s9 }
 0x3fd   : > { %v3951_v24 = vsel %vm12266_vm8, %v3888_v46, -1e+30  ;;  %v3952_v26 = vsel %vm12266_vm8, %v3907_v23, -1e+30 }
 0x3fe   : > { %v3956_v25 = vsel %vm3955_vm9, %v3951_v24, -inf  ;;  %v3959_v31 = vsel %vm3955_vm9, %v3952_v26, -inf }
 0x3ff   : > { %3957 = vmax.xlane.f32.xlu0 %v3956_v25 }
 0x400   : > { %v9667_v16 = vld [vmem:[%s13466_s26 + $0x8] sm:$0xff] }
 0x404   : > { %v3890_v27 = vpop.f32.mrf.mxu2  ;;  %v3909_v30 = vpop.f32.mrf.mxu3 }
 0x407   : > { %3960 = vmax.xlane.f32.xlu0 %v3959_v31 }
 0x467   : > { %v3964_v32 = vpop.xlane.xlu1 %3963 }
 0x468   : > { %v3970_v33 = vsub.f32 %v3953_v18, %v3964_v32  ;;  %v4093_v18 = vsel %vm3486_vm1, %v2978_v17, 0 }
 0x469   : > { %4102 = vmatpush.bf16.msrb.mxu2 %v4093_v18 }
 0x46a   : > { %v3976_v34 = vmul.f32 1.442695, %v3970_v33 }
 0x46c   : > { %10199 = vpow2.f32 %v3976_v34 }
 0x46f   : > { %v3967_v35 = vpop.xlane.xlu1 %3966 }
 0x470   : > { %v3971_v36 = vsub.f32 %v3954_v20, %v3967_v35  ;;  %v4112_v20 = vsel %vm3486_vm1, %v2979_v19, 0 }
 0x471   : > { %4121 = vmatpush.bf16.msrb.mxu3 %v4112_v20 }
 0x472   : > { %v10200_v38 = vpop.eup %10199  ;;  %v3978_v39 = vmul.f32 1.442695, %v3971_v36  ;;  %v3958_v40 = vpop.xlane.xlu0 %3957 }
 0x473   : > { %v3968_v41 = vsub.f32 %v3951_v24, %v3958_v40  ;;  %v3986_v47 = vsel %vm3955_vm9, %v10200_v38, 0.0  ;;  %v9659_v40 = vld [vmem:[%s13463_s1 + $0x18] sm:$0xff] }
 0x474   : > { %10201 = vpow2.f32 %v3978_v39  ;;  %3987 = vadd.xlane.f32.xlu0 %v3986_v47  ;;  %v9657_v39 = vld [vmem:[%s13462_s22 + $0x8] sm:$0xff]  ;;  %v9663_v47 = vld [vmem:[%s13463_s1 + $0x38] sm:$0xff]  ;;  %s13468_s22 = sld [smem:[#allocation69_spill]] }
 0x475   : > { %v3972_v48 = vmul.f32 1.442695, %v3968_v41  ;;  %v9661_v41 = vld [vmem:[%s13463_s1 + $0x28] sm:$0xff] }
 0x477   : > { %10203 = vpow2.f32 %v3972_v48  ;;  %v9656_v48 = vld [vmem:[%s13463_s1] sm:$0xff] }
 0x47a   : > { %v10202_v51 = vpop.eup %10201  ;;  %v3961_v52 = vpop.xlane.xlu0 %3960 }
 0x47b   : > { %v3969_v54 = vsub.f32 %v3952_v26, %v3961_v52  ;;  %v3989_v55 = vsel %vm3955_vm9, %v10202_v51, 0.0  ;;  %v9660_v52 = vld [vmem:[%s13463_s1 + $0x20] sm:$0xff] }
 0x47c   : > { %3990 = vadd.xlane.f32.xlu1 %v3989_v55 }
 0x47d   : > { %v10204_v56 = vpop.eup %10203  ;;  %v3974_v57 = vmul.f32 1.442695, %v3969_v54 }
 0x47e   : > { %v3980_v58 = vsel %vm3955_vm9, %v10204_v56, 0.0 }
 0x47f   : > { %10205 = vpow2.f32 %v3974_v57  ;;  %3981 = vadd.xlane.f32.xlu2 %v3980_v58  ;;  %v9677_v57 = vld [vmem:[%s13465_s0 + $0x18] sm:$0xff]  ;;  %v9679_v58 = vld [vmem:[%s13465_s0 + $0x28] sm:$0xff] }
 0x485   : > { %v10206_v59 = vpop.eup %10205 }
 0x486   : > { %v3983_v60 = vsel %vm3955_vm9, %v10206_v59, 0.0 }
 0x487   : > { %3984 = vadd.xlane.f32.xlu2 %v3983_v60  ;;  %v9674_v60 = vld [vmem:[%s13465_s0] sm:$0xff] }
 0x4e7   : > { %v3988_v61 = vpop.xlane.xlu0 %3987 }
 0x4e8   : > { %10207 = vrcp.f32 %v3988_v61  ;;  %v9676_v61 = vld [vmem:[%s13465_s0 + $0x10] sm:$0xff] }
 0x4ee   : > { %v10208_v45 = vpop.eup %10207 }
 0x4ef   : > { %v3998_v62 = vmul.f32 %v10208_v45, %v10200_v38  ;;  %v3991_v63 = vpop.xlane.xlu1 %3990  ;;  %v9678_v45 = vld [vmem:[%s13465_s0 + $0x20] sm:$0xff] }
 0x4f0   : > { %10209 = vrcp.f32 %v3991_v63 }
 0x4f1   : > { %v4002_v0 = vpack.c.bf16 %v3998_v62, %v3998_v62  ;;  %v9680_v62 = vld [vmem:[%s13465_s0 + $0x30] sm:$0xff] }
 0x4f2   : > { %v3982_v1 = vpop.xlane.xlu2 %3981 }
 0x4f3   : > { %10211 = vrcp.f32 %v3982_v1  ;;  %8836 = vmatmul.msk.bf16.vlgmr.msrb.gmra.mxu0 %vm3955_vm9, %v4002_v0 }
 0x4f4   : > { %4261 = vmatpush.bf16.msrb.mxu0 %v9659_v40 }
 0x4f6   : > { %v10210_v2 = vpop.eup %10209 }
 0x4f7   : > { %v3999_v3 = vmul.f32 %v10210_v2, %v10202_v51  ;;  %v9658_v51 = vld [vmem:[%s13463_s1 + $0x10] sm:$0xff] }
 0x4f8   : > { %4262 = vmatpush.bf16.msrb.mxu0 %v9658_v51 }
 0x4f9   : > { %v10212_v4 = vpop.eup %10211  ;;  %v4003_v49 = vpack.c.bf16 %v3999_v3, %v3999_v3 }
 0x4fa   : > { %v3996_v5 = vmul.f32 %v10212_v4, %v10204_v56  ;;  %v3985_v6 = vpop.xlane.xlu2 %3984  ;;  %v9675_v56 = vld [vmem:[%s13464_s9 + $0x8] sm:$0xff]  ;;  %s13470_s9 = sld [smem:[#allocation72_spill]] }
 0x4fb   : > { %8837 = vmatmul.msk.bf16.vlgmr.msrb.gmra.mxu1 %vm3955_vm9, %v4003_v49  ;;  %10213 = vrcp.f32 %v3985_v6 }
 0x4fc   : > { %v4000_v7 = vpack.c.bf16 %v3996_v5, %v3996_v5  ;;  %4286 = vmatpush.bf16.msrb.mxu1 %v9661_v41 }
 0x4fe   : > { %8834 = vmatmul.msk.bf16.vlgmr.msra.gmra.mxu2 %vm3955_vm9, %v4000_v7  ;;  %v10131_v7 = vld [vmem:[#allocation5] ss:$0 sm:$0xff] }
 0x4ff   : > { %4190 = vmatpush.bf16.msra.mxu2 %v9639_v44 }
 0x500   : > { %4287 = vmatpush.bf16.msrb.mxu1 %v9660_v52 }
 0x501   : > { %v10214_v8 = vpop.eup %10213 }
 0x502   : > { %v3997_v9 = vmul.f32 %v10214_v8, %v10206_v59  ;;  %v9681_v59 = vld [vmem:[%s13465_s0 + $0x38] sm:$0xff]  ;;  %s13469_s0 = smov %s13468_s22 }
 0x503   : > { %4191 = vmatpush.bf16.msra.mxu2 %v9638_v22 }
 0x504   : > { %v4001_v10 = vpack.c.bf16 %v3997_v9, %v3997_v9 }
 0x506   : > { %8835 = vmatmul.msk.bf16.vlgmr.msra.gmra.mxu3 %vm3955_vm9, %v4001_v10 }
 0x507   : > { %4236 = vmatpush.bf16.msra.mxu3 %v9657_v39 }
 0x50b   : > { %4237 = vmatpush.bf16.msra.mxu3 %v9656_v48 }
 0x570   : > { %v4062_v21 = vpop.f32.mrf.mxu0 }
 0x571   : > { %v4087_v46 = vpack.c.bf16 %v4062_v21, %v4062_v21 }
 0x573   : > { %8840 = vmatmul.msk.bf16.vlgmr.msra.gmra.mxu0 %vm3872_vm5, %v4087_v46 }
 0x574   : > { %4377 = vmatpush.bf16.msra.mxu0 %v9677_v57 }
 0x578   : > { %v4064_v23 = vpop.f32.mrf.mxu0  ;;  %v4081_v24 = vpop.f32.mrf.mxu1  ;;  %4378 = vmatpush.bf16.msra.mxu0 %v9676_v61 }
 0x579   : > { %v4088_v25 = vpack.c.bf16 %v4081_v24, %v4081_v24  ;;  %v10132_v23 = vld [vmem:[%s13468_s22 + $0x1] ss:$0 sm:$0xff]  ;;  %v10133_v24 = vld [vmem:[%s13469_s0 + $0x2] ss:$0 sm:$0xff]  ;;  %s13477_s22 = sld [smem:[#allocation74_spill]] }
 0x57b   : > { %8841 = vmatmul.msk.bf16.vlgmr.msra.gmra.mxu1 %vm3872_vm5, %v4088_v25 }
 0x57c   : > { %4402 = vmatpush.bf16.msra.mxu1 %v9679_v58  ;;  %v10136_v58 = vld [vmem:[%s13470_s9 + $0x1] ss:$0 sm:$0xff] }
 0x580   : > { %v4083_v26 = vpop.f32.mrf.mxu1  ;;  %4403 = vmatpush.bf16.msra.mxu1 %v9678_v45 }
 0x581   : > { %v4024_v27 = vpop.f32.mrf.mxu2 }
 0x582   : > { %v4085_v30 = vpack.c.bf16 %v4024_v27, %v4024_v27 }
 0x584   : > { %8838 = vmatmul.msk.bf16.vlgmr.msrb.gmra.mxu2 %vm3872_vm5, %v4085_v30 }
 0x585   : > { %4311 = vmatpush.bf16.msrb.mxu2 %v9663_v47 }
 0x589   : > { %v4026_v31 = vpop.f32.mrf.mxu2  ;;  %v4043_v32 = vpop.f32.mrf.mxu3 }
 0x58a   : > { %v4086_v33 = vpack.c.bf16 %v4043_v32, %v4043_v32  ;;  %v10134_v32 = vld [vmem:[%s13469_s0] ss:$0 sm:$0xff] }
 0x58c   : > { %8839 = vmatmul.msk.bf16.vlgmr.msrb.gmra.mxu3 %vm3872_vm5, %v4086_v33 }
 0x58d   : > { %4352 = vmatpush.bf16.msrb.mxu3 %v9675_v56 }
 0x591   : > { %v4045_v34 = vpop.f32.mrf.mxu3  ;;  %4353 = vmatpush.bf16.msrb.mxu3 %v9674_v60 }
 0x592   : > { %v10135_v34 = vld [vmem:[%s13469_s0 + $0x3] ss:$0 sm:$0xff] }
 0x594   : > { %8850 = vmatmul.msk.bf16.vlgmr.msra.gmra.mxu2 %vm3528_vm3, %v12191_v43  ;;  %v9662_v43 = vld [vmem:[%s13463_s1 + $0x30] sm:$0xff]  ;;  %s13467_s1 = smov %s13466_s26  ;;  %s13472_s26 = sld [smem:[#allocation71_spill]] }
 0x595   : > { %4312 = vmatpush.bf16.msrb.mxu2 %v9662_v43  ;;  %v9669_v17 = vld [vmem:[%s13467_s1 + $0x18] sm:$0xff]  ;;  %v9671_v19 = vld [vmem:[%s13467_s1 + $0x28] sm:$0xff]  ;;  %v9666_v44 = vld [vmem:[%s13467_s1] sm:$0xff] }
 0x596   : > { %v9673_v20 = vld [vmem:[%s13467_s1 + $0x38] sm:$0xff]  ;;  %v9668_v21 = vld [vmem:[%s13467_s1 + $0x10] sm:$0xff]  ;;  %v9670_v22 = vld [vmem:[%s13467_s1 + $0x20] sm:$0xff] }
 0x597   : > { %v9672_v46 = vld [vmem:[%s13467_s1 + $0x30] sm:$0xff]  ;;  %s13471_s1 = smov %s13470_s9  ;;  %s13479_s9 = sld [smem:[#allocation92_spill]] }
 0x598   : > { %v10137_v61 = vld [vmem:[%s13471_s1 + $0x2] ss:$0 sm:$0xff] }
 0x599   : > { %4427 = vmatpush.bf16.msra.mxu2 %v9681_v59 }
 0x59a   : > { %s13473_s0 = smov %s13472_s26 }
 0x59d   : > { %4428 = vmatpush.bf16.msra.mxu2 %v9680_v62 }
 0x5f0   : > { %v4142_v35 = vpop.f32.mrf.mxu0 }
 0x5f1   : > { %v4168_v4 = vsel %vm3528_vm3, %v4142_v35, 0.0 }
 0x5f8   : > { %v4144_v36 = vpop.f32.mrf.mxu0  ;;  %v4161_v38 = vpop.f32.mrf.mxu1 }
 0x5f9   : > { %v4170_v5 = vsel %vm3528_vm3, %v4161_v38, 0.0 }
 0x600   : > { %v4163_v54 = vpop.f32.mrf.mxu1 }
 0x607   : > { %v4104_v55 = vpop.f32.mrf.mxu2 }
 0x608   : > { %v4165_v1 = vsel %vm3528_vm3, %v4104_v55, 0.0 }
 0x60f   : > { %v4106_v63 = vpop.f32.mrf.mxu2  ;;  %v4123_v0 = vpop.f32.mrf.mxu3 }
 0x610   : > { %v4166_v2 = vsel %vm3528_vm3, %v4123_v0, 0.0 }
 0x611   : > { %v4167_v3 = vadd.f32 %v4166_v2, %v4165_v1 }
 0x613   : > { %v4169_v49 = vadd.f32 %v4168_v4, %v4167_v3  ;;  %v10138_v3 = vld [vmem:[%s13471_s1] ss:$0 sm:$0xff] }
 0x615   : > { %v4171_v6 = vadd.f32 %v4170_v5, %v4169_v49  ;;  %v10139_v49 = vld [vmem:[%s13471_s1 + $0x3] ss:$0 sm:$0xff]  ;;  %s13480_s1 = smov %s13479_s9 }
 0x617   : > { %v4125_v8 = vpop.f32.mrf.mxu3  ;;  %v4193_v9 = vpop.f32.mrf.mxu2 }
 0x618   : > { %v4194_v10 = vadd.f32 %v4193_v9, %v4171_v6 }
 0x61a   : > { %v12326_v11 = vadd.f32 %v10131_v7, %v4194_v10 }
 0x61c   : > { %v12330_v12 = vadd.f32 %v12326_v11, %v12187_v42 }
 0x61e   : > { %v12334_v13 = vpack.c.bf16 %v12330_v12, %v12330_v12 }
 0x61f   : > { %v4195_v18 = vpop.f32.mrf.mxu2 }
 0x620   : > { %8859 = vmatmul.msk.bf16.vlgmr.msra.gmra.mxu3 %vm3528_vm3, %v12334_v13  ;;  %8868 = vmatmul.msk.bf16.vlgmr.msrb.gmra.mxu0 %vm3528_vm3, %v12334_v13 }
 0x621   : > { %8877 = vmatmul.msk.bf16.vlgmr.msrb.gmra.mxu1 %vm3528_vm3, %v12334_v13  ;;  %8886 = vmatmul.msk.bf16.vlgmr.msrb.gmra.mxu2 %vm3528_vm3, %v12334_v13 }
 0x622   : > { %4468 = vmatpush.bf16.msra.mxu3 %v9667_v16  ;;  %4493 = vmatpush.bf16.msrb.mxu0 %v9669_v17 }
 0x623   : > { %4518 = vmatpush.bf16.msrb.mxu1 %v9671_v19  ;;  %4543 = vmatpush.bf16.msrb.mxu2 %v9673_v20 }
 0x626   : > { %4469 = vmatpush.bf16.msra.mxu3 %v9666_v44  ;;  %4494 = vmatpush.bf16.msrb.mxu0 %v9668_v21 }
 0x627   : > { %4519 = vmatpush.bf16.msrb.mxu1 %v9670_v22  ;;  %4544 = vmatpush.bf16.msrb.mxu2 %v9672_v46 }
 0x630   : > { %8895 = vmatmul.msk.bf16.vlgmr.msrb.gmra.mxu3 %vm3528_vm3, %v12334_v13  ;;  %8904 = vmatmul.msk.bf16.vlgmr.msra.gmra.mxu0 %vm3528_vm3, %v12334_v13 }
 0x631   : > { %8913 = vmatmul.msk.bf16.vlgmr.msra.gmra.mxu1 %vm3528_vm3, %v12334_v13  ;;  %8922 = vmatmul.msk.bf16.vlgmr.msra.gmra.mxu2 %vm3528_vm3, %v12334_v13 }
 0x640   : > { %8931 = vmatmul.msk.bf16.vlgmr.msra.gmra.mxu3 %vm3528_vm3, %v12161_v29  ;;  %8940 = vmatmul.msk.bf16.vlgmr.msrb.gmra.mxu0 %vm3528_vm3, %v12161_v29 }
 0x641   : > { %8949 = vmatmul.msk.bf16.vlgmr.msrb.gmra.mxu1 %vm3528_vm3, %v12161_v29  ;;  %8958 = vmatmul.msk.bf16.vlgmr.msrb.gmra.mxu2 %vm3528_vm3, %v12161_v29 }
 0x69d   : > { %v4264_v25 = vpop.f32.mrf.mxu0 }
 0x69e   : > { %v4265_v26 = vadd.f32 %v10132_v23, %v4264_v25  ;;  %v4289_v27 = vpop.f32.mrf.mxu1  ;;  %v10140_v23 = vld [vmem:[%s13472_s26 + $0x1] ss:$0 sm:$0xff]  ;;  %s13481_s26 = sld [smem:[#allocation89_spill]] }
 0x69f   : > { %v4290_v30 = vadd.f32 %v10133_v24, %v4289_v27 }
 0x6a0   : > { %v4319_v31 = vmul.f32 %v12248_v53, %v4265_v26  ;;  %v10141_v26 = vld [vmem:[%s13473_s0 + $0x2] ss:$0 sm:$0xff] }
 0x6a1   : > { %v4320_v33 = vmul.f32 %v12248_v53, %v4290_v30 }
 0x6a2   : > { %v4563_v35 = vpack.c.bf16 %v4319_v31, %v4319_v31 }
 0x6a3   : > { %v4564_v36 = vpack.c.bf16 %v4320_v33, %v4320_v33  ;;  %v4239_v38 = vpop.f32.mrf.mxu3 }
 0x6a4   : > { %v4240_v39 = vadd.f32 %v10134_v32, %v4239_v38  ;;  %v4314_v40 = vpop.f32.mrf.mxu2  ;;  %v4589_v41 = vsel %vm3872_vm5, %v4563_v35, 0  ;;  %v10142_v35 = vld [vmem:[%s13473_s0] ss:$0 sm:$0xff]  ;;  %v10143_v38 = vld [vmem:[%s13473_s0 + $0x3] ss:$0 sm:$0xff]  ;;  %s13478_s0 = smov %s13477_s22 }
 0x6a5   : > { %v4315_v47 = vadd.f32 %v10135_v34, %v4314_v40  ;;  %v4266_v48 = vpop.f32.mrf.mxu0  ;;  %4598 = vmatpush.bf16.xpose.msra.mxu0 %v4589_v41  ;;  %v4608_v51 = vsel %vm3872_vm5, %v4564_v36, 0 }
 0x6a6   : > { %v4318_v52 = vmul.f32 %v12248_v53, %v4240_v39  ;;  %v4291_v43 = vpop.f32.mrf.mxu1  ;;  %4617 = vmatpush.bf16.xpose.msra.mxu1 %v4608_v51 }
 0x6a7   : > { %v4321_v54 = vmul.f32 %v12248_v53, %v4315_v47 }
 0x6a8   : > { %v4562_v55 = vpack.c.bf16 %v4318_v52, %v4318_v52 }
 0x6a9   : > { %v4565_v56 = vpack.c.bf16 %v4321_v54, %v4321_v54 }
 0x6aa   : > { %v4570_v57 = vsel %vm3872_vm5, %v4562_v55, 0 }
 0x6ab   : > { %v4241_v59 = vpop.f32.mrf.mxu3  ;;  %4579 = vmatpush.bf16.xpose.msrb.mxu3 %v4570_v57  ;;  %v4627_v60 = vsel %vm3872_vm5, %v4565_v56, 0 }
 0x6ac   : > { %v4316_v45 = vpop.f32.mrf.mxu2  ;;  %4636 = vmatpush.bf16.xpose.msra.mxu2 %v4627_v60 }
 0x6ad   : > { %v4380_v62 = vpop.f32.mrf.mxu0 }
 0x6ae   : > { %v4381_v63 = vadd.f32 %v10136_v58, %v4380_v62  ;;  %v4405_v0 = vpop.f32.mrf.mxu1 }
 0x6af   : > { %v4406_v1 = vadd.f32 %v10137_v61, %v4405_v0 }
 0x6b0   : > { %v4435_v2 = vmul.f32 %v12248_v53, %v4381_v63 }
 0x6b1   : > { %v4436_v4 = vmul.f32 %v12248_v53, %v4406_v1 }
 0x6b2   : > { %v4698_v5 = vpack.c.bf16 %v4435_v2, %v4435_v2 }
 0x6b3   : > { %v4699_v6 = vpack.c.bf16 %v4436_v4, %v4436_v4  ;;  %v4355_v7 = vpop.f32.mrf.mxu3 }
 0x6b4   : > { %v4356_v8 = vadd.f32 %v10138_v3, %v4355_v7  ;;  %v4430_v9 = vpop.f32.mrf.mxu2  ;;  %v4724_v10 = vsel %vm3486_vm1, %v4698_v5, 0 }
 0x6b5   : > { %v4431_v16 = vadd.f32 %v10139_v49, %v4430_v9  ;;  %v4382_v17 = vpop.f32.mrf.mxu0  ;;  %4733 = vmatpush.bf16.msrb.mxu0 %v4724_v10  ;;  %v4743_v18 = vsel %vm3486_vm1, %v4699_v6, 0 }
 0x6b6   : > { %v4434_v19 = vmul.f32 %v12248_v53, %v4356_v8  ;;  %v4407_v20 = vpop.f32.mrf.mxu1  ;;  %4752 = vmatpush.bf16.msrb.mxu1 %v4743_v18 }
 0x6b7   : > { %v4437_v44 = vmul.f32 %v12248_v53, %v4431_v16 }
 0x6b8   : > { %v4697_v21 = vpack.c.bf16 %v4434_v19, %v4434_v19 }
 0x6b9   : > { %v4700_v22 = vpack.c.bf16 %v4437_v44, %v4437_v44 }
 0x6ba   : > { %v4705_v46 = vsel %vm3486_vm1, %v4697_v21, 0 }
 0x6bb   : > { %v4357_v24 = vpop.f32.mrf.mxu3  ;;  %4714 = vmatpush.bf16.msra.mxu3 %v4705_v46  ;;  %v4762_v25 = vsel %vm3486_vm1, %v4700_v22, 0 }
 0x6bc   : > { %v4432_v27 = vpop.f32.mrf.mxu2  ;;  %4771 = vmatpush.bf16.msrb.mxu2 %v4762_v25 }
 0x6bd   : > { %v4496_v30 = vpop.f32.mrf.mxu0 }
 0x6be   : > { %v4497_v31 = vadd.f32 %v10140_v23, %v4496_v30  ;;  %v4521_v32 = vpop.f32.mrf.mxu1 }
 0x6bf   : > { %v4522_v33 = vadd.f32 %v10141_v26, %v4521_v32 }
 0x6c0   : > { %v4551_v34 = vmul.f32 %v12214_v50, %v4497_v31 }
 0x6c1   : > { %v4552_v36 = vmul.f32 %v12214_v50, %v4522_v33 }
 0x6c2   : > { %v4555_v39 = vmul.f32 0.35355338, %v4551_v34 }
 0x6c3   : > { %v4556_v40 = vmul.f32 0.35355338, %v4552_v36  ;;  %v4471_v41 = vpop.f32.mrf.mxu3 }
 0x6c4   : > { %v4559_v47 = vpack.c.bf16 %v4555_v39, %v4555_v39  ;;  %v4472_v48 = vadd.f32 %v10142_v35, %v4471_v41  ;;  %v4546_v51 = vpop.f32.mrf.mxu2 }
 0x6c5   : > { %v4560_v52 = vpack.c.bf16 %v4556_v40, %v4556_v40  ;;  %v4547_v43 = vadd.f32 %v10143_v38, %v4546_v51  ;;  %v4498_v54 = vpop.f32.mrf.mxu0 }
 0x6c6   : > { %v4550_v55 = vmul.f32 %v12214_v50, %v4472_v48  ;;  %v4523_v56 = vpop.f32.mrf.mxu1  ;;  %8960 = vmatmul.msk.bf16.vlgmr.msra.gmra.mxu0 %vm3872_vm5, %v4559_v47 }
 0x6c7   : > { %v4553_v57 = vmul.f32 %v12214_v50, %v4547_v43  ;;  %8961 = vmatmul.msk.bf16.vlgmr.msra.gmra.mxu1 %vm3872_vm5, %v4560_v52 }
 0x6c8   : > { %v4554_v58 = vmul.f32 0.35355338, %v4550_v55 }
 0x6c9   : > { %v4557_v59 = vmul.f32 0.35355338, %v4553_v57 }
 0x6ca   : > { %v4558_v60 = vpack.c.bf16 %v4554_v58, %v4554_v58 }
 0x6cb   : > { %v4561_v61 = vpack.c.bf16 %v4557_v59, %v4557_v59  ;;  %v4473_v45 = vpop.f32.mrf.mxu3 }
 0x6cc   : > { %v4548_v62 = vpop.f32.mrf.mxu2  ;;  %8959 = vmatmul.msk.bf16.vlgmr.msrb.gmra.mxu3 %vm3872_vm5, %v4558_v60  ;;  %v3048_v45 = vld [vmem:[%s13476_s13 + $0x4] sm:$0xf] }
 0x6cd   : > { %8962 = vmatmul.msk.bf16.vlgmr.msra.gmra.mxu2 %vm3872_vm5, %v4561_v61  ;;  %v4804_v62 = vsel %vm3486_vm1, %v3048_v45, 0 }
 0x6ce   : > { %4813 = vmatpush.bf16.msra.mxu0 %v4804_v62 }
 0x743   : > { %v4600_v0 = vpop.f32.mrf.mxu0 }
 0x744   : > { %v4645_v1 = vsel %vm12407_vm10, %v4600_v0, -1e+30  ;;  %v4619_v2 = vpop.f32.mrf.mxu1  ;;  %v3047_v0 = vld [vmem:[%s13476_s13] sm:$0xf] }
 0x745   : > { %v4652_v3 = vsel %vm13297_vm11, %v4645_v1, -inf  ;;  %v4646_v9 = vsel %vm12407_vm10, %v4619_v2, -1e+30  ;;  %v3050_v2 = vld [vmem:[%s13476_s13 + $0xc] sm:$0xf] }
 0x746   : > { %4653 = vmax.xlane.f32.xlu1 %v4652_v3  ;;  %v4655_v17 = vsel %vm13297_vm11, %v4646_v9, -inf  ;;  %v4842_v3 = vsel %vm3486_vm1, %v3050_v2, 0 }
 0x747   : > { %4851 = vmatpush.bf16.msra.mxu2 %v4842_v3 }
 0x74b   : > { %v4602_v4 = vpop.f32.mrf.mxu0 }
 0x74c   : > { %v4621_v49 = vpop.f32.mrf.mxu1  ;;  %v3049_v4 = vld [vmem:[%s13476_s13 + $0x8] sm:$0xf] }
 0x74d   : > { %v4823_v49 = vsel %vm3486_vm1, %v3049_v4, 0 }
 0x74e   : > { %4832 = vmatpush.bf16.msra.mxu1 %v4823_v49 }
 0x74f   : > { %v4581_v5 = vpop.f32.mrf.mxu3 }
 0x750   : > { %v4644_v6 = vsel %vm12407_vm10, %v4581_v5, -1e+30  ;;  %v4638_v7 = vpop.f32.mrf.mxu2  ;;  %v4904_v5 = vrot.slane %v12248_v53, 4 }
 0x751   : > { %v4647_v37 = vsel %vm12407_vm10, %v4638_v7, -1e+30  ;;  %v4649_v14 = vsel %vm13297_vm11, %v4644_v6, -inf  ;;  %v9711_v7 = vld [vmem:[%s13479_s9 + $0x8] sm:$0xff]  ;;  %s13485_s9 = sld [smem:[#allocation91_spill]] }
 0x752   : > { %v4658_v8 = vsel %vm13297_vm11, %v4647_v37, -inf  ;;  %4650 = vmax.xlane.f32.xlu2 %v4649_v14  ;;  %v9710_v14 = vld [vmem:[%s13480_s1] sm:$0xff] }
 0x753   : > { %4659 = vmax.xlane.f32.xlu0 %v4658_v8  ;;  %v4905_v8 = vadd.f32 %v12248_v53, %v4904_v5 }
 0x757   : > { %v4583_v10 = vpop.f32.mrf.mxu3  ;;  %s13486_s2 = smov %s13485_s9 }
 0x758   : > { %v4640_v16 = vpop.f32.mrf.mxu2  ;;  %v4921_v10 = vmul.f32 %v12248_v53, %v12330_v12 }
 0x75a   : > { %4656 = vmax.xlane.f32.xlu2 %v4655_v17  ;;  %v4906_v17 = vrot.slane %v4905_v8, 2 }
 0x7b9   : > { %v4654_v18 = vpop.xlane.xlu1 %4653 }
 0x7ba   : > { %v4662_v19 = vsub.f32 %v4645_v1, %v4654_v18  ;;  %v4785_v1 = vsel %vm3486_vm1, %v3047_v0, 0  ;;  %v4922_v18 = vsel %vm3528_vm3, %v4921_v10, 0.0  ;;  %v9707_v0 = vld [vmem:[%s13485_s9 + $0x8] sm:$0xff]  ;;  %s13491_s9 = sld [smem:[#allocation90_spill]] }
 0x7bb   : > { %4794 = vmatpush.bf16.msrb.mxu3 %v4785_v1  ;;  %v9709_v1 = vld [vmem:[%s13486_s2 + $0x18] sm:$0xff] }
 0x7bc   : > { %v4667_v20 = vmul.f32 1.442695, %v4662_v19  ;;  %v4907_v19 = vadd.f32 %v4906_v17, %v4905_v8 }
 0x7be   : > { %10215 = vpow2.f32 %v4667_v20  ;;  %v4923_v20 = vrot.slane %v4922_v18, 4 }
 0x7c4   : > { %v10216_v44 = vpop.eup %10215 }
 0x7c5   : > { %v4651_v21 = vpop.xlane.xlu2 %4650  ;;  %v4676_v22 = vsel %vm13297_vm11, %v10216_v44, 0.0 }
 0x7c6   : > { %v4660_v46 = vpop.xlane.xlu0 %4659  ;;  %v4661_v23 = vsub.f32 %v4644_v6, %v4651_v21  ;;  %4677 = vadd.xlane.f32.xlu2 %v4676_v22  ;;  %v9665_v6 = vld [vmem:[%s13477_s22 + $0x8] sm:$0xff]  ;;  %v4908_v21 = vrot.slane %v4907_v19, 1  ;;  %v4924_v22 = vadd.f32 %v4923_v20, %v4922_v18  ;;  %s13483_s22 = sld [smem:[#allocation84_spill]] }
 0x7c7   : > { %v4664_v24 = vsub.f32 %v4647_v37, %v4660_v46  ;;  %v9664_v37 = vld [vmem:[%s13478_s0] sm:$0xff]  ;;  %s13482_s0 = smov %s13481_s26 }
 0x7c8   : > { %v4665_v25 = vmul.f32 1.442695, %v4661_v23  ;;  %v4909_v46 = vadd.f32 %v4908_v21, %v4907_v19  ;;  %v4925_v23 = vrot.slane %v4924_v22, 2 }
 0x7c9   : > { %v4671_v26 = vmul.f32 1.442695, %v4664_v24 }
 0x7ca   : > { %10217 = vpow2.f32 %v4665_v25  ;;  %v9713_v25 = vld [vmem:[%s13480_s1 + $0x18] sm:$0xff] }
 0x7cb   : > { %10219 = vpow2.f32 %v4671_v26 }
 0x7cd   : > { %v4657_v27 = vpop.xlane.xlu2 %4656 }
 0x7ce   : > { %v4663_v30 = vsub.f32 %v4646_v9, %v4657_v27 }
 0x7d0   : > { %v10218_v31 = vpop.eup %10217  ;;  %v4669_v32 = vmul.f32 1.442695, %v4663_v30  ;;  %v4910_v30 = vmax.f32 %v4909_v46, 1.0 }
 0x7d1   : > { %v10220_v33 = vpop.eup %10219  ;;  %v4673_v34 = vsel %vm13297_vm11, %v10218_v31, 0.0 }
 0x7d2   : > { %10221 = vpow2.f32 %v4669_v32  ;;  %v4682_v35 = vsel %vm13297_vm11, %v10220_v33, 0.0  ;;  %4674 = vadd.xlane.f32.xlu0 %v4673_v34 }
 0x7d3   : > { %4683 = vadd.xlane.f32.xlu1 %v4682_v35  ;;  %v9712_v35 = vld [vmem:[%s13480_s1 + $0x10] sm:$0xff]  ;;  %s13484_s1 = smov %s13483_s22 }
 0x7d4   : > { %v9685_v45 = vld [vmem:[%s13484_s1 + $0x18] sm:$0xff]  ;;  %v9682_v4 = vld [vmem:[%s13484_s1] sm:$0xff]  ;;  %v9684_v49 = vld [vmem:[%s13484_s1 + $0x10] sm:$0xff] }
 0x7d8   : > { %v10222_v36 = vpop.eup %10221 }
 0x7d9   : > { %v4679_v38 = vsel %vm13297_vm11, %v10222_v36, 0.0 }
 0x7da   : > { %4680 = vadd.xlane.f32.xlu0 %v4679_v38 }
 0x839   : > { %v4678_v39 = vpop.xlane.xlu2 %4677 }
 0x83a   : > { %10223 = vrcp.f32 %v4678_v39 }
 0x840   : > { %v10224_v40 = vpop.eup %10223 }
 0x841   : > { %v4690_v41 = vmul.f32 %v10224_v40, %v10216_v44 }
 0x843   : > { %v4694_v47 = vpack.c.bf16 %v4690_v41, %v4690_v41 }
 0x845   : > { %v4675_v48 = vpop.xlane.xlu0 %4674  ;;  %8964 = vmatmul.msk.bf16.vlgmr.msrb.gmra.mxu0 %vm3872_vm5, %v4694_v47 }
 0x846   : > { %v4684_v51 = vpop.xlane.xlu1 %4683  ;;  %10225 = vrcp.f32 %v4675_v48  ;;  %4953 = vmatpush.bf16.msrb.mxu0 %v9707_v0 }
 0x847   : > { %10227 = vrcp.f32 %v4684_v51 }
 0x84c   : > { %v10226_v52 = vpop.eup %10225 }
 0x84d   : > { %v10228_v43 = vpop.eup %10227  ;;  %v4689_v54 = vmul.f32 %v10226_v52, %v10218_v31  ;;  %v4681_v55 = vpop.xlane.xlu0 %4680  ;;  %v4926_v31 = vadd.f32 %v4925_v23, %v4924_v22 }
 0x84e   : > { %v4692_v56 = vmul.f32 %v10228_v43, %v10220_v33  ;;  %10229 = vrcp.f32 %v4681_v55  ;;  %v9701_v55 = vld [vmem:[%s13482_s0 + $0x18] sm:$0xff] }
 0x84f   : > { %v4693_v57 = vpack.c.bf16 %v4689_v54, %v4689_v54  ;;  %10231 = vrcp.f32 %v4910_v30  ;;  %v9699_v54 = vld [vmem:[%s13481_s26 + $0x8] sm:$0xff]  ;;  %s13487_s26 = sld [smem:[#allocation88_spill]] }
 0x850   : > { %v4696_v58 = vpack.c.bf16 %v4692_v56, %v4692_v56  ;;  %v9698_v56 = vld [vmem:[%s13482_s0] sm:$0xff] }
 0x851   : > { %8963 = vmatmul.msk.bf16.vlgmr.msra.gmra.mxu3 %vm3872_vm5, %v4693_v57  ;;  %v9700_v57 = vld [vmem:[%s13482_s0 + $0x10] sm:$0xff] }
 0x852   : > { %8966 = vmatmul.msk.bf16.vlgmr.msrb.gmra.mxu2 %vm3872_vm5, %v4696_v58  ;;  %4883 = vmatpush.bf16.msra.mxu3 %v9665_v6  ;;  %v4896_v58 = vsel %vm4895_vm12, %v12214_v50, 0.0 }
 0x853   : > { %5047 = vmatpush.bf16.msrb.mxu2 %v9711_v7  ;;  %v4897_v62 = vrot.slane %v4896_v58, 4  ;;  %v9706_v7 = vld [vmem:[%s13486_s2] sm:$0xff] }
 0x854   : > { %v10230_v59 = vpop.eup %10229  ;;  %4954 = vmatpush.bf16.msrb.mxu0 %v9706_v7 }
 0x855   : > { %v4691_v60 = vmul.f32 %v10230_v59, %v10222_v36  ;;  %v4927_v36 = vrot.slane %v4926_v31, 1  ;;  %v12454_v47 = vpop.eup %10231  ;;  %v4898_v5 = vadd.f32 %v4897_v62, %v4896_v58  ;;  %s13488_s0 = smov %s13487_s26 }
 0x856   : > { %4884 = vmatpush.bf16.msra.mxu3 %v9664_v37  ;;  %v9708_v37 = vld [vmem:[%s13486_s2 + $0x10] sm:$0xff] }
 0x857   : > { %v4695_v61 = vpack.c.bf16 %v4691_v60, %v4691_v60  ;;  %5048 = vmatpush.bf16.msrb.mxu2 %v9710_v14  ;;  %v4928_v40 = vadd.f32 %v4927_v36, %v4926_v31  ;;  %v4899_v10 = vrot.slane %v4898_v5, 2 }
 0x859   : > { %8965 = vmatmul.msk.bf16.vlgmr.msrb.gmra.mxu1 %vm3872_vm5, %v4695_v61  ;;  %v4930_v48 = vmul.f32 %v12454_v47, %v4928_v40  ;;  %v9683_v61 = vld [vmem:[%s13483_s22 + $0x8] sm:$0xff]  ;;  %s13489_s22 = sld [smem:[#allocation86_spill]]  ;;  %v4900_v18 = vadd.f32 %v4899_v10, %v4898_v5 }
 0x85a   : > { %4978 = vmatpush.bf16.msrb.mxu1 %v9709_v1 }
 0x85b   : > { %v5025_v51 = vpack.c.bf16 %v4930_v48, %v4930_v48  ;;  %v4901_v23 = vrot.slane %v4900_v18, 1 }
 0x85d   : > { %v4902_v30 = vadd.f32 %v4901_v23, %v4900_v18 }
 0x85e   : > { %4979 = vmatpush.bf16.msrb.mxu1 %v9708_v37 }
 0x85f   : > { %s13490_s3 = smov %s13489_s22  ;;  %v9691_v31 = vld [vmem:[%s13489_s22 + $0x8] sm:$0xff]  ;;  %s13495_s22 = sld [smem:[#allocation79_spill]] }
 0x865   : > { %s13496_s2 = smov %s13495_s22  ;;  %v3085_v5 = vld [vmem:[%s13495_s22] sm:$0x1]  ;;  %s13505_s22 = sld [smem:[#allocation96_spill]] }
 0x8c2   : > { %v4735_v9 = vpop.f32.mrf.mxu0 }
 0x8c3   : > { %v4778_v16 = vpack.c.bf16 %v4735_v9, %v4735_v9 }
 0x8c5   : > { %8968 = vmatmul.msk.bf16.vlgmr.msra.gmra.mxu0 %vm3872_vm5, %v4778_v16 }
 0x8ca   : > { %v4737_v44 = vpop.f32.mrf.mxu0 }
 0x8cb   : > { %v10144_v44 = vld [vmem:[#allocation8] ss:$0 sm:$0xff] }
 0x8d4   : > { %v4716_v24 = vpop.f32.mrf.mxu3 }
 0x8d5   : > { %v4777_v26 = vpack.c.bf16 %v4716_v24, %v4716_v24  ;;  %v4773_v27 = vpop.f32.mrf.mxu2  ;;  %v9695_v24 = vld [vmem:[%s13487_s26 + $0x8] sm:$0xff]  ;;  %s13493_s26 = sld [smem:[#allocation85_spill]] }
 0x8d6   : > { %v4780_v32 = vpack.c.bf16 %v4773_v27, %v4773_v27  ;;  %v4754_v33 = vpop.f32.mrf.mxu1  ;;  %5147 = vmatpush.bf16.msra.mxu0 %v9695_v24 }
 0x8d7   : > { %v4779_v34 = vpack.c.bf16 %v4754_v33, %v4754_v33  ;;  %8967 = vmatmul.msk.bf16.vlgmr.msrb.gmra.mxu3 %vm3872_vm5, %v4777_v26  ;;  %v9694_v33 = vld [vmem:[%s13488_s0] sm:$0xff] }
 0x8d8   : > { %8970 = vmatmul.msk.bf16.vlgmr.msra.gmra.mxu2 %vm3872_vm5, %v4780_v32  ;;  %5072 = vmatpush.bf16.msrb.mxu3 %v9713_v25  ;;  %v9697_v25 = vld [vmem:[%s13488_s0 + $0x18] sm:$0xff] }
 0x8d9   : > { %8969 = vmatmul.msk.bf16.vlgmr.msra.gmra.mxu1 %vm3872_vm5, %v4779_v34  ;;  %5205 = vmatpush.bf16.msra.mxu2 %v9699_v54  ;;  %v9693_v32 = vld [vmem:[%s13490_s3 + $0x18] sm:$0xff]  ;;  %v9696_v34 = vld [vmem:[%s13488_s0 + $0x10] sm:$0xff]  ;;  %s13492_s0 = smov %s13491_s9 }
 0x8da   : > { %5172 = vmatpush.bf16.msra.mxu1 %v9697_v25  ;;  %5148 = vmatpush.bf16.msra.mxu0 %v9694_v33  ;;  %v9702_v0 = vld [vmem:[%s13492_s0] sm:$0xff]  ;;  %v9704_v1 = vld [vmem:[%s13492_s0 + $0x10] sm:$0xff] }
 0x8db   : > { %s13494_s1 = smov %s13493_s26 }
 0x8dc   : > { %v4718_v38 = vpop.f32.mrf.mxu3  ;;  %5073 = vmatpush.bf16.msrb.mxu3 %v9712_v35 }
 0x8dd   : > { %v4775_v39 = vpop.f32.mrf.mxu2  ;;  %5206 = vmatpush.bf16.msra.mxu2 %v9698_v56 }
 0x8de   : > { %v4756_v41 = vpop.f32.mrf.mxu1  ;;  %5173 = vmatpush.bf16.msra.mxu1 %v9696_v34 }
 0x8df   : > { %v4903_v41 = vmax.f32 %v4902_v30, 1.0 }
 0x8e1   : > { %10233 = vrcp.f32 %v4903_v41 }
 0x8e7   : > { %8979 = vmatmul.msk.bf16.vlgmr.msra.gmra.mxu3 %vm3528_vm3, %v12161_v29 }
 0x8e8   : > { %9008 = vmatmul.msk.bf16.vlgmr.msrb.gmra.mxu2 %vm3528_vm3, %v5025_v51  ;;  %5230 = vmatpush.bf16.msra.mxu3 %v9701_v55 }
 0x8e9   : > { %5321 = vmatpush.bf16.msrb.mxu2 %v9683_v61  ;;  %v9705_v61 = vld [vmem:[%s13492_s0 + $0x18] sm:$0xff] }
 0x8ec   : > { %5231 = vmatpush.bf16.msra.mxu3 %v9700_v57 }
 0x8ed   : > { %5322 = vmatpush.bf16.msrb.mxu2 %v9682_v4  ;;  %v9686_v4 = vld [vmem:[%s13494_s1] sm:$0xff] }
 0x8f7   : > { %9017 = vmatmul.msk.bf16.vlgmr.msrb.gmra.mxu3 %vm3528_vm3, %v5025_v51  ;;  %v9690_v51 = vld [vmem:[%s13490_s3] sm:$0xff] }
 0x8f8   : > { %5346 = vmatpush.bf16.msrb.mxu3 %v9685_v45 }
 0x8fc   : > { %5347 = vmatpush.bf16.msrb.mxu3 %v9684_v49  ;;  %v9688_v49 = vld [vmem:[%s13494_s1 + $0x10] sm:$0xff] }
 0x942   : > { %v4815_v52 = vpop.f32.mrf.mxu0 }
 0x943   : > { %v4859_v6 = vsel %vm13326_vm13, %v4815_v52, 0.0  ;;  %v9692_v52 = vld [vmem:[%s13490_s3 + $0x10] sm:$0xff]  ;;  %s13509_s3 = sld [smem:[#allocation94_spill]] }
 0x94a   : > { %v4817_v43 = vpop.f32.mrf.mxu0 }
 0x956   : > { %v4834_v29 = vpop.f32.mrf.mxu1 }
 0x957   : > { %v4861_v16 = vsel %vm13326_vm13, %v4834_v29, 0.0  ;;  %v12505_v29 = vpop.eup %10233 }
 0x95a   : > { %v4796_v59 = vpop.f32.mrf.mxu3 }
 0x95b   : > { %v4853_v60 = vpop.f32.mrf.mxu2  ;;  %v4858_v2 = vsel %vm13326_vm13, %v4796_v59, 0.0 }
 0x95c   : > { %v4860_v14 = vadd.f32 %v4859_v6, %v4858_v2  ;;  %v4863_v19 = vsel %vm13326_vm13, %v4853_v60, 0.0  ;;  %v9703_v60 = vld [vmem:[%s13491_s9 + $0x8] sm:$0xff]  ;;  %v3086_v6 = vld [vmem:[%s13496_s2 + $0x1] sm:$0x1]  ;;  %s13497_s9 = sld [smem:[#allocation78_spill]] }
 0x95d   : > { %v9687_v2 = vld [vmem:[%s13493_s26 + $0x8] sm:$0xff]  ;;  %s13503_s26 = sld [smem:[#allocation95_spill]] }
 0x95e   : > { %v4836_v3 = vpop.f32.mrf.mxu1  ;;  %v4862_v17 = vadd.f32 %v4861_v16, %v4860_v14 }
 0x95f   : > { %v9689_v3 = vld [vmem:[%s13494_s1 + $0x18] sm:$0xff]  ;;  %s13506_s1 = smov %s13505_s22 }
 0x960   : > { %v4864_v20 = vadd.f32 %v4863_v19, %v4862_v17 }
 0x962   : > { %v4798_v8 = vpop.f32.mrf.mxu3  ;;  %s13498_s0 = smov %s13497_s9 }
 0x963   : > { %v4855_v9 = vpop.f32.mrf.mxu2  ;;  %v3084_v33 = vld [vmem:[%s13498_s0 + $0x1] sm:$0x1]  ;;  %s13504_s0 = smov %s13503_s26 }
 0x96a   : > { %v4886_v21 = vpop.f32.mrf.mxu3 }
 0x96b   : > { %v4887_v22 = vadd.f32 %v4886_v21, %v4864_v20  ;;  %v12478_v46 = vpop.f32.mrf.mxu2 }
 0x96c   : > { %v5051_v7 = vadd.f32 %v12478_v46, %v3085_v5 }
 0x96d   : > { %v12482_v26 = vadd.f32 %v10144_v44, %v4887_v22 }
 0x96e   : > { %v9018_v14 = vmul.f32 -1.442695, %v5051_v7 }
 0x96f   : > { %v12486_v27 = vadd.f32 %v12482_v26, %v12157_v28 }
 0x970   : > { %10235 = vpow2.f32 %v9018_v14  ;;  %v10146_v14 = vld [vmem:[#allocation19 + $0x1] ss:$0 sm:$0xff] }
 0x971   : > { %v4911_v35 = vmul.f32 %v12214_v50, %v12486_v27  ;;  %v12496_v36 = vpack.c.bf16 %v12486_v27, %v12486_v27 }
 0x972   : > { %v4888_v38 = vpop.f32.mrf.mxu3 }
 0x973   : > { %v4912_v39 = vsel %vm13326_vm13, %v4911_v35, 0.0  ;;  %v5052_v40 = vpop.f32.mrf.mxu2  ;;  %9046 = vmatmul.msk.bf16.vlgmr.msra.gmra.mxu2 %vm3528_vm3, %v12496_v36  ;;  %9055 = vmatmul.msk.bf16.vlgmr.msra.gmra.mxu3 %vm3528_vm3, %v12496_v36 }
 0x974   : > { %v4913_v48 = vrot.slane %v4912_v39, 4  ;;  %5437 = vmatpush.bf16.msra.mxu2 %v9691_v31  ;;  %5462 = vmatpush.bf16.msra.mxu3 %v9693_v32  ;;  %v3083_v32 = vld [vmem:[%s13497_s9] sm:$0x1]  ;;  %s13507_s9 = sld [smem:[#allocation93_spill]] }
 0x976   : > { %v4914_v43 = vadd.f32 %v4913_v48, %v4912_v39  ;;  %v10236_v9 = vpop.eup %10235 }
 0x977   : > { %v5085_v16 = vadd.f32 1.0, %v10236_v9 }
 0x978   : > { %v4915_v54 = vrot.slane %v4914_v43, 2  ;;  %5438 = vmatpush.bf16.msra.mxu2 %v9690_v51  ;;  %5463 = vmatpush.bf16.msra.mxu3 %v9692_v52 }
 0x979   : > { %v5098_v35 = vand.u32 2147483648, %v5085_v16  ;;  %vm5092_vm2 = vweird.f32 %v5085_v16  ;;  %v5096_v51 = vand.u32 2147483647, %v5085_v16 }
 0x97a   : > { %v4916_v55 = vadd.f32 %v4915_v54, %v4914_v43  ;;  %v5075_v56 = vpop.f32.mrf.mxu3  ;;  %s13508_s2 = smov %s13507_s9 }
 0x97b   : > { %v5076_v37 = vadd.f32 %v5075_v56, %v3086_v6  ;;  %vm5097_vm11 = vcmp.eq.f32.partialorder %v5096_v51, 8.507059e+37 }
 0x97c   : > { %v4917_v57 = vrot.slane %v4916_v55, 1 }
 0x97d   : > { %v9019_v8 = vmul.f32 -1.442695, %v5076_v37  ;;  %v10145_v37 = vld [vmem:[#allocation19] ss:$0 sm:$0xff] }
 0x97e   : > { %v4918_v58 = vadd.f32 %v4917_v57, %v4916_v55 }
 0x97f   : > { %10237 = vpow2.f32 %v9019_v8 }
 0x980   : > { %v4920_v59 = vmul.f32 %v12505_v29, %v4918_v58  ;;  %10239 = vrcp.f32 %v5085_v16  ;;  %v5099_v58 = vor.u32 1.1754944e-38, %v5098_v35 }
 0x982   : > { %v5077_v45 = vpop.f32.mrf.mxu3  ;;  %v4931_v62 = vpack.c.bf16 %v4920_v59, %v4920_v59 }
 0x983   : > { %9082 = vmatmul.msk.bf16.vlgmr.msrb.gmra.mxu2 %vm3528_vm3, %v12334_v13  ;;  %9091 = vmatmul.msk.bf16.vlgmr.msrb.gmra.mxu3 %vm3528_vm3, %v12334_v13 }
 0x984   : > { %8988 = vmatmul.msk.bf16.vlgmr.msrb.gmra.mxu0 %vm3528_vm3, %v4931_v62  ;;  %8997 = vmatmul.msk.bf16.vlgmr.msrb.gmra.mxu1 %vm3528_vm3, %v4931_v62 }
 0x985   : > { %5263 = vmatpush.bf16.msrb.mxu0 %v9703_v60  ;;  %5288 = vmatpush.bf16.msrb.mxu1 %v9705_v61  ;;  %v10238_v10 = vpop.eup %10237 }
 0x986   : > { %v5086_v17 = vadd.f32 1.0, %v10238_v10  ;;  %v10240_v18 = vpop.eup %10239 }
 0x987   : > { %v5088_v20 = vmul.f32 %v10240_v18, %v5085_v16  ;;  %vm5093_vm14 = vweird.f32 %v10240_v18 }
 0x988   : > { %10241 = vrcp.f32 %v5086_v17  ;;  %v5113_v52 = vand.u32 2147483648, %v5086_v17  ;;  %vm12545_vm4 = vmor %vm5092_vm2, %vm5093_vm14  ;;  %vm5107_vm7 = vweird.f32 %v5086_v17  ;;  %v5111_v54 = vand.u32 2147483647, %v5086_v17 }
 0x989   : > { %5264 = vmatpush.bf16.msrb.mxu0 %v9702_v0  ;;  %5289 = vmatpush.bf16.msrb.mxu1 %v9704_v1  ;;  %v5089_v46 = vsub.f32 1.0, %v5088_v20  ;;  %v10147_v1 = vld [vmem:[#allocation13] ss:$0 sm:$0xff]  ;;  %v10150_v20 = vld [vmem:[#allocation17 + $0x1] ss:$0 sm:$0xff] }
 0x98a   : > { %v5114_v45 = vor.u32 1.1754944e-38, %v5113_v52  ;;  %vm5112_vm14 = vcmp.eq.f32.partialorder %v5111_v54, 8.507059e+37 }
 0x98b   : > { %v5090_v24 = vmul.f32 %v10240_v18, %v5089_v46 }
 0x98d   : > { %v5091_v34 = vadd.f32 %v10240_v18, %v5090_v24 }
 0x98e   : > { %v10242_v19 = vpop.eup %10241 }
 0x98f   : > { %v5103_v44 = vmul.f32 %v10242_v19, %v5086_v17  ;;  %vm5108_vm15 = vweird.f32 %v10242_v19  ;;  %v5095_v57 = vsel %vm12545_vm4, %v10240_v18, %v5091_v34 }
 0x990   : > { %vm5109_vm12 = vmor %vm5107_vm7, %vm5108_vm15  ;;  %v5100_v62 = vsel %vm5097_vm11, %v5099_v58, %v5095_v57 }
 0x991   : > { %v5104_v23 = vsub.f32 1.0, %v5103_v44 }
 0x993   : > { %9118 = vmatmul.msk.bf16.vlgmr.msra.gmra.mxu2 %vm3528_vm3, %v12334_v13  ;;  %9127 = vmatmul.msk.bf16.vlgmr.msra.gmra.mxu3 %vm3528_vm3, %v12334_v13  ;;  %v5105_v25 = vmul.f32 %v10242_v19, %v5104_v23 }
 0x994   : > { %9028 = vmatmul.msk.bf16.vlgmr.msra.gmra.mxu0 %vm3528_vm3, %v12496_v36  ;;  %9037 = vmatmul.msk.bf16.vlgmr.msra.gmra.mxu1 %vm3528_vm3, %v12496_v36 }
 0x995   : > { %5379 = vmatpush.bf16.msra.mxu0 %v9687_v2  ;;  %5404 = vmatpush.bf16.msra.mxu1 %v9689_v3  ;;  %v5106_v40 = vadd.f32 %v10242_v19, %v5105_v25  ;;  %v10148_v2 = vld [vmem:[#allocation13 + $0x1] ss:$0 sm:$0xff] }
 0x997   : > { %v5110_v59 = vsel %vm5109_vm12, %v10242_v19, %v5106_v40  ;;  %v10149_v19 = vld [vmem:[#allocation17] ss:$0 sm:$0xff] }
 0x998   : > { %v5115_v0 = vsel %vm5112_vm14, %v5114_v45, %v5110_v59  ;;  %v10151_v45 = vld [vmem:[#allocation16] ss:$0 sm:$0xff] }
 0x999   : > { %5380 = vmatpush.bf16.msra.mxu0 %v9686_v4  ;;  %5405 = vmatpush.bf16.msra.mxu1 %v9688_v49  ;;  %v12551_v49 = vadd.f32 1.0, %v5100_v62  ;;  %v12553_v6 = vadd.f32 1.0, %v5115_v0 }
 0x99b   : > { %v5471_v44 = vmul.f32 %v12551_v49, %v12551_v49  ;;  %v5472_v46 = vmul.f32 %v12553_v6, %v12553_v6 }
 0x99d   : > { %v5473_v35 = vmul.f32 0.25, %v5471_v44 }
 0x99f   : > { %v5475_v58 = vperm.slane %v5473_v35, 0 }
 0x9a4   : > { %9064 = vmatmul.msk.bf16.vlgmr.msrb.gmra.mxu0 %vm3528_vm3, %v12496_v36  ;;  %9073 = vmatmul.msk.bf16.vlgmr.msrb.gmra.mxu1 %vm3528_vm3, %v12496_v36 }
 0x9b4   : > { %9100 = vmatmul.msk.bf16.vlgmr.msra.gmra.mxu0 %vm3528_vm3, %v12334_v13  ;;  %9109 = vmatmul.msk.bf16.vlgmr.msra.gmra.mxu1 %vm3528_vm3, %v12334_v13 }
 0x9f6   : > { %v5208_v21 = vpop.f32.mrf.mxu2  ;;  %v12541_v22 = vpop.f32.mrf.mxu3 }
 0x9f7   : > { %v5209_v23 = vadd.f32 %v10145_v37, %v5208_v21 }
 0x9f9   : > { %v5237_v21 = vmul.f32 %v12214_v50, %v5209_v23  ;;  %v10153_v23 = vld [vmem:[#allocation20] ss:$0 sm:$0xff] }
 0x9fe   : > { %v5210_v30 = vpop.f32.mrf.mxu2  ;;  %v5235_v31 = vpop.f32.mrf.mxu3 }
 0xa01   : > { %v4956_v38 = vpop.f32.mrf.mxu0  ;;  %v4981_v39 = vpop.f32.mrf.mxu1 }
 0xa02   : > { %v4957_v41 = vadd.f32 %v4956_v38, %v3083_v32  ;;  %v4982_v48 = vadd.f32 %v4981_v39, %v3084_v33  ;;  %v5234_v32 = vadd.f32 %v10146_v14, %v12541_v22  ;;  %v5474_v38 = vmul.f32 0.25, %v5472_v46 }
 0xa04   : > { %v8998_v55 = vmul.f32 -1.442695, %v4957_v41  ;;  %v8999_v56 = vmul.f32 -1.442695, %v4982_v48  ;;  %v5238_v43 = vmul.f32 %v12214_v50, %v5234_v32 }
 0xa06   : > { %10243 = vpow2.f32 %v8998_v55  ;;  %v5324_v60 = vpop.f32.mrf.mxu2  ;;  %v5349_v61 = vpop.f32.mrf.mxu3 }
 0xa07   : > { %10245 = vpow2.f32 %v8999_v56  ;;  %v5325_v9 = vadd.f32 %v10147_v1, %v5324_v60  ;;  %v5350_v10 = vadd.f32 %v10148_v2, %v5349_v61  ;;  %v5476_v60 = vperm.slane %v5474_v38, 0 }
 0xa08   : > { %v5477_v1 = vmul.f32 %v5475_v58, %v5237_v21 }
 0xa09   : > { %v4958_v3 = vpop.f32.mrf.mxu0  ;;  %v4983_v4 = vpop.f32.mrf.mxu1  ;;  %v5353_v24 = vmul.f32 %v12248_v53, %v5325_v9  ;;  %v5354_v25 = vmul.f32 %v12248_v53, %v5350_v10  ;;  %v5478_v14 = vmul.f32 %v5476_v60, %v5238_v43 }
 0xa0a   : > { %v10152_v3 = vld [vmem:[#allocation16 + $0x1] ss:$0 sm:$0xff] }
 0xa0b   : > { %v5602_v48 = vpack.c.bf16 %v5353_v24, %v5353_v24  ;;  %v5603_v51 = vpack.c.bf16 %v5354_v25, %v5354_v25  ;;  %v10154_v24 = vld [vmem:[#allocation20 + $0x1] ss:$0 sm:$0xff] }
 0xa0c   : > { %v10244_v5 = vpop.eup %10243 }
 0xa0d   : > { %v10246_v7 = vpop.eup %10245  ;;  %v12555_v8 = vadd.f32 1.0, %v10244_v5  ;;  %v5627_v37 = vsel %vm3451_vm0, %v5603_v51, 0 }
 0xa0e   : > { %v12557_v16 = vadd.f32 1.0, %v10246_v7  ;;  %v5326_v17 = vpop.f32.mrf.mxu2  ;;  %v5351_v18 = vpop.f32.mrf.mxu3  ;;  %v5608_v7 = vsel %vm3451_vm0, %v5602_v48, 0 }
 0xa0f   : > { %10247 = vrcp.f32 %v12555_v8  ;;  %v5479_v17 = vpack.c.bf16 %v5477_v1, %v5477_v1  ;;  %vm4998_vm2 = vweird.f32 %v12555_v8 }
 0xa10   : > { %10249 = vrcp.f32 %v12557_v16  ;;  %v5019_v32 = vand.u32 2147483648, %v12557_v16  ;;  %vm5013_vm7 = vweird.f32 %v12557_v16  ;;  %v5017_v35 = vand.u32 2147483647, %v12557_v16 }
 0xa11   : > { %v5150_v30 = vpop.f32.mrf.mxu0  ;;  %v5175_v31 = vpop.f32.mrf.mxu1 }
 0xa12   : > { %v5151_v33 = vadd.f32 %v10149_v19, %v5150_v30  ;;  %v5176_v34 = vadd.f32 %v10150_v20, %v5175_v31  ;;  %v5480_v20 = vpack.c.bf16 %v5478_v14, %v5478_v14  ;;  %v5004_v31 = vand.u32 2147483648, %v12555_v8 }
 0xa14   : > { %v5179_v39 = vmul.f32 %v12214_v50, %v5151_v33  ;;  %v5180_v40 = vmul.f32 %v12214_v50, %v5176_v34  ;;  %v5002_v34 = vand.u32 2147483647, %v12555_v8 }
 0xa15   : > { %v12570_v41 = vpop.eup %10247 }
 0xa16   : > { %v12573_v52 = vpop.eup %10249  ;;  %v4994_v22 = vmul.f32 %v12570_v41, %v12555_v8  ;;  %v5481_v54 = vpack.c.bf16 %v5179_v39, %v5179_v39  ;;  %v5482_v55 = vpack.c.bf16 %v5180_v40, %v5180_v40  ;;  %v5440_v56 = vpop.f32.mrf.mxu2  ;;  %vm4999_vm11 = vweird.f32 %v12570_v41 }
 0xa17   : > { %v5465_v57 = vpop.f32.mrf.mxu3  ;;  %v5009_v59 = vmul.f32 %v12573_v52, %v12557_v16  ;;  %v5441_v18 = vadd.f32 %v10151_v45, %v5440_v56  ;;  %vm5014_vm15 = vweird.f32 %v12573_v52  ;;  %vm12595_vm4 = vmor %vm4998_vm2, %vm4999_vm11  ;;  %v5005_v8 = vor.u32 1.1754944e-38, %v5004_v31 }
 0xa18   : > { %v4995_v61 = vsub.f32 1.0, %v4994_v22  ;;  %v5487_v62 = vsel %vm3451_vm0, %v5481_v54, 0  ;;  %v5506_v0 = vsel %vm3451_vm0, %v5482_v55, 0  ;;  %v5466_v19 = vadd.f32 %v10152_v3, %v5465_v57  ;;  %vm5015_vm12 = vmor %vm5013_vm7, %vm5014_vm15 }
 0xa19   : > { %v5010_v2 = vsub.f32 1.0, %v5009_v59  ;;  %v5152_v4 = vpop.f32.mrf.mxu0  ;;  %v5177_v5 = vpop.f32.mrf.mxu1  ;;  %5496 = vmatpush.bf16.xpose.msrb.mxu0 %v5487_v62  ;;  %5515 = vmatpush.bf16.xpose.msrb.mxu1 %v5506_v0  ;;  %v5469_v38 = vmul.f32 %v12248_v53, %v5441_v18  ;;  %v5020_v54 = vor.u32 1.1754944e-38, %v5019_v32  ;;  %vm5003_vm14 = vcmp.eq.f32.partialorder %v5002_v34, 8.507059e+37 }
 0xa1a   : > { %v4996_v9 = vmul.f32 %v12570_v41, %v4995_v61  ;;  %v5470_v39 = vmul.f32 %v12248_v53, %v5466_v19  ;;  %vm5018_vm11 = vcmp.eq.f32.partialorder %v5017_v35, 8.507059e+37  ;;  %vm5523_vm15 = vcmask 46080  }
 0xa1b   : > { %v5011_v10 = vmul.f32 %v12573_v52, %v5010_v2  ;;  %v5668_v56 = vpack.c.bf16 %v5469_v38, %v5469_v38  ;;  %vm13538_vm2 = vcmask 62464  }
 0xa1c   : > { %v4997_v25 = vadd.f32 %v12570_v41, %v4996_v9  ;;  %v5669_v57 = vpack.c.bf16 %v5470_v39, %v5470_v39  ;;  %vm13540_vm7 = vmmov %vm13538_vm2 }
 0xa1d   : > { %v5012_v30 = vadd.f32 %v12573_v52, %v5011_v10  ;;  %v5674_v2 = vsel %vm3486_vm1, %v5668_v56, 0 }
 0xa1e   : > { %v5442_v44 = vpop.f32.mrf.mxu2  ;;  %v5001_v43 = vsel %vm12595_vm4, %v12570_v41, %v4997_v25  ;;  %v5693_v3 = vsel %vm3486_vm1, %v5669_v57, 0  ;;  %vm13539_vm4 = vmmov %vm13538_vm2 }
 0xa1f   : > { %v5467_v46 = vpop.f32.mrf.mxu3  ;;  %v5016_v22 = vsel %vm5015_vm12, %v12573_v52, %v5012_v30  ;;  %v5006_v58 = vsel %vm5003_vm14, %v5005_v8, %v5001_v43  ;;  %vm13541_vm12 = vmmov %vm13538_vm2 }
 0xa20   : > { %9128 = vmatmul.msk.bf16.vlgmr.msrb.gmra.mxu0 %vm3451_vm0, %v5479_v17  ;;  %9129 = vmatmul.msk.bf16.vlgmr.msrb.gmra.mxu1 %vm3451_vm0, %v5480_v20  ;;  %v5021_v59 = vsel %vm5018_vm11, %v5020_v54, %v5016_v22  ;;  %v12612_v62 = vadd.f32 1.0, %v5006_v58  ;;  %vm13542_vm14 = vmmov %vm13538_vm2 }
 0xa21   : > { %5617 = vmatpush.bf16.xpose.msra.mxu0 %v5608_v7  ;;  %5636 = vmatpush.bf16.xpose.msra.mxu1 %v5627_v37  ;;  %v5266_v40 = vpop.f32.mrf.mxu0  ;;  %v5291_v21 = vpop.f32.mrf.mxu1  ;;  %v12614_v52 = vadd.f32 1.0, %v5021_v59  ;;  %v10155_v7 = vld [vmem:[#allocation14] ss:$0 sm:$0xff]  ;;  %v10156_v37 = vld [vmem:[#allocation14 + $0x1] ss:$0 sm:$0xff]  ;;  %vm13543_vm11 = vmmov %vm13538_vm2 }
 0xa22   : > { %v5267_v48 = vadd.f32 %v10153_v23, %v5266_v40  ;;  %v5292_v51 = vadd.f32 %v10154_v24, %v5291_v21  ;;  %v5592_v4 = vmul.f32 %v12612_v62, %v12612_v62 }
 0xa23   : > { %v5593_v5 = vmul.f32 %v12614_v52, %v12614_v52 }
 0xa24   : > { %v5295_v55 = vmul.f32 %v12214_v50, %v5267_v48  ;;  %v5296_v16 = vmul.f32 %v12214_v50, %v5292_v51  ;;  %v5594_v14 = vmul.f32 0.25, %v5592_v4 }
 0xa25   : > { %v5595_v9 = vmul.f32 0.25, %v5593_v5 }
 0xa26   : > { %v5548_v60 = vpack.c.bf16 %v5295_v55, %v5295_v55  ;;  %v5549_v61 = vpack.c.bf16 %v5296_v16, %v5296_v16  ;;  %v5596_v44 = vperm.slane %v5594_v14, 0 }
 0xa27   : > { %v5597_v23 = vperm.slane %v5595_v9, 0 }
 0xa28   : > { %v5554_v45 = vsel %vm4011_vm6, %v5548_v60, 0  ;;  %v5573_v41 = vsel %vm4011_vm6, %v5549_v61, 0 }
 0xa29   : > { %v5268_v0 = vpop.f32.mrf.mxu0  ;;  %v5293_v1 = vpop.f32.mrf.mxu1  ;;  %5563 = vmatpush.bf16.msrb.mxu2 %v5554_v45  ;;  %5582 = vmatpush.bf16.msrb.mxu3 %v5573_v41 }
 0xa2d   : > { %5683 = vmatpush.bf16.msra.mxu2 %v5674_v2  ;;  %5702 = vmatpush.bf16.msra.mxu3 %v5693_v3 }
 0xa31   : > { %v5382_v10 = vpop.f32.mrf.mxu0  ;;  %v5407_v17 = vpop.f32.mrf.mxu1 }
 0xa32   : > { %v5383_v18 = vadd.f32 %v10155_v7, %v5382_v10  ;;  %v5408_v19 = vadd.f32 %v10156_v37, %v5407_v17 }
 0xa34   : > { %v5411_v20 = vmul.f32 %v12248_v53, %v5383_v18  ;;  %v5412_v46 = vmul.f32 %v12248_v53, %v5408_v19 }
 0xa36   : > { %v5598_v24 = vmul.f32 %v5596_v44, %v5411_v20  ;;  %v5599_v25 = vmul.f32 %v5597_v23, %v5412_v46 }
 0xa38   : > { %v5600_v30 = vpack.c.bf16 %v5598_v24, %v5598_v24  ;;  %v5601_v31 = vpack.c.bf16 %v5599_v25, %v5599_v25 }
 0xa39   : > { %v5384_v32 = vpop.f32.mrf.mxu0  ;;  %v5409_v33 = vpop.f32.mrf.mxu1 }
 0xa3a   : > { %9132 = vmatmul.msk.bf16.vlgmr.msra.gmra.mxu0 %vm3451_vm0, %v5600_v30  ;;  %9133 = vmatmul.msk.bf16.vlgmr.msra.gmra.mxu1 %vm3451_vm0, %v5601_v31  ;;  %v9719_v31 = vld [vmem:[%s13503_s26 + $0x8] sm:$0xff]  ;;  %v9718_v33 = vld [vmem:[%s13504_s0] sm:$0xff]  ;;  %s13510_s26 = sld [smem:[#allocation101_spill]] }
 0xa40   : > { %s13511_s0 = smov %s13510_s26 }
 0xa9d   : > { %v5498_v34 = vpop.f32.mrf.mxu0  ;;  %v5517_v35 = vpop.f32.mrf.mxu1 }
 0xa9e   : > { %v5521_v38 = vsel %vm12266_vm8, %v5498_v34, -1e+30  ;;  %v5522_v39 = vsel %vm12266_vm8, %v5517_v35, -1e+30  ;;  %v9720_v34 = vld [vmem:[%s13505_s22] sm:$0xff]  ;;  %v9721_v35 = vld [vmem:[%s13506_s1 + $0x8] sm:$0xff] }
 0xa9f   : > { %v5527_v40 = vsel %vm5523_vm15, %v5522_v39, -inf  ;;  %v5524_v21 = vsel %vm5523_vm15, %v5521_v38, -inf  ;;  %5730 = vmatpush.bf16.msrb.mxu0 %v9720_v34  ;;  %5752 = vmatpush.bf16.msrb.mxu1 %v9721_v35  ;;  %s13512_s22 = sld [smem:[#allocation105_spill]] }
 0xaa0   : > { %5528 = vmax.xlane.f32.xlu2 %v5527_v40  ;;  %5525 = vmax.xlane.f32.xlu1 %v5524_v21 }
 0xaa5   : > { %v5500_v48 = vpop.f32.mrf.mxu0  ;;  %v5519_v51 = vpop.f32.mrf.mxu1  ;;  %s13513_s1 = smov %s13512_s22 }
 0xab7   : > { %v5619_v43 = vpop.f32.mrf.mxu0  ;;  %v5638_v22 = vpop.f32.mrf.mxu1 }
 0xab8   : > { %v5642_v8 = vsel %vm12407_vm10, %v5619_v43, -1e+30  ;;  %v5643_v54 = vsel %vm12407_vm10, %v5638_v22, -1e+30 }
 0xab9   : > { %v5647_v55 = vsel %vm3872_vm5, %v5643_v54, -inf  ;;  %v5644_v16 = vsel %vm3872_vm5, %v5642_v8, -inf }
 0xaba   : > { %5648 = vmax.xlane.f32.xlu1 %v5647_v55  ;;  %5645 = vmax.xlane.f32.xlu0 %v5644_v16  ;;  %v9716_v55 = vld [vmem:[%s13509_s3] sm:$0xff]  ;;  %v9717_v16 = vld [vmem:[%s13509_s3 + $0x8] sm:$0xff] }
 0xabb   : > { %5830 = vmatpush.bf16.msra.mxu0 %v9717_v16 }
 0xabf   : > { %v5621_v56 = vpop.f32.mrf.mxu0  ;;  %v5640_v57 = vpop.f32.mrf.mxu1 }
 0xac0   : > { %v5589_v56 = vperm.slane %v12553_v6, 0  ;;  %v5588_v57 = vperm.slane %v12551_v49, 0  ;;  %v5709_v6 = vperm.slane %v12614_v52, 0  ;;  %v5708_v49 = vperm.slane %v12612_v62, 0  ;;  %v9723_v62 = vld [vmem:[%s13510_s26 + $0x8] sm:$0xff]  ;;  %s13516_s26 = sld [smem:[#allocation97_spill]] }
 0xb13   : > { %v5529_v58 = vpop.xlane.xlu2 %5528  ;;  %v5526_v59 = vpop.xlane.xlu1 %5525 }
 0xb14   : > { %v5531_v60 = vsub.f32 %v5522_v39, %v5529_v58  ;;  %v5530_v61 = vsub.f32 %v5521_v38, %v5526_v59 }
 0xb16   : > { %v5534_v45 = vmul.f32 1.442695, %v5531_v60  ;;  %v5532_v41 = vmul.f32 1.442695, %v5530_v61 }
 0xb18   : > { %10251 = vpow2.f32 %v5534_v45 }
 0xb19   : > { %10253 = vpow2.f32 %v5532_v41 }
 0xb1e   : > { %v10252_v0 = vpop.eup %10251 }
 0xb1f   : > { %v10254_v1 = vpop.eup %10253  ;;  %v5539_v2 = vsel %vm5523_vm15, %v10252_v0, 0.0 }
 0xb20   : > { %v5536_v3 = vsel %vm5523_vm15, %v10254_v1, 0.0  ;;  %5540 = vadd.xlane.f32.xlu0 %v5539_v2 }
 0xb21   : > { %5537 = vadd.xlane.f32.xlu2 %v5536_v3 }
 0xb2d   : > { %v5649_v4 = vpop.xlane.xlu1 %5648  ;;  %v5646_v5 = vpop.xlane.xlu0 %5645 }
 0xb2e   : > { %v5651_v7 = vsub.f32 %v5643_v54, %v5649_v4  ;;  %v5650_v37 = vsub.f32 %v5642_v8, %v5646_v5  ;;  %v9715_v8 = vld [vmem:[%s13507_s9 + $0x8] sm:$0xff]  ;;  %v9714_v54 = vld [vmem:[%s13508_s2] sm:$0xff]  ;;  %s13514_s9 = sld [smem:[#allocation104_spill]] }
 0xb2f   : > { %5857 = vmatpush.bf16.msra.mxu1 %v9715_v8 }
 0xb30   : > { %v5654_v14 = vmul.f32 1.442695, %v5651_v7  ;;  %v5652_v9 = vmul.f32 1.442695, %v5650_v37 }
 0xb32   : > { %10255 = vpow2.f32 %v5654_v14 }
 0xb33   : > { %10257 = vpow2.f32 %v5652_v9  ;;  %5858 = vmatpush.bf16.msra.mxu1 %v9714_v54  ;;  %v9725_v9 = vld [vmem:[%s13511_s0 + $0x18] sm:$0xff] }
 0xb34   : > { %v9733_v16 = vld [vmem:[%s13514_s9 + $0x8] sm:$0xff] }
 0xb38   : > { %v10256_v10 = vpop.eup %10255 }
 0xb39   : > { %v10258_v17 = vpop.eup %10257  ;;  %v5659_v18 = vsel %vm3872_vm5, %v10256_v10, 0.0 }
 0xb3a   : > { %5660 = vadd.xlane.f32.xlu2 %v5659_v18  ;;  %v5656_v19 = vsel %vm3872_vm5, %v10258_v17, 0.0  ;;  %v9722_v18 = vld [vmem:[%s13511_s0] sm:$0xff] }
 0xb3b   : > { %5657 = vadd.xlane.f32.xlu1 %v5656_v19  ;;  %v9724_v19 = vld [vmem:[%s13511_s0 + $0x10] sm:$0xff] }
 0xb93   : > { %v5541_v20 = vpop.xlane.xlu0 %5540 }
 0xb94   : > { %v5538_v44 = vpop.xlane.xlu2 %5537  ;;  %10259 = vrcp.f32 %v5541_v20  ;;  %v9726_v20 = vld [vmem:[%s13511_s0 + $0x20] sm:$0xff] }
 0xb95   : > { %10261 = vrcp.f32 %v5538_v44  ;;  %v9728_v44 = vld [vmem:[%s13511_s0 + $0x30] sm:$0xff] }
 0xb9a   : > { %v10260_v46 = vpop.eup %10259 }
 0xb9b   : > { %v10262_v23 = vpop.eup %10261  ;;  %v5545_v24 = vmul.f32 %v10260_v46, %v10252_v0  ;;  %v9741_v46 = vld [vmem:[%s13512_s22 + $0x8] sm:$0xff]  ;;  %s13518_s22 = sld [smem:[#allocation100_spill]] }
 0xb9c   : > { %v5544_v25 = vmul.f32 %v10262_v23, %v10254_v1  ;;  %v9743_v23 = vld [vmem:[%s13513_s1 + $0x18] sm:$0xff] }
 0xb9d   : > { %v5547_v30 = vpack.c.bf16 %v5545_v24, %v5545_v24  ;;  %v9745_v24 = vld [vmem:[%s13513_s1 + $0x28] sm:$0xff] }
 0xb9e   : > { %v5546_v32 = vpack.c.bf16 %v5544_v25, %v5544_v25  ;;  %v9747_v25 = vld [vmem:[%s13513_s1 + $0x38] sm:$0xff] }
 0xb9f   : > { %9131 = vmatmul.msk.bf16.vlgmr.msrb.gmra.mxu3 %vm3955_vm9, %v5547_v30  ;;  %v9740_v30 = vld [vmem:[%s13513_s1] sm:$0xff] }
 0xba0   : > { %9130 = vmatmul.msk.bf16.vlgmr.msrb.gmra.mxu2 %vm3955_vm9, %v5546_v32  ;;  %5808 = vmatpush.bf16.msrb.mxu3 %v9716_v55  ;;  %v9744_v32 = vld [vmem:[%s13513_s1 + $0x20] sm:$0xff] }
 0xba1   : > { %5779 = vmatpush.bf16.msrb.mxu2 %v9719_v31  ;;  %v9742_v31 = vld [vmem:[%s13513_s1 + $0x10] sm:$0xff] }
 0xba5   : > { %5780 = vmatpush.bf16.msrb.mxu2 %v9718_v33  ;;  %v9746_v33 = vld [vmem:[%s13513_s1 + $0x30] sm:$0xff]  ;;  %s13519_s1 = smov %s13518_s22 }
 0xbad   : > { %v5661_v38 = vpop.xlane.xlu2 %5660 }
 0xbae   : > { %10263 = vrcp.f32 %v5661_v38  ;;  %v5658_v39 = vpop.xlane.xlu1 %5657 }
 0xbaf   : > { %10265 = vrcp.f32 %v5658_v39 }
 0xbb4   : > { %v10264_v40 = vpop.eup %10263 }
 0xbb5   : > { %v10266_v21 = vpop.eup %10265  ;;  %v5665_v48 = vmul.f32 %v10264_v40, %v10256_v10  ;;  %v9727_v10 = vld [vmem:[%s13511_s0 + $0x28] sm:$0xff] }
 0xbb6   : > { %v5664_v51 = vmul.f32 %v10266_v21, %v10258_v17  ;;  %v9729_v17 = vld [vmem:[%s13511_s0 + $0x38] sm:$0xff]  ;;  %s13515_s0 = smov %s13514_s9  ;;  %v10157_v21 = vld [vmem:[#allocation11] ss:$0 sm:$0xff]  ;;  %s13520_s9 = sld [smem:[#allocation99_spill]] }
 0xbb7   : > { %v5667_v43 = vpack.c.bf16 %v5665_v48, %v5665_v48 }
 0xbb8   : > { %v5666_v22 = vpack.c.bf16 %v5664_v51, %v5664_v51 }
 0xbb9   : > { %9135 = vmatmul.msk.bf16.vlgmr.msra.gmra.mxu3 %vm3872_vm5, %v5667_v43 }
 0xbba   : > { %9134 = vmatmul.msk.bf16.vlgmr.msra.gmra.mxu2 %vm3872_vm5, %v5666_v22  ;;  %5933 = vmatpush.bf16.msra.mxu3 %v9725_v9 }
 0xbbb   : > { %5908 = vmatpush.bf16.msra.mxu2 %v9723_v62 }
 0xbbe   : > { %5934 = vmatpush.bf16.msra.mxu3 %v9724_v19 }
 0xbbf   : > { %5909 = vmatpush.bf16.msra.mxu2 %v9722_v18 }
 0xbca   : > { %9154 = vmatmul.msk.bf16.vlgmr.msrb.gmra.mxu2 %vm3528_vm3, %v12496_v36 }
 0xbcb   : > { %6024 = vmatpush.bf16.msrb.mxu2 %v9741_v46 }
 0xbcf   : > { %6025 = vmatpush.bf16.msrb.mxu2 %v9740_v30 }
 0xc22   : > { %v5584_v58 = vpop.f32.mrf.mxu3 }
 0xc23   : > { %v5565_v59 = vpop.f32.mrf.mxu2  ;;  %v5591_v60 = vmul.f32 %v5589_v56, %v5584_v58  ;;  %v9735_v56 = vld [vmem:[%s13515_s0 + $0x18] sm:$0xff] }
 0xc24   : > { %v5590_v61 = vmul.f32 %v5588_v57, %v5565_v59  ;;  %v9737_v57 = vld [vmem:[%s13515_s0 + $0x28] sm:$0xff]  ;;  %v9739_v58 = vld [vmem:[%s13515_s0 + $0x38] sm:$0xff]  ;;  %v9734_v59 = vld [vmem:[%s13515_s0 + $0x10] sm:$0xff] }
 0xc25   : > { %v5713_v45 = vpack.c.bf16 %v5591_v60, %v5591_v60  ;;  %v9736_v60 = vld [vmem:[%s13515_s0 + $0x20] sm:$0xff] }
 0xc26   : > { %v5712_v41 = vpack.c.bf16 %v5590_v61, %v5590_v61  ;;  %v9738_v61 = vld [vmem:[%s13515_s0 + $0x30] sm:$0xff] }
 0xc27   : > { %9145 = vmatmul.msk.bf16.vlgmr.msrb.gmra.mxu1 %vm3451_vm0, %v5713_v45 }
 0xc28   : > { %9140 = vmatmul.msk.bf16.vlgmr.msrb.gmra.mxu0 %vm3451_vm0, %v5712_v41  ;;  %5983 = vmatpush.bf16.msrb.mxu1 %v9729_v17 }
 0xc29   : > { %5958 = vmatpush.bf16.msrb.mxu0 %v9727_v10 }
 0xc2a   : > { %v5586_v36 = vpop.f32.mrf.mxu3 }
 0xc2b   : > { %v5567_v0 = vpop.f32.mrf.mxu2 }
 0xc2c   : > { %5984 = vmatpush.bf16.msrb.mxu1 %v9728_v44 }
 0xc2d   : > { %5959 = vmatpush.bf16.msrb.mxu0 %v9726_v20 }
 0xc37   : > { %9173 = vmatmul.msk.bf16.vlgmr.msra.gmra.mxu1 %vm3528_vm3, %v12334_v13 }
 0xc38   : > { %6099 = vmatpush.bf16.msra.mxu1 %v9747_v25 }
 0xc3c   : > { %v5704_v1 = vpop.f32.mrf.mxu3  ;;  %6100 = vmatpush.bf16.msra.mxu1 %v9746_v33 }
 0xc3d   : > { %v5685_v2 = vpop.f32.mrf.mxu2  ;;  %v5711_v3 = vmul.f32 %v5709_v6, %v5704_v1 }
 0xc3e   : > { %v5710_v4 = vmul.f32 %v5708_v49, %v5685_v2  ;;  %v10158_v2 = vld [vmem:[#allocation10] ss:$0 sm:$0xff] }
 0xc3f   : > { %v5791_v5 = vpack.c.bf16 %v5711_v3, %v5711_v3 }
 0xc40   : > { %v5790_v7 = vpack.c.bf16 %v5710_v4, %v5710_v4 }
 0xc41   : > { %9164 = vmatmul.msk.bf16.vlgmr.msra.gmra.mxu0 %vm3451_vm0, %v5791_v5 }
 0xc42   : > { %9159 = vmatmul.msk.bf16.vlgmr.msrb.gmra.mxu3 %vm3451_vm0, %v5790_v7  ;;  %6074 = vmatpush.bf16.msra.mxu0 %v9745_v24 }
 0xc43   : > { %6049 = vmatpush.bf16.msrb.mxu3 %v9743_v23 }
 0xc44   : > { %v5706_v13 = vpop.f32.mrf.mxu3 }
 0xc45   : > { %v5687_v52 = vpop.f32.mrf.mxu2 }
 0xc46   : > { %6075 = vmatpush.bf16.msra.mxu0 %v9744_v32 }
 0xc47   : > { %6050 = vmatpush.bf16.msrb.mxu3 %v9742_v31 }
 0xc4d   : > { %v5782_v37 = vpop.f32.mrf.mxu2 }
 0xc55   : > { %v5784_v14 = vpop.f32.mrf.mxu2 }
 0xca4   : > { %v5754_v34 = vpop.f32.mrf.mxu1 }
 0xca5   : > { %v5732_v35 = vpop.f32.mrf.mxu0  ;;  %v5759_v38 = vsel %vm13326_vm13, %v5754_v34, 0.0 }
 0xca6   : > { %v5758_v39 = vsel %vm13326_vm13, %v5732_v35, 0.0 }
 0xca7   : > { %v5760_v40 = vadd.f32 %v5759_v38, %v5758_v39 }
 0xca9   : > { %v5783_v48 = vadd.f32 %v5782_v37, %v5760_v40 }
 0xcab   : > { %v12684_v51 = vadd.f32 %v10157_v21, %v5783_v48 }
 0xcac   : > { %v5756_v43 = vpop.f32.mrf.mxu1 }
 0xcad   : > { %v5870_v22 = vadd.f32 %v12684_v51, %v12482_v26  ;;  %v5734_v8 = vpop.f32.mrf.mxu0  ;;  %v9732_v26 = vld [vmem:[%s13515_s0] sm:$0xff]  ;;  %s13517_s0 = smov %s13516_s26 }
 0xcae   : > { %v10160_v37 = vld [vmem:[%s13517_s0 + $0x3] ss:$0 sm:$0xff]  ;;  %v10161_v10 = vld [vmem:[%s13517_s0] ss:$0 sm:$0xff]  ;;  %v10162_v17 = vld [vmem:[%s13517_s0 + $0x1] ss:$0 sm:$0xff]  ;;  %s13521_s0 = smov %s13520_s9 }
 0xcaf   : > { %v12689_v54 = vadd.f32 %v5870_v22, %v12157_v28  ;;  %v10163_v22 = vld [vmem:[%s13518_s22 + $0x2] ss:$0 sm:$0xff]  ;;  %v10164_v8 = vld [vmem:[%s13519_s1 + $0x3] ss:$0 sm:$0xff]  ;;  %s13524_s22 = sld [smem:[#allocation102_spill]] }
 0xcb1   : > { %v12693_v55 = vpack.c.bf16 %v12689_v54, %v12689_v54 }
 0xcb3   : > { %9182 = vmatmul.msk.bf16.vlgmr.msra.gmra.mxu2 %vm3528_vm3, %v12693_v55  ;;  %9191 = vmatmul.msk.bf16.vlgmr.msra.gmra.mxu3 %vm3528_vm3, %v12693_v55 }
 0xcb4   : > { %9200 = vmatmul.msk.bf16.vlgmr.msrb.gmra.mxu0 %vm3528_vm3, %v12693_v55  ;;  %9209 = vmatmul.msk.bf16.vlgmr.msrb.gmra.mxu1 %vm3528_vm3, %v12693_v55  ;;  %v5860_v28 = vpop.f32.mrf.mxu1 }
 0xcb5   : > { %6144 = vmatpush.bf16.msra.mxu2 %v9733_v16  ;;  %6169 = vmatpush.bf16.msra.mxu3 %v9735_v56 }
 0xcb6   : > { %6194 = vmatpush.bf16.msrb.mxu0 %v9737_v57  ;;  %6219 = vmatpush.bf16.msrb.mxu1 %v9739_v58 }
 0xcb9   : > { %6145 = vmatpush.bf16.msra.mxu2 %v9732_v26  ;;  %6170 = vmatpush.bf16.msra.mxu3 %v9734_v59  ;;  %v10166_v26 = vld [vmem:[%s13519_s1 + $0x1] ss:$0 sm:$0xff] }
 0xcba   : > { %6195 = vmatpush.bf16.msrb.mxu0 %v9736_v60  ;;  %6220 = vmatpush.bf16.msrb.mxu1 %v9738_v61 }
 0xcbc   : > { %v5862_v45 = vpop.f32.mrf.mxu1 }
 0xcbe   : > { %v5832_v41 = vpop.f32.mrf.mxu0 }
 0xcbf   : > { %v5837_v0 = vsel %vm3528_vm3, %v5832_v41, 0.0 }
 0xcc3   : > { %9218 = vmatmul.msk.bf16.vlgmr.msrb.gmra.mxu2 %vm3528_vm3, %v12693_v55  ;;  %9227 = vmatmul.msk.bf16.vlgmr.msrb.gmra.mxu3 %vm3528_vm3, %v12693_v55 }
 0xcc4   : > { %9236 = vmatmul.msk.bf16.vlgmr.msra.gmra.mxu0 %vm3528_vm3, %v12693_v55  ;;  %9245 = vmatmul.msk.bf16.vlgmr.msra.gmra.mxu1 %vm3528_vm3, %v12693_v55 }
 0xcc5   : > { %v5810_v36 = vpop.f32.mrf.mxu3 }
 0xcc6   : > { %v5836_v6 = vsel %vm3528_vm3, %v5810_v36, 0.0  ;;  %v5834_v49 = vpop.f32.mrf.mxu0 }
 0xcc7   : > { %v5838_v1 = vadd.f32 %v5837_v0, %v5836_v6 }
 0xcc9   : > { %v5861_v3 = vadd.f32 %v5860_v28, %v5838_v1  ;;  %v10165_v28 = vld [vmem:[%s13519_s1] ss:$0 sm:$0xff]  ;;  %s13525_s1 = smov %s13524_s22 }
 0xccb   : > { %v12721_v4 = vadd.f32 %v10158_v2, %v5861_v3 }
 0xccd   : > { %v5872_v5 = vadd.f32 %v12721_v4, %v12326_v11  ;;  %v5812_v7 = vpop.f32.mrf.mxu3  ;;  %v10159_v11 = vld [vmem:[%s13516_s26 + $0x2] ss:$0 sm:$0xff]  ;;  %s13522_s26 = sld [smem:[#allocation103_spill]] }
 0xccf   : > { %v12726_v13 = vadd.f32 %v5872_v5, %v12187_v42 }
 0xcd1   : > { %v12730_v52 = vpack.c.bf16 %v12726_v13, %v12726_v13 }
 0xcd3   : > { %9254 = vmatmul.msk.bf16.vlgmr.msra.gmra.mxu2 %vm3528_vm3, %v12730_v52  ;;  %9263 = vmatmul.msk.bf16.vlgmr.msra.gmra.mxu3 %vm3528_vm3, %v12730_v52 }
 0xcd4   : > { %9272 = vmatmul.msk.bf16.vlgmr.msrb.gmra.mxu0 %vm3528_vm3, %v12730_v52  ;;  %9281 = vmatmul.msk.bf16.vlgmr.msrb.gmra.mxu1 %vm3528_vm3, %v12730_v52 }
 0xd31   : > { %v5961_v42 = vpop.f32.mrf.mxu0  ;;  %v5986_v14 = vpop.f32.mrf.mxu1 }
 0xd32   : > { %v5962_v62 = vadd.f32 %v10159_v11, %v5961_v42  ;;  %v5987_v9 = vadd.f32 %v10160_v37, %v5986_v14 }
 0xd34   : > { %v5992_v18 = vmul.f32 %v12214_v50, %v5962_v62  ;;  %v5993_v19 = vmul.f32 %v12214_v50, %v5987_v9 }
 0xd36   : > { %v6240_v20 = vpack.c.bf16 %v5992_v18, %v5992_v18  ;;  %v6241_v44 = vpack.c.bf16 %v5993_v19, %v5993_v19  ;;  %v5911_v46 = vpop.f32.mrf.mxu2  ;;  %v5936_v23 = vpop.f32.mrf.mxu3 }
 0xd37   : > { %v5912_v24 = vadd.f32 %v10161_v10, %v5911_v46  ;;  %v5937_v25 = vadd.f32 %v10162_v17, %v5936_v23  ;;  %v10167_v10 = vld [vmem:[%s13520_s9 + $0x2] ss:$0 sm:$0xff]  ;;  %v10168_v17 = vld [vmem:[%s13521_s0 + $0x3] ss:$0 sm:$0xff]  ;;  %v10169_v46 = vld [vmem:[%s13521_s0] ss:$0 sm:$0xff] }
 0xd38   : > { %v6284_v30 = vsel %vm3872_vm5, %v6240_v20, 0  ;;  %v6303_v31 = vsel %vm3872_vm5, %v6241_v44, 0  ;;  %v10170_v23 = vld [vmem:[%s13521_s0 + $0x1] ss:$0 sm:$0xff]  ;;  %s13523_s0 = smov %s13522_s26  ;;  %s13526_s9 = sld [smem:[#allocation110_spill]] }
 0xd39   : > { %v5990_v32 = vmul.f32 %v12214_v50, %v5912_v24  ;;  %v5991_v33 = vmul.f32 %v12214_v50, %v5937_v25  ;;  %v5963_v34 = vpop.f32.mrf.mxu0  ;;  %v5988_v35 = vpop.f32.mrf.mxu1  ;;  %6293 = vmatpush.bf16.xpose.msra.mxu0 %v6284_v30  ;;  %6312 = vmatpush.bf16.xpose.msra.mxu1 %v6303_v31 }
 0xd3b   : > { %v6238_v38 = vpack.c.bf16 %v5990_v32, %v5990_v32  ;;  %v6239_v39 = vpack.c.bf16 %v5991_v33, %v5991_v33 }
 0xd3d   : > { %v6246_v40 = vsel %vm3872_vm5, %v6238_v38, 0  ;;  %v6265_v21 = vsel %vm3872_vm5, %v6239_v39, 0 }
 0xd3e   : > { %v5913_v48 = vpop.f32.mrf.mxu2  ;;  %v5938_v43 = vpop.f32.mrf.mxu3  ;;  %6255 = vmatpush.bf16.xpose.msrb.mxu2 %v6246_v40  ;;  %6274 = vmatpush.bf16.xpose.msrb.mxu3 %v6265_v21  ;;  %s13527_s2 = smov %s13526_s9 }
 0xd41   : > { %v6077_v16 = vpop.f32.mrf.mxu0  ;;  %v6102_v56 = vpop.f32.mrf.mxu1 }
 0xd42   : > { %v6078_v57 = vadd.f32 %v10163_v22, %v6077_v16  ;;  %v6103_v58 = vadd.f32 %v10164_v8, %v6102_v56 }
 0xd44   : > { %v6108_v59 = vmul.f32 %v12214_v50, %v6078_v57  ;;  %v6109_v60 = vmul.f32 %v12214_v50, %v6103_v58 }
 0xd46   : > { %v6372_v61 = vpack.c.bf16 %v6108_v59, %v6108_v59  ;;  %v6373_v45 = vpack.c.bf16 %v6109_v60, %v6109_v60  ;;  %v6027_v41 = vpop.f32.mrf.mxu2  ;;  %v6052_v36 = vpop.f32.mrf.mxu3 }
 0xd47   : > { %v6028_v0 = vadd.f32 %v10165_v28, %v6027_v41  ;;  %v6053_v6 = vadd.f32 %v10166_v26, %v6052_v36 }
 0xd48   : > { %v6416_v49 = vsel %vm4011_vm6, %v6372_v61, 0  ;;  %v6435_v1 = vsel %vm4011_vm6, %v6373_v45, 0 }
 0xd49   : > { %v6106_v2 = vmul.f32 %v12214_v50, %v6028_v0  ;;  %v6107_v3 = vmul.f32 %v12214_v50, %v6053_v6  ;;  %v6079_v5 = vpop.f32.mrf.mxu0  ;;  %v6104_v7 = vpop.f32.mrf.mxu1  ;;  %6425 = vmatpush.bf16.msrb.mxu0 %v6416_v49  ;;  %6444 = vmatpush.bf16.msrb.mxu1 %v6435_v1 }
 0xd4b   : > { %v6370_v11 = vpack.c.bf16 %v6106_v2, %v6106_v2  ;;  %v6371_v37 = vpack.c.bf16 %v6107_v3, %v6107_v3 }
 0xd4d   : > { %v6378_v42 = vsel %vm4011_vm6, %v6370_v11, 0  ;;  %v6397_v14 = vsel %vm4011_vm6, %v6371_v37, 0 }
 0xd4e   : > { %v6029_v62 = vpop.f32.mrf.mxu2  ;;  %v6054_v9 = vpop.f32.mrf.mxu3  ;;  %6387 = vmatpush.bf16.msra.mxu2 %v6378_v42  ;;  %6406 = vmatpush.bf16.msra.mxu3 %v6397_v14 }
 0xd51   : > { %v6197_v18 = vpop.f32.mrf.mxu0  ;;  %v6222_v19 = vpop.f32.mrf.mxu1 }
 0xd52   : > { %v6198_v20 = vadd.f32 %v10167_v10, %v6197_v18  ;;  %v6223_v44 = vadd.f32 %v10168_v17, %v6222_v19 }
 0xd54   : > { %v6228_v24 = vmul.f32 %v12248_v53, %v6198_v20  ;;  %v6229_v25 = vmul.f32 %v12248_v53, %v6223_v44 }
 0xd56   : > { %v6232_v30 = vmul.f32 0.35355338, %v6228_v24  ;;  %v6233_v31 = vmul.f32 0.35355338, %v6229_v25  ;;  %v6147_v32 = vpop.f32.mrf.mxu2  ;;  %v6172_v33 = vpop.f32.mrf.mxu3 }
 0xd57   : > { %v6148_v34 = vadd.f32 %v10169_v46, %v6147_v32  ;;  %v6173_v35 = vadd.f32 %v10170_v23, %v6172_v33 }
 0xd58   : > { %v6236_v38 = vpack.c.bf16 %v6232_v30, %v6232_v30  ;;  %v6237_v39 = vpack.c.bf16 %v6233_v31, %v6233_v31 }
 0xd59   : > { %v6226_v40 = vmul.f32 %v12248_v53, %v6148_v34  ;;  %v6227_v21 = vmul.f32 %v12248_v53, %v6173_v35  ;;  %v6199_v48 = vpop.f32.mrf.mxu0  ;;  %v6224_v43 = vpop.f32.mrf.mxu1 }
 0xd5a   : > { %9284 = vmatmul.msk.bf16.vlgmr.msra.gmra.mxu0 %vm3872_vm5, %v6236_v38  ;;  %9285 = vmatmul.msk.bf16.vlgmr.msra.gmra.mxu1 %vm3872_vm5, %v6237_v39 }
 0xd5b   : > { %v6230_v22 = vmul.f32 0.35355338, %v6226_v40  ;;  %v6231_v8 = vmul.f32 0.35355338, %v6227_v21 }
 0xd5d   : > { %v6234_v16 = vpack.c.bf16 %v6230_v22, %v6230_v22  ;;  %v6235_v56 = vpack.c.bf16 %v6231_v8, %v6231_v8 }
 0xd5e   : > { %v6149_v57 = vpop.f32.mrf.mxu2  ;;  %v6174_v58 = vpop.f32.mrf.mxu3 }
 0xd5f   : > { %9282 = vmatmul.msk.bf16.vlgmr.msrb.gmra.mxu2 %vm3872_vm5, %v6234_v16  ;;  %9283 = vmatmul.msk.bf16.vlgmr.msrb.gmra.mxu3 %vm3872_vm5, %v6235_v56 }
 0xdd7   : > { %v6295_v28 = vpop.f32.mrf.mxu0  ;;  %v6314_v26 = vpop.f32.mrf.mxu1 }
 0xdd8   : > { %v6320_v59 = vsel %vm12266_vm8, %v6295_v28, -1e+30  ;;  %v6321_v2 = vsel %vm12266_vm8, %v6314_v26, -1e+30 }
 0xdd9   : > { %v6328_v60 = vsel %vm3955_vm9, %v6320_v59, -inf  ;;  %v6331_v7 = vsel %vm3955_vm9, %v6321_v2, -inf }
 0xdda   : > { %6329 = vmax.xlane.f32.xlu2 %v6328_v60 }
 0xddf   : > { %v6297_v61 = vpop.f32.mrf.mxu0  ;;  %v6316_v45 = vpop.f32.mrf.mxu1 }
 0xde0   : > { %v3214_v61 = vld [vmem:[%s13523_s0] sm:$0xf] }
 0xde1   : > { %v6458_v45 = vsel %vm3486_vm1, %v3214_v61, 0  ;;  %v10171_v61 = vld [vmem:[#allocation22] ss:$0 sm:$0xff] }
 0xde2   : > { %v6257_v41 = vpop.f32.mrf.mxu2  ;;  %v6276_v36 = vpop.f32.mrf.mxu3  ;;  %6467 = vmatpush.bf16.msrb.mxu2 %v6458_v45 }
 0xde3   : > { %v6318_v0 = vsel %vm12266_vm8, %v6257_v41, -1e+30  ;;  %v6319_v6 = vsel %vm12266_vm8, %v6276_v36, -1e+30  ;;  %v3215_v41 = vld [vmem:[%s13523_s0 + $0x4] sm:$0xf] }
 0xde4   : > { %v6325_v49 = vsel %vm3955_vm9, %v6319_v6, -inf  ;;  %v6322_v1 = vsel %vm3955_vm9, %v6318_v0, -inf  ;;  %v6477_v36 = vsel %vm3486_vm1, %v3215_v41, 0 }
 0xde5   : > { %6326 = vmax.xlane.f32.xlu1 %v6325_v49  ;;  %6323 = vmax.xlane.f32.xlu0 %v6322_v1  ;;  %v9731_v49 = vld [vmem:[%s13524_s22 + $0x8] sm:$0xff]  ;;  %v9730_v1 = vld [vmem:[%s13525_s1] sm:$0xff]  ;;  %s13530_s22 = sld [smem:[#allocation113_spill]] }
 0xde6   : > { %6486 = vmatpush.bf16.msrb.mxu3 %v6477_v36  ;;  %v5869_v36 = vadd.f32 %v12721_v4, %v12330_v12 }
 0xdea   : > { %v6259_v3 = vpop.f32.mrf.mxu2  ;;  %v6278_v5 = vpop.f32.mrf.mxu3 }
 0xdeb   : > { %s13531_s1 = smov %s13530_s22 }
 0xdec   : > { %v9758_v12 = vld [vmem:[%s13531_s1] sm:$0xff]  ;;  %v9760_v4 = vld [vmem:[%s13531_s1 + $0x10] sm:$0xff] }
 0xded   : > { %6332 = vmax.xlane.f32.xlu0 %v6331_v7 }
 0xe4d   : > { %v6330_v11 = vpop.xlane.xlu2 %6329 }
 0xe4e   : > { %v6336_v37 = vsub.f32 %v6320_v59, %v6330_v11  ;;  %v3216_v59 = vld [vmem:[%s13522_s26 + $0x8] sm:$0xf]  ;;  %s13528_s26 = sld [smem:[#allocation114_spill]] }
 0xe4f   : > { %v6496_v60 = vsel %vm3486_vm1, %v3216_v59, 0 }
 0xe50   : > { %v6342_v42 = vmul.f32 1.442695, %v6336_v37  ;;  %6505 = vmatpush.bf16.msra.mxu0 %v6496_v60 }
 0xe52   : > { %10267 = vpow2.f32 %v6342_v42 }
 0xe58   : > { %v10268_v14 = vpop.eup %10267  ;;  %v6327_v62 = vpop.xlane.xlu1 %6326 }
 0xe59   : > { %v6324_v9 = vpop.xlane.xlu0 %6323  ;;  %v6335_v10 = vsub.f32 %v6319_v6, %v6327_v62  ;;  %v6352_v18 = vsel %vm3955_vm9, %v10268_v14, 0.0 }
 0xe5a   : > { %v6334_v17 = vsub.f32 %v6318_v0, %v6324_v9  ;;  %6353 = vadd.xlane.f32.xlu0 %v6352_v18  ;;  %v3217_v0 = vld [vmem:[%s13523_s0 + $0xc] sm:$0xf]  ;;  %s13529_s0 = smov %s13528_s26 }
 0xe5b   : > { %v6340_v19 = vmul.f32 1.442695, %v6335_v10  ;;  %v6515_v6 = vsel %vm3486_vm1, %v3217_v0, 0 }
 0xe5c   : > { %v6338_v20 = vmul.f32 1.442695, %v6334_v17  ;;  %6524 = vmatpush.bf16.msra.mxu1 %v6515_v6 }
 0xe5d   : > { %10269 = vpow2.f32 %v6340_v19 }
 0xe5e   : > { %10271 = vpow2.f32 %v6338_v20  ;;  %v9749_v20 = vld [vmem:[%s13526_s9 + $0x8] sm:$0xff]  ;;  %s13532_s9 = sld [smem:[#allocation106_spill]] }
 0xe61   : > { %v6333_v44 = vpop.xlane.xlu0 %6332 }
 0xe62   : > { %v6337_v46 = vsub.f32 %v6321_v2, %v6333_v44  ;;  %v9751_v44 = vld [vmem:[%s13527_s2 + $0x18] sm:$0xff] }
 0xe63   : > { %v10270_v23 = vpop.eup %10269 }
 0xe64   : > { %v6344_v24 = vmul.f32 1.442695, %v6337_v46  ;;  %v10272_v25 = vpop.eup %10271  ;;  %v6349_v30 = vsel %vm3955_vm9, %v10270_v23, 0.0  ;;  %v9753_v46 = vld [vmem:[%s13527_s2 + $0x28] sm:$0xff] }
 0xe65   : > { %v6346_v31 = vsel %vm3955_vm9, %v10272_v25, 0.0  ;;  %6350 = vadd.xlane.f32.xlu2 %v6349_v30  ;;  %v9752_v30 = vld [vmem:[%s13527_s2 + $0x20] sm:$0xff] }
 0xe66   : > { %10273 = vpow2.f32 %v6344_v24  ;;  %6347 = vadd.xlane.f32.xlu1 %v6346_v31  ;;  %v9748_v24 = vld [vmem:[%s13527_s2] sm:$0xff]  ;;  %v9754_v31 = vld [vmem:[%s13527_s2 + $0x30] sm:$0xff] }
 0xe6c   : > { %v10274_v32 = vpop.eup %10273 }
 0xe6d   : > { %v6355_v33 = vsel %vm3955_vm9, %v10274_v32, 0.0 }
 0xe6e   : > { %6356 = vadd.xlane.f32.xlu1 %v6355_v33 }
 0xecd   : > { %v6354_v34 = vpop.xlane.xlu0 %6353 }
 0xece   : > { %10275 = vrcp.f32 %v6354_v34  ;;  %v9767_v34 = vld [vmem:[%s13528_s26 + $0x8] sm:$0xff]  ;;  %s13534_s26 = sld [smem:[#allocation109_spill]] }
 0xed4   : > { %v10276_v35 = vpop.eup %10275 }
 0xed5   : > { %v6364_v38 = vmul.f32 %v10276_v35, %v10268_v14  ;;  %v9769_v35 = vld [vmem:[%s13529_s0 + $0x18] sm:$0xff] }
 0xed7   : > { %v6368_v39 = vpack.c.bf16 %v6364_v38, %v6364_v38  ;;  %v9771_v38 = vld [vmem:[%s13529_s0 + $0x28] sm:$0xff] }
 0xed8   : > { %v6351_v40 = vpop.xlane.xlu2 %6350 }
 0xed9   : > { %v6348_v21 = vpop.xlane.xlu1 %6347  ;;  %9288 = vmatmul.msk.bf16.vlgmr.msrb.gmra.mxu0 %vm3955_vm9, %v6368_v39  ;;  %10277 = vrcp.f32 %v6351_v40  ;;  %v9773_v39 = vld [vmem:[%s13529_s0 + $0x38] sm:$0xff] }
 0xeda   : > { %10279 = vrcp.f32 %v6348_v21  ;;  %6626 = vmatpush.bf16.msrb.mxu0 %v9751_v44 }
 0xedf   : > { %v10278_v48 = vpop.eup %10277 }
 0xee0   : > { %v10280_v43 = vpop.eup %10279  ;;  %v6363_v22 = vmul.f32 %v10278_v48, %v10270_v23  ;;  %v9755_v23 = vld [vmem:[%s13527_s2 + $0x38] sm:$0xff] }
 0xee1   : > { %v6362_v8 = vmul.f32 %v10280_v43, %v10272_v25  ;;  %v6357_v16 = vpop.xlane.xlu1 %6356  ;;  %v9750_v25 = vld [vmem:[%s13527_s2 + $0x10] sm:$0xff]  ;;  %v9766_v43 = vld [vmem:[%s13529_s0] sm:$0xff] }
 0xee2   : > { %v6367_v56 = vpack.c.bf16 %v6363_v22, %v6363_v22  ;;  %10281 = vrcp.f32 %v6357_v16  ;;  %6627 = vmatpush.bf16.msrb.mxu0 %v9750_v25  ;;  %v9768_v22 = vld [vmem:[%s13529_s0 + $0x10] sm:$0xff] }
 0xee3   : > { %v6366_v57 = vpack.c.bf16 %v6362_v8, %v6362_v8  ;;  %v9770_v8 = vld [vmem:[%s13529_s0 + $0x20] sm:$0xff]  ;;  %v9772_v16 = vld [vmem:[%s13529_s0 + $0x30] sm:$0xff]  ;;  %s13533_s0 = smov %s13532_s9 }
 0xee4   : > { %9287 = vmatmul.msk.bf16.vlgmr.msra.gmra.mxu3 %vm3955_vm9, %v6367_v56  ;;  %v10175_v44 = vld [vmem:[%s13533_s0 + $0x3] ss:$0 sm:$0xff] }
 0xee5   : > { %9286 = vmatmul.msk.bf16.vlgmr.msra.gmra.mxu2 %vm3955_vm9, %v6366_v57  ;;  %6601 = vmatpush.bf16.msra.mxu3 %v9749_v20 }
 0xee6   : > { %6555 = vmatpush.bf16.msra.mxu2 %v9731_v49 }
 0xee8   : > { %v10282_v58 = vpop.eup %10281 }
 0xee9   : > { %v6365_v28 = vmul.f32 %v10282_v58, %v10274_v32  ;;  %6602 = vmatpush.bf16.msra.mxu3 %v9748_v24 }
 0xeea   : > { %6556 = vmatpush.bf16.msra.mxu2 %v9730_v1 }
 0xeeb   : > { %v6369_v26 = vpack.c.bf16 %v6365_v28, %v6365_v28 }
 0xeed   : > { %9289 = vmatmul.msk.bf16.vlgmr.msrb.gmra.mxu1 %vm3955_vm9, %v6369_v26 }
 0xeee   : > { %6651 = vmatpush.bf16.msrb.mxu1 %v9753_v46 }
 0xef2   : > { %6652 = vmatpush.bf16.msrb.mxu1 %v9752_v30 }
 0xf56   : > { %v6427_v2 = vpop.f32.mrf.mxu0 }
 0xf57   : > { %v6452_v3 = vpack.c.bf16 %v6427_v2, %v6427_v2  ;;  %v9759_v2 = vld [vmem:[%s13530_s22 + $0x8] sm:$0xff]  ;;  %s13536_s22 = sld [smem:[#allocation108_spill]] }
 0xf59   : > { %9292 = vmatmul.msk.bf16.vlgmr.msra.gmra.mxu0 %vm3872_vm5, %v6452_v3  ;;  %v9761_v3 = vld [vmem:[%s13531_s1 + $0x18] sm:$0xff] }
 0xf5a   : > { %6742 = vmatpush.bf16.msra.mxu0 %v9769_v35 }
 0xf5e   : > { %v6429_v5 = vpop.f32.mrf.mxu0  ;;  %6743 = vmatpush.bf16.msra.mxu0 %v9768_v22 }
 0xf67   : > { %v6408_v7 = vpop.f32.mrf.mxu3 }
 0xf68   : > { %v6389_v11 = vpop.f32.mrf.mxu2  ;;  %v6451_v37 = vpack.c.bf16 %v6408_v7, %v6408_v7  ;;  %v9763_v7 = vld [vmem:[%s13531_s1 + $0x28] sm:$0xff] }
 0xf69   : > { %v6450_v42 = vpack.c.bf16 %v6389_v11, %v6389_v11  ;;  %v9765_v11 = vld [vmem:[%s13531_s1 + $0x38] sm:$0xff] }
 0xf6a   : > { %v6446_v14 = vpop.f32.mrf.mxu1  ;;  %9291 = vmatmul.msk.bf16.vlgmr.msrb.gmra.mxu3 %vm3872_vm5, %v6451_v37  ;;  %v9764_v37 = vld [vmem:[%s13531_s1 + $0x30] sm:$0xff] }
 0xf6b   : > { %v6453_v62 = vpack.c.bf16 %v6446_v14, %v6446_v14  ;;  %9290 = vmatmul.msk.bf16.vlgmr.msrb.gmra.mxu2 %vm3872_vm5, %v6450_v42  ;;  %6717 = vmatpush.bf16.msrb.mxu3 %v9767_v34  ;;  %v10172_v42 = vld [vmem:[%s13532_s9 + $0x1] ss:$0 sm:$0xff]  ;;  %v10173_v14 = vld [vmem:[%s13533_s0 + $0x2] ss:$0 sm:$0xff]  ;;  %s13545_s9 = sld [smem:[#allocation112_spill]] }
 0xf6c   : > { %6676 = vmatpush.bf16.msrb.mxu2 %v9755_v23 }
 0xf6d   : > { %9293 = vmatmul.msk.bf16.vlgmr.msra.gmra.mxu1 %vm3872_vm5, %v6453_v62 }
 0xf6e   : > { %6767 = vmatpush.bf16.msra.mxu1 %v9771_v38 }
 0xf6f   : > { %v6410_v9 = vpop.f32.mrf.mxu3  ;;  %6718 = vmatpush.bf16.msrb.mxu3 %v9766_v43 }
 0xf70   : > { %v6391_v10 = vpop.f32.mrf.mxu2  ;;  %6677 = vmatpush.bf16.msrb.mxu2 %v9754_v31 }
 0xf72   : > { %v6448_v17 = vpop.f32.mrf.mxu1  ;;  %6768 = vmatpush.bf16.msra.mxu1 %v9770_v8 }
 0xf7b   : > { %9302 = vmatmul.msk.bf16.vlgmr.msra.gmra.mxu2 %vm3528_vm3, %v12730_v52 }
 0xf7c   : > { %6792 = vmatpush.bf16.msra.mxu2 %v9773_v39 }
 0xf80   : > { %6793 = vmatpush.bf16.msra.mxu2 %v9772_v16 }
 0xfd6   : > { %v6507_v18 = vpop.f32.mrf.mxu0 }
 0xfd7   : > { %v6533_v28 = vsel %vm3528_vm3, %v6507_v18, 0.0 }
 0xfde   : > { %v6509_v19 = vpop.f32.mrf.mxu0 }
 0xfdf   : > { %v10174_v19 = vld [vmem:[%s13533_s0] ss:$0 sm:$0xff]  ;;  %s13537_s0 = smov %s13536_s22 }
 0xfea   : > { %v6526_v52 = vpop.f32.mrf.mxu1 }
 0xfeb   : > { %v6535_v59 = vsel %vm3528_vm3, %v6526_v52, 0.0 }
 0xfed   : > { %v6488_v32 = vpop.f32.mrf.mxu3 }
 0xfee   : > { %v6469_v33 = vpop.f32.mrf.mxu2  ;;  %v6531_v21 = vsel %vm3528_vm3, %v6488_v32, 0.0 }
 0xfef   : > { %v6530_v40 = vsel %vm3528_vm3, %v6469_v33, 0.0 }
 0xff0   : > { %v6532_v56 = vadd.f32 %v6531_v21, %v6530_v40 }
 0xff2   : > { %v6528_v48 = vpop.f32.mrf.mxu1  ;;  %v6534_v26 = vadd.f32 %v6533_v28, %v6532_v56 }
 0xff3   : > { %v10176_v48 = vld [vmem:[%s13534_s26 + $0x1] ss:$0 sm:$0xff] }
 0xff4   : > { %v6536_v60 = vadd.f32 %v6535_v59, %v6534_v26 }
 0xff5   : > { %v6490_v57 = vpop.f32.mrf.mxu3 }
 0xff6   : > { %v6471_v58 = vpop.f32.mrf.mxu2 }
 0xffe   : > { %v6558_v45 = vpop.f32.mrf.mxu2 }
 0xfff   : > { %v6559_v41 = vadd.f32 %v6558_v45, %v6536_v60 }
0x1001   : > { %v6565_v0 = vadd.f32 %v10171_v61, %v6559_v41 }
0x1003   : > { %v12835_v6 = vadd.f32 %v6565_v0, %v12726_v13  ;;  %v12837_v49 = vadd.f32 %v6565_v0, %v5869_v36  ;;  %v9762_v13 = vld [vmem:[%s13531_s1 + $0x20] sm:$0xff]  ;;  %s13535_s1 = smov %s13534_s26  ;;  %s13547_s26 = sld [smem:[#allocation111_spill]] }
0x1004   : > { %v10177_v8 = vld [vmem:[%s13535_s1 + $0x2] ss:$0 sm:$0xff]  ;;  %v10178_v59 = vld [vmem:[%s13535_s1] ss:$0 sm:$0xff]  ;;  %v10179_v61 = vld [vmem:[%s13535_s1 + $0x3] ss:$0 sm:$0xff] }
0x1005   : > { %v12841_v1 = vpack.c.bf16 %v12835_v6, %v12835_v6 }
0x1006   : > { %v6560_v5 = vpop.f32.mrf.mxu2 }
0x1007   : > { %9311 = vmatmul.msk.bf16.vlgmr.msra.gmra.mxu3 %vm3528_vm3, %v12841_v1  ;;  %9320 = vmatmul.msk.bf16.vlgmr.msrb.gmra.mxu0 %vm3528_vm3, %v12841_v1 }
0x1008   : > { %9329 = vmatmul.msk.bf16.vlgmr.msrb.gmra.mxu1 %vm3528_vm3, %v12841_v1  ;;  %9338 = vmatmul.msk.bf16.vlgmr.msrb.gmra.mxu2 %vm3528_vm3, %v12841_v1 }
0x1009   : > { %6833 = vmatpush.bf16.msra.mxu3 %v9759_v2  ;;  %6858 = vmatpush.bf16.msrb.mxu0 %v9761_v3  ;;  %s13548_s1 = smov %s13547_s26 }
0x100a   : > { %6883 = vmatpush.bf16.msrb.mxu1 %v9763_v7  ;;  %6908 = vmatpush.bf16.msrb.mxu2 %v9765_v11 }
0x100d   : > { %6834 = vmatpush.bf16.msra.mxu3 %v9758_v12  ;;  %6859 = vmatpush.bf16.msrb.mxu0 %v9760_v4 }
0x100e   : > { %6884 = vmatpush.bf16.msrb.mxu1 %v9762_v13  ;;  %6909 = vmatpush.bf16.msrb.mxu2 %v9764_v37 }
0x1017   : > { %9347 = vmatmul.msk.bf16.vlgmr.msrb.gmra.mxu3 %vm3528_vm3, %v12841_v1  ;;  %9356 = vmatmul.msk.bf16.vlgmr.msra.gmra.mxu0 %vm3528_vm3, %v12841_v1 }
0x1018   : > { %9365 = vmatmul.msk.bf16.vlgmr.msra.gmra.mxu1 %vm3528_vm3, %v12841_v1  ;;  %9374 = vmatmul.msk.bf16.vlgmr.msra.gmra.mxu2 %vm3528_vm3, %v12841_v1 }
0x1027   : > { %9383 = vmatmul.msk.bf16.vlgmr.msra.gmra.mxu3 %vm3528_vm3, %v12693_v55  ;;  %9392 = vmatmul.msk.bf16.vlgmr.msrb.gmra.mxu0 %vm3528_vm3, %v12693_v55 }
0x1028   : > { %9401 = vmatmul.msk.bf16.vlgmr.msrb.gmra.mxu1 %vm3528_vm3, %v12693_v55  ;;  %9410 = vmatmul.msk.bf16.vlgmr.msrb.gmra.mxu2 %vm3528_vm3, %v12693_v55 }
0x1084   : > { %v6629_v62 = vpop.f32.mrf.mxu0 }
0x1085   : > { %v6630_v9 = vadd.f32 %v10172_v42, %v6629_v62  ;;  %v6654_v10 = vpop.f32.mrf.mxu1  ;;  %v10180_v62 = vld [vmem:[%s13536_s22 + $0x1] ss:$0 sm:$0xff]  ;;  %s13549_s22 = sld [smem:[#allocation129_spill]] }
0x1086   : > { %v6655_v17 = vadd.f32 %v10173_v14, %v6654_v10 }
0x1087   : > { %v6684_v18 = vmul.f32 %v12248_v53, %v6630_v9 }
0x1088   : > { %v6685_v20 = vmul.f32 %v12248_v53, %v6655_v17  ;;  %v10181_v17 = vld [vmem:[%s13537_s0 + $0x2] ss:$0 sm:$0xff] }
0x1089   : > { %v6928_v46 = vpack.c.bf16 %v6684_v18, %v6684_v18 }
0x108a   : > { %v6929_v23 = vpack.c.bf16 %v6685_v20, %v6685_v20  ;;  %v6604_v24 = vpop.f32.mrf.mxu3 }
0x108b   : > { %v6605_v25 = vadd.f32 %v10174_v19, %v6604_v24  ;;  %v6679_v30 = vpop.f32.mrf.mxu2  ;;  %v6954_v31 = vsel %vm3872_vm5, %v6928_v46, 0  ;;  %v10182_v24 = vld [vmem:[%s13537_s0] ss:$0 sm:$0xff]  ;;  %s13550_s2 = smov %s13549_s22 }
0x108c   : > { %v6680_v52 = vadd.f32 %v10175_v44, %v6679_v30  ;;  %v6631_v32 = vpop.f32.mrf.mxu0  ;;  %6963 = vmatpush.bf16.xpose.msra.mxu0 %v6954_v31  ;;  %v6973_v33 = vsel %vm3872_vm5, %v6929_v23, 0  ;;  %v10183_v30 = vld [vmem:[%s13537_s0 + $0x3] ss:$0 sm:$0xff]  ;;  %s13546_s0 = smov %s13545_s9 }
0x108d   : > { %v6683_v34 = vmul.f32 %v12248_v53, %v6605_v25  ;;  %v6656_v35 = vpop.f32.mrf.mxu1  ;;  %6982 = vmatpush.bf16.xpose.msra.mxu1 %v6973_v33 }
0x108e   : > { %v6686_v38 = vmul.f32 %v12248_v53, %v6680_v52 }
0x108f   : > { %v6927_v39 = vpack.c.bf16 %v6683_v34, %v6683_v34 }
0x1090   : > { %v6930_v40 = vpack.c.bf16 %v6686_v38, %v6686_v38 }
0x1091   : > { %v6935_v21 = vsel %vm3872_vm5, %v6927_v39, 0 }
0x1092   : > { %v6606_v43 = vpop.f32.mrf.mxu3  ;;  %6944 = vmatpush.bf16.xpose.msrb.mxu3 %v6935_v21  ;;  %v6992_v22 = vsel %vm3872_vm5, %v6930_v40, 0 }
0x1093   : > { %v6681_v16 = vpop.f32.mrf.mxu2  ;;  %7001 = vmatpush.bf16.xpose.msra.mxu2 %v6992_v22 }
0x1094   : > { %v6745_v56 = vpop.f32.mrf.mxu0 }
0x1095   : > { %v6746_v57 = vadd.f32 %v10176_v48, %v6745_v56  ;;  %v6770_v58 = vpop.f32.mrf.mxu1 }
0x1096   : > { %v6771_v28 = vadd.f32 %v10177_v8, %v6770_v58 }
0x1097   : > { %v6800_v26 = vmul.f32 %v12248_v53, %v6746_v57 }
0x1098   : > { %v6801_v60 = vmul.f32 %v12248_v53, %v6771_v28 }
0x1099   : > { %v7060_v45 = vpack.c.bf16 %v6800_v26, %v6800_v26 }
0x109a   : > { %v7061_v41 = vpack.c.bf16 %v6801_v60, %v6801_v60  ;;  %v6720_v36 = vpop.f32.mrf.mxu3 }
0x109b   : > { %v6721_v0 = vadd.f32 %v10178_v59, %v6720_v36  ;;  %v6795_v2 = vpop.f32.mrf.mxu2  ;;  %v7086_v3 = vsel %vm3486_vm1, %v7060_v45, 0 }
0x109c   : > { %v6796_v5 = vadd.f32 %v10179_v61, %v6795_v2  ;;  %v6747_v7 = vpop.f32.mrf.mxu0  ;;  %7095 = vmatpush.bf16.msrb.mxu0 %v7086_v3  ;;  %v7105_v11 = vsel %vm3486_vm1, %v7061_v41, 0 }
0x109d   : > { %v6799_v12 = vmul.f32 %v12248_v53, %v6721_v0  ;;  %v6772_v4 = vpop.f32.mrf.mxu1  ;;  %7114 = vmatpush.bf16.msrb.mxu1 %v7105_v11 }
0x109e   : > { %v6802_v13 = vmul.f32 %v12248_v53, %v6796_v5 }
0x109f   : > { %v7059_v37 = vpack.c.bf16 %v6799_v12, %v6799_v12 }
0x10a0   : > { %v7062_v42 = vpack.c.bf16 %v6802_v13, %v6802_v13 }
0x10a1   : > { %v7067_v14 = vsel %vm3486_vm1, %v7059_v37, 0 }
0x10a2   : > { %v6722_v9 = vpop.f32.mrf.mxu3  ;;  %7076 = vmatpush.bf16.msra.mxu3 %v7067_v14  ;;  %v7124_v10 = vsel %vm3486_vm1, %v7062_v42, 0 }
0x10a3   : > { %v6797_v18 = vpop.f32.mrf.mxu2  ;;  %7133 = vmatpush.bf16.msrb.mxu2 %v7124_v10 }
0x10a4   : > { %v6861_v19 = vpop.f32.mrf.mxu0 }
0x10a5   : > { %v6862_v20 = vadd.f32 %v10180_v62, %v6861_v19  ;;  %v6886_v44 = vpop.f32.mrf.mxu1 }
0x10a6   : > { %v6887_v46 = vadd.f32 %v10181_v17, %v6886_v44 }
0x10a7   : > { %v6916_v23 = vmul.f32 %v12214_v50, %v6862_v20 }
0x10a8   : > { %v6917_v25 = vmul.f32 %v12214_v50, %v6887_v46 }
0x10a9   : > { %v6920_v31 = vmul.f32 0.35355338, %v6916_v23 }
0x10aa   : > { %v6921_v52 = vmul.f32 0.35355338, %v6917_v25  ;;  %v6836_v32 = vpop.f32.mrf.mxu3 }
0x10ab   : > { %v6924_v33 = vpack.c.bf16 %v6920_v31, %v6920_v31  ;;  %v6837_v34 = vadd.f32 %v10182_v24, %v6836_v32  ;;  %v6911_v35 = vpop.f32.mrf.mxu2 }
0x10ac   : > { %v6925_v38 = vpack.c.bf16 %v6921_v52, %v6921_v52  ;;  %v6912_v39 = vadd.f32 %v10183_v30, %v6911_v35  ;;  %v6863_v40 = vpop.f32.mrf.mxu0 }
0x10ad   : > { %v6915_v21 = vmul.f32 %v12214_v50, %v6837_v34  ;;  %v6888_v48 = vpop.f32.mrf.mxu1  ;;  %9412 = vmatmul.msk.bf16.vlgmr.msra.gmra.mxu0 %vm3872_vm5, %v6924_v33 }
0x10ae   : > { %v6918_v43 = vmul.f32 %v12214_v50, %v6912_v39  ;;  %9413 = vmatmul.msk.bf16.vlgmr.msra.gmra.mxu1 %vm3872_vm5, %v6925_v38 }
0x10af   : > { %v6919_v22 = vmul.f32 0.35355338, %v6915_v21 }
0x10b0   : > { %v6922_v8 = vmul.f32 0.35355338, %v6918_v43 }
0x10b1   : > { %v6923_v16 = vpack.c.bf16 %v6919_v22, %v6919_v22 }
0x10b2   : > { %v6926_v56 = vpack.c.bf16 %v6922_v8, %v6922_v8  ;;  %v6838_v57 = vpop.f32.mrf.mxu3 }
0x10b3   : > { %v6913_v58 = vpop.f32.mrf.mxu2  ;;  %9411 = vmatmul.msk.bf16.vlgmr.msrb.gmra.mxu3 %vm3872_vm5, %v6923_v16 }
0x10b4   : > { %9414 = vmatmul.msk.bf16.vlgmr.msra.gmra.mxu2 %vm3872_vm5, %v6926_v56 }
0x112a   : > { %v6965_v28 = vpop.f32.mrf.mxu0 }
0x112b   : > { %v7008_v26 = vsel %vm12407_vm10, %v6965_v28, -1e+30  ;;  %v6984_v59 = vpop.f32.mrf.mxu1 }
0x112c   : > { %v7014_v60 = vsel %vm13538_vm2, %v7008_v26, -inf  ;;  %v7009_v7 = vsel %vm12407_vm10, %v6984_v59, -1e+30 }
0x112d   : > { %7015 = vmax.xlane.f32.xlu1 %v7014_v60  ;;  %v7017_v4 = vsel %vm13541_vm12, %v7009_v7, -inf  ;;  %v3283_v60 = vld [vmem:[%s13546_s0] sm:$0xf] }
0x1132   : > { %v6967_v61 = vpop.f32.mrf.mxu0 }
0x1133   : > { %v6986_v45 = vpop.f32.mrf.mxu1  ;;  %v7147_v61 = vsel %vm3486_vm1, %v3283_v60, 0 }
0x1134   : > { %7156 = vmatpush.bf16.msrb.mxu3 %v7147_v61  ;;  %v3286_v45 = vld [vmem:[%s13546_s0 + $0xc] sm:$0xf] }
0x1136   : > { %v6946_v41 = vpop.f32.mrf.mxu3 }
0x1137   : > { %v7007_v36 = vsel %vm12407_vm10, %v6946_v41, -1e+30  ;;  %v7003_v0 = vpop.f32.mrf.mxu2  ;;  %v7204_v41 = vsel %vm3486_vm1, %v3286_v45, 0 }
0x1138   : > { %v7010_v2 = vsel %vm12407_vm10, %v7003_v0, -1e+30  ;;  %v7011_v3 = vsel %vm13539_vm4, %v7007_v36, -inf  ;;  %vm13544_vm4 = vmmov %vm13538_vm2  ;;  %7213 = vmatpush.bf16.msra.mxu2 %v7204_v41 }
0x1139   : > { %v7020_v5 = vsel %vm13540_vm7, %v7010_v2, -inf  ;;  %7012 = vmax.xlane.f32.xlu2 %v7011_v3  ;;  %v9803_v3 = vld [vmem:[%s13549_s22 + $0x8] sm:$0xff]  ;;  %s13555_s22 = sld [smem:[#allocation128_spill]] }
0x113a   : > { %7021 = vmax.xlane.f32.xlu0 %v7020_v5  ;;  %v9756_v5 = vld [vmem:[%s13548_s1] sm:$0xff] }
0x113e   : > { %v6948_v11 = vpop.f32.mrf.mxu3 }
0x113f   : > { %v7005_v12 = vpop.f32.mrf.mxu2 }
0x1140   : > { %v7265_v12 = vmul.f32 %v12248_v53, %v12835_v6 }
0x1141   : > { %7018 = vmax.xlane.f32.xlu2 %v7017_v4 }
0x11a0   : > { %v7016_v13 = vpop.xlane.xlu1 %7015 }
0x11a1   : > { %v7024_v37 = vsub.f32 %v7008_v26, %v7016_v13  ;;  %v3284_v26 = vld [vmem:[%s13545_s9 + $0x4] sm:$0xf]  ;;  %v7266_v13 = vsel %vm3528_vm3, %v7265_v12, 0.0  ;;  %s13551_s9 = sld [smem:[#allocation126_spill]] }
0x11a2   : > { %v7166_v59 = vsel %vm3486_vm1, %v3284_v26, 0 }
0x11a3   : > { %v7029_v42 = vmul.f32 1.442695, %v7024_v37  ;;  %7175 = vmatpush.bf16.msra.mxu0 %v7166_v59  ;;  %v7267_v37 = vrot.slane %v7266_v13, 4 }
0x11a5   : > { %10283 = vpow2.f32 %v7029_v42 }
0x11ab   : > { %v10284_v14 = vpop.eup %10283 }
0x11ac   : > { %v7013_v62 = vpop.xlane.xlu2 %7012  ;;  %v7038_v9 = vsel %vm13542_vm14, %v10284_v14, 0.0 }
0x11ad   : > { %v7022_v10 = vpop.xlane.xlu0 %7021  ;;  %v7023_v17 = vsub.f32 %v7007_v36, %v7013_v62  ;;  %7039 = vadd.xlane.f32.xlu2 %v7038_v9  ;;  %v3285_v36 = vld [vmem:[%s13546_s0 + $0x8] sm:$0xf]  ;;  %s13552_s0 = smov %s13551_s9 }
0x11ae   : > { %v7026_v18 = vsub.f32 %v7010_v2, %v7022_v10  ;;  %v7185_v0 = vsel %vm3486_vm1, %v3285_v36, 0  ;;  %v9757_v2 = vld [vmem:[%s13547_s26 + $0x8] sm:$0xff]  ;;  %v9805_v10 = vld [vmem:[%s13550_s2 + $0x18] sm:$0xff]  ;;  %s13553_s26 = sld [smem:[#allocation120_spill]] }
0x11af   : > { %v7027_v19 = vmul.f32 1.442695, %v7023_v17  ;;  %7194 = vmatpush.bf16.msra.mxu1 %v7185_v0 }
0x11b0   : > { %v7033_v20 = vmul.f32 1.442695, %v7026_v18 }
0x11b1   : > { %10285 = vpow2.f32 %v7027_v19 }
0x11b2   : > { %10287 = vpow2.f32 %v7033_v20 }
0x11b4   : > { %v7019_v44 = vpop.xlane.xlu2 %7018  ;;  %s13554_s1 = smov %s13553_s26 }
0x11b5   : > { %v7025_v46 = vsub.f32 %v7009_v7, %v7019_v44  ;;  %v9802_v7 = vld [vmem:[%s13550_s2] sm:$0xff] }
0x11b7   : > { %v10286_v23 = vpop.eup %10285  ;;  %v7031_v24 = vmul.f32 1.442695, %v7025_v46  ;;  %v9804_v46 = vld [vmem:[%s13550_s2 + $0x10] sm:$0xff]  ;;  %s13556_s2 = smov %s13555_s22 }
0x11b8   : > { %v10288_v25 = vpop.eup %10287  ;;  %v7035_v30 = vsel %vm13543_vm11, %v10286_v23, 0.0  ;;  %v9798_v26 = vld [vmem:[%s13556_s2] sm:$0xff]  ;;  %v9800_v59 = vld [vmem:[%s13556_s2 + $0x10] sm:$0xff] }
0x11b9   : > { %10289 = vpow2.f32 %v7031_v24  ;;  %7036 = vadd.xlane.f32.xlu0 %v7035_v30  ;;  %v7044_v31 = vsel %vm13538_vm2, %v10288_v25, 0.0 }
0x11ba   : > { %7045 = vadd.xlane.f32.xlu1 %v7044_v31 }
0x11bf   : > { %v10290_v52 = vpop.eup %10289 }
0x11c0   : > { %v7041_v32 = vsel %vm13544_vm4, %v10290_v52, 0.0 }
0x11c1   : > { %7042 = vadd.xlane.f32.xlu0 %v7041_v32 }
0x1220   : > { %v7040_v33 = vpop.xlane.xlu2 %7039 }
0x1221   : > { %10291 = vrcp.f32 %v7040_v33 }
0x1227   : > { %v10292_v34 = vpop.eup %10291 }
0x1228   : > { %v7052_v35 = vmul.f32 %v10292_v34, %v10284_v14  ;;  %v7268_v14 = vadd.f32 %v7267_v37, %v7266_v13  ;;  %v5868_v13 = vadd.f32 %v12684_v51, %v12486_v27 }
0x122a   : > { %v7056_v38 = vpack.c.bf16 %v7052_v35, %v7052_v35  ;;  %v7269_v62 = vrot.slane %v7268_v14, 2  ;;  %v9791_v35 = vld [vmem:[%s13551_s9 + $0x8] sm:$0xff]  ;;  %s13557_s9 = sld [smem:[#allocation125_spill]] }
0x122c   : > { %v7037_v39 = vpop.xlane.xlu0 %7036  ;;  %9416 = vmatmul.msk.bf16.vlgmr.msrb.gmra.mxu0 %vm3872_vm5, %v7056_v38  ;;  %v7270_v19 = vadd.f32 %v7269_v62, %v7268_v14  ;;  %v9793_v38 = vld [vmem:[%s13552_s0 + $0x18] sm:$0xff] }
0x122d   : > { %10293 = vrcp.f32 %v7037_v39  ;;  %v7046_v40 = vpop.xlane.xlu1 %7045  ;;  %v9790_v39 = vld [vmem:[%s13552_s0] sm:$0xff] }
0x122e   : > { %10295 = vrcp.f32 %v7046_v40 }
0x1230   : > { %v9787_v12 = vld [vmem:[%s13557_s9 + $0x8] sm:$0xff] }
0x1233   : > { %v10294_v21 = vpop.eup %10293 }
0x1234   : > { %v10296_v48 = vpop.eup %10295  ;;  %v7051_v43 = vmul.f32 %v10294_v21, %v10286_v23  ;;  %v7043_v22 = vpop.xlane.xlu0 %7042  ;;  %v7271_v23 = vrot.slane %v7270_v19, 1 }
0x1235   : > { %v7054_v8 = vmul.f32 %v10296_v48, %v10288_v25  ;;  %10297 = vrcp.f32 %v7043_v22  ;;  %v9775_v48 = vld [vmem:[%s13553_s26 + $0x8] sm:$0xff]  ;;  %s13559_s26 = sld [smem:[#allocation122_spill]] }
0x1236   : > { %v7055_v16 = vpack.c.bf16 %v7051_v43, %v7051_v43  ;;  %v7272_v30 = vadd.f32 %v7271_v23, %v7270_v19  ;;  %v9777_v43 = vld [vmem:[%s13554_s1 + $0x18] sm:$0xff]  ;;  %v9799_v22 = vld [vmem:[%s13555_s22 + $0x8] sm:$0xff]  ;;  %s13561_s22 = sld [smem:[#allocation127_spill]] }
0x1237   : > { %v7058_v56 = vpack.c.bf16 %v7054_v8, %v7054_v8  ;;  %v9801_v8 = vld [vmem:[%s13556_s2 + $0x18] sm:$0xff]  ;;  %7296 = vmatpush.bf16.msrb.mxu0 %v9799_v22 }
0x1238   : > { %9415 = vmatmul.msk.bf16.vlgmr.msra.gmra.mxu3 %vm3872_vm5, %v7055_v16 }
0x1239   : > { %9418 = vmatmul.msk.bf16.vlgmr.msrb.gmra.mxu2 %vm3872_vm5, %v7058_v56  ;;  %7244 = vmatpush.bf16.msra.mxu3 %v9757_v2 }
0x123a   : > { %7390 = vmatpush.bf16.msrb.mxu2 %v9803_v3  ;;  %v10184_v3 = vld [vmem:[#allocation23] ss:$0 sm:$0xff] }
0x123b   : > { %v10298_v57 = vpop.eup %10297  ;;  %7297 = vmatpush.bf16.msrb.mxu0 %v9798_v26  ;;  %s13560_s3 = smov %s13559_s26  ;;  %v9783_v62 = vld [vmem:[%s13559_s26 + $0x8] sm:$0xff]  ;;  %s13569_s26 = sld [smem:[#allocation132_spill]] }
0x123c   : > { %v7053_v58 = vmul.f32 %v10298_v57, %v10290_v52  ;;  %v7273_v52 = vmul.f32 %v12454_v47, %v7272_v30  ;;  %v9792_v47 = vld [vmem:[%s13552_s0 + $0x10] sm:$0xff]  ;;  %v9774_v57 = vld [vmem:[%s13554_s1] sm:$0xff]  ;;  %s13558_s0 = smov %s13557_s9  ;;  %s13563_s9 = sld [smem:[#allocation121_spill]] }
0x123d   : > { %7245 = vmatpush.bf16.msra.mxu3 %v9756_v5 }
0x123e   : > { %v7057_v28 = vpack.c.bf16 %v7053_v58, %v7053_v58  ;;  %7391 = vmatpush.bf16.msrb.mxu2 %v9802_v7  ;;  %v7368_v32 = vpack.c.bf16 %v7273_v52, %v7273_v52  ;;  %v9776_v58 = vld [vmem:[%s13554_s1 + $0x10] sm:$0xff]  ;;  %s13562_s1 = smov %s13561_s22 }
0x1240   : > { %9417 = vmatmul.msk.bf16.vlgmr.msrb.gmra.mxu1 %vm3872_vm5, %v7057_v28 }
0x1241   : > { %7321 = vmatpush.bf16.msrb.mxu1 %v9801_v8 }
0x1245   : > { %7322 = vmatpush.bf16.msrb.mxu1 %v9800_v59 }
0x12a9   : > { %v7097_v11 = vpop.f32.mrf.mxu0 }
0x12aa   : > { %v7140_v4 = vpack.c.bf16 %v7097_v11, %v7097_v11 }
0x12ac   : > { %9420 = vmatmul.msk.bf16.vlgmr.msra.gmra.mxu0 %vm3872_vm5, %v7140_v4  ;;  %v9789_v4 = vld [vmem:[%s13558_s0 + $0x18] sm:$0xff] }
0x12ad   : > { %7490 = vmatpush.bf16.msra.mxu0 %v9787_v12  ;;  %v3320_v12 = vld [vmem:[#allocation25 + $0x1] sm:$0x1] }
0x12b1   : > { %v7099_v42 = vpop.f32.mrf.mxu0 }
0x12bb   : > { %v7078_v9 = vpop.f32.mrf.mxu3 }
0x12bc   : > { %v7139_v17 = vpack.c.bf16 %v7078_v9, %v7078_v9  ;;  %v7135_v18 = vpop.f32.mrf.mxu2  ;;  %v9785_v9 = vld [vmem:[%s13560_s3 + $0x18] sm:$0xff] }
0x12bd   : > { %v7142_v20 = vpack.c.bf16 %v7135_v18, %v7135_v18  ;;  %v7116_v44 = vpop.f32.mrf.mxu1 }
0x12be   : > { %v7141_v6 = vpack.c.bf16 %v7116_v44, %v7116_v44  ;;  %9419 = vmatmul.msk.bf16.vlgmr.msrb.gmra.mxu3 %vm3872_vm5, %v7139_v17  ;;  %v9788_v17 = vld [vmem:[%s13558_s0 + $0x10] sm:$0xff]  ;;  %v9782_v44 = vld [vmem:[%s13560_s3] sm:$0xff] }
0x12bf   : > { %9422 = vmatmul.msk.bf16.vlgmr.msra.gmra.mxu2 %vm3872_vm5, %v7142_v20  ;;  %7415 = vmatpush.bf16.msrb.mxu3 %v9805_v10  ;;  %v9786_v10 = vld [vmem:[%s13558_s0] sm:$0xff]  ;;  %s13564_s0 = smov %s13563_s9 }
0x12c0   : > { %9421 = vmatmul.msk.bf16.vlgmr.msra.gmra.mxu1 %vm3872_vm5, %v7141_v6  ;;  %7548 = vmatpush.bf16.msra.mxu2 %v9791_v35  ;;  %v9784_v6 = vld [vmem:[%s13560_s3 + $0x10] sm:$0xff]  ;;  %s13575_s3 = sld [smem:[#allocation131_spill]] }
0x12c1   : > { %7515 = vmatpush.bf16.msra.mxu1 %v9789_v4  ;;  %7491 = vmatpush.bf16.msra.mxu0 %v9786_v10 }
0x12c3   : > { %v7080_v24 = vpop.f32.mrf.mxu3  ;;  %7416 = vmatpush.bf16.msrb.mxu3 %v9804_v46 }
0x12c4   : > { %v7137_v25 = vpop.f32.mrf.mxu2  ;;  %7549 = vmatpush.bf16.msra.mxu2 %v9790_v39  ;;  %v9779_v39 = vld [vmem:[%s13563_s9 + $0x8] sm:$0xff]  ;;  %s13573_s9 = sld [smem:[#allocation130_spill]] }
0x12c5   : > { %v7118_v31 = vpop.f32.mrf.mxu1  ;;  %7516 = vmatpush.bf16.msra.mxu1 %v9788_v17 }
0x12ca   : > { %s13574_s2 = smov %s13573_s9 }
0x12ce   : > { %9431 = vmatmul.msk.bf16.vlgmr.msra.gmra.mxu3 %vm3528_vm3, %v12693_v55 }
0x12cf   : > { %9460 = vmatmul.msk.bf16.vlgmr.msrb.gmra.mxu2 %vm3528_vm3, %v7368_v32  ;;  %7573 = vmatpush.bf16.msra.mxu3 %v9793_v38  ;;  %v9796_v38 = vld [vmem:[%s13562_s1 + $0x10] sm:$0xff] }
0x12d0   : > { %7664 = vmatpush.bf16.msrb.mxu2 %v9775_v48  ;;  %v3322_v48 = vld [vmem:[#allocation26 + $0x1] sm:$0x1] }
0x12d3   : > { %7574 = vmatpush.bf16.msra.mxu3 %v9792_v47  ;;  %v9781_v47 = vld [vmem:[%s13564_s0 + $0x18] sm:$0xff] }
0x12d4   : > { %7665 = vmatpush.bf16.msrb.mxu2 %v9774_v57 }
0x12de   : > { %9469 = vmatmul.msk.bf16.vlgmr.msrb.gmra.mxu3 %vm3528_vm3, %v7368_v32  ;;  %v9795_v32 = vld [vmem:[%s13561_s22 + $0x8] sm:$0xff]  ;;  %s13571_s22 = sld [smem:[#allocation133_spill]] }
0x12df   : > { %7689 = vmatpush.bf16.msrb.mxu3 %v9777_v43 }
0x12e3   : > { %7690 = vmatpush.bf16.msrb.mxu3 %v9776_v58 }
0x1329   : > { %v7177_v33 = vpop.f32.mrf.mxu0 }
0x132a   : > { %v7220_v28 = vsel %vm13326_vm13, %v7177_v33, 0.0  ;;  %v9797_v33 = vld [vmem:[%s13562_s1 + $0x18] sm:$0xff] }
0x1331   : > { %v7179_v34 = vpop.f32.mrf.mxu0 }
0x133d   : > { %v7196_v55 = vpop.f32.mrf.mxu1 }
0x133e   : > { %v7222_v41 = vsel %vm13326_vm13, %v7196_v55, 0.0  ;;  %v9778_v55 = vld [vmem:[%s13564_s0] sm:$0xff] }
0x1341   : > { %v7158_v40 = vpop.f32.mrf.mxu3 }
0x1342   : > { %v7215_v21 = vpop.f32.mrf.mxu2  ;;  %v7219_v16 = vsel %vm13326_vm13, %v7158_v40, 0.0  ;;  %v9780_v40 = vld [vmem:[%s13564_s0 + $0x10] sm:$0xff]  ;;  %s13570_s0 = smov %s13569_s26 }
0x1343   : > { %v7221_v60 = vadd.f32 %v7220_v28, %v7219_v16  ;;  %v7224_v0 = vsel %vm13326_vm13, %v7215_v21, 0.0  ;;  %v3321_v21 = vld [vmem:[#allocation26] sm:$0x1] }
0x1345   : > { %v7198_v56 = vpop.f32.mrf.mxu1  ;;  %v7223_v36 = vadd.f32 %v7222_v41, %v7221_v60 }
0x1347   : > { %v7225_v2 = vadd.f32 %v7224_v0, %v7223_v36 }
0x1349   : > { %v7160_v61 = vpop.f32.mrf.mxu3 }
0x134a   : > { %v7217_v45 = vpop.f32.mrf.mxu2 }
0x1351   : > { %v7247_v5 = vpop.f32.mrf.mxu3 }
0x1352   : > { %v7248_v7 = vadd.f32 %v7247_v5, %v7225_v2  ;;  %v12973_v11 = vpop.f32.mrf.mxu2 }
0x1353   : > { %v7394_v43 = vadd.f32 %v12973_v11, %v3321_v21  ;;  %v3319_v11 = vld [vmem:[#allocation25] sm:$0x1] }
0x1354   : > { %v7254_v37 = vadd.f32 %v10184_v3, %v7248_v7 }
0x1355   : > { %v9470_v8 = vmul.f32 -1.442695, %v7394_v43 }
0x1356   : > { %v7255_v42 = vadd.f32 %v7254_v37, %v12689_v54  ;;  %v12980_v14 = vadd.f32 %v7254_v37, %v5868_v13 }
0x1357   : > { %10299 = vpow2.f32 %v9470_v8 }
0x1358   : > { %v7256_v18 = vmul.f32 %v12214_v50, %v7255_v42  ;;  %v12987_v19 = vpack.c.bf16 %v7255_v42, %v7255_v42 }
0x1359   : > { %v7249_v20 = vpop.f32.mrf.mxu3 }
0x135a   : > { %v7257_v27 = vsel %vm13326_vm13, %v7256_v18, 0.0  ;;  %v7395_v51 = vpop.f32.mrf.mxu2  ;;  %9498 = vmatmul.msk.bf16.vlgmr.msra.gmra.mxu2 %vm3528_vm3, %v12987_v19  ;;  %9507 = vmatmul.msk.bf16.vlgmr.msra.gmra.mxu3 %vm3528_vm3, %v12987_v19 }
0x135b   : > { %v7258_v54 = vrot.slane %v7257_v27, 4  ;;  %7780 = vmatpush.bf16.msra.mxu2 %v9783_v62  ;;  %7805 = vmatpush.bf16.msra.mxu3 %v9785_v9 }
0x135d   : > { %v7259_v46 = vadd.f32 %v7258_v54, %v7257_v27  ;;  %v10300_v56 = vpop.eup %10299 }
0x135e   : > { %v7428_v58 = vadd.f32 1.0, %v10300_v56  ;;  %v10190_v56 = vld [vmem:[#allocation35 + $0x1] ss:$0 sm:$0xff] }
0x135f   : > { %v7260_v23 = vrot.slane %v7259_v46, 2  ;;  %7781 = vmatpush.bf16.msra.mxu2 %v9782_v44  ;;  %7806 = vmatpush.bf16.msra.mxu3 %v9784_v6 }
0x1360   : > { %v7441_v13 = vand.u32 2147483648, %v7428_v58  ;;  %vm7435_vm14 = vweird.f32 %v7428_v58  ;;  %v7439_v17 = vand.u32 2147483647, %v7428_v58 }
0x1361   : > { %v7261_v24 = vadd.f32 %v7260_v23, %v7259_v46  ;;  %v7418_v25 = vpop.f32.mrf.mxu3 }
0x1362   : > { %v7419_v22 = vadd.f32 %v7418_v25, %v3322_v48  ;;  %v7442_v6 = vor.u32 1.1754944e-38, %v7441_v13  ;;  %vm7440_vm13 = vcmp.eq.f32.partialorder %v7439_v17, 8.507059e+37 }
0x1363   : > { %v7262_v30 = vrot.slane %v7261_v24, 1 }
0x1364   : > { %v9471_v16 = vmul.f32 -1.442695, %v7419_v22 }
0x1365   : > { %v7263_v31 = vadd.f32 %v7262_v30, %v7261_v24 }
0x1366   : > { %10301 = vpow2.f32 %v9471_v16  ;;  %v10189_v16 = vld [vmem:[#allocation35] ss:$0 sm:$0xff] }
0x1367   : > { %v7264_v52 = vmul.f32 %v12505_v29, %v7263_v31  ;;  %v9794_v29 = vld [vmem:[%s13562_s1] sm:$0xff]  ;;  %10303 = vrcp.f32 %v7428_v58  ;;  %s13572_s1 = smov %s13571_s22 }
0x1369   : > { %v7274_v34 = vpack.c.bf16 %v7264_v52, %v7264_v52  ;;  %v7420_v35 = vpop.f32.mrf.mxu3  ;;  %v10187_v52 = vld [vmem:[#allocation31] ss:$0 sm:$0xff] }
0x136a   : > { %9534 = vmatmul.msk.bf16.vlgmr.msrb.gmra.mxu2 %vm3528_vm3, %v12841_v1  ;;  %9543 = vmatmul.msk.bf16.vlgmr.msrb.gmra.mxu3 %vm3528_vm3, %v12841_v1 }
0x136b   : > { %9440 = vmatmul.msk.bf16.vlgmr.msrb.gmra.mxu0 %vm3528_vm3, %v7274_v34  ;;  %9449 = vmatmul.msk.bf16.vlgmr.msrb.gmra.mxu1 %vm3528_vm3, %v7274_v34 }
0x136c   : > { %7606 = vmatpush.bf16.msrb.mxu0 %v9795_v32  ;;  %7631 = vmatpush.bf16.msrb.mxu1 %v9797_v33  ;;  %v10302_v57 = vpop.eup %10301  ;;  %v10188_v32 = vld [vmem:[#allocation31 + $0x1] ss:$0 sm:$0xff] }
0x136d   : > { %v7429_v28 = vadd.f32 1.0, %v10302_v57  ;;  %v10304_v26 = vpop.eup %10303 }
0x136e   : > { %v7431_v60 = vmul.f32 %v10304_v26, %v7428_v58  ;;  %vm7436_vm7 = vweird.f32 %v10304_v26 }
0x136f   : > { %10305 = vrcp.f32 %v7429_v28  ;;  %v7456_v18 = vand.u32 2147483648, %v7429_v28  ;;  %vm13030_vm11 = vmor %vm7435_vm14, %vm7436_vm7  ;;  %vm7450_vm2 = vweird.f32 %v7429_v28  ;;  %v7454_v27 = vand.u32 2147483647, %v7429_v28 }
0x1370   : > { %7607 = vmatpush.bf16.msrb.mxu0 %v9794_v29  ;;  %7632 = vmatpush.bf16.msrb.mxu1 %v9796_v38  ;;  %v7432_v36 = vsub.f32 1.0, %v7431_v60 }
0x1371   : > { %v7457_v25 = vor.u32 1.1754944e-38, %v7456_v18  ;;  %vm7455_vm7 = vcmp.eq.f32.partialorder %v7454_v27, 8.507059e+37 }
0x1372   : > { %v7433_v2 = vmul.f32 %v10304_v26, %v7432_v36 }
0x1374   : > { %v7434_v4 = vadd.f32 %v10304_v26, %v7433_v2 }
0x1375   : > { %v10306_v59 = vpop.eup %10305 }
0x1376   : > { %v7446_v61 = vmul.f32 %v10306_v59, %v7429_v28  ;;  %vm7451_vm12 = vweird.f32 %v10306_v59  ;;  %v7438_v44 = vsel %vm13030_vm11, %v10304_v26, %v7434_v4 }
0x1377   : > { %vm7452_vm4 = vmor %vm7450_vm2, %vm7451_vm12  ;;  %v7443_v30 = vsel %vm7440_vm13, %v7442_v6, %v7438_v44 }
0x1378   : > { %v7447_v0 = vsub.f32 1.0, %v7446_v61  ;;  %v13036_v35 = vadd.f32 1.0, %v7443_v30 }
0x137a   : > { %9570 = vmatmul.msk.bf16.vlgmr.msra.gmra.mxu2 %vm3528_vm3, %v12841_v1  ;;  %9579 = vmatmul.msk.bf16.vlgmr.msra.gmra.mxu3 %vm3528_vm3, %v12841_v1  ;;  %v7448_v3 = vmul.f32 %v10306_v59, %v7447_v0  ;;  %v7814_v57 = vmul.f32 %v13036_v35, %v13036_v35 }
0x137b   : > { %9480 = vmatmul.msk.bf16.vlgmr.msra.gmra.mxu0 %vm3528_vm3, %v12987_v19  ;;  %9489 = vmatmul.msk.bf16.vlgmr.msra.gmra.mxu1 %vm3528_vm3, %v12987_v19 }
0x137c   : > { %7722 = vmatpush.bf16.msra.mxu0 %v9779_v39  ;;  %7747 = vmatpush.bf16.msra.mxu1 %v9781_v47  ;;  %v7449_v62 = vadd.f32 %v10306_v59, %v7448_v3  ;;  %v10185_v47 = vld [vmem:[#allocation37] ss:$0 sm:$0xff]  ;;  %v7816_v3 = vmul.f32 0.25, %v7814_v57 }
0x137e   : > { %v7453_v46 = vsel %vm7452_vm4, %v10306_v59, %v7449_v62  ;;  %v7818_v18 = vperm.slane %v7816_v3, 0 }
0x137f   : > { %v7458_v31 = vsel %vm7455_vm7, %v7457_v25, %v7453_v46 }
0x1380   : > { %7723 = vmatpush.bf16.msra.mxu0 %v9778_v55  ;;  %7748 = vmatpush.bf16.msra.mxu1 %v9780_v40  ;;  %v13038_v38 = vadd.f32 1.0, %v7458_v31  ;;  %v10186_v55 = vld [vmem:[#allocation37 + $0x1] ss:$0 sm:$0xff] }
0x1382   : > { %v7815_v58 = vmul.f32 %v13038_v38, %v13038_v38 }
0x138b   : > { %9516 = vmatmul.msk.bf16.vlgmr.msrb.gmra.mxu0 %vm3528_vm3, %v12987_v19  ;;  %9525 = vmatmul.msk.bf16.vlgmr.msrb.gmra.mxu1 %vm3528_vm3, %v12987_v19 }
0x139b   : > { %9552 = vmatmul.msk.bf16.vlgmr.msra.gmra.mxu0 %vm3528_vm3, %v12841_v1  ;;  %9561 = vmatmul.msk.bf16.vlgmr.msra.gmra.mxu1 %vm3528_vm3, %v12841_v1 }
0x13dd   : > { %v7551_v45 = vpop.f32.mrf.mxu2  ;;  %v13028_v41 = vpop.f32.mrf.mxu3 }
0x13de   : > { %v7552_v28 = vadd.f32 %v10185_v47, %v7551_v45  ;;  %v7577_v36 = vadd.f32 %v10186_v55, %v13028_v41 }
0x13e0   : > { %v7580_v45 = vmul.f32 %v12214_v50, %v7552_v28 }
0x13e2   : > { %v7820_v46 = vmul.f32 %v7818_v18, %v7580_v45 }
0x13e5   : > { %v7553_v5 = vpop.f32.mrf.mxu2  ;;  %v7578_v7 = vpop.f32.mrf.mxu3 }
0x13e6   : > { %v7817_v5 = vmul.f32 0.25, %v7815_v58 }
0x13e8   : > { %v7299_v37 = vpop.f32.mrf.mxu0  ;;  %v7324_v42 = vpop.f32.mrf.mxu1  ;;  %v7819_v27 = vperm.slane %v7817_v5, 0 }
0x13e9   : > { %v7300_v9 = vadd.f32 %v7299_v37, %v3319_v11  ;;  %v7325_v10 = vadd.f32 %v7324_v42, %v3320_v12  ;;  %v7581_v42 = vmul.f32 %v12214_v50, %v7577_v36 }
0x13eb   : > { %v9450_v51 = vmul.f32 -1.442695, %v7300_v9  ;;  %v9451_v54 = vmul.f32 -1.442695, %v7325_v10 }
0x13ed   : > { %10307 = vpow2.f32 %v9450_v51  ;;  %v7667_v23 = vpop.f32.mrf.mxu2  ;;  %v7692_v24 = vpop.f32.mrf.mxu3 }
0x13ee   : > { %10309 = vpow2.f32 %v9451_v54  ;;  %v7668_v21 = vadd.f32 %v10187_v52, %v7667_v23  ;;  %v7693_v48 = vadd.f32 %v10188_v32, %v7692_v24  ;;  %v10191_v54 = vld [vmem:[#allocation34] ss:$0 sm:$0xff]  ;;  %v10192_v24 = vld [vmem:[#allocation34 + $0x1] ss:$0 sm:$0xff]  ;;  %v7821_v32 = vmul.f32 %v7819_v27, %v7581_v42 }
0x13f0   : > { %v7301_v33 = vpop.f32.mrf.mxu0  ;;  %v7326_v34 = vpop.f32.mrf.mxu1  ;;  %v7696_v26 = vmul.f32 %v12248_v53, %v7668_v21  ;;  %v7697_v59 = vmul.f32 %v12248_v53, %v7693_v48  ;;  %v7823_v55 = vpack.c.bf16 %v7821_v32, %v7821_v32 }
0x13f2   : > { %v7944_v4 = vpack.c.bf16 %v7696_v26, %v7696_v26  ;;  %v7945_v13 = vpack.c.bf16 %v7697_v59, %v7697_v59 }
0x13f3   : > { %v10308_v29 = vpop.eup %10307 }
0x13f4   : > { %v10310_v39 = vpop.eup %10309  ;;  %v13040_v40 = vadd.f32 1.0, %v10308_v29  ;;  %v7950_v31 = vsel %vm3451_vm0, %v7944_v4, 0  ;;  %v7969_v52 = vsel %vm3451_vm0, %v7945_v13, 0  ;;  %v7822_v29 = vpack.c.bf16 %v7820_v46, %v7820_v46 }
0x13f5   : > { %v13042_v43 = vadd.f32 1.0, %v10310_v39  ;;  %v7669_v22 = vpop.f32.mrf.mxu2  ;;  %v7694_v8 = vpop.f32.mrf.mxu3 }
0x13f6   : > { %10311 = vrcp.f32 %v13040_v40  ;;  %v10193_v22 = vld [vmem:[#allocation38] ss:$0 sm:$0xff]  ;;  %v10194_v8 = vld [vmem:[#allocation38 + $0x1] ss:$0 sm:$0xff]  ;;  %vm7341_vm14 = vweird.f32 %v13040_v40  ;;  %v7347_v57 = vand.u32 2147483648, %v13040_v40 }
0x13f7   : > { %10313 = vrcp.f32 %v13042_v43  ;;  %v7362_v58 = vand.u32 2147483648, %v13042_v43  ;;  %v7345_v26 = vand.u32 2147483647, %v13040_v40  ;;  %vm7356_vm2 = vweird.f32 %v13042_v43 }
0x13f8   : > { %v7493_v60 = vpop.f32.mrf.mxu0  ;;  %v7518_v61 = vpop.f32.mrf.mxu1  ;;  %v7360_v59 = vand.u32 2147483647, %v13042_v43 }
0x13f9   : > { %v7494_v0 = vadd.f32 %v10189_v16, %v7493_v60  ;;  %v7519_v2 = vadd.f32 %v10190_v56, %v7518_v61  ;;  %vm7346_vm7 = vcmp.eq.f32.partialorder %v7345_v26, 8.507059e+37 }
0x13fb   : > { %v7522_v7 = vmul.f32 %v12214_v50, %v7494_v0  ;;  %v7523_v11 = vmul.f32 %v12214_v50, %v7519_v2 }
0x13fc   : > { %v13055_v12 = vpop.eup %10311 }
0x13fd   : > { %v13058_v37 = vpop.eup %10313  ;;  %v7337_v41 = vmul.f32 %v13055_v12, %v13040_v40  ;;  %v7824_v62 = vpack.c.bf16 %v7522_v7, %v7522_v7  ;;  %v7825_v9 = vpack.c.bf16 %v7523_v11, %v7523_v11  ;;  %v7783_v10 = vpop.f32.mrf.mxu2  ;;  %vm7342_vm13 = vweird.f32 %v13055_v12 }
0x13fe   : > { %v7808_v17 = vpop.f32.mrf.mxu3  ;;  %v7352_v20 = vmul.f32 %v13058_v37, %v13042_v43  ;;  %v7784_v39 = vadd.f32 %v10191_v54, %v7783_v10  ;;  %vm7357_vm12 = vweird.f32 %v13058_v37  ;;  %vm13080_vm11 = vmor %vm7341_vm14, %vm7342_vm13  ;;  %v7348_v40 = vor.u32 1.1754944e-38, %v7347_v57 }
0x13ff   : > { %v7338_v51 = vsub.f32 1.0, %v7337_v41  ;;  %v7830_v44 = vsel %vm3451_vm0, %v7824_v62, 0  ;;  %v7849_v6 = vsel %vm3451_vm0, %v7825_v9, 0  ;;  %v7809_v47 = vadd.f32 %v10192_v24, %v7808_v17  ;;  %vm7358_vm4 = vmor %vm7356_vm2, %vm7357_vm12 }
0x1400   : > { %v7353_v23 = vsub.f32 1.0, %v7352_v20  ;;  %v7495_v25 = vpop.f32.mrf.mxu0  ;;  %v7520_v30 = vpop.f32.mrf.mxu1  ;;  %7839 = vmatpush.bf16.xpose.msrb.mxu0 %v7830_v44  ;;  %7858 = vmatpush.bf16.xpose.msrb.mxu1 %v7849_v6  ;;  %v7812_v60 = vmul.f32 %v12248_v53, %v7784_v39  ;;  %v7363_v11 = vor.u32 1.1754944e-38, %v7362_v58  ;;  %vm7361_vm13 = vcmp.eq.f32.partialorder %v7360_v59, 8.507059e+37  ;;  %v10195_v44 = vld [vmem:[#allocation32] ss:$0 sm:$0xff] }
0x1401   : > { %v7339_v33 = vmul.f32 %v13055_v12, %v7338_v51  ;;  %v7813_v61 = vmul.f32 %v12248_v53, %v7809_v47  ;;  %v10196_v6 = vld [vmem:[#allocation32 + $0x1] ss:$0 sm:$0xff] }
0x1402   : > { %v7354_v34 = vmul.f32 %v13058_v37, %v7353_v23  ;;  %v8010_v4 = vpack.c.bf16 %v7812_v60, %v7812_v60 }
0x1403   : > { %v7340_v16 = vadd.f32 %v13055_v12, %v7339_v33  ;;  %v8011_v13 = vpack.c.bf16 %v7813_v61, %v7813_v61 }
0x1404   : > { %v7355_v56 = vadd.f32 %v13058_v37, %v7354_v34 }
0x1405   : > { %v7785_v21 = vpop.f32.mrf.mxu2  ;;  %v7344_v5 = vsel %vm13080_vm11, %v13055_v12, %v7340_v16  ;;  %v8035_v27 = vsel %vm3486_vm1, %v8011_v13, 0 }
0x1406   : > { %v7810_v48 = vpop.f32.mrf.mxu3  ;;  %v7359_v7 = vsel %vm7358_vm4, %v13058_v37, %v7355_v56  ;;  %v7349_v42 = vsel %vm7346_vm7, %v7348_v40, %v7344_v5 }
0x1407   : > { %9580 = vmatmul.msk.bf16.vlgmr.msrb.gmra.mxu0 %vm3451_vm0, %v7822_v29  ;;  %9581 = vmatmul.msk.bf16.vlgmr.msrb.gmra.mxu1 %vm3451_vm0, %v7823_v55  ;;  %v7364_v41 = vsel %vm7361_vm13, %v7363_v11, %v7359_v7  ;;  %v13097_v17 = vadd.f32 1.0, %v7349_v42 }
0x1408   : > { %7959 = vmatpush.bf16.xpose.msra.mxu0 %v7950_v31  ;;  %7978 = vmatpush.bf16.xpose.msra.mxu1 %v7969_v52  ;;  %v7609_v36 = vpop.f32.mrf.mxu0  ;;  %v7634_v0 = vpop.f32.mrf.mxu1  ;;  %v13099_v37 = vadd.f32 1.0, %v7364_v41 }
0x1409   : > { %v7610_v2 = vadd.f32 %v10193_v22, %v7609_v36  ;;  %v7635_v3 = vadd.f32 %v10194_v8, %v7634_v0  ;;  %v7934_v51 = vmul.f32 %v13097_v17, %v13097_v17 }
0x140a   : > { %v7935_v54 = vmul.f32 %v13099_v37, %v13099_v37 }
0x140b   : > { %v7638_v45 = vmul.f32 %v12214_v50, %v7610_v2  ;;  %v7639_v43 = vmul.f32 %v12214_v50, %v7635_v3  ;;  %v8016_v50 = vsel %vm3486_vm1, %v8010_v4, 0  ;;  %v7936_v46 = vmul.f32 0.25, %v7934_v51 }
0x140c   : > { %v7937_v23 = vmul.f32 0.25, %v7935_v54  ;;  %vm13576_vm1 = vcmask 259072  }
0x140d   : > { %v7890_v62 = vpack.c.bf16 %v7638_v45, %v7638_v45  ;;  %v7891_v9 = vpack.c.bf16 %v7639_v43, %v7639_v43  ;;  %v7938_v32 = vperm.slane %v7936_v46, 0 }
0x140e   : > { %v7939_v34 = vperm.slane %v7937_v23, 0 }
0x140f   : > { %v7896_v10 = vsel %vm4011_vm6, %v7890_v62, 0  ;;  %v7915_v12 = vsel %vm4011_vm6, %v7891_v9, 0 }
0x1410   : > { %v7611_v18 = vpop.f32.mrf.mxu0  ;;  %v7636_v20 = vpop.f32.mrf.mxu1  ;;  %7905 = vmatpush.bf16.msrb.mxu2 %v7896_v10  ;;  %7924 = vmatpush.bf16.msrb.mxu3 %v7915_v12 }
0x1414   : > { %8025 = vmatpush.bf16.msra.mxu2 %v8016_v50  ;;  %8044 = vmatpush.bf16.msra.mxu3 %v8035_v27 }
0x1418   : > { %v7725_v24 = vpop.f32.mrf.mxu0  ;;  %v7750_v25 = vpop.f32.mrf.mxu1 }
0x1419   : > { %v7726_v30 = vadd.f32 %v10195_v44, %v7725_v24  ;;  %v7751_v31 = vadd.f32 %v10196_v6, %v7750_v25  ;;  %v9811_v25 = vld [vmem:[%s13569_s26 + $0x8] sm:$0xff]  ;;  %s2943_s26 = scalar_lea.vmem %s11712_s19, %s12130_s27 }
0x141b   : > { %v7754_v52 = vmul.f32 %v12248_v53, %v7726_v30  ;;  %v7755_v33 = vmul.f32 %v12248_v53, %v7751_v31  ;;  %v9810_v31 = vld [vmem:[%s13570_s0] sm:$0xff]  ;;  %s9627_s0 = sshll.u32 %s11745_s28, 3 }
0x141c   : > { %s8234_s27 = scalar_lea.hbm %s11717_s10, %s9627_s0  ;;  %s11047_s0 = scalar_lea.hbm %s11717_s10, 16 }
0x141d   : > { %v7940_v29 = vmul.f32 %v7938_v32, %v7754_v52  ;;  %v7941_v39 = vmul.f32 %v7939_v34, %v7755_v33 }
0x141f   : > { %v7942_v47 = vpack.c.bf16 %v7940_v29, %v7940_v29  ;;  %v7943_v55 = vpack.c.bf16 %v7941_v39, %v7941_v39 }
0x1420   : > { %v7727_v21 = vpop.f32.mrf.mxu0  ;;  %v7752_v48 = vpop.f32.mrf.mxu1 }
0x1421   : > { %9584 = vmatmul.msk.bf16.vlgmr.msra.gmra.mxu0 %vm3451_vm0, %v7942_v47  ;;  %9585 = vmatmul.msk.bf16.vlgmr.msra.gmra.mxu1 %vm3451_vm0, %v7943_v55  ;;  %v9812_v21 = vld [vmem:[%s13571_s22] sm:$0xff]  ;;  %v9813_v48 = vld [vmem:[%s13572_s1 + $0x8] sm:$0xff]  ;;  %s2929_s22 = sand.u32 1, %s11135_s18  }
0x1422   : > { %8072 = vmatpush.bf16.msrb.mxu0 %v9812_v21  ;;  %8094 = vmatpush.bf16.msrb.mxu1 %v9813_v48  ;;  %s8221_s28 = scalar_lea.sflag [#allocation7], %s2929_s22 }
0x1484   : > { %v7841_v22 = vpop.f32.mrf.mxu0  ;;  %v7860_v8 = vpop.f32.mrf.mxu1 }
0x1485   : > { %v7864_v16 = vsel %vm12266_vm8, %v7841_v22, -1e+30  ;;  %v7865_v56 = vsel %vm12266_vm8, %v7860_v8, -1e+30  ;;  %v9807_v22 = vld [vmem:[%s13573_s9 + $0x8] sm:$0xff]  ;;  %v9806_v8 = vld [vmem:[%s13574_s2] sm:$0xff] }
0x1486   : > { %v7869_v53 = vsel %vm5523_vm15, %v7865_v56, -inf  ;;  %v7866_v57 = vsel %vm5523_vm15, %v7864_v16, -inf  ;;  %8199 = vmatpush.bf16.msra.mxu1 %v9807_v22  ;;  %s8706_s9 = sshll.u32 %s2929_s22, 3  ;;  %s8238_s2 = sshll.u32 %s8234_s27, 4  ;;  %s8239_s2 = int_to_ptr.hbm [resolvable:$true] %s8238_s2 }
0x1487   : > { %7870 = vmax.xlane.f32.xlu2 %v7869_v53  ;;  %7867 = vmax.xlane.f32.xlu1 %v7866_v57  ;;  %v7931_v53 = vperm.slane %v13038_v38, 0  ;;  %v7930_v57 = vperm.slane %v13036_v35, 0  ;;  %v8050_v38 = vperm.slane %v13097_v17, 0  ;;  %s2931_s1 = scalar_lea.vmem [#allocation43], %s8706_s9 }
0x148a   : > { %8200 = vmatpush.bf16.msra.mxu1 %v9806_v8 }
0x148c   : > { %v7843_v58 = vpop.f32.mrf.mxu0  ;;  %v7862_v28 = vpop.f32.mrf.mxu1 }
0x149e   : > { %v7961_v26 = vpop.f32.mrf.mxu0  ;;  %v7980_v59 = vpop.f32.mrf.mxu1 }
0x149f   : > { %v7984_v60 = vsel %vm12407_vm10, %v7961_v26, -1e+30  ;;  %v7985_v61 = vsel %vm12407_vm10, %v7980_v59, -1e+30 }
0x14a0   : > { %v7989_v36 = vsel %vm3872_vm5, %v7985_v61, -inf  ;;  %v7986_v15 = vsel %vm3872_vm5, %v7984_v60, -inf }
0x14a1   : > { %7990 = vmax.xlane.f32.xlu1 %v7989_v36  ;;  %7987 = vmax.xlane.f32.xlu0 %v7986_v15  ;;  %v8051_v15 = vperm.slane %v13099_v37, 0 }
0x14a6   : > { %v7963_v0 = vpop.f32.mrf.mxu0  ;;  %v7982_v2 = vpop.f32.mrf.mxu1 }
0x14fa   : > { %v7871_v3 = vpop.xlane.xlu2 %7870  ;;  %v7868_v5 = vpop.xlane.xlu1 %7867 }
0x14fb   : > { %v7873_v7 = vsub.f32 %v7865_v56, %v7871_v3  ;;  %v7872_v40 = vsub.f32 %v7864_v16, %v7868_v5  ;;  %v9808_v16 = vld [vmem:[%s13575_s3] sm:$0xff]  ;;  %v9809_v56 = vld [vmem:[%s13575_s3 + $0x8] sm:$0xff]  ;;  %s11041_s3 = sshra.s32 %s8239_s2, 4  ;;  %s11042_s3 = int_to_ptr.hbm [resolvable:$true] %s11041_s3 }
0x14fc   : > { %8172 = vmatpush.bf16.msra.mxu0 %v9809_v56  ;;  %s11043_s4 = scalar_lea.hbm %s11042_s3, 8  ;;  %p11048_p8 = scmp.lt.s32.totalorder %s11042_s3, %s11717_s10 }
0x14fd   : > { %v7876_v11 = vmul.f32 1.442695, %v7873_v7  ;;  %v7874_v45 = vmul.f32 1.442695, %v7872_v40  ;;  %p11044_p6 = scmp.ne.s32.totalorder %s11042_s3, %s11043_s4  ;;  %p11049_p9 = scmp.lt.s32.totalorder %s11047_s0, %s11043_s4 }
0x14ff   : > { %10315 = vpow2.f32 %v7876_v11  ;;  %p11045_p4 = pnand %p11044_p6, %p11762_p1  ;;  %p11050_p10 = por %p11049_p9, %p11048_p8 }
0x1500   : > { %10317 = vpow2.f32 %v7874_v45 }
0x1501   : > { %p11046_p7 = pneg %p11045_p4 }
0x1503   : > { %p11051_p11 = pnand %p11050_p10, %p11046_p7 }
0x1505   : > { %v10316_v43 = vpop.eup %10315 }
0x1506   : > { %v10318_v4 = vpop.eup %10317  ;;  %v7881_v63 = vsel %vm5523_vm15, %v10316_v43, 0.0 }
0x1507   : > { %v7878_v13 = vsel %vm5523_vm15, %v10318_v4, 0.0  ;;  %7882 = vadd.xlane.f32.xlu0 %v7881_v63 }
0x1508   : > { %7879 = vadd.xlane.f32.xlu2 %v7878_v13  ;;  %v10197_v13 = vld [vmem:[#allocation29] ss:$0 sm:$0xff] }
0x1514   : > { %v7991_v42 = vpop.xlane.xlu1 %7990  ;;  %v7988_v41 = vpop.xlane.xlu0 %7987 }
0x1515   : > { %v7993_v62 = vsub.f32 %v7985_v61, %v7991_v42  ;;  %v7992_v9 = vsub.f32 %v7984_v60, %v7988_v41 }
0x1517   : > { %v7996_v10 = vmul.f32 1.442695, %v7993_v62  ;;  %v7994_v12 = vmul.f32 1.442695, %v7992_v9 }
0x1519   : > { %10319 = vpow2.f32 %v7996_v10 }
0x151a   : > { %10321 = vpow2.f32 %v7994_v12 }
0x151f   : > { %v10320_v18 = vpop.eup %10319 }
0x1520   : > { %v10322_v20 = vpop.eup %10321  ;;  %v8001_v50 = vsel %vm3872_vm5, %v10320_v18, 0.0 }
0x1521   : > { %8002 = vadd.xlane.f32.xlu2 %v8001_v50  ;;  %v7998_v27 = vsel %vm3872_vm5, %v10322_v20, 0.0 }
0x1522   : > { %7999 = vadd.xlane.f32.xlu1 %v7998_v27 }
0x157a   : > { %v7883_v51 = vpop.xlane.xlu0 %7882 }
0x157b   : > { %v7880_v54 = vpop.xlane.xlu2 %7879  ;;  %10323 = vrcp.f32 %v7883_v51 }
0x157c   : > { %10325 = vrcp.f32 %v7880_v54 }
0x1581   : > { %v10324_v44 = vpop.eup %10323 }
0x1582   : > { %v10326_v6 = vpop.eup %10325  ;;  %v7887_v46 = vmul.f32 %v10324_v44, %v10316_v43 }
0x1583   : > { %v7886_v23 = vmul.f32 %v10326_v6, %v10318_v4  ;;  %v10198_v6 = vld [vmem:[#allocation28] ss:$0 sm:$0xff] }
0x1584   : > { %v7889_v24 = vpack.c.bf16 %v7887_v46, %v7887_v46 }
0x1585   : > { %v7888_v30 = vpack.c.bf16 %v7886_v23, %v7886_v23 }
0x1586   : > { %9583 = vmatmul.msk.bf16.vlgmr.msrb.gmra.mxu3 %vm3955_vm9, %v7889_v24 }
0x1587   : > { %9582 = vmatmul.msk.bf16.vlgmr.msrb.gmra.mxu2 %vm3955_vm9, %v7888_v30  ;;  %8150 = vmatpush.bf16.msrb.mxu3 %v9808_v16 }
0x1588   : > { %8121 = vmatpush.bf16.msrb.mxu2 %v9811_v25 }
0x158c   : > { %8122 = vmatpush.bf16.msrb.mxu2 %v9810_v31 }
0x1594   : > { %v8003_v52 = vpop.xlane.xlu2 %8002 }
0x1595   : > { %10327 = vrcp.f32 %v8003_v52  ;;  %v8000_v32 = vpop.xlane.xlu1 %7999 }
0x1596   : > { %10329 = vrcp.f32 %v8000_v32 }
0x159b   : > { %v10328_v33 = vpop.eup %10327 }
0x159c   : > { %v10330_v34 = vpop.eup %10329  ;;  %v8007_v29 = vmul.f32 %v10328_v33, %v10320_v18 }
0x159d   : > { %v8006_v39 = vmul.f32 %v10330_v34, %v10322_v20 }
0x159e   : > { %v8009_v47 = vpack.c.bf16 %v8007_v29, %v8007_v29 }
0x159f   : > { %v8008_v55 = vpack.c.bf16 %v8006_v39, %v8006_v39 }
0x15a0   : > { %9587 = vmatmul.msk.bf16.vlgmr.msra.gmra.mxu3 %vm3872_vm5, %v8009_v47 }
0x15a1   : > { %9586 = vmatmul.msk.bf16.vlgmr.msra.gmra.mxu2 %vm3872_vm5, %v8008_v55  ;;  %vm13577_vm5 = vmmov %vm13576_vm1 }
0x15b1   : > { %9606 = vmatmul.msk.bf16.vlgmr.msrb.gmra.mxu2 %vm3528_vm3, %v12987_v19 }
0x1609   : > { %v7926_v58 = vpop.f32.mrf.mxu3 }
0x160a   : > { %v7907_v28 = vpop.f32.mrf.mxu2  ;;  %v7933_v26 = vmul.f32 %v7931_v53, %v7926_v58 }
0x160b   : > { %v7932_v19 = vmul.f32 %v7930_v57, %v7907_v28 }
0x160c   : > { %v8055_v59 = vpack.c.bf16 %v7933_v26, %v7933_v26 }
0x160d   : > { %v8054_v60 = vpack.c.bf16 %v7932_v19, %v7932_v19 }
0x160e   : > { %9597 = vmatmul.msk.bf16.vlgmr.msrb.gmra.mxu1 %vm3451_vm0, %v8055_v59 }
0x160f   : > { %9592 = vmatmul.msk.bf16.vlgmr.msrb.gmra.mxu0 %vm3451_vm0, %v8054_v60 }
0x1611   : > { %v7928_v61 = vpop.f32.mrf.mxu3 }
0x1612   : > { %v7909_v36 = vpop.f32.mrf.mxu2 }
0x161e   : > { %9625 = vmatmul.msk.bf16.vlgmr.msra.gmra.mxu1 %vm3528_vm3, %v12841_v1 }
0x1623   : > { %v8046_v35 = vpop.f32.mrf.mxu3 }
0x1624   : > { %v8027_v0 = vpop.f32.mrf.mxu2  ;;  %v8053_v2 = vmul.f32 %v8051_v15, %v8046_v35 }
0x1625   : > { %v8052_v3 = vmul.f32 %v8050_v38, %v8027_v0 }
0x1626   : > { %v8133_v5 = vpack.c.bf16 %v8053_v2, %v8053_v2 }
0x1627   : > { %v8132_v7 = vpack.c.bf16 %v8052_v3, %v8052_v3 }
0x1628   : > { %9616 = vmatmul.msk.bf16.vlgmr.msra.gmra.mxu0 %vm3451_vm0, %v8133_v5 }
0x1629   : > { %9611 = vmatmul.msk.bf16.vlgmr.msrb.gmra.mxu3 %vm3451_vm0, %v8132_v7  ;;  %vm13578_vm0 = vmmov %vm13576_vm1 }
0x162b   : > { %v8048_v40 = vpop.f32.mrf.mxu3 }
0x162c   : > { %v8029_v11 = vpop.f32.mrf.mxu2 }
0x1634   : > { %v8124_v45 = vpop.f32.mrf.mxu2 }
0x163c   : > { %v8126_v1 = vpop.f32.mrf.mxu2 }
0x168b   : > { %v8096_v43 = vpop.f32.mrf.mxu1 }
0x168c   : > { %v8074_v37 = vpop.f32.mrf.mxu0  ;;  %v8101_v17 = vsel %vm13576_vm1, %v8096_v43, 0.0 }
0x168d   : > { %v8100_v4 = vsel %vm13577_vm5, %v8074_v37, 0.0 }
0x168e   : > { %v8102_v63 = vadd.f32 %v8101_v17, %v8100_v4 }
0x1690   : > { %v8125_v42 = vadd.f32 %v8124_v45, %v8102_v63 }
0x1692   : > { %v8131_v41 = vadd.f32 %v10197_v13, %v8125_v42 }
0x1693   : > { %v8098_v62 = vpop.f32.mrf.mxu1 }
0x1694   : > { %v8211_v9 = vadd.f32 %v12980_v14, %v8131_v41  ;;  %v8076_v10 = vpop.f32.mrf.mxu0 }
0x1696   : > { %8214 = vst.msk [vmem:[%s2943_s26] sm:$0x3f] %vm13578_vm0, %v8211_v9  ;;  %s8236_s26 = sshll.u32 %s2931_s1, 4  ;;  %s8237_s26 = int_to_ptr.vmem [resolvable:$true] %s8236_s26 }
0x169b   : > { %v8202_v12 = vpop.f32.mrf.mxu1 }
0x16a3   : > { %v8204_v18 = vpop.f32.mrf.mxu1 }
0x16a5   : > { %v8174_v20 = vpop.f32.mrf.mxu0 }
0x16a6   : > { %v8179_v27 = vsel %vm3528_vm3, %v8174_v20, 0.0 }
0x16ac   : > { %v8152_v50 = vpop.f32.mrf.mxu3 }
0x16ad   : > { %v8178_v51 = vsel %vm3528_vm3, %v8152_v50, 0.0  ;;  %v8176_v54 = vpop.f32.mrf.mxu0 }
0x16ae   : > { %v8180_v44 = vadd.f32 %v8179_v27, %v8178_v51 }
0x16b0   : > { %v8203_v14 = vadd.f32 %v8202_v12, %v8180_v44 }
0x16b2   : > { %v8209_v46 = vadd.f32 %v10198_v6, %v8203_v14 }
0x16b4   : > { %v8213_v23 = vadd.f32 %v12837_v49, %v8209_v46  ;;  %v8154_v24 = vpop.f32.mrf.mxu3 }
0x16b6   : > { %8215 = vst.msk [vmem:[%s2931_s1] sm:$0xff] %vm3528_vm3, %v8213_v23 }
0x16b7   : > { %11054 = shalt.err (!%p11051_p11)
}
0x16b8   : > { %9912 = dma.vmem_to_hbm [thread:$0]  (%p11762_p1), %s8237_s26, 128, %s8239_s2, %s8221_s28  }
0x16b9 PF: > { %s13579_s9 = sld [smem:[#allocation139_spill]] }
0x16ba   : > { %s13580_s1 = sld [smem:[#allocation137_spill]] }
0x16bf   : > { %p9966_p12 = scmp.ge.s32.totalorder %s13579_s9, 2 }
0x16c0   : > { %s8257_s27 = sand.u32 1, %s13580_s1  }
0x16c1   : > { %p9915_p13 = pnand %p9966_p12, %p11766_p2  ;;  %s8258_s5 = scalar_lea.sflag [#allocation7], %s8257_s27 }
0x16c3   : > { %p9916_p0 = pneg %p9915_p13 }
0x16c5   : > { %11126 = dma.done.wait (%p9916_p0), %s8258_s5, 128  }
0x16c6   : > { %11128 = vsyncadd (%p9916_p0), %s8258_s5, 4294967168  ;;  %s13582_s26 = sld [smem:[#allocation140_spill]]  ;;  %s13585_s9 = smov %s11135_s18 }
0x16c7   : > { %s13583_s4 = sld [smem:[#allocation138_spill]] }
0x16c8   : > { %s13584_s22 = sld [smem:[#allocation141_spill]] }
0x16cc   : > { %p216_p3 = scmp.ge.s32.totalorder %s13582_s26, 4  }
0x16cd   : > { %s13586_s18 = smov %s13583_s4 }
0x16ce   :  { %218 = sbr.rel (!%p216_p3) target bundleno = 212 (0xd4), region = 600 }
0x16d3   :  { %8264 = vsyncpa [#allocation6], 1 }
0x16d4   :  { %8266 = vsyncpa [#allocation6 + $0x1], 1 }
0x16d5   :  { %8267 = vsyncpa [#allocation9], 1 }
0x16d6   :  { %8268 = vsyncpa [#allocation12], 1 }
0x16d7   :  { %8269 = vsyncpa [#allocation15], 1 }
0x16d8   :  { %8270 = vsyncpa [#allocation18], 1 }
0x16d9   :  { %8271 = vsyncpa [#allocation21], 1 }
0x16da   :  { %8272 = vsyncpa [#allocation24], 1 }
0x16db   :  { %8273 = vsyncpa [#allocation27], 1 }
0x16dc   :  { %8274 = vsyncpa [#allocation30], 1 }
0x16dd   :  { %8275 = vsyncpa [#allocation33], 1 }
0x16de   :  { %8276 = vsyncpa [#allocation36], 1 }
0x16df   :  { %8277 = vsyncpa [#allocation39], 1 }
0x16e0   :  { %8278 = vsyncpa [#allocation42], 1 }
0x16e1   :  { %8279 = vsyncpa [#allocation7], 1 }
0x16e2   :  { %8281 = vsyncpa [#allocation7 + $0x1], 1 }

</bundles_post_ra>
